<compile_context>
chip_gen: v5e
topology: v5e:2x2
jax: 0.10.0
libtpu: 0.0.40
codegen_flags: <defaults>
</compile_context>

<pallas_src>
import jax
import jax.numpy as jnp
from jax.experimental import pallas as pl
from jax.experimental.pallas import tpu as pltpu

_LANE = 128


def _store_with_halo(dst_ref, interior, H, W):
    """Write `interior` (H, W, C) into dst_ref (H+2, W+2, C) with a zero 1-px border.

    All ref stores are offset only along the leading (major) dim, so no packed/masked
    sub-lane stores are needed; the 1-column shift is done as a value-level concat.
    Border rows/cols are (re)written every step so the kernel is correct even when the
    "parallel" batch axis is split across TensorCores (scratch is per-core).
    """
    C = dst_ref.shape[-1]
    zrow = jnp.zeros((1, W + 2, C), dst_ref.dtype)
    zcol = jnp.zeros((H, 1, C), dst_ref.dtype)
    dst_ref[0:1, :, :] = zrow
    dst_ref[H + 1:H + 2, :, :] = zrow
    dst_ref[1:H + 1, :, :] = jnp.concatenate([zcol, interior, zcol], axis=1)


def _im2col_conv3x3(src_ref, w_ref, H, W):
    """3x3 / stride 1 / pad 1 conv as a single (H*W, 9*C) x (9*C, P) bf16 matmul."""
    taps = []
    for kh in range(3):
        for kw in range(3):
            taps.append(src_ref[kh:kh + H, kw:kw + W, :])      # (H, W, C) bf16
    patches = jnp.concatenate(taps, axis=-1).reshape(H * W, -1)  # (H*W, 9*C) bf16
    return jnp.dot(patches, w_ref[...], preferred_element_type=jnp.float32)


def _basic_block_kernel(x_ref, w1_ref, s1_ref, b1_ref, w2_ref, s2_ref, b2_ref,
                        o_ref, xpad_ref, mid_ref):
    # x_ref  : (1, H, W, C)   unpadded, channel-padded input (f32)
    # w*_ref : (9*C, P)       im2col-flattened conv weights (bf16)
    # s*/b*  : (1, P)         folded BN scale / bias (f32)
    # o_ref  : (1, H, W, P)   output (f32, lane-dense)
    # xpad_ref, mid_ref : (H+2, W+2, C|P) bf16 VMEM halo buffers
    _, H, W, C = x_ref.shape
    P = o_ref.shape[-1]

    x = x_ref[0]                                                # (H, W, C) f32

    # --- conv1 -> bn1 (folded) -> relu ---
    _store_with_halo(xpad_ref, x.astype(jnp.bfloat16), H, W)
    acc1 = _im2col_conv3x3(xpad_ref, w1_ref, H, W)              # (H*W, P) f32
    out1 = jnp.maximum(acc1 * s1_ref[...] + b1_ref[...], 0.0)

    # --- conv2 -> bn2 (folded) ---
    _store_with_halo(mid_ref, out1.astype(jnp.bfloat16).reshape(H, W, P), H, W)
    acc2 = _im2col_conv3x3(mid_ref, w2_ref, H, W)               # (H*W, P) f32
    out2 = acc2 * s2_ref[...] + b2_ref[...]

    # --- residual add (f32, straight from the unpadded input block) + relu ---
    residual = x.reshape(H * W, C)
    o_ref[...] = jnp.maximum(out2 + residual, 0.0).reshape(1, H, W, P)


def basic_block_forward(x_nchw, params, eps=1e-5):
    """Fused BasicBlock forward. x_nchw: (N, C, H, W) float32."""
    N, C, H, W = x_nchw.shape
    P = params["w1"].shape[-1]
    assert C == P, "this kernel covers inplanes == planes, stride=1, downsample=None"

    Cp = ((C + _LANE - 1) // _LANE) * _LANE                     # lane-dense channels
    Pp = Cp

    # NCHW -> NHWC, channel-pad to Cp (layout plumbing only; no spatial pad).
    x = jnp.transpose(x_nchw, (0, 2, 3, 1)).astype(jnp.float32)
    x = jnp.pad(x, ((0, 0), (0, 0), (0, 0), (0, Cp - C)))

    # Fold BN (inference mode) into per-channel scale / bias; pad with zeros so the
    # extra lanes stay exactly zero through both stages.
    s1 = params["gamma1"] / jnp.sqrt(params["var1"] + eps)
    b1 = params["beta1"] - params["mean1"] * s1
    s2 = params["gamma2"] / jnp.sqrt(params["var2"] + eps)
    b2 = params["beta2"] - params["mean2"] * s2
    s1 = jnp.pad(s1, (0, Pp - P)).reshape(1, Pp)
    b1 = jnp.pad(b1, (0, Pp - P)).reshape(1, Pp)
    s2 = jnp.pad(s2, (0, Pp - P)).reshape(1, Pp)
    b2 = jnp.pad(b2, (0, Pp - P)).reshape(1, Pp)

    # Pad + flatten conv weights (HWIO) into im2col layout (9*Cin, P), cast to bf16.
    w1 = jnp.pad(params["w1"], ((0, 0), (0, 0), (0, Cp - C), (0, Pp - P)))
    w2 = jnp.pad(params["w2"], ((0, 0), (0, 0), (0, Pp - P), (0, Pp - P)))
    w1f = w1.reshape(9 * Cp, Pp).astype(jnp.bfloat16)
    w2f = w2.reshape(9 * Pp, Pp).astype(jnp.bfloat16)

    out_nhwc = pl.pallas_call(
        _basic_block_kernel,
        out_shape=jax.ShapeDtypeStruct((N, H, W, Pp), jnp.float32),
        grid_spec=pltpu.PrefetchScalarGridSpec(
            num_scalar_prefetch=0,
            grid=(N,),
            in_specs=[
                pl.BlockSpec((1, H, W, Cp), lambda n: (n, 0, 0, 0)),
                pl.BlockSpec((9 * Cp, Pp), lambda n: (0, 0)),
                pl.BlockSpec((1, Pp), lambda n: (0, 0)),
                pl.BlockSpec((1, Pp), lambda n: (0, 0)),
                pl.BlockSpec((9 * Pp, Pp), lambda n: (0, 0)),
                pl.BlockSpec((1, Pp), lambda n: (0, 0)),
                pl.BlockSpec((1, Pp), lambda n: (0, 0)),
            ],
            out_specs=pl.BlockSpec((1, H, W, Pp), lambda n: (n, 0, 0, 0)),
            scratch_shapes=[
                pltpu.VMEM((H + 2, W + 2, Cp), jnp.bfloat16),   # padded input (bf16)
                pltpu.VMEM((H + 2, W + 2, Pp), jnp.bfloat16),   # padded conv1 out (bf16)
            ],
        ),
        compiler_params=pltpu.CompilerParams(
            dimension_semantics=("parallel",)),
    )(x, w1f, s1, b1, w2f, s2, b2)

    return jnp.transpose(out_nhwc[..., :P], (0, 3, 1, 2))       # back to NCHW


def reference_forward(x_nchw, params, eps=1e-5, matmul_dtype=jnp.float32):
    """Pure-JAX reference. matmul_dtype=bfloat16 mirrors the kernel's MXU operand dtype."""
    dn = ("NCHW", "HWIO", "NCHW")
    s1 = params["gamma1"] / jnp.sqrt(params["var1"] + eps)
    b1 = params["beta1"] - params["mean1"] * s1
    s2 = params["gamma2"] / jnp.sqrt(params["var2"] + eps)
    b2 = params["beta2"] - params["mean2"] * s2

    def conv(x, w):
        return jax.lax.conv_general_dilated(
            x.astype(matmul_dtype), w.astype(matmul_dtype), (1, 1),
            ((1, 1), (1, 1)), dimension_numbers=dn,
            preferred_element_type=jnp.float32)

    y = conv(x_nchw, params["w1"])
    y = y * s1[None, :, None, None] + b1[None, :, None, None]
    y = jnp.maximum(y, 0.0)
    y = conv(y, params["w2"])
    y = y * s2[None, :, None, None] + b2[None, :, None, None]
    return jnp.maximum(y + x_nchw, 0.0)


if __name__ == "__main__":
    N, C, H, W = 2, 4, 16, 16
    P = C  # inplanes == planes (stride=1, downsample=None)

    key = jax.random.PRNGKey(0)
    keys = jax.random.split(key, 9)
    x = jax.random.normal(keys[0], (N, C, H, W), jnp.float32)

    params = dict(
        w1=jax.random.normal(keys[1], (3, 3, C, P), jnp.float32) * 0.1,   # HWIO
        w2=jax.random.normal(keys[2], (3, 3, P, P), jnp.float32) * 0.1,   # HWIO
        gamma1=jax.random.uniform(keys[3], (P,), jnp.float32, 0.5, 1.5),
        beta1=jax.random.normal(keys[4], (P,), jnp.float32) * 0.1,
        mean1=jax.random.normal(keys[5], (P,), jnp.float32) * 0.1,
        var1=jax.random.uniform(keys[6], (P,), jnp.float32, 0.5, 1.5),
        gamma2=jax.random.uniform(keys[7], (P,), jnp.float32, 0.5, 1.5),
        beta2=jax.random.normal(keys[8], (P,), jnp.float32) * 0.1,
        mean2=jnp.zeros((P,), jnp.float32),
        var2=jnp.ones((P,), jnp.float32),
    )

    out = jax.block_until_ready(basic_block_forward(x, params))
    assert out.shape == (N, C, H, W)

    # Tight check vs. a reference that uses the same bf16 matmul operands / f32 accum.
    ref_bf16 = reference_forward(x, params, matmul_dtype=jnp.bfloat16)
    err_bf16 = float(jnp.max(jnp.abs(out - ref_bf16)))
    assert jnp.allclose(out, ref_bf16, rtol=1e-2, atol=1e-2), f"max abs err {err_bf16}"

    # Loose sanity check vs. the pure-f32 reference (bf16 MXU operands -> ~1e-2 noise).
    ref_f32 = reference_forward(x, params, matmul_dtype=jnp.float32)
    err_f32 = float(jnp.max(jnp.abs(out - ref_f32)))
    assert jnp.allclose(out, ref_f32, rtol=5e-2, atol=5e-2), f"max abs err {err_f32}"

    print("KERNEL_OK")
</pallas_src>

<mosaic_0001>
module attributes {stable_mosaic.version = 11 : i64} {
  func.func @_basic_block_kernel(%arg0: i32, %arg1: memref<1x16x16x128xf32, #tpu.memory_space<vmem>>, %arg2: memref<1152x128xbf16, #tpu.memory_space<vmem>>, %arg3: memref<1x128xf32, #tpu.memory_space<vmem>>, %arg4: memref<1x128xf32, #tpu.memory_space<vmem>>, %arg5: memref<1152x128xbf16, #tpu.memory_space<vmem>>, %arg6: memref<1x128xf32, #tpu.memory_space<vmem>>, %arg7: memref<1x128xf32, #tpu.memory_space<vmem>>, %arg8: memref<1x16x16x128xf32, #tpu.memory_space<vmem>>, %arg9: memref<18x18x128xbf16, #tpu.memory_space<vmem>>, %arg10: memref<18x18x128xbf16, #tpu.memory_space<vmem>>) attributes {dimension_semantics = [#tpu.dimension_semantics<parallel>], iteration_bounds = array<i64: 2>, scalar_prefetch = 0 : i64, scratch_operands = 2 : i64, tpu.core_type = #tpu.core_type<tc>, window_params = [{transform_indices = @transform_0, window_bounds = array<i64: 1, 16, 16, 128>}, {pipeline_mode = #tpu.pipeline_mode<synchronous>, transform_indices = @transform_1, window_bounds = array<i64: 1152, 128>}, {pipeline_mode = #tpu.pipeline_mode<synchronous>, transform_indices = @transform_2, window_bounds = array<i64: 1, 128>}, {pipeline_mode = #tpu.pipeline_mode<synchronous>, transform_indices = @transform_3, window_bounds = array<i64: 1, 128>}, {pipeline_mode = #tpu.pipeline_mode<synchronous>, transform_indices = @transform_4, window_bounds = array<i64: 1152, 128>}, {pipeline_mode = #tpu.pipeline_mode<synchronous>, transform_indices = @transform_5, window_bounds = array<i64: 1, 128>}, {pipeline_mode = #tpu.pipeline_mode<synchronous>, transform_indices = @transform_6, window_bounds = array<i64: 1, 128>}, {transform_indices = @transform_7, window_bounds = array<i64: 1, 16, 16, 128>}]} {
    %c0 = arith.constant 0 : index
    %c0_0 = arith.constant 0 : index
    %c0_1 = arith.constant 0 : index
    %c0_2 = arith.constant 0 : index
    %0 = vector.load %arg1[%c0, %c0_0, %c0_1, %c0_2] : memref<1x16x16x128xf32, #tpu.memory_space<vmem>>, vector<1x16x16x128xf32>
    %1 = vector.shape_cast %0 : vector<1x16x16x128xf32> to vector<16x16x128xf32>
    %2 = arith.truncf %1 : vector<16x16x128xf32> to vector<16x16x128xbf16>
    %cst = arith.constant 0.000000e+00 : bf16
    %3 = vector.broadcast %cst : bf16 to vector<1x18x128xbf16>
    %cst_3 = arith.constant 0.000000e+00 : bf16
    %4 = vector.broadcast %cst_3 : bf16 to vector<16x1x128xbf16>
    %c0_4 = arith.constant 0 : index
    %c0_5 = arith.constant 0 : index
    %c0_6 = arith.constant 0 : index
    %5 = vector.load %arg9[%c0_4, %c0_5, %c0_6] : memref<18x18x128xbf16, #tpu.memory_space<vmem>>, vector<1x18x128xbf16>
    tpu.vector_store %arg9[%c0_4, %c0_5, %c0_6], %3 {strides = array<i32>} : memref<18x18x128xbf16, #tpu.memory_space<vmem>>, vector<1x18x128xbf16>,
    %c17 = arith.constant 17 : index
    %c0_7 = arith.constant 0 : index
    %c0_8 = arith.constant 0 : index
    %6 = vector.load %arg9[%c17, %c0_7, %c0_8] : memref<18x18x128xbf16, #tpu.memory_space<vmem>>, vector<1x18x128xbf16>
    tpu.vector_store %arg9[%c17, %c0_7, %c0_8], %3 {strides = array<i32>} : memref<18x18x128xbf16, #tpu.memory_space<vmem>>, vector<1x18x128xbf16>,
    %7 = tpu.concatenate %4, %2, %4 in 1 : vector<16x1x128xbf16>, vector<16x16x128xbf16>, vector<16x1x128xbf16> -> vector<16x18x128xbf16>
    %c1 = arith.constant 1 : index
    %c0_9 = arith.constant 0 : index
    %c0_10 = arith.constant 0 : index
    %8 = vector.load %arg9[%c1, %c0_9, %c0_10] : memref<18x18x128xbf16, #tpu.memory_space<vmem>>, vector<16x18x128xbf16>
    tpu.vector_store %arg9[%c1, %c0_9, %c0_10], %7 {strides = array<i32>} : memref<18x18x128xbf16, #tpu.memory_space<vmem>>, vector<16x18x128xbf16>,
    %c0_11 = arith.constant 0 : index
    %c0_12 = arith.constant 0 : index
    %c0_13 = arith.constant 0 : index
    %9 = vector.load %arg9[%c0_11, %c0_12, %c0_13] : memref<18x18x128xbf16, #tpu.memory_space<vmem>>, vector<16x16x128xbf16>
    %c0_14 = arith.constant 0 : index
    %c1_15 = arith.constant 1 : index
    %c0_16 = arith.constant 0 : index
    %10 = vector.load %arg9[%c0_14, %c1_15, %c0_16] : memref<18x18x128xbf16, #tpu.memory_space<vmem>>, vector<16x16x128xbf16>
    %c0_17 = arith.constant 0 : index
    %c2 = arith.constant 2 : index
    %c0_18 = arith.constant 0 : index
    %11 = vector.load %arg9[%c0_17, %c2, %c0_18] : memref<18x18x128xbf16, #tpu.memory_space<vmem>>, vector<16x16x128xbf16>
    %c1_19 = arith.constant 1 : index
    %c0_20 = arith.constant 0 : index
    %c0_21 = arith.constant 0 : index
    %12 = vector.load %arg9[%c1_19, %c0_20, %c0_21] : memref<18x18x128xbf16, #tpu.memory_space<vmem>>, vector<16x16x128xbf16>
    %c1_22 = arith.constant 1 : index
    %c1_23 = arith.constant 1 : index
    %c0_24 = arith.constant 0 : index
    %13 = vector.load %arg9[%c1_22, %c1_23, %c0_24] : memref<18x18x128xbf16, #tpu.memory_space<vmem>>, vector<16x16x128xbf16>
    %c1_25 = arith.constant 1 : index
    %c2_26 = arith.constant 2 : index
    %c0_27 = arith.constant 0 : index
    %14 = vector.load %arg9[%c1_25, %c2_26, %c0_27] : memref<18x18x128xbf16, #tpu.memory_space<vmem>>, vector<16x16x128xbf16>
    %c2_28 = arith.constant 2 : index
    %c0_29 = arith.constant 0 : index
    %c0_30 = arith.constant 0 : index
    %15 = vector.load %arg9[%c2_28, %c0_29, %c0_30] : memref<18x18x128xbf16, #tpu.memory_space<vmem>>, vector<16x16x128xbf16>
    %c2_31 = arith.constant 2 : index
    %c1_32 = arith.constant 1 : index
    %c0_33 = arith.constant 0 : index
    %16 = vector.load %arg9[%c2_31, %c1_32, %c0_33] : memref<18x18x128xbf16, #tpu.memory_space<vmem>>, vector<16x16x128xbf16>
    %c2_34 = arith.constant 2 : index
    %c2_35 = arith.constant 2 : index
    %c0_36 = arith.constant 0 : index
    %17 = vector.load %arg9[%c2_34, %c2_35, %c0_36] : memref<18x18x128xbf16, #tpu.memory_space<vmem>>, vector<16x16x128xbf16>
    %18 = tpu.concatenate %9, %10, %11, %12, %13, %14, %15, %16, %17 in 2 : vector<16x16x128xbf16>, vector<16x16x128xbf16>, vector<16x16x128xbf16>, vector<16x16x128xbf16>, vector<16x16x128xbf16>, vector<16x16x128xbf16>, vector<16x16x128xbf16>, vector<16x16x128xbf16>, vector<16x16x128xbf16> -> vector<16x16x1152xbf16>
    %19 = vector.shape_cast %18 : vector<16x16x1152xbf16> to vector<256x1152xbf16>
    %c0_37 = arith.constant 0 : index
    %c0_38 = arith.constant 0 : index
    %20 = vector.load %arg2[%c0_37, %c0_38] : memref<1152x128xbf16, #tpu.memory_space<vmem>>, vector<1152x128xbf16>
    %cst_39 = arith.constant dense<0.000000e+00> : vector<256x128xf32>
    %21 = tpu.matmul %19, %20, %cst_39 {dimension_numbers = #tpu.dot_dimension_numbers<[1], [0], [0], [1], [0, 0, 1, 1], [], []>} : vector<256x1152xbf16>, vector<1152x128xbf16>, vector<256x128xf32> -> vector<256x128xf32>
    %c0_40 = arith.constant 0 : index
    %c0_41 = arith.constant 0 : index
    %22 = vector.load %arg3[%c0_40, %c0_41] : memref<1x128xf32, #tpu.memory_space<vmem>>, vector<1x128xf32>
    %23 = vector.broadcast %22 : vector<1x128xf32> to vector<256x128xf32>
    %24 = arith.mulf %21, %23 : vector<256x128xf32>
    %c0_42 = arith.constant 0 : index
    %c0_43 = arith.constant 0 : index
    %25 = vector.load %arg4[%c0_42, %c0_43] : memref<1x128xf32, #tpu.memory_space<vmem>>, vector<1x128xf32>
    %26 = vector.broadcast %25 : vector<1x128xf32> to vector<256x128xf32>
    %27 = arith.addf %24, %26 : vector<256x128xf32>
    %cst_44 = arith.constant 0.000000e+00 : f32
    %28 = vector.broadcast %cst_44 : f32 to vector<256x128xf32>
    %29 = arith.maximumf %27, %28 : vector<256x128xf32>
    %30 = arith.truncf %29 : vector<256x128xf32> to vector<256x128xbf16>
    %31 = vector.shape_cast %30 : vector<256x128xbf16> to vector<16x16x128xbf16>
    %cst_45 = arith.constant 0.000000e+00 : bf16
    %32 = vector.broadcast %cst_45 : bf16 to vector<1x18x128xbf16>
    %cst_46 = arith.constant 0.000000e+00 : bf16
    %33 = vector.broadcast %cst_46 : bf16 to vector<16x1x128xbf16>
    %c0_47 = arith.constant 0 : index
    %c0_48 = arith.constant 0 : index
    %c0_49 = arith.constant 0 : index
    %34 = vector.load %arg10[%c0_47, %c0_48, %c0_49] : memref<18x18x128xbf16, #tpu.memory_space<vmem>>, vector<1x18x128xbf16>
    tpu.vector_store %arg10[%c0_47, %c0_48, %c0_49], %32 {strides = array<i32>} : memref<18x18x128xbf16, #tpu.memory_space<vmem>>, vector<1x18x128xbf16>,
    %c17_50 = arith.constant 17 : index
    %c0_51 = arith.constant 0 : index
    %c0_52 = arith.constant 0 : index
    %35 = vector.load %arg10[%c17_50, %c0_51, %c0_52] : memref<18x18x128xbf16, #tpu.memory_space<vmem>>, vector<1x18x128xbf16>
    tpu.vector_store %arg10[%c17_50, %c0_51, %c0_52], %32 {strides = array<i32>} : memref<18x18x128xbf16, #tpu.memory_space<vmem>>, vector<1x18x128xbf16>,
    %36 = tpu.concatenate %33, %31, %33 in 1 : vector<16x1x128xbf16>, vector<16x16x128xbf16>, vector<16x1x128xbf16> -> vector<16x18x128xbf16>
    %c1_53 = arith.constant 1 : index
    %c0_54 = arith.constant 0 : index
    %c0_55 = arith.constant 0 : index
    %37 = vector.load %arg10[%c1_53, %c0_54, %c0_55] : memref<18x18x128xbf16, #tpu.memory_space<vmem>>, vector<16x18x128xbf16>
    tpu.vector_store %arg10[%c1_53, %c0_54, %c0_55], %36 {strides = array<i32>} : memref<18x18x128xbf16, #tpu.memory_space<vmem>>, vector<16x18x128xbf16>,
    %c0_56 = arith.constant 0 : index
    %c0_57 = arith.constant 0 : index
    %c0_58 = arith.constant 0 : index
    %38 = vector.load %arg10[%c0_56, %c0_57, %c0_58] : memref<18x18x128xbf16, #tpu.memory_space<vmem>>, vector<16x16x128xbf16>
    %c0_59 = arith.constant 0 : index
    %c1_60 = arith.constant 1 : index
    %c0_61 = arith.constant 0 : index
    %39 = vector.load %arg10[%c0_59, %c1_60, %c0_61] : memref<18x18x128xbf16, #tpu.memory_space<vmem>>, vector<16x16x128xbf16>
    %c0_62 = arith.constant 0 : index
    %c2_63 = arith.constant 2 : index
    %c0_64 = arith.constant 0 : index
    %40 = vector.load %arg10[%c0_62, %c2_63, %c0_64] : memref<18x18x128xbf16, #tpu.memory_space<vmem>>, vector<16x16x128xbf16>
    %c1_65 = arith.constant 1 : index
    %c0_66 = arith.constant 0 : index
    %c0_67 = arith.constant 0 : index
    %41 = vector.load %arg10[%c1_65, %c0_66, %c0_67] : memref<18x18x128xbf16, #tpu.memory_space<vmem>>, vector<16x16x128xbf16>
    %c1_68 = arith.constant 1 : index
    %c1_69 = arith.constant 1 : index
    %c0_70 = arith.constant 0 : index
    %42 = vector.load %arg10[%c1_68, %c1_69, %c0_70] : memref<18x18x128xbf16, #tpu.memory_space<vmem>>, vector<16x16x128xbf16>
    %c1_71 = arith.constant 1 : index
    %c2_72 = arith.constant 2 : index
    %c0_73 = arith.constant 0 : index
    %43 = vector.load %arg10[%c1_71, %c2_72, %c0_73] : memref<18x18x128xbf16, #tpu.memory_space<vmem>>, vector<16x16x128xbf16>
    %c2_74 = arith.constant 2 : index
    %c0_75 = arith.constant 0 : index
    %c0_76 = arith.constant 0 : index
    %44 = vector.load %arg10[%c2_74, %c0_75, %c0_76] : memref<18x18x128xbf16, #tpu.memory_space<vmem>>, vector<16x16x128xbf16>
    %c2_77 = arith.constant 2 : index
    %c1_78 = arith.constant 1 : index
    %c0_79 = arith.constant 0 : index
    %45 = vector.load %arg10[%c2_77, %c1_78, %c0_79] : memref<18x18x128xbf16, #tpu.memory_space<vmem>>, vector<16x16x128xbf16>
    %c2_80 = arith.constant 2 : index
    %c2_81 = arith.constant 2 : index
    %c0_82 = arith.constant 0 : index
    %46 = vector.load %arg10[%c2_80, %c2_81, %c0_82] : memref<18x18x128xbf16, #tpu.memory_space<vmem>>, vector<16x16x128xbf16>
    %47 = tpu.concatenate %38, %39, %40, %41, %42, %43, %44, %45, %46 in 2 : vector<16x16x128xbf16>, vector<16x16x128xbf16>, vector<16x16x128xbf16>, vector<16x16x128xbf16>, vector<16x16x128xbf16>, vector<16x16x128xbf16>, vector<16x16x128xbf16>, vector<16x16x128xbf16>, vector<16x16x128xbf16> -> vector<16x16x1152xbf16>
    %48 = vector.shape_cast %47 : vector<16x16x1152xbf16> to vector<256x1152xbf16>
    %c0_83 = arith.constant 0 : index
    %c0_84 = arith.constant 0 : index
    %49 = vector.load %arg5[%c0_83, %c0_84] : memref<1152x128xbf16, #tpu.memory_space<vmem>>, vector<1152x128xbf16>
    %cst_85 = arith.constant dense<0.000000e+00> : vector<256x128xf32>
    %50 = tpu.matmul %48, %49, %cst_85 {dimension_numbers = #tpu.dot_dimension_numbers<[1], [0], [0], [1], [0, 0, 1, 1], [], []>} : vector<256x1152xbf16>, vector<1152x128xbf16>, vector<256x128xf32> -> vector<256x128xf32>
    %c0_86 = arith.constant 0 : index
    %c0_87 = arith.constant 0 : index
    %51 = vector.load %arg6[%c0_86, %c0_87] : memref<1x128xf32, #tpu.memory_space<vmem>>, vector<1x128xf32>
    %52 = vector.broadcast %51 : vector<1x128xf32> to vector<256x128xf32>
    %53 = arith.mulf %50, %52 : vector<256x128xf32>
    %c0_88 = arith.constant 0 : index
    %c0_89 = arith.constant 0 : index
    %54 = vector.load %arg7[%c0_88, %c0_89] : memref<1x128xf32, #tpu.memory_space<vmem>>, vector<1x128xf32>
    %55 = vector.broadcast %54 : vector<1x128xf32> to vector<256x128xf32>
    %56 = arith.addf %53, %55 : vector<256x128xf32>
    %57 = vector.shape_cast %1 : vector<16x16x128xf32> to vector<256x128xf32>
    %58 = arith.addf %56, %57 : vector<256x128xf32>
    %cst_90 = arith.constant 0.000000e+00 : f32
    %59 = vector.broadcast %cst_90 : f32 to vector<256x128xf32>
    %60 = arith.maximumf %58, %59 : vector<256x128xf32>
    %61 = vector.shape_cast %60 : vector<256x128xf32> to vector<1x16x16x128xf32>
    %c0_91 = arith.constant 0 : index
    %c0_92 = arith.constant 0 : index
    %c0_93 = arith.constant 0 : index
    %c0_94 = arith.constant 0 : index
    %62 = vector.load %arg8[%c0_91, %c0_92, %c0_93, %c0_94] : memref<1x16x16x128xf32, #tpu.memory_space<vmem>>, vector<1x16x16x128xf32>
    tpu.vector_store %arg8[%c0_91, %c0_92, %c0_93, %c0_94], %61 {strides = array<i32>} : memref<1x16x16x128xf32, #tpu.memory_space<vmem>>, vector<1x16x16x128xf32>,
    return
  }
  func.func @transform_0(%arg0: i32) -> (i32, i32, i32, i32) {
    %c0_i32 = arith.constant 0 : i32
    %c0_i32_0 = arith.constant 0 : i32
    %c0_i32_1 = arith.constant 0 : i32
    %c0_i32_2 = arith.constant 0 : i32
    return %arg0, %c0_i32, %c0_i32_0, %c0_i32_1 : i32, i32, i32, i32
  }
  func.func @transform_1(%arg0: i32) -> (i32, i32) {
    %c0_i32 = arith.constant 0 : i32
    %c0_i32_0 = arith.constant 0 : i32
    %c0_i32_1 = arith.constant 0 : i32
    return %c0_i32, %c0_i32_0 : i32, i32
  }
  func.func @transform_2(%arg0: i32) -> (i32, i32) {
    %c0_i32 = arith.constant 0 : i32
    %c0_i32_0 = arith.constant 0 : i32
    %c0_i32_1 = arith.constant 0 : i32
    return %c0_i32, %c0_i32_0 : i32, i32
  }
  func.func @transform_3(%arg0: i32) -> (i32, i32) {
    %c0_i32 = arith.constant 0 : i32
    %c0_i32_0 = arith.constant 0 : i32
    %c0_i32_1 = arith.constant 0 : i32
    return %c0_i32, %c0_i32_0 : i32, i32
  }
  func.func @transform_4(%arg0: i32) -> (i32, i32) {
    %c0_i32 = arith.constant 0 : i32
    %c0_i32_0 = arith.constant 0 : i32
    %c0_i32_1 = arith.constant 0 : i32
    return %c0_i32, %c0_i32_0 : i32, i32
  }
  func.func @transform_5(%arg0: i32) -> (i32, i32) {
    %c0_i32 = arith.constant 0 : i32
    %c0_i32_0 = arith.constant 0 : i32
    %c0_i32_1 = arith.constant 0 : i32
    return %c0_i32, %c0_i32_0 : i32, i32
  }
  func.func @transform_6(%arg0: i32) -> (i32, i32) {
    %c0_i32 = arith.constant 0 : i32
    %c0_i32_0 = arith.constant 0 : i32
    %c0_i32_1 = arith.constant 0 : i32
    return %c0_i32, %c0_i32_0 : i32, i32
  }
  func.func @transform_7(%arg0: i32) -> (i32, i32, i32, i32) {
    %c0_i32 = arith.constant 0 : i32
    %c0_i32_0 = arith.constant 0 : i32
    %c0_i32_1 = arith.constant 0 : i32
    %c0_i32_2 = arith.constant 0 : i32
    return %arg0, %c0_i32, %c0_i32_0, %c0_i32_1 : i32, i32, i32, i32
  }
}

</mosaic_0001>

<bundles_post_ra>
// kernel: tpu_custom_call.1
= control target key start
LH: loop header
LB: loop body
LE: loop exit
PB: predicated region body
PF: predicated region fallthrough
CT: control target
= control target key end

     0   :  { %s11630_s0 = inlined_call_operand.hbm [shape: f32[2,16,16,128], index: 0, kind: input, shape index: {}]   ;;  %s11631_s1 = inlined_call_operand.hbm [shape: bf16[1152,128], index: 1, kind: input, shape index: {}]   ;;  %s11632_s2 = inlined_call_operand.vmem [shape: f32[1,128], index: 2, kind: input, shape index: {}]   ;;  %s11633_s3 = inlined_call_operand.vmem [shape: f32[1,128], index: 3, kind: input, shape index: {}]   ;;  %s11634_s4 = inlined_call_operand.hbm [shape: bf16[1152,128], index: 4, kind: input, shape index: {}]   ;;  %s11635_s5 = inlined_call_operand.vmem [shape: f32[1,128], index: 5, kind: input, shape index: {}]   ;;  %s11636_s6 = inlined_call_operand.vmem [shape: f32[1,128], index: 6, kind: input, shape index: {}]   ;;  %s11637_s7 = inlined_call_operand.hbm [shape: f32[2,16,16,128], index: 7, kind: output, shape index: {}]  }
   0x1   :  { %11658 = sst [smem:[#allocation46_spill]] %s11631_s1 }
   0x2   :  { %12 = vsyncpa [#allocation5], 0 }
   0x3   :  { %14 = vsyncpa [#allocation5 + $0x1], 0 }
   0x4   :  { %15 = vsyncpa [#allocation8], 0 }
   0x5   :  { %16 = vsyncpa [#allocation6], 0 }
   0x6   :  { %18 = vsyncpa [#allocation6 + $0x1], 0  ;;  %s9319_s24 = smov 0   ;;  %s9321_s25 = smov 0  }
   0x7   :  { %s9323_s26 = smov 0   ;;  %s9325_s27 = smov 0  }
   0x8 LB: > { %s9340_s28 = sadd.s32 4294967295, %s9268_s27   ;;  %s7714_s29 = sadd.s32 4294967294, %s9268_s27   ;;  %s9268_s27 = sphi %s9325_s27, %s11805_s27   ;;  %s9264_s26 = sphi %s9323_s26, %s11804_s26   ;;  %s9260_s25 = sphi %s9321_s25, %s11803_s25   ;;  %s9256_s24 = sphi %s9319_s24, %s11802_s24  }
   0x9   : > { %p44_p0 = scmp.ne.s32.totalorder %s9260_s25, %s9256_s24  ;;  %p45_p1 = scmp.eq.s32.totalorder %s9340_s28, 0 }
   0xa   : > { %p194_p2 = scmp.eq.s32.totalorder %s9340_s28, 1  ;;  %p200_p3 = scmp.eq.s32.totalorder %s7714_s29, 1 }
   0xb   : > { %p9349_p4 = por %p45_p1, %p44_p0  ;;  %p7715_p5 = scmp.ge.s32.totalorder %s9268_s27, 1 }
   0xc   : > { %p9354_p6 = por %p200_p3, %p44_p0  ;;  %p207_p7 = scmp.lt.s32.totalorder %s9268_s27, 3 }
   0xd   : > { %s11661_s1 = sld [smem:[#allocation46_spill]]  ;;  %s9270_s13 = smov [#allocation7]  }
   0xe   : > { %p9362_p8 = pnand %p7715_p5, %p207_p7  ;;  %s220_s14 = sshll.u32 %s9270_s13, 4  ;;  %s221_s14 = int_to_ptr.vmem [resolvable:$true] %s220_s14 }
   0xf   : > { %s238_s17 = sshll.u32 %s11634_s4, 4  ;;  %s9271_s18 = smov 64   ;;  %s239_s17 = int_to_ptr.hbm [resolvable:$true] %s238_s17 }
  0x10   : > { %p8862_p9 = pneg %p9362_p8  ;;  %s9272_s19 = smov 4  }
  0x11   : > { %s9273_s20 = smov [#allocation9]   ;;  %s9375_s22 = sadd.s32 1, %s9268_s27  }
  0x12   : > { %p8863_p10 = pnand %p8862_p9, %p45_p1  ;;  %s240_s21 = sshll.u32 %s9273_s20, 4  ;;  %s241_s21 = int_to_ptr.vmem [resolvable:$true] %s240_s21 }
  0x13   : > { %s218_s11 = sshll.u32 %s11661_s1, 4  ;;  %s31_s23 = sadd.s32 1, %s9264_s26  ;;  %s219_s11 = int_to_ptr.hbm [resolvable:$true] %s218_s11 }
  0x14   : > { %8865 = dma.hbm_to_vmem [thread:$0]  (!%p8863_p10), %s219_s11, 9216, %s221_s14, [#allocation8], %s9271_s18, %s9271_s18, %s9272_s19  }
  0x15   : > { %8868 = dma.hbm_to_vmem [thread:$0]  (!%p8863_p10), %s239_s17, 9216, %s241_s21, [#allocation8], %s9271_s18, %s9271_s18, %s9272_s19  }
  0x16   : > { %s28_s29 = ssub.s32 %s9268_s27, %s9375_s22  ;;  %p38_p12 = scmp.ne.s32.totalorder %s9264_s26, %s9260_s25 }
  0x17   : > { %p29_p13 = scmp.eq.s32.totalorder %s28_s29, 0  ;;  %p39_p0 = scmp.eq.s32.totalorder %s9268_s27, 0 }
  0x18   : > { %p9385_p3 = por %p194_p2, %p38_p12  ;;  %p8879_p5 = scmp.lt.s32.totalorder %s9268_s27, 2 }
  0x19   : > { %s9391_s10 = scalar_select %p29_p13, %s9264_s26, %s31_s23  }
  0x1a   : > { %p40_p7 = por %p39_p0, %p38_p12  ;;  %s260_s11 = sand.u32 1, %s9264_s26  }
  0x1b   : > { %s7719_s13 = sshll.u32 %s260_s11, 8  ;;  %s8308_s14 = sshll.u32 %s9268_s27, 8 }
  0x1c   : > { %s269_s17 = scalar_lea.hbm %s11630_s0, %s8308_s14  ;;  %s264_s18 = scalar_lea.vmem [#allocation4], %s7719_s13 }
  0x1d   : > { %s272_s19 = sshll.u32 %s264_s18, 4  ;;  %s270_s20 = sshll.u32 %s269_s17, 4  ;;  %s273_s19 = int_to_ptr.vmem [resolvable:$true] %s272_s19  ;;  %s271_s20 = int_to_ptr.hbm [resolvable:$true] %s270_s20 }
  0x1e   : > { %p9398_p2 = pnand %p8879_p5, %p40_p7  ;;  %s261_s23 = scalar_lea.sflag [#allocation5], %s260_s11 }
  0x1f   : > { %s9150_s29 = sshra.s32 %s271_s20, 4  ;;  %s9157_s15 = scalar_lea.hbm %s11630_s0, 512  ;;  %s9151_s29 = int_to_ptr.hbm [resolvable:$true] %s9150_s29 }
  0x20   : > { %s9152_s1 = scalar_lea.hbm %s9151_s29, 256  ;;  %p9154_p10 = pneg %p9398_p2 }
  0x21   : > { %p9153_p9 = scmp.ne.s32.totalorder %s9151_s29, %s9152_s1  ;;  %p9158_p0 = scmp.lt.s32.totalorder %s9151_s29, %s11630_s0 }
  0x22   : > { %p9159_p5 = scmp.lt.s32.totalorder %s9157_s15, %s9152_s1 }
  0x23   : > { %p9155_p12 = pnand %p9154_p10, %p9153_p9 }
  0x24   : > { %p9160_p7 = por %p9159_p5, %p9158_p0 }
  0x25   : > { %p9156_p13 = pneg %p9155_p12 }
  0x27   : > { %p9161_p11 = pnand %p9160_p7, %p9156_p13 }
  0x29   : > { %9164 = shalt.err (!%p9161_p11)
}
  0x2a   : > { %s9274_s11 = smov 128   ;;  %s9275_s18 = smov 8  }
  0x2b   : > { %8872 = dma.hbm_to_vmem [thread:$0]  (!%p9398_p2), %s271_s20, 4096, %s273_s19, %s261_s23, %s9274_s11, %s9274_s11, %s9275_s18  }
  0x2c   : > { %284 = sbr.rel (%p9362_p8) target bundleno = 1537 (0x601), region = 48 }
  0x31   : > { %s9415_s14 = sand.u32 1, %s9260_s25  }
  0x32   : > { %s7723_s29 = sshll.u32 %s9415_s14, 8  ;;  %s287_s1 = scalar_lea.sflag [#allocation5], %s9415_s14 }
  0x33   : > { %s9421_s13 = scalar_lea.vmem [#allocation4], %s7723_s29 }
  0x34   : > { %9225 = dma.done.wait (%p9349_p4), %s287_s1, 4096  }
  0x35   : > { %9227 = vsyncadd (%p9349_p4), %s287_s1, 4294963200 }
  0x36   : > { %9229 = dma.done.wait (%p45_p1), [#allocation8], 18432  }
  0x37   : > { %9231 = vsyncadd (%p45_p1), [#allocation8], 4294948864  ;;  %v9276_v0 = vmov 0   ;;  %v8316_v1 = vld [vmem:[#allocation7 + $0x38] sm:$0xff]  ;;  %v8315_v3 = vld [vmem:[#allocation7 + $0x30] sm:$0xff]  ;;  %vm628_vm0 = vcmask 1040384  }
  0x38   : > { %397 = vst [vmem:[#allocation2] sm:$0xf] %v9276_v0  ;;  %v8324_v2 = vld [vmem:[#allocation7 + $0x78] sm:$0xff]  ;;  %3051 = vmatpush.bf16.msra.mxu0 %v8316_v1  ;;  %8834 = vmatpush.bf16.msra.mxu2 %v8316_v1  ;;  %v8323_v4 = vld [vmem:[#allocation7 + $0x70] sm:$0xff]  ;;  %v8314_v5 = vld [vmem:[#allocation7 + $0x28] sm:$0xff]  ;;  %vm1482_vm4 = vcmask 1046528  }
  0x39   : > { %398 = vst [vmem:[#allocation2 + $0x4] sm:$0xf] %v9276_v0  ;;  %8842 = vmatpush.bf16.msra.mxu3 %v8324_v2  ;;  %3140 = vmatpush.bf16.msra.mxu1 %v8324_v2  ;;  %v347_v7 = vld [vmem:[%s9421_s13 + $0x70] sm:$0xff]  ;;  %v8322_v8 = vld [vmem:[#allocation7 + $0x68] sm:$0xff]  ;;  %v348_v10 = vld [vmem:[%s9421_s13 + $0x78] sm:$0xff]  ;;  %s11344_s21 = scalar_lea.vmem [#allocation10], %s7723_s29 }
  0x3a   : > { %399 = vst [vmem:[#allocation2 + $0x8] sm:$0x1] %v9276_v0  ;;  %v379_v11 = vpack.c.bf16 %v347_v7, %v347_v7  ;;  %v333_v12 = vld [vmem:[%s9421_s13] sm:$0xff]  ;;  %v380_v13 = vpack.c.bf16 %v348_v10, %v348_v10  ;;  %v334_v15 = vld [vmem:[%s9421_s13 + $0x8] sm:$0xff]  ;;  %vm629_vm1 = vsmask.f32 256 }
  0x3b   : > { %401 = vst [vmem:[#allocation2 + $0xcc] sm:$0xf] %v9276_v0  ;;  %v365_v16 = vpack.c.bf16 %v333_v12, %v333_v12  ;;  %v349_v17 = vld [vmem:[%s9421_s13 + $0x80] sm:$0xff]  ;;  %v366_v21 = vpack.c.bf16 %v334_v15, %v334_v15  ;;  %v350_v25 = vld [vmem:[%s9421_s13 + $0x88] sm:$0xff]  ;;  %v335_v27 = vld [vmem:[%s9421_s13 + $0x10] sm:$0xff]  ;;  %s8453_s29 = sshll.u32 %s9340_s28, 8 }
  0x3c   : > { %402 = vst [vmem:[#allocation2 + $0xd0] sm:$0xf] %v9276_v0  ;;  %3052 = vmatpush.bf16.msra.mxu0 %v8315_v3  ;;  %8835 = vmatpush.bf16.msra.mxu2 %v8315_v3  ;;  %v8313_v18 = vld [vmem:[#allocation7 + $0x20] sm:$0xff]  ;;  %v450_v19 = vunpack.c.l.b16 %v379_v11  ;;  %v451_v23 = vunpack.c.l.b16 %v380_v13  ;;  %v381_v26 = vpack.c.bf16 %v349_v17, %v349_v17  ;;  %v336_v28 = vld [vmem:[%s9421_s13 + $0x18] sm:$0xff]  ;;  %v382_v33 = vpack.c.bf16 %v350_v25, %v350_v25  ;;  %v351_v34 = vld [vmem:[%s9421_s13 + $0x90] sm:$0xff]  ;;  %s7618_s16 = scalar_lea.hbm %s11637_s7, %s8453_s29  ;;  %s7619_s17 = sshll.u32 %s11344_s21, 4  ;;  %s7620_s17 = int_to_ptr.vmem [resolvable:$true] %s7619_s17 }
  0x3d   : > { %403 = vst [vmem:[#allocation2 + $0xd4] sm:$0x1] %v9276_v0  ;;  %8843 = vmatpush.bf16.msra.mxu3 %v8323_v4  ;;  %3141 = vmatpush.bf16.msra.mxu1 %v8323_v4  ;;  %v436_v24 = vunpack.c.l.b16 %v365_v16  ;;  %v8321_v29 = vld [vmem:[#allocation7 + $0x60] sm:$0xff]  ;;  %v437_v32 = vunpack.c.l.b16 %v366_v21  ;;  %v367_v37 = vpack.c.bf16 %v335_v27, %v335_v27  ;;  %v368_v38 = vpack.c.bf16 %v336_v28, %v336_v28  ;;  %v352_v41 = vld [vmem:[%s9421_s13 + $0x98] sm:$0xff]  ;;  %vm9449_vm2 = vmand %vm628_vm0, %vm629_vm1  ;;  %s7621_s11 = sshll.u32 %s7618_s16, 4  ;;  %s7607_s28 = scalar_lea.sflag [#allocation6], %s9415_s14  ;;  %s7622_s11 = int_to_ptr.hbm [resolvable:$true] %s7621_s11 }
  0x3e   : > { %3988 = vst [vmem:[#allocation3] sm:$0xf] %v9276_v0  ;;  %v475_v35 = vpack.c.b16 %v451_v23, %v450_v19  ;;  %v452_v36 = vunpack.c.l.b16 %v381_v26  ;;  %v453_v40 = vunpack.c.l.b16 %v382_v33  ;;  %v383_v42 = vpack.c.bf16 %v351_v34, %v351_v34  ;;  %v8312_v47 = vld [vmem:[#allocation7 + $0x18] sm:$0xff]  ;;  %v8311_v2 = vld [vmem:[#allocation7 + $0x10] sm:$0xff]  ;;  %v8310_v21 = vld [vmem:[#allocation7 + $0x8] sm:$0xff]  ;;  %s9194_s18 = sshra.s32 %s7622_s11, 4  ;;  %s9195_s18 = int_to_ptr.hbm [resolvable:$true] %s9194_s18 }
  0x3f   : > { %3989 = vst [vmem:[#allocation3 + $0x4] sm:$0xf] %v9276_v0  ;;  %v468_v39 = vpack.c.b16 %v437_v32, %v436_v24  ;;  %v438_v45 = vunpack.c.l.b16 %v367_v37  ;;  %v439_v46 = vunpack.c.l.b16 %v368_v38  ;;  %v8320_v53 = vld [vmem:[#allocation7 + $0x58] sm:$0xff]  ;;  %v384_v57 = vpack.c.bf16 %v352_v41, %v352_v41  ;;  %v337_v26 = vld [vmem:[%s9421_s13 + $0x20] sm:$0xff]  ;;  %v338_v27 = vld [vmem:[%s9421_s13 + $0x28] sm:$0xff]  ;;  %s9196_s1 = scalar_lea.hbm %s9195_s18, 256  ;;  %p9201_p11 = scmp.lt.s32.totalorder %s9195_s18, %s11637_s7 }
  0x40   : > { %3990 = vst [vmem:[#allocation3 + $0x8] sm:$0x1] %v9276_v0  ;;  %v9431_v6 = vld [vmem:[#allocation2] sm:$0xff]   ;;  %3053 = vmatpush.bf16.msra.mxu0 %v8314_v5  ;;  %8836 = vmatpush.bf16.msra.mxu2 %v8314_v5  ;;  %v534_v43 = vshrl.u32 %v475_v35, 16  ;;  %v537_v44 = vshll.u32 %v475_v35, 16  ;;  %v476_v52 = vpack.c.b16 %v453_v40, %v452_v36  ;;  %v454_v61 = vunpack.c.l.b16 %v383_v42  ;;  %v8318_v28 = vld [vmem:[#allocation7 + $0x48] sm:$0xff]  ;;  %p9197_p1 = scmp.ne.s32.totalorder %s9195_s18, %s9196_s1 }
  0x41   : > { %3992 = vst [vmem:[#allocation3 + $0xcc] sm:$0xf] %v9276_v0  ;;  %v1229_v9 = vshll.u32 %v9431_v6, 16  ;;  %v920_v14 = vld [vmem:[#allocation2 + $0x8] sm:$0x1]  ;;  %v1227_v22 = vshrl.u32 %v9431_v6, 16  ;;  %8844 = vmatpush.bf16.msra.mxu3 %v8322_v8  ;;  %3142 = vmatpush.bf16.msra.mxu1 %v8322_v8  ;;  %v469_v56 = vpack.c.b16 %v439_v46, %v438_v45  ;;  %v455_v1 = vunpack.c.l.b16 %v384_v57 }
  0x42   : > { %3993 = vst [vmem:[#allocation3 + $0xd0] sm:$0xf] %v9276_v0  ;;  %v1193_v20 = vunpack.c.l.b16 %v920_v14  ;;  %v485_v50 = vshrl.u32 %v468_v39, 16  ;;  %v488_v51 = vshll.u32 %v468_v39, 16  ;;  %v536_v54 = vrot.slane %v534_v43, 7  ;;  %v8319_v8 = vld [vmem:[#allocation7 + $0x50] sm:$0xff]  ;;  %p9198_p4 = pnand %p9197_p1, %p9385_p3 }
  0x43   : > { %3994 = vst [vmem:[#allocation3 + $0xd4] sm:$0x1] %v9276_v0  ;;  %v1231_v30 = vrot.slane %v1229_v9, 1  ;;  %v541_v59 = vshrl.u32 %v476_v52, 16  ;;  %v544_v60 = vshll.u32 %v476_v52, 16  ;;  %v492_v0 = vshrl.u32 %v469_v56, 16 }
  0x44   : > { %v9443_v31 = vpack.c.b16 %v1193_v20, %v1193_v20  ;;  %3054 = vmatpush.bf16.msra.mxu0 %v8313_v18  ;;  %8837 = vmatpush.bf16.msra.mxu2 %v8313_v18  ;;  %v487_v58 = vrot.slane %v485_v50, 7  ;;  %v539_v62 = vor.u32 %v537_v44, %v536_v54  ;;  %v654_v63 = vsel %vm9449_vm2, %v536_v54, 0  ;;  %v353_v42 = vld [vmem:[%s9421_s13 + $0xa0] sm:$0xff]  ;;  %v354_v50 = vld [vmem:[%s9421_s13 + $0xa8] sm:$0xff]  ;;  %v8340_v57 = vld [vmem:[#allocation7 + $0xf8] sm:$0xff]  ;;  %p9199_p8 = pneg %p9198_p4  ;;  %s9200_s19 = scalar_lea.hbm %s11637_s7, 512 }
  0x45   : > { %v9453_v49 = vor.u32 %v1231_v30, %v1227_v22  ;;  %8845 = vmatpush.bf16.msra.mxu3 %v8321_v29  ;;  %3143 = vmatpush.bf16.msra.mxu1 %v8321_v29  ;;  %v718_v3 = vunpack.c.l.b16 %v654_v63  ;;  %v543_v5 = vrot.slane %v541_v59, 7  ;;  %v494_v11 = vrot.slane %v492_v0, 7  ;;  %v8309_v43 = vld [vmem:[#allocation7] sm:$0xff]  ;;  %p9202_p2 = scmp.lt.s32.totalorder %s9200_s19, %s9196_s1 }
  0x46   : > { %v1234_v55 = vshll.u32 %v9443_v31, 16  ;;  %v490_v4 = vor.u32 %v488_v51, %v487_v58  ;;  %v647_v7 = vsel %vm9449_vm2, %v487_v58, 0  ;;  %v638_v9 = vsel %vm9449_vm2, 0, %v539_v62  ;;  %v8317_v51 = vld [vmem:[#allocation7 + $0x40] sm:$0xff] }
  0x47   : > { %v9462_v10 = vunpack.c.l.b16 %v647_v7  ;;  %v495_v12 = vshll.u32 %v469_v56, 16  ;;  %v716_v13 = vunpack.c.l.b16 %v638_v9  ;;  %v717_v14 = vunpack.c.h.b16 %v638_v9  ;;  %v8332_v56 = vld [vmem:[#allocation7 + $0xb8] sm:$0xff]  ;;  %v8331_v9 = vld [vmem:[#allocation7 + $0xb0] sm:$0xff]  ;;  %p9203_p9 = por %p9202_p2, %p9201_p11 }
  0x48   : > { %3055 = vmatpush.bf16.msra.mxu0 %v8312_v47  ;;  %8838 = vmatpush.bf16.msra.mxu2 %v8312_v47  ;;  %v766_v15 = vpack.c.b16 %v718_v3, %v718_v3  ;;  %v631_v16 = vsel %vm9449_vm2, 0, %v490_v4  ;;  %v546_v19 = vor.u32 %v544_v60, %v543_v5  ;;  %v655_v20 = vsel %vm9449_vm2, %v543_v5, 0  ;;  %v8348_v3 = vld [vmem:[#allocation7 + $0x138] sm:$0xff] }
  0x49   : > { %8846 = vmatpush.bf16.msra.mxu3 %v8320_v53  ;;  %3144 = vmatpush.bf16.msra.mxu1 %v8320_v53  ;;  %v695_v17 = vunpack.c.l.b16 %v631_v16  ;;  %v696_v18 = vunpack.c.h.b16 %v631_v16  ;;  %v764_v22 = vpack.c.b16 %v716_v13, %v716_v13  ;;  %v765_v23 = vpack.c.b16 %v717_v14, %v717_v14  ;;  %p9204_p10 = pnand %p9203_p9, %p9199_p8 }
  0x4a   : > { %863 = vst [vmem:[#allocation2 + $0x68] sm:$0x1] %v766_v15  ;;  %v9468_v24 = vrot.slane %v1234_v55, 1  ;;  %v721_v25 = vunpack.c.l.b16 %v655_v20  ;;  %v639_v32 = vsel %vm9449_vm2, 0, %v546_v19  ;;  %v648_v33 = vsel %vm9449_vm2, %v494_v11, 0  ;;  %v8339_v15 = vld [vmem:[#allocation7 + $0xf0] sm:$0xff] }
  0x4b   : > { %v743_v29 = vpack.c.b16 %v695_v17, %v695_v17  ;;  %v744_v30 = vpack.c.b16 %v696_v18, %v696_v18  ;;  %861 = vst [vmem:[#allocation2 + $0x60] sm:$0xf] %v764_v22  ;;  %v719_v34 = vunpack.c.l.b16 %v639_v32  ;;  %v720_v35 = vunpack.c.h.b16 %v639_v32 }
  0x4c   : > { %3056 = vmatpush.bf16.msra.mxu0 %v8311_v2  ;;  %8839 = vmatpush.bf16.msra.mxu2 %v8311_v2  ;;  %v745_v36 = vpack.c.b16 %v9462_v10, %v9462_v10  ;;  %v497_v37 = vor.u32 %v495_v12, %v494_v11  ;;  %862 = vst [vmem:[#allocation2 + $0x64] sm:$0xf] %v765_v23  ;;  %v9481_v47 = vunpack.c.l.b16 %v648_v33  ;;  %vm1225_vm3 = vsmask.f32 7424 }
  0x4d   : > { %8847 = vmatpush.bf16.msra.mxu3 %v8319_v8  ;;  %3145 = vmatpush.bf16.msra.mxu1 %v8319_v8  ;;  %v769_v38 = vpack.c.b16 %v721_v25, %v721_v25  ;;  %v477_v39 = vpack.c.b16 %v455_v1, %v454_v61  ;;  %v369_v40 = vpack.c.bf16 %v337_v26, %v337_v26  ;;  %v8347_v25 = vld [vmem:[#allocation7 + $0x130] sm:$0xff] }
  0x4e   : > { %v370_v41 = vpack.c.bf16 %v338_v27, %v338_v27  ;;  %840 = vst [vmem:[#allocation2 + $0xc] sm:$0xf] %v743_v29  ;;  %v767_v44 = vpack.c.b16 %v719_v34, %v719_v34  ;;  %v768_v45 = vpack.c.b16 %v720_v35, %v720_v35  ;;  %v632_v46 = vsel %vm9449_vm2, 0, %v497_v37 }
  0x4f   : > { %841 = vst [vmem:[#allocation2 + $0x10] sm:$0xf] %v744_v30  ;;  %v698_v52 = vunpack.c.l.b16 %v632_v46  ;;  %v699_v53 = vunpack.c.h.b16 %v632_v46  ;;  %v548_v54 = vshrl.u32 %v477_v39, 16  ;;  %v551_v55 = vshll.u32 %v477_v39, 16 }
  0x50   : > { %3057 = vmatpush.bf16.msra.mxu0 %v8310_v21  ;;  %8840 = vmatpush.bf16.msra.mxu2 %v8310_v21  ;;  %864 = vst [vmem:[#allocation2 + $0x6c] sm:$0xf] %v767_v44  ;;  %v440_v58 = vunpack.c.l.b16 %v369_v40  ;;  %v441_v59 = vunpack.c.l.b16 %v370_v41  ;;  %v385_v60 = vpack.c.bf16 %v353_v42, %v353_v42  ;;  %v386_v1 = vpack.c.bf16 %v354_v50, %v354_v50 }
  0x51   : > { %8848 = vmatpush.bf16.msra.mxu3 %v8318_v28  ;;  %3146 = vmatpush.bf16.msra.mxu1 %v8318_v28  ;;  %v928_v61 = vld [vmem:[#allocation2 + $0x68] sm:$0x1]  ;;  %865 = vst [vmem:[#allocation2 + $0x70] sm:$0xf] %v768_v45  ;;  %v746_v62 = vpack.c.b16 %v698_v52, %v698_v52  ;;  %v747_v63 = vpack.c.b16 %v699_v53, %v699_v53  ;;  %v550_v0 = vrot.slane %v548_v54, 7  ;;  %v8330_v52 = vld [vmem:[#allocation7 + $0xa8] sm:$0xff] }
  0x52   : > { %v1201_v2 = vunpack.c.l.b16 %v928_v61  ;;  %866 = vst [vmem:[#allocation2 + $0x74] sm:$0x1] %v769_v38  ;;  %v748_v4 = vpack.c.b16 %v9481_v47, %v9481_v47  ;;  %v470_v5 = vpack.c.b16 %v441_v59, %v440_v58  ;;  %v456_v7 = vunpack.c.l.b16 %v385_v60  ;;  %v8338_v53 = vld [vmem:[#allocation7 + $0xe8] sm:$0xff] }
  0x53   : > { %v1237_v8 = vsel %vm1225_vm3, %v9453_v49, %v9468_v24  ;;  %842 = vst [vmem:[#allocation2 + $0x14] sm:$0x1] %v745_v36  ;;  %v553_v10 = vor.u32 %v551_v55, %v550_v0  ;;  %v656_v11 = vsel %vm9449_vm2, %v550_v0, 0  ;;  %v457_v12 = vunpack.c.l.b16 %v386_v1  ;;  %v8649_v13 = vld [vmem:[#allocation2 + $0x60] sm:$0xff]   ;;  %v8346_v58 = vld [vmem:[#allocation7 + $0x128] sm:$0xff] }
  0x54   : > { %3058 = vmatpush.bf16.msra.mxu0 %v8309_v43  ;;  %8841 = vmatpush.bf16.msra.mxu2 %v8309_v43  ;;  %v9491_v14 = vpack.c.b16 %v1201_v2, %v1201_v2  ;;  %843 = vst [vmem:[#allocation2 + $0x18] sm:$0xf] %v746_v62  ;;  %v724_v16 = vunpack.c.l.b16 %v656_v11  ;;  %v499_v17 = vshrl.u32 %v470_v5, 16  ;;  %v502_v18 = vshll.u32 %v470_v5, 16 }
  0x55   : > { %8849 = vmatpush.bf16.msra.mxu3 %v8317_v51  ;;  %3147 = vmatpush.bf16.msra.mxu1 %v8317_v51  ;;  %v1323_v49 = vshrl.u32 %v8649_v13, 16  ;;  %v1325_v19 = vshll.u32 %v8649_v13, 16  ;;  %844 = vst [vmem:[#allocation2 + $0x1c] sm:$0xf] %v747_v63  ;;  %v640_v20 = vsel %vm9449_vm2, 0, %v553_v10  ;;  %v478_v21 = vpack.c.b16 %v457_v12, %v456_v7 }
  0x56   : > { %v1330_v22 = vshll.u32 %v9491_v14, 16  ;;  %v9497_v23 = vld [vmem:[#allocation2 + $0xc] sm:$0xff]   ;;  %v722_v26 = vunpack.c.l.b16 %v640_v20  ;;  %v723_v27 = vunpack.c.h.b16 %v640_v20  ;;  %845 = vst [vmem:[#allocation2 + $0x20] sm:$0x1] %v748_v4  ;;  %v9501_v29 = vrot.slane %v499_v17, 7 }
  0x57   : > { %3059 = vmatmul.bf16.vlgmr.msra.gmra.mxu0 %v9431_v6  ;;  %3099 = vmatmul.bf16.vlgmr.msra.gmra.mxu2 %v8649_v13  ;;  %v9499_v24 = vld [vmem:[#allocation2 + $0xc] sm:$0xf0]  ;;  %v772_v6 = vpack.c.b16 %v724_v16, %v724_v16  ;;  %v1327_v28 = vrot.slane %v1325_v19, 1  ;;  %v555_v36 = vshrl.u32 %v478_v21, 16  ;;  %v558_v43 = vshll.u32 %v478_v21, 16  ;;  %v339_v16 = vld [vmem:[%s9421_s13 + $0x30] sm:$0xff] }
  0x58   : > { %3229 = vmatpush.bf16.msrb.mxu2 %v8332_v56  ;;  %3148 = vmatmul.bf16.vlgmr.msra.gmra.mxu1 %v1237_v8  ;;  %v1332_v30 = vrot.slane %v1330_v22, 1  ;;  %v9503_v32 = vld [vmem:[#allocation2 + $0x6c] sm:$0xff]   ;;  %v770_v34 = vpack.c.b16 %v722_v26, %v722_v26  ;;  %v771_v35 = vpack.c.b16 %v723_v27, %v723_v27  ;;  %v504_v41 = vor.u32 %v502_v18, %v9501_v29 }
  0x59   : > { %3318 = vmatpush.bf16.msrb.mxu3 %v8340_v57  ;;  %3407 = vmatpush.bf16.msrb.mxu0 %v8348_v3  ;;  %v9505_v33 = vld [vmem:[#allocation2 + $0x6c] sm:$0xf0]  ;;  %869 = vst [vmem:[#allocation2 + $0x80] sm:$0x1] %v772_v6  ;;  %v1328_v37 = vor.u32 %v1327_v28, %v1323_v49  ;;  %v929_v38 = vld [vmem:[#allocation2 + $0x74] sm:$0x1]  ;;  %v371_v28 = vpack.c.bf16 %v339_v16, %v339_v16 }
  0x5a   : > { %v1202_v39 = vunpack.c.l.b16 %v929_v38  ;;  %v921_v40 = vld [vmem:[#allocation2 + $0x14] sm:$0x1]  ;;  %867 = vst [vmem:[#allocation2 + $0x78] sm:$0xf] %v770_v34  ;;  %v9508_v42 = vrot.slane %v555_v36, 7  ;;  %v1239_v47 = vshrl.u32 %v9497_v23, 16 }
  0x5b   : > { %v1333_v44 = vsel %vm1225_vm3, %v1328_v37, %v1332_v30  ;;  %v1194_v45 = vunpack.c.l.b16 %v921_v40  ;;  %868 = vst [vmem:[#allocation2 + $0x7c] sm:$0xf] %v771_v35  ;;  %v1241_v50 = vshll.u32 %v9497_v23, 16  ;;  %v633_v54 = vsel %vm9449_vm2, 0, %v504_v41  ;;  %v355_v30 = vld [vmem:[%s9421_s13 + $0xb0] sm:$0xff]  ;;  %v356_v34 = vld [vmem:[%s9421_s13 + $0xb8] sm:$0xff] }
  0x5c   : > { %3230 = vmatpush.bf16.msrb.mxu2 %v8331_v9  ;;  %3188 = vmatmul.bf16.vlgmr.msra.gmra.mxu3 %v1333_v44  ;;  %v9511_v46 = vpack.c.b16 %v1202_v39, %v1202_v39  ;;  %v9515_v51 = vld [vmem:[#allocation2 + $0x18] sm:$0xff]   ;;  %v1337_v55 = vshll.u32 %v9503_v32, 16  ;;  %v560_v61 = vor.u32 %v558_v43, %v9508_v42  ;;  %v701_v1 = vunpack.c.l.b16 %v633_v54 }
  0x5d   : > { %3319 = vmatpush.bf16.msrb.mxu3 %v8339_v15  ;;  %3408 = vmatpush.bf16.msrb.mxu0 %v8347_v25  ;;  %v9520_v56 = vpack.c.b16 %v1194_v45, %v1194_v45  ;;  %v922_v57 = vld [vmem:[#allocation2 + $0x20] sm:$0x1]  ;;  %v1243_v59 = vrot.slane %v1241_v50, 1  ;;  %v1253_v60 = vshll.u32 %v9515_v51, 16  ;;  %v702_v2 = vunpack.c.h.b16 %v633_v54  ;;  %v340_v25 = vld [vmem:[%s9421_s13 + $0x38] sm:$0xff]  ;;  %v357_v54 = vld [vmem:[%s9421_s13 + $0xc0] sm:$0xff] }
  0x5e   : > { %v1195_v0 = vunpack.c.l.b16 %v922_v57  ;;  %v1335_v3 = vshrl.u32 %v9503_v32, 16  ;;  %v1339_v4 = vrot.slane %v1337_v55, 1  ;;  %v1342_v5 = vshll.u32 %v9511_v46, 16 }
  0x5f   : > { %v1246_v62 = vshll.u32 %v9520_v56, 16  ;;  %v1244_v7 = vor.u32 %v1243_v59, %v1239_v47  ;;  %v749_v10 = vpack.c.b16 %v701_v1, %v701_v1  ;;  %v1251_v11 = vshrl.u32 %v9515_v51, 16 }
  0x60   : > { %3231 = vmatpush.bf16.msrb.mxu2 %v8330_v52  ;;  %v930_v63 = vld [vmem:[#allocation2 + $0x80] sm:$0x1]  ;;  %v1255_v12 = vrot.slane %v1253_v60, 1  ;;  %v750_v13 = vpack.c.b16 %v702_v2, %v702_v2  ;;  %v641_v15 = vsel %vm9449_vm2, 0, %v560_v61  ;;  %v9534_v49 = vpack.c.b16 %v1195_v0, %v1195_v0  ;;  %v341_v52 = vld [vmem:[%s9421_s13 + $0x40] sm:$0xff]  ;;  %v358_v60 = vld [vmem:[%s9421_s13 + $0xc8] sm:$0xff] }
  0x61   : > { %3320 = vmatpush.bf16.msrb.mxu3 %v8338_v53  ;;  %3409 = vmatpush.bf16.msrb.mxu0 %v8346_v58  ;;  %v1248_v8 = vrot.slane %v1246_v62, 1  ;;  %v1203_v9 = vunpack.c.l.b16 %v930_v63  ;;  %846 = vst [vmem:[#allocation2 + $0x24] sm:$0xf] %v749_v10  ;;  %v1340_v19 = vor.u32 %v1339_v4, %v1335_v3  ;;  %v1344_v20 = vrot.slane %v1342_v5, 1  ;;  %v342_v53 = vld [vmem:[%s9421_s13 + $0x48] sm:$0xff]  ;;  %v8329_v3 = vld [vmem:[#allocation7 + $0xa0] sm:$0xff] }
  0x62   : > { %v9532_v18 = vld [vmem:[#allocation2 + $0x78] sm:$0xff]   ;;  %847 = vst [vmem:[#allocation2 + $0x28] sm:$0xf] %v750_v13  ;;  %v725_v21 = vunpack.c.l.b16 %v641_v15  ;;  %v726_v22 = vunpack.c.h.b16 %v641_v15  ;;  %v657_v27 = vsel %vm9449_vm2, %v9508_v42, 0  ;;  %v649_v6 = vsel %vm9449_vm2, %v9501_v29, 0  ;;  %v8337_v4 = vld [vmem:[#allocation7 + $0xe0] sm:$0xff] }
  0x63   : > { %v1249_v17 = vsel %vm1225_vm3, %v1244_v7, %v1248_v8  ;;  %v9539_v26 = vpack.c.b16 %v1203_v9, %v1203_v9  ;;  %v1349_v35 = vshll.u32 %v9532_v18, 16  ;;  %v1256_v36 = vor.u32 %v1255_v12, %v1251_v11  ;;  %v8345_v5 = vld [vmem:[#allocation7 + $0x120] sm:$0xff] }
  0x64   : > { %v1258_v37 = vshll.u32 %v9534_v49, 16  ;;  %v727_v38 = vunpack.c.l.b16 %v657_v27  ;;  %v703_v39 = vunpack.c.l.b16 %v649_v6  ;;  %v372_v40 = vpack.c.bf16 %v340_v25, %v340_v25  ;;  %3232 = vmatpush.bf16.msrb.mxu2 %v8329_v3 }
  0x65   : > { %v1345_v41 = vsel %vm1225_vm3, %v1340_v19, %v1344_v20  ;;  %v442_v29 = vunpack.c.l.b16 %v371_v28  ;;  %v387_v42 = vpack.c.bf16 %v355_v30, %v355_v30  ;;  %v388_v43 = vpack.c.bf16 %v356_v34, %v356_v34  ;;  %3321 = vmatpush.bf16.msrb.mxu3 %v8337_v4  ;;  %3410 = vmatpush.bf16.msrb.mxu0 %v8345_v5 }
  0x66   : > { %v1347_v44 = vshrl.u32 %v9532_v18, 16  ;;  %v775_v45 = vpack.c.b16 %v727_v38, %v727_v38  ;;  %v751_v47 = vpack.c.b16 %v703_v39, %v703_v39  ;;  %v443_v50 = vunpack.c.l.b16 %v372_v40 }
  0x67   : > { %3064 = vmatmul.bf16.gmra.mxu0 %v9497_v23  ;;  %3104 = vmatmul.bf16.gmra.mxu2 %v9503_v32  ;;  %v773_v23 = vpack.c.b16 %v725_v21, %v725_v21  ;;  %v774_v32 = vpack.c.b16 %v726_v22, %v726_v22  ;;  %v458_v55 = vunpack.c.l.b16 %v387_v42  ;;  %v459_v57 = vunpack.c.l.b16 %v388_v43 }
  0x68   : > { %3153 = vmatmul.bf16.gmra.mxu1 %v1249_v17  ;;  %v373_v58 = vpack.c.bf16 %v341_v52, %v341_v52  ;;  %v374_v59 = vpack.c.bf16 %v342_v53, %v342_v53  ;;  %v1351_v61 = vrot.slane %v1349_v35, 1  ;;  %v1354_v62 = vshll.u32 %v9539_v26, 16  ;;  %872 = vst [vmem:[#allocation2 + $0x8c] sm:$0x1] %v775_v45 }
  0x69   : > { %870 = vst [vmem:[#allocation2 + $0x84] sm:$0xf] %v773_v23  ;;  %v1260_v63 = vrot.slane %v1258_v37, 1  ;;  %v9558_v0 = vld [vmem:[#allocation2 + $0x24] sm:$0xff]   ;;  %v471_v2 = vpack.c.b16 %v443_v50, %v442_v29  ;;  %v479_v7 = vpack.c.b16 %v459_v57, %v458_v55  ;;  %v389_v8 = vpack.c.bf16 %v357_v54, %v357_v54 }
  0x6a   : > { %871 = vst [vmem:[#allocation2 + $0x88] sm:$0xf] %v774_v32  ;;  %v9560_v1 = vld [vmem:[#allocation2 + $0x24] sm:$0xf0]  ;;  %v390_v11 = vpack.c.bf16 %v358_v60, %v358_v60  ;;  %v444_v15 = vunpack.c.l.b16 %v373_v58  ;;  %v445_v16 = vunpack.c.l.b16 %v374_v59  ;;  %v1356_v17 = vrot.slane %v1354_v62, 1 }
  0x6b   : > { %848 = vst [vmem:[#allocation2 + $0x2c] sm:$0x1] %v751_v47  ;;  %v506_v9 = vshrl.u32 %v471_v2, 16  ;;  %v509_v10 = vshll.u32 %v471_v2, 16  ;;  %v562_v12 = vshrl.u32 %v479_v7, 16  ;;  %v565_v13 = vshll.u32 %v479_v7, 16 }
  0x6c   : > { %3193 = vmatmul.bf16.gmra.mxu3 %v1345_v41  ;;  %v1352_v20 = vor.u32 %v1351_v61, %v1347_v44  ;;  %v1261_v21 = vsel %vm1225_vm3, %v1256_v36, %v1260_v63  ;;  %v460_v6 = vunpack.c.l.b16 %v389_v8  ;;  %v461_v30 = vunpack.c.l.b16 %v390_v11 }
  0x6d   : > { %v508_v19 = vrot.slane %v506_v9, 7  ;;  %v564_v27 = vrot.slane %v562_v12, 7  ;;  %v472_v37 = vpack.c.b16 %v445_v16, %v444_v15  ;;  %v1265_v36 = vshll.u32 %v9558_v0, 16  ;;  %v359_v12 = vld [vmem:[%s9421_s13 + $0xd0] sm:$0xff]  ;;  %v8328_v15 = vld [vmem:[#allocation7 + $0x98] sm:$0xff] }
  0x6e   : > { %v1357_v44 = vsel %vm1225_vm3, %v1352_v20, %v1356_v17  ;;  %v480_v50 = vpack.c.b16 %v461_v30, %v460_v6  ;;  %v8336_v16 = vld [vmem:[#allocation7 + $0xd8] sm:$0xff]  ;;  %3233 = vmatpush.bf16.msrb.mxu2 %v8328_v15 }
  0x6f   : > { %v511_v28 = vor.u32 %v509_v10, %v508_v19  ;;  %v931_v34 = vld [vmem:[#allocation2 + $0x8c] sm:$0x1]  ;;  %v567_v35 = vor.u32 %v565_v13, %v564_v27  ;;  %v658_v23 = vsel %vm9449_vm2, %v564_v27, 0  ;;  %v650_v32 = vsel %vm9449_vm2, %v508_v19, 0  ;;  %3322 = vmatpush.bf16.msrb.mxu3 %v8336_v16 }
  0x70   : > { %v1204_v38 = vunpack.c.l.b16 %v931_v34  ;;  %v730_v43 = vunpack.c.l.b16 %v658_v23  ;;  %v706_v47 = vunpack.c.l.b16 %v650_v32  ;;  %v1267_v59 = vrot.slane %v1265_v36, 1  ;;  %v360_v13 = vld [vmem:[%s9421_s13 + $0xd8] sm:$0xff] }
  0x71   : > { %v9563_v22 = vld [vmem:[#allocation2 + $0x84] sm:$0xff]   ;;  %v634_v40 = vsel %vm9449_vm2, 0, %v511_v28  ;;  %v642_v45 = vsel %vm9449_vm2, 0, %v567_v35  ;;  %v513_v62 = vshrl.u32 %v472_v37, 16  ;;  %v516_v4 = vshll.u32 %v472_v37, 16 }
  0x72   : > { %v9565_v25 = vld [vmem:[#allocation2 + $0x84] sm:$0xf0]  ;;  %v923_v39 = vld [vmem:[#allocation2 + $0x2c] sm:$0x1]  ;;  %v704_v29 = vunpack.c.l.b16 %v634_v40  ;;  %v705_v42 = vunpack.c.h.b16 %v634_v40  ;;  %v728_v55 = vunpack.c.l.b16 %v642_v45  ;;  %v9581_v57 = vpack.c.b16 %v1204_v38, %v1204_v38  ;;  %v343_v28 = vld [vmem:[%s9421_s13 + $0x50] sm:$0xff] }
  0x73   : > { %v1196_v41 = vunpack.c.l.b16 %v923_v39  ;;  %v1361_v58 = vshll.u32 %v9563_v22, 16  ;;  %v778_v61 = vpack.c.b16 %v730_v43, %v730_v43  ;;  %v754_v3 = vpack.c.b16 %v706_v47, %v706_v47  ;;  %v8344_v17 = vld [vmem:[#allocation7 + $0x118] sm:$0xff] }
  0x74   : > { %v752_v53 = vpack.c.b16 %v704_v29, %v704_v29  ;;  %v753_v54 = vpack.c.b16 %v705_v42, %v705_v42  ;;  %v776_v60 = vpack.c.b16 %v728_v55, %v728_v55  ;;  %v1359_v5 = vshrl.u32 %v9563_v22, 16  ;;  %v344_v30 = vld [vmem:[%s9421_s13 + $0x58] sm:$0xff]  ;;  %3411 = vmatpush.bf16.msrb.mxu0 %v8344_v17 }
  0x75   : > { %v9579_v52 = vpack.c.b16 %v1196_v41, %v1196_v41  ;;  %v515_v7 = vrot.slane %v513_v62, 7  ;;  %v569_v8 = vshrl.u32 %v480_v50, 16  ;;  %v572_v9 = vshll.u32 %v480_v50, 16  ;;  %875 = vst [vmem:[#allocation2 + $0x98] sm:$0x1] %v778_v61 }
  0x76   : > { %849 = vst [vmem:[#allocation2 + $0x30] sm:$0xf] %v752_v53  ;;  %v1363_v10 = vrot.slane %v1361_v58, 1  ;;  %v1366_v11 = vshll.u32 %v9581_v57, 16  ;;  %v391_v34 = vpack.c.bf16 %v359_v12, %v359_v12  ;;  %v375_v36 = vpack.c.bf16 %v343_v28, %v343_v28 }
  0x77   : > { %3069 = vmatmul.bf16.gmra.mxu0 %v9515_v51  ;;  %3109 = vmatmul.bf16.gmra.mxu2 %v9532_v18  ;;  %v1263_v51 = vshrl.u32 %v9558_v0, 16  ;;  %v729_v18 = vunpack.c.h.b16 %v642_v45  ;;  %v1270_v63 = vshll.u32 %v9579_v52, 16  ;;  %850 = vst [vmem:[#allocation2 + $0x34] sm:$0xf] %v753_v54  ;;  %v518_v19 = vor.u32 %v516_v4, %v515_v7 }
  0x78   : > { %3158 = vmatmul.bf16.gmra.mxu1 %v1261_v21  ;;  %873 = vst [vmem:[#allocation2 + $0x90] sm:$0xf] %v776_v60  ;;  %v571_v20 = vrot.slane %v569_v8, 7  ;;  %v651_v6 = vsel %vm9449_vm2, %v515_v7, 0  ;;  %v392_v40 = vpack.c.bf16 %v360_v13, %v360_v13  ;;  %v376_v43 = vpack.c.bf16 %v344_v30, %v344_v30 }
  0x79   : > { %v777_v2 = vpack.c.b16 %v729_v18, %v729_v18  ;;  %v1268_v21 = vor.u32 %v1267_v59, %v1263_v51  ;;  %v1272_v27 = vrot.slane %v1270_v63, 1  ;;  %851 = vst [vmem:[#allocation2 + $0x38] sm:$0x1] %v754_v3  ;;  %v635_v35 = vsel %vm9449_vm2, 0, %v518_v19 }
  0x7a   : > { %v574_v23 = vor.u32 %v572_v9, %v571_v20  ;;  %v659_v32 = vsel %vm9449_vm2, %v571_v20, 0  ;;  %v709_v37 = vunpack.c.l.b16 %v651_v6  ;;  %v707_v38 = vunpack.c.l.b16 %v635_v35 }
  0x7b   : > { %874 = vst [vmem:[#allocation2 + $0x94] sm:$0xf] %v777_v2  ;;  %v708_v39 = vunpack.c.h.b16 %v635_v35  ;;  %v733_v29 = vunpack.c.l.b16 %v659_v32  ;;  %v446_v54 = vunpack.c.l.b16 %v375_v36  ;;  %v462_v55 = vunpack.c.l.b16 %v391_v34  ;;  %v8327_v32 = vld [vmem:[#allocation7 + $0x90] sm:$0xff] }
  0x7c   : > { %3198 = vmatmul.bf16.gmra.mxu3 %v1357_v44  ;;  %v643_v41 = vsel %vm9449_vm2, 0, %v574_v23  ;;  %v757_v42 = vpack.c.b16 %v709_v37, %v709_v37  ;;  %v755_v44 = vpack.c.b16 %v707_v38, %v707_v38  ;;  %v1364_v58 = vor.u32 %v1363_v10, %v1359_v5  ;;  %v932_v59 = vld [vmem:[#allocation2 + $0x98] sm:$0x1]  ;;  %v8335_v37 = vld [vmem:[#allocation7 + $0xd0] sm:$0xff]  ;;  %3234 = vmatpush.bf16.msrb.mxu2 %v8327_v32 }
  0x7d   : > { %v756_v45 = vpack.c.b16 %v708_v39, %v708_v39  ;;  %v731_v50 = vunpack.c.l.b16 %v643_v41  ;;  %v732_v53 = vunpack.c.h.b16 %v643_v41  ;;  %v1368_v51 = vrot.slane %v1366_v11, 1  ;;  %v8343_v41 = vld [vmem:[#allocation7 + $0x110] sm:$0xff]  ;;  %3323 = vmatpush.bf16.msrb.mxu3 %v8335_v37 }
  0x7e   : > { %v9600_v47 = vld [vmem:[#allocation2 + $0x30] sm:$0xff]   ;;  %854 = vst [vmem:[#allocation2 + $0x44] sm:$0x1] %v757_v42  ;;  %v1273_v18 = vsel %vm1225_vm3, %v1268_v21, %v1272_v27  ;;  %v447_v60 = vunpack.c.l.b16 %v376_v43  ;;  %v781_v2 = vpack.c.b16 %v733_v29, %v733_v29  ;;  %v463_v3 = vunpack.c.l.b16 %v392_v40  ;;  %3412 = vmatpush.bf16.msrb.mxu0 %v8343_v41 }
  0x7f   : > { %852 = vst [vmem:[#allocation2 + $0x3c] sm:$0xf] %v755_v44  ;;  %v779_v62 = vpack.c.b16 %v731_v50, %v731_v50  ;;  %v780_v63 = vpack.c.b16 %v732_v53, %v732_v53  ;;  %v1277_v4 = vshll.u32 %v9600_v47, 16  ;;  %v1205_v5 = vunpack.c.l.b16 %v932_v59  ;;  %v345_v42 = vld [vmem:[%s9421_s13 + $0x60] sm:$0xff]  ;;  %v346_v50 = vld [vmem:[%s9421_s13 + $0x68] sm:$0xff] }
  0x80   : > { %v924_v61 = vld [vmem:[#allocation2 + $0x38] sm:$0x1]  ;;  %853 = vst [vmem:[#allocation2 + $0x40] sm:$0xf] %v756_v45  ;;  %v473_v9 = vpack.c.b16 %v447_v60, %v446_v54  ;;  %v481_v10 = vpack.c.b16 %v463_v3, %v462_v55  ;;  %v1275_v17 = vshrl.u32 %v9600_v47, 16  ;;  %v361_v53 = vld [vmem:[%s9421_s13 + $0xe0] sm:$0xff] }
  0x81   : > { %v1197_v8 = vunpack.c.l.b16 %v924_v61  ;;  %876 = vst [vmem:[#allocation2 + $0x9c] sm:$0xf] %v779_v62  ;;  %v1279_v19 = vrot.slane %v1277_v4, 1  ;;  %v9613_v20 = vpack.c.b16 %v1205_v5, %v1205_v5  ;;  %v362_v54 = vld [vmem:[%s9421_s13 + $0xe8] sm:$0xff]  ;;  %v377_v62 = vpack.c.bf16 %v345_v42, %v345_v42 }
  0x82   : > { %v9606_v7 = vld [vmem:[#allocation2 + $0x90] sm:$0xff]   ;;  %877 = vst [vmem:[#allocation2 + $0xa0] sm:$0xf] %v780_v63  ;;  %v520_v12 = vshrl.u32 %v473_v9, 16  ;;  %v523_v13 = vshll.u32 %v473_v9, 16  ;;  %v576_v15 = vshrl.u32 %v481_v10, 16  ;;  %v393_v3 = vpack.c.bf16 %v361_v53, %v361_v53 }
  0x83   : > { %v9608_v11 = vpack.c.b16 %v1197_v8, %v1197_v8  ;;  %878 = vst [vmem:[#allocation2 + $0xa4] sm:$0x1] %v781_v2  ;;  %v579_v16 = vshll.u32 %v481_v10, 16  ;;  %v1371_v30 = vshrl.u32 %v9606_v7, 16  ;;  %v1378_v39 = vshll.u32 %v9613_v20, 16 }
  0x84   : > { %v522_v21 = vrot.slane %v520_v12, 7  ;;  %v578_v27 = vrot.slane %v576_v15, 7  ;;  %v1280_v36 = vor.u32 %v1279_v19, %v1275_v17  ;;  %v378_v2 = vpack.c.bf16 %v346_v50, %v346_v50 }
  0x85   : > { %v1282_v6 = vshll.u32 %v9608_v11, 16  ;;  %v925_v40 = vld [vmem:[#allocation2 + $0x44] sm:$0x1]  ;;  %v394_v4 = vpack.c.bf16 %v362_v54, %v362_v54 }
  0x86   : > { %v525_v28 = vor.u32 %v523_v13, %v522_v21  ;;  %v581_v38 = vor.u32 %v579_v16, %v578_v27  ;;  %v1198_v59 = vunpack.c.l.b16 %v925_v40 }
  0x87   : > { %3074 = vmatmul.bf16.gmra.mxu0 %v9558_v0  ;;  %3114 = vmatmul.bf16.gmra.mxu2 %v9563_v22  ;;  %v1369_v0 = vsel %vm1225_vm3, %v1364_v58, %v1368_v51  ;;  %v1373_v22 = vshll.u32 %v9606_v7, 16  ;;  %v9617_v35 = vld [vmem:[#allocation2 + $0x3c] sm:$0xff]   ;;  %v1284_v55 = vrot.slane %v1282_v6, 1  ;;  %v660_v51 = vsel %vm9449_vm2, %v578_v27, 0 }
  0x88   : > { %3163 = vmatmul.bf16.gmra.mxu1 %v1273_v18  ;;  %v9619_v23 = vld [vmem:[#allocation2 + $0x3c] sm:$0xf0]  ;;  %v636_v29 = vsel %vm9449_vm2, 0, %v525_v28  ;;  %v644_v45 = vsel %vm9449_vm2, 0, %v581_v38  ;;  %v652_v18 = vsel %vm9449_vm2, %v522_v21, 0  ;;  %v736_v10 = vunpack.c.l.b16 %v660_v51 }
  0x89   : > { %v1375_v34 = vrot.slane %v1373_v22, 1  ;;  %v710_v43 = vunpack.c.l.b16 %v636_v29  ;;  %v711_v44 = vunpack.c.h.b16 %v636_v29  ;;  %v734_v58 = vunpack.c.l.b16 %v644_v45  ;;  %v9634_v5 = vld [vmem:[#allocation2 + $0x9c] sm:$0xff]  }
  0x8a   : > { %v735_v63 = vunpack.c.h.b16 %v644_v45  ;;  %v9636_v8 = vld [vmem:[#allocation2 + $0x9c] sm:$0xf0]  ;;  %v712_v12 = vunpack.c.l.b16 %v652_v18  ;;  %v1285_v22 = vsel %vm1225_vm3, %v1280_v36, %v1284_v55  ;;  %v9639_v16 = vpack.c.b16 %v1198_v59, %v1198_v59  ;;  %v933_v28 = vld [vmem:[#allocation2 + $0xa4] sm:$0x1]  ;;  %v8334_v45 = vld [vmem:[#allocation7 + $0xc8] sm:$0xff] }
  0x8b   : > { %v758_v60 = vpack.c.b16 %v710_v43, %v710_v43  ;;  %v759_v61 = vpack.c.b16 %v711_v44, %v711_v44  ;;  %v782_v9 = vpack.c.b16 %v734_v58, %v734_v58  ;;  %v1376_v13 = vor.u32 %v1375_v34, %v1371_v30  ;;  %v8326_v44 = vld [vmem:[#allocation7 + $0x88] sm:$0xff]  ;;  %3324 = vmatpush.bf16.msrb.mxu3 %v8334_v45  ;;  %v8356_v59 = vld [vmem:[#allocation7 + $0x178] sm:$0xff] }
  0x8c   : > { %3203 = vmatmul.bf16.gmra.mxu3 %v1369_v0  ;;  %v1380_v0 = vrot.slane %v1378_v39, 1  ;;  %v783_v15 = vpack.c.b16 %v735_v63, %v735_v63  ;;  %v784_v17 = vpack.c.b16 %v736_v10, %v736_v10  ;;  %v760_v19 = vpack.c.b16 %v712_v12, %v712_v12  ;;  %v8342_v55 = vld [vmem:[#allocation7 + $0x108] sm:$0xff]  ;;  %3235 = vmatpush.bf16.msrb.mxu2 %v8326_v44 }
  0x8d   : > { %855 = vst [vmem:[#allocation2 + $0x48] sm:$0xf] %v758_v60  ;;  %v448_v21 = vunpack.c.l.b16 %v377_v62  ;;  %v449_v27 = vunpack.c.l.b16 %v378_v2  ;;  %v464_v6 = vunpack.c.l.b16 %v393_v3  ;;  %v1289_v30 = vshll.u32 %v9617_v35, 16  ;;  %3413 = vmatpush.bf16.msrb.mxu0 %v8342_v55  ;;  %3496 = vmatpush.bf16.msrb.mxu1 %v8356_v59 }
  0x8e   : > { %856 = vst [vmem:[#allocation2 + $0x4c] sm:$0xf] %v759_v61  ;;  %v465_v34 = vunpack.c.l.b16 %v394_v4  ;;  %v1381_v37 = vsel %vm1225_vm3, %v1376_v13, %v1380_v0  ;;  %v1294_v38 = vshll.u32 %v9639_v16, 16  ;;  %v1206_v36 = vunpack.c.l.b16 %v933_v28 }
  0x8f   : > { %879 = vst [vmem:[#allocation2 + $0xa8] sm:$0xf] %v782_v9  ;;  %v474_v32 = vpack.c.b16 %v449_v27, %v448_v21  ;;  %v1291_v41 = vrot.slane %v1289_v30, 1  ;;  %v1385_v54 = vshll.u32 %v9634_v5, 16  ;;  %v1383_v61 = vshrl.u32 %v9634_v5, 16 }
  0x90   : > { %880 = vst [vmem:[#allocation2 + $0xac] sm:$0xf] %v783_v15  ;;  %v482_v39 = vpack.c.b16 %v465_v34, %v464_v6  ;;  %v9647_v53 = vpack.c.b16 %v1206_v36, %v1206_v36  ;;  %v1296_v18 = vrot.slane %v1294_v38, 1 }
  0x91   : > { %881 = vst [vmem:[#allocation2 + $0xb0] sm:$0x1] %v784_v17  ;;  %v530_v40 = vshll.u32 %v474_v32, 16  ;;  %v1387_v12 = vrot.slane %v1385_v54, 1  ;;  %v8333_v54 = vld [vmem:[#allocation7 + $0xc0] sm:$0xff] }
  0x92   : > { %857 = vst [vmem:[#allocation2 + $0x50] sm:$0x1] %v760_v19  ;;  %v583_v29 = vshrl.u32 %v482_v39, 16  ;;  %v586_v42 = vshll.u32 %v482_v39, 16  ;;  %v1390_v13 = vshll.u32 %v9647_v53, 16  ;;  %3325 = vmatpush.bf16.msrb.mxu3 %v8333_v54 }
  0x94   : > { %v585_v50 = vrot.slane %v583_v29, 7  ;;  %v1392_v38 = vrot.slane %v1390_v13, 1 }
  0x95   : > { %v9661_v34 = vld [vmem:[#allocation2 + $0x48] sm:$0xff]  }
  0x96   : > { %v588_v60 = vor.u32 %v586_v42, %v585_v50  ;;  %v661_v63 = vsel %vm9449_vm2, %v585_v50, 0  ;;  %v8325_v50 = vld [vmem:[#allocation7 + $0x80] sm:$0xff] }
  0x97   : > { %3079 = vmatmul.bf16.gmra.mxu0 %v9600_v47  ;;  %3119 = vmatmul.bf16.gmra.mxu2 %v9606_v7  ;;  %v527_v47 = vshrl.u32 %v474_v32, 16  ;;  %v1287_v7 = vshrl.u32 %v9617_v35, 16  ;;  %v739_v21 = vunpack.c.l.b16 %v661_v63 }
  0x98   : > { %3168 = vmatmul.bf16.gmra.mxu1 %v1285_v22  ;;  %v645_v9 = vsel %vm9449_vm2, 0, %v588_v60  ;;  %v934_v36 = vld [vmem:[#allocation2 + $0xb0] sm:$0x1]  ;;  %3236 = vmatpush.bf16.msrb.mxu2 %v8325_v50 }
  0x99   : > { %v529_v43 = vrot.slane %v527_v47, 7  ;;  %v1292_v51 = vor.u32 %v1291_v41, %v1287_v7  ;;  %v926_v2 = vld [vmem:[#allocation2 + $0x50] sm:$0x1]  ;;  %v737_v0 = vunpack.c.l.b16 %v645_v9  ;;  %v738_v22 = vunpack.c.h.b16 %v645_v9 }
  0x9a   : > { %v1199_v27 = vunpack.c.l.b16 %v926_v2  ;;  %v787_v32 = vpack.c.b16 %v739_v21, %v739_v21  ;;  %v1301_v47 = vshll.u32 %v9661_v34, 16  ;;  %v1207_v41 = vunpack.c.l.b16 %v934_v36  ;;  %v8372_v36 = vld [vmem:[#allocation7 + $0x1f8] sm:$0xff] }
  0x9b   : > { %v532_v58 = vor.u32 %v530_v40, %v529_v43  ;;  %v653_v10 = vsel %vm9449_vm2, %v529_v43, 0  ;;  %v1297_v15 = vsel %vm1225_vm3, %v1292_v51, %v1296_v18  ;;  %v785_v6 = vpack.c.b16 %v737_v0, %v737_v0  ;;  %v8355_v43 = vld [vmem:[#allocation7 + $0x170] sm:$0xff]  ;;  %v8354_v51 = vld [vmem:[#allocation7 + $0x168] sm:$0xff]  ;;  %v8341_v18 = vld [vmem:[#allocation7 + $0x100] sm:$0xff]  ;;  %3674 = vmatpush.bf16.msra.mxu3 %v8372_v36 }
  0x9c   : > { %3208 = vmatmul.bf16.gmra.mxu3 %v1381_v37  ;;  %v786_v28 = vpack.c.b16 %v738_v22, %v738_v22  ;;  %v715_v30 = vunpack.c.l.b16 %v653_v10  ;;  %v1388_v37 = vor.u32 %v1387_v12, %v1383_v61  ;;  %v9666_v40 = vpack.c.b16 %v1199_v27, %v1199_v27  ;;  %884 = vst [vmem:[#allocation2 + $0xbc] sm:$0x1] %v787_v32  ;;  %v8353_v12 = vld [vmem:[#allocation7 + $0x160] sm:$0xff] }
  0x9d   : > { %v637_v62 = vsel %vm9449_vm2, 0, %v532_v58  ;;  %882 = vst [vmem:[#allocation2 + $0xb4] sm:$0xf] %v785_v6  ;;  %v1303_v29 = vrot.slane %v1301_v47, 1  ;;  %v9675_v58 = vpack.c.b16 %v1207_v41, %v1207_v41  ;;  %3497 = vmatpush.bf16.msrb.mxu1 %v8355_v43  ;;  %3414 = vmatpush.bf16.msrb.mxu0 %v8341_v18  ;;  %v9691_v32 = vld [vmem:[#allocation2 + $0xc] sm:$0xff]  }
  0x9e   : > { %v713_v3 = vunpack.c.l.b16 %v637_v62  ;;  %v714_v4 = vunpack.c.h.b16 %v637_v62  ;;  %v763_v39 = vpack.c.b16 %v715_v30, %v715_v30  ;;  %883 = vst [vmem:[#allocation2 + $0xb8] sm:$0xf] %v786_v28  ;;  %v1393_v7 = vsel %vm1225_vm3, %v1388_v37, %v1392_v38  ;;  %v8964_v37 = vld [vmem:[#allocation2 + $0xc] sm:$0xf0]  ;;  %v8351_v38 = vld [vmem:[#allocation7 + $0x150] sm:$0xff] }
  0x9f   : > { %v1306_v42 = vshll.u32 %v9666_v40, 16  ;;  %v1402_v2 = vshll.u32 %v9675_v58, 16  ;;  %v8349_v18 = vld [vmem:[#allocation7 + $0x140] sm:$0xff] }
  0xa0   : > { %v761_v17 = vpack.c.b16 %v713_v3, %v713_v3  ;;  %v762_v19 = vpack.c.b16 %v714_v4, %v714_v4  ;;  %860 = vst [vmem:[#allocation2 + $0x5c] sm:$0x1] %v763_v39  ;;  %v8364_v39 = vld [vmem:[#allocation7 + $0x1b8] sm:$0xff] }
  0xa1   : > { %v1308_v60 = vrot.slane %v1306_v42, 1  ;;  %3498 = vmatpush.bf16.msrb.mxu1 %v8354_v51  ;;  %v1404_v0 = vrot.slane %v1402_v2, 1  ;;  %3585 = vmatpush.bf16.msra.mxu2 %v8364_v39  ;;  %v8380_v42 = vld [vmem:[#allocation7 + $0x238] sm:$0xff] }
  0xa2   : > { %858 = vst [vmem:[#allocation2 + $0x54] sm:$0xf] %v761_v17  ;;  %3763 = vmatpush.bf16.msra.mxu0 %v8380_v42 }
  0xa3   : > { %859 = vst [vmem:[#allocation2 + $0x58] sm:$0xf] %v762_v19  ;;  %v935_v22 = vld [vmem:[#allocation2 + $0xbc] sm:$0x1]  ;;  %v8352_v19 = vld [vmem:[#allocation7 + $0x158] sm:$0xff] }
  0xa4   : > { %v1208_v27 = vunpack.c.l.b16 %v935_v22 }
  0xa5   : > { %v918_v3 = vld [vmem:[#allocation2 + $0xb4] sm:$0xff]   ;;  %3499 = vmatpush.bf16.msrb.mxu1 %v8353_v12 }
  0xa6   : > { %v9680_v4 = vld [vmem:[#allocation2 + $0xb4] sm:$0xf0]  ;;  %v9693_v47 = vpack.c.b16 %v1208_v27, %v1208_v27  ;;  %v1407_v43 = vshrl.u32 %v918_v3, 16 }
  0xa7   : > { %3084 = vmatmul.bf16.gmra.mxu0 %v9617_v35  ;;  %3124 = vmatmul.bf16.gmra.mxu2 %v9634_v5  ;;  %v8652_v35 = vld [vmem:[#allocation2 + $0xa8] sm:$0xff]   ;;  %v1299_v5 = vshrl.u32 %v9661_v34, 16  ;;  %v927_v61 = vld [vmem:[#allocation2 + $0x5c] sm:$0x1] }
  0xa8   : > { %3173 = vmatmul.bf16.gmra.mxu1 %v1297_v15  ;;  %v1397_v55 = vshll.u32 %v8652_v35, 16  ;;  %v1395_v62 = vshrl.u32 %v8652_v35, 16  ;;  %v1200_v10 = vunpack.c.l.b16 %v927_v61  ;;  %v1414_v54 = vshll.u32 %v9693_v47, 16 }
  0xa9   : > { %v9677_v59 = vor.u32 %v1303_v29, %v1299_v5  ;;  %3500 = vmatpush.bf16.msrb.mxu1 %v8352_v19  ;;  %v984_v5 = vld [vmem:[#allocation2 + $0x14] sm:$0x1]  ;;  %v8350_v29 = vld [vmem:[#allocation7 + $0x148] sm:$0xff] }
  0xaa   : > { %v9671_v44 = vld [vmem:[#allocation2 + $0x54] sm:$0xff]   ;;  %v1399_v63 = vrot.slane %v1397_v55, 1  ;;  %v9685_v15 = vpack.c.b16 %v1200_v10, %v1200_v10  ;;  %v1659_v55 = vunpack.c.l.b16 %v984_v5  ;;  %v8669_v10 = vld [vmem:[#allocation2] sm:$0xe] }
  0xab   : > { %v9673_v45 = vld [vmem:[#allocation2 + $0x54] sm:$0xf0]  ;;  %v1309_v9 = vsel %vm1225_vm3, %v9677_v59, %v1308_v60  ;;  %v1313_v17 = vshll.u32 %v9671_v44, 16  ;;  %v1311_v6 = vshrl.u32 %v9671_v44, 16  ;;  %v8965_v60 = vld [vmem:[#allocation2 + $0xc] sm:$0xe] }
  0xac   : > { %3213 = vmatmul.bf16.gmra.mxu3 %v1393_v7  ;;  %v1400_v13 = vor.u32 %v1399_v63, %v1395_v62  ;;  %v1318_v30 = vshll.u32 %v9685_v15, 16  ;;  %v1409_v7 = vshll.u32 %v918_v3, 16  ;;  %v1416_v62 = vrot.slane %v1414_v54, 1  ;;  %v8653_v5 = vld [vmem:[#allocation2 + $0x18] sm:$0xff]  }
  0xad   : > { %v1315_v28 = vrot.slane %v1313_v17, 1  ;;  %3501 = vmatpush.bf16.msrb.mxu1 %v8351_v38  ;;  %v1694_v63 = vshll.u32 %v9691_v32, 16  ;;  %v1675_v2 = vpack.c.b16 %v1659_v55, %v1659_v55  ;;  %v8966_v19 = vor.u32 %v8965_v60, %v8964_v37  ;;  %v8693_v54 = vld [vmem:[#allocation2 + $0x18] sm:$0xe] }
  0xae   : > { %v1405_v21 = vsel %vm1225_vm3, %v1400_v13, %v1404_v0  ;;  %v1411_v50 = vrot.slane %v1409_v7, 1  ;;  %v1692_v0 = vshrl.u32 %v9691_v32, 16  ;;  %v8968_v7 = vld [vmem:[#allocation2 + $0xc] sm:$0xe] }
  0xaf   : > { %v1316_v41 = vor.u32 %v1315_v28, %v1311_v6  ;;  %v1696_v22 = vrot.slane %v1694_v63, 1  ;;  %v1699_v17 = vshll.u32 %v1675_v2, 16  ;;  %v1947_v6 = vrot.slane %v8966_v19, 1 }
  0xb0   : > { %v1412_v61 = vor.u32 %v1411_v50, %v1407_v43  ;;  %v1948_v28 = vrot.slane %v1675_v2, 1  ;;  %v8692_v50 = vld [vmem:[#allocation2 + $0x18] sm:$0xf0]  ;;  %v8969_v55 = vor.u32 %v8968_v7, %v9499_v24  ;;  %v9708_v2 = vld [vmem:[#allocation2 + $0x24] sm:$0xff]  }
  0xb1   : > { %3502 = vmatpush.bf16.msrb.mxu1 %v8350_v29  ;;  %v1701_v27 = vrot.slane %v1699_v17, 1  ;;  %v8694_v63 = vor.u32 %v8693_v54, %v8692_v50 }
  0xb2   : > { %v1417_v12 = vsel %vm1225_vm3, %v1412_v61, %v1416_v62  ;;  %v1949_v37 = vsel %vm1482_vm4, %v1947_v6, %v1948_v28  ;;  %v8379_v28 = vld [vmem:[#allocation7 + $0x230] sm:$0xff] }
  0xb3   : > { %3764 = vmatpush.bf16.msra.mxu0 %v8379_v28 }
  0xb5   : > { %3503 = vmatpush.bf16.msrb.mxu1 %v8349_v18  ;;  %v1704_v18 = vshrl.u32 %v8653_v5, 16 }
  0xb7   : > { %3089 = vmatmul.bf16.gmra.mxu0 %v9661_v34  ;;  %3129 = vmatmul.bf16.gmra.mxu2 %v8652_v35  ;;  %v1320_v35 = vrot.slane %v1318_v30, 1  ;;  %v985_v30 = vld [vmem:[#allocation2 + $0x20] sm:$0x1] }
  0xb8   : > { %3178 = vmatmul.bf16.gmra.mxu1 %v1309_v9  ;;  %v8668_v9 = vld [vmem:[#allocation2] sm:$0xf0] }
  0xb9   : > { %v1321_v51 = vsel %vm1225_vm3, %v1316_v41, %v1320_v35  ;;  %v8670_v13 = vor.u32 %v8669_v10, %v8668_v9  ;;  %v1660_v41 = vunpack.c.l.b16 %v985_v30  ;;  %v8970_v9 = vld [vmem:[#allocation2 + $0x24] sm:$0xf0] }
  0xbb   : > { %v1676_v42 = vpack.c.b16 %v1660_v41, %v1660_v41  ;;  %v8971_v41 = vld [vmem:[#allocation2 + $0x24] sm:$0xe] }
  0xbc   : > { %3218 = vmatmul.bf16.gmra.mxu3 %v1405_v21  ;;  %v1697_v21 = vor.u32 %v1696_v22, %v1692_v0  ;;  %v1486_v0 = vrot.slane %v8969_v55, 1  ;;  %v1487_v22 = vrot.slane %v9520_v56, 1 }
  0xbd   : > { %v1711_v61 = vshll.u32 %v1676_v42, 16 }
  0xbe   : > { %v1702_v36 = vsel %vm1225_vm3, %v1697_v21, %v1701_v27  ;;  %v986_v21 = vld [vmem:[#allocation2 + $0x2c] sm:$0x1]  ;;  %v1488_v30 = vsel %vm1482_vm4, %v1486_v0, %v1487_v22  ;;  %v1490_v0 = vrot.slane %v9534_v49, 1  ;;  %v9733_v49 = vld [vmem:[#allocation2 + $0x30] sm:$0xff]  }
  0xbf   : > { %v1713_v24 = vrot.slane %v1711_v61, 1 }
  0xc7   : > { %3094 = vmatmul.bf16.gmra.mxu0 %v9671_v44  ;;  %3134 = vmatmul.bf16.gmra.mxu2 %v918_v3  ;;  %v1483_v44 = vrot.slane %v8670_v13, 1  ;;  %v1484_v3 = vrot.slane %v9443_v31, 1  ;;  %v1706_v31 = vshll.u32 %v8653_v5, 16  ;;  %v8371_v13 = vld [vmem:[#allocation7 + $0x1f0] sm:$0xff] }
  0xc8   : > { %3183 = vmatmul.bf16.gmra.mxu1 %v1321_v51  ;;  %3675 = vmatpush.bf16.msra.mxu3 %v8371_v13 }
  0xc9   : > { %v1485_v39 = vsel %vm1482_vm4, %v1483_v44, %v1484_v3  ;;  %v1708_v60 = vrot.slane %v1706_v31, 1  ;;  %v1950_v44 = vrot.slane %v8694_v63, 1  ;;  %v1951_v3 = vrot.slane %v1676_v42, 1  ;;  %v8671_v42 = vld [vmem:[#allocation2 + $0x18] sm:$0xf0] }
  0xca   : > { %v8972_v63 = vor.u32 %v8971_v41, %v8970_v9 }
  0xcb   : > { %v1709_v17 = vor.u32 %v1708_v60, %v1704_v18  ;;  %v1716_v18 = vshrl.u32 %v9708_v2, 16 }
  0xcc   : > { %3223 = vmatmul.bf16.gmra.mxu3 %v1417_v12  ;;  %v8363_v12 = vld [vmem:[#allocation7 + $0x1b0] sm:$0xff] }
  0xcd   : > { %3586 = vmatpush.bf16.msra.mxu2 %v8363_v12 }
  0xd4   : > { %v3060_v38 = vpop.f32.mrf.mxu0 }
  0xd5   : > { %v3149_v35 = vpop.f32.mrf.mxu1 }
  0xd6   : > { %v9705_v29 = vadd.f32 %v3149_v35, %v3060_v38  ;;  %v1714_v38 = vsel %vm1225_vm3, %v1709_v17, %v1713_v24 }
  0xd7   : > { %3237 = vmatmul.bf16.vlgmr.msrb.gmra.mxu2 %v1485_v39  ;;  %3415 = vmatmul.bf16.vlgmr.msrb.gmra.mxu0 %v1702_v36  ;;  %v1661_v39 = vunpack.c.l.b16 %v986_v21  ;;  %v1952_v36 = vsel %vm1482_vm4, %v1950_v44, %v1951_v3  ;;  %v987_v3 = vld [vmem:[#allocation2 + $0x38] sm:$0x1] }
  0xd8   : > { %3504 = vmatmul.bf16.vlgmr.msrb.gmra.mxu1 %v1949_v37  ;;  %v1718_v37 = vshll.u32 %v9708_v2, 16 }
  0xd9   : > { %v1677_v35 = vpack.c.b16 %v1661_v39, %v1661_v39 }
  0xda   : > { %v3100_v43 = vpop.f32.mrf.mxu2  ;;  %v1720_v60 = vrot.slane %v1718_v37, 1 }
  0xdb   : > { %v1723_v61 = vshll.u32 %v1677_v35, 16  ;;  %v1954_v44 = vrot.slane %v1677_v35, 1 }
  0xdc   : > { %v3062_v51 = vpop.f32.mrf.mxu0  ;;  %3326 = vmatmul.bf16.vlgmr.msrb.gmra.mxu3 %v9691_v32  ;;  %v1721_v22 = vor.u32 %v1720_v60, %v1716_v18 }
  0xdd   : > { %v3151_v62 = vpop.f32.mrf.mxu1  ;;  %v1725_v17 = vrot.slane %v1723_v61, 1 }
  0xde   : > { %v9711_v10 = vadd.f32 %v3151_v62, %v3062_v51 }
  0xdf   : > { %v3189_v19 = vpop.f32.mrf.mxu3  ;;  %v1726_v9 = vsel %vm1225_vm3, %v1721_v22, %v1725_v17  ;;  %v8362_v22 = vld [vmem:[#allocation7 + $0x1a8] sm:$0xff] }
  0xe0   : > { %v9714_v27 = vadd.f32 %v3189_v19, %v3100_v43  ;;  %v8672_v43 = vld [vmem:[#allocation2 + $0x18] sm:$0xe]  ;;  %v1953_v19 = vrot.slane %v8972_v63, 1  ;;  %v9742_v63 = vld [vmem:[#allocation2 + $0x3c] sm:$0xff]   ;;  %3587 = vmatpush.bf16.msra.mxu2 %v8362_v22 }
  0xe1   : > { %v8673_v51 = vor.u32 %v8672_v43, %v8671_v42  ;;  %v8695_v42 = vld [vmem:[#allocation2 + $0x30] sm:$0xf0]  ;;  %v8696_v43 = vld [vmem:[#allocation2 + $0x30] sm:$0xe]  ;;  %v8370_v17 = vld [vmem:[#allocation7 + $0x1e8] sm:$0xff]  ;;  %v1740_v22 = vshrl.u32 %v9742_v63, 16 }
  0xe2   : > { %v3102_v6 = vpop.f32.mrf.mxu2  ;;  %v1955_v39 = vsel %vm1482_vm4, %v1953_v19, %v1954_v44  ;;  %v1493_v19 = vrot.slane %v9579_v52, 1  ;;  %3676 = vmatpush.bf16.msra.mxu3 %v8370_v17 }
  0xe3   : > { %v1489_v13 = vrot.slane %v8673_v51, 1  ;;  %v1728_v51 = vshrl.u32 %v9733_v49, 16 }
  0xe4   : > { %v3065_v32 = vpop.f32.mrf.mxu0 }
  0xe5   : > { %v3154_v56 = vpop.f32.mrf.mxu1 }
  0xe6   : > { %v9719_v7 = vadd.f32 %v3154_v56, %v3065_v32  ;;  %v1491_v32 = vsel %vm1482_vm4, %v1489_v13, %v1490_v0  ;;  %v8976_v13 = vld [vmem:[#allocation2 + $0x3c] sm:$0xf0] }
  0xe7   : > { %3242 = vmatmul.bf16.gmra.mxu2 %v1488_v30  ;;  %3420 = vmatmul.bf16.gmra.mxu0 %v1714_v38  ;;  %v3191_v31 = vpop.f32.mrf.mxu3  ;;  %v1662_v30 = vunpack.c.l.b16 %v987_v3 }
  0xe8   : > { %3509 = vmatmul.bf16.gmra.mxu1 %v1952_v36  ;;  %v9722_v50 = vadd.f32 %v3191_v31, %v3102_v6  ;;  %v1730_v36 = vshll.u32 %v9733_v49, 16 }
  0xe9   : > { %v1678_v41 = vpack.c.b16 %v1662_v30, %v1662_v30  ;;  %v8378_v30 = vld [vmem:[#allocation7 + $0x228] sm:$0xff] }
  0xea   : > { %v3105_v54 = vpop.f32.mrf.mxu2  ;;  %v1732_v18 = vrot.slane %v1730_v36, 1  ;;  %3765 = vmatpush.bf16.msra.mxu0 %v8378_v30 }
  0xeb   : > { %v1735_v60 = vshll.u32 %v1678_v41, 16 }
  0xec   : > { %v3067_v55 = vpop.f32.mrf.mxu0  ;;  %3331 = vmatmul.bf16.gmra.mxu3 %v8653_v5  ;;  %v8974_v5 = vld [vmem:[#allocation2 + $0x24] sm:$0xe] }
  0xed   : > { %v3156_v62 = vpop.f32.mrf.mxu1  ;;  %v1737_v44 = vrot.slane %v1735_v60, 1 }
  0xee   : > { %v9725_v12 = vadd.f32 %v3156_v62, %v3067_v55  ;;  %v8697_v62 = vor.u32 %v8696_v43, %v8695_v42  ;;  %v8977_v43 = vld [vmem:[#allocation2 + $0x3c] sm:$0xe] }
  0xef   : > { %v3194_v24 = vpop.f32.mrf.mxu3 }
  0xf0   : > { %v9728_v21 = vadd.f32 %v3194_v24, %v3105_v54  ;;  %v8975_v54 = vor.u32 %v8974_v5, %v9560_v1  ;;  %v1733_v1 = vor.u32 %v1732_v18, %v1728_v51  ;;  %v8675_v51 = vld [vmem:[#allocation2 + $0x30] sm:$0xe] }
  0xf2   : > { %v3107_v6 = vpop.f32.mrf.mxu2  ;;  %v1492_v24 = vrot.slane %v8975_v54, 1 }
  0xf4   : > { %v3070_v28 = vpop.f32.mrf.mxu0 }
  0xf5   : > { %v3159_v38 = vpop.f32.mrf.mxu1 }
  0xf6   : > { %v9735_v56 = vadd.f32 %v3159_v38, %v3070_v28  ;;  %v1957_v28 = vrot.slane %v1678_v41, 1  ;;  %v1494_v38 = vsel %vm1482_vm4, %v1492_v24, %v1493_v19  ;;  %v1742_v41 = vshll.u32 %v9742_v63, 16 }
  0xf7   : > { %3247 = vmatmul.bf16.gmra.mxu2 %v1491_v32  ;;  %3425 = vmatmul.bf16.gmra.mxu0 %v1726_v9  ;;  %v3196_v35 = vpop.f32.mrf.mxu3  ;;  %v988_v32 = vld [vmem:[#allocation2 + $0x44] sm:$0x1] }
  0xf8   : > { %3514 = vmatmul.bf16.gmra.mxu1 %v1955_v39  ;;  %v9738_v37 = vadd.f32 %v3196_v35, %v3107_v6  ;;  %v1956_v6 = vrot.slane %v8697_v62, 1  ;;  %v1738_v39 = vsel %vm1225_vm3, %v1733_v1, %v1737_v44  ;;  %v1663_v36 = vunpack.c.l.b16 %v988_v32 }
  0xf9   : > { %v1744_v17 = vrot.slane %v1742_v41, 1  ;;  %v8978_v1 = vor.u32 %v8977_v43, %v8976_v13 }
  0xfa   : > { %v3110_v31 = vpop.f32.mrf.mxu2  ;;  %v1958_v35 = vsel %vm1482_vm4, %v1956_v6, %v1957_v28  ;;  %v1496_v6 = vrot.slane %v9608_v11, 1 }
  0xfb   : > { %v1745_v28 = vor.u32 %v1744_v17, %v1740_v22  ;;  %v1959_v30 = vrot.slane %v8978_v1, 1 }
  0xfc   : > { %v3072_v55 = vpop.f32.mrf.mxu0  ;;  %3336 = vmatmul.bf16.gmra.mxu3 %v9708_v2 }
  0xfd   : > { %v3161_v61 = vpop.f32.mrf.mxu1 }
  0xfe   : > { %v9745_v0 = vadd.f32 %v3161_v61, %v3072_v55  ;;  %v8674_v55 = vld [vmem:[#allocation2 + $0x30] sm:$0xf0] }
  0xff   : > { %v3199_v3 = vpop.f32.mrf.mxu3  ;;  %v8676_v62 = vor.u32 %v8675_v51, %v8674_v55 }
 0x100   : > { %v9748_v9 = vadd.f32 %v3199_v3, %v3110_v31  ;;  %v1679_v31 = vpack.c.b16 %v1663_v36, %v1663_v36 }
 0x101   : > { %v1495_v3 = vrot.slane %v8676_v62, 1  ;;  %v8699_v62 = vld [vmem:[#allocation2 + $0x48] sm:$0xe] }
 0x102   : > { %v3112_v5 = vpop.f32.mrf.mxu2  ;;  %v1747_v24 = vshll.u32 %v1679_v31, 16 }
 0x104   : > { %v3075_v2 = vpop.f32.mrf.mxu0  ;;  %v1749_v32 = vrot.slane %v1747_v24, 1 }
 0x105   : > { %v3164_v52 = vpop.f32.mrf.mxu1 }
 0x106   : > { %v9753_v42 = vadd.f32 %v3164_v52, %v3075_v2  ;;  %v1960_v2 = vrot.slane %v1679_v31, 1  ;;  %v1750_v13 = vsel %vm1225_vm3, %v1745_v28, %v1749_v32  ;;  %v8361_v32 = vld [vmem:[#allocation7 + $0x1a0] sm:$0xff] }
 0x107   : > { %3252 = vmatmul.bf16.gmra.mxu2 %v1494_v38  ;;  %3430 = vmatmul.bf16.gmra.mxu0 %v1738_v39  ;;  %v3201_v54 = vpop.f32.mrf.mxu3  ;;  %v989_v38 = vld [vmem:[#allocation2 + $0x50] sm:$0x1] }
 0x108   : > { %3519 = vmatmul.bf16.gmra.mxu1 %v1958_v35  ;;  %v9756_v18 = vadd.f32 %v3201_v54, %v3112_v5  ;;  %v1497_v35 = vsel %vm1482_vm4, %v1495_v3, %v1496_v6  ;;  %v1961_v41 = vsel %vm1482_vm4, %v1959_v30, %v1960_v2  ;;  %v8980_v54 = vld [vmem:[#allocation2 + $0x3c] sm:$0xe]  ;;  %v9773_v3 = vld [vmem:[#allocation2 + $0x54] sm:$0xff]   ;;  %v1499_v30 = vrot.slane %v9639_v16, 1  ;;  %3588 = vmatpush.bf16.msra.mxu2 %v8361_v32 }
 0x109   : > { %v8981_v17 = vor.u32 %v8980_v54, %v9619_v23  ;;  %v8982_v6 = vld [vmem:[#allocation2 + $0x54] sm:$0xf0] }
 0x10a   : > { %v3115_v60 = vpop.f32.mrf.mxu2 }
 0x10b   : > { %v1498_v2 = vrot.slane %v8981_v17, 1 }
 0x10c   : > { %v3077_v61 = vpop.f32.mrf.mxu0  ;;  %3341 = vmatmul.bf16.gmra.mxu3 %v9733_v49  ;;  %v1664_v49 = vunpack.c.l.b16 %v989_v38 }
 0x10d   : > { %v3166_v19 = vpop.f32.mrf.mxu1 }
 0x10e   : > { %v9760_v44 = vadd.f32 %v3166_v19, %v3077_v61  ;;  %v1680_v31 = vpack.c.b16 %v1664_v49, %v1664_v49  ;;  %v8698_v61 = vld [vmem:[#allocation2 + $0x48] sm:$0xf0] }
 0x10f   : > { %v3204_v5 = vpop.f32.mrf.mxu3  ;;  %v8700_v1 = vor.u32 %v8699_v62, %v8698_v61 }
 0x110   : > { %v9763_v39 = vadd.f32 %v3204_v5, %v3115_v60  ;;  %v1759_v24 = vshll.u32 %v1680_v31, 16  ;;  %v8369_v5 = vld [vmem:[#allocation7 + $0x1e0] sm:$0xff] }
 0x111   : > { %3677 = vmatpush.bf16.msra.mxu3 %v8369_v5  ;;  %v1962_v23 = vrot.slane %v8700_v1, 1 }
 0x112   : > { %v3117_v36 = vpop.f32.mrf.mxu2  ;;  %v1761_v38 = vrot.slane %v1759_v24, 1  ;;  %v8677_v24 = vld [vmem:[#allocation2 + $0x48] sm:$0xf0] }
 0x114   : > { %v3080_v52 = vpop.f32.mrf.mxu0  ;;  %v1762_v54 = vsel %vm1225_vm3, %v9677_v59, %v1761_v38 }
 0x115   : > { %v3169_v43 = vpop.f32.mrf.mxu1 }
 0x116   : > { %v9768_v11 = vadd.f32 %v3169_v43, %v3080_v52  ;;  %v1963_v52 = vrot.slane %v1680_v31, 1  ;;  %v8377_v43 = vld [vmem:[#allocation7 + $0x220] sm:$0xff]  ;;  %v1766_v31 = vshll.u32 %v9773_v3, 16 }
 0x117   : > { %3257 = vmatmul.bf16.gmra.mxu2 %v1497_v35  ;;  %3435 = vmatmul.bf16.gmra.mxu0 %v1750_v13  ;;  %v3206_v55 = vpop.f32.mrf.mxu3  ;;  %v990_v35 = vld [vmem:[#allocation2 + $0x5c] sm:$0x1] }
 0x118   : > { %3524 = vmatmul.bf16.gmra.mxu1 %v1961_v41  ;;  %v9770_v51 = vadd.f32 %v3206_v55, %v3117_v36  ;;  %v1665_v55 = vunpack.c.l.b16 %v990_v35  ;;  %3766 = vmatpush.bf16.msra.mxu0 %v8377_v43  ;;  %v1964_v61 = vsel %vm1482_vm4, %v1962_v23, %v1963_v52  ;;  %v1502_v43 = vrot.slane %v9666_v40, 1  ;;  %v9800_v40 = vld [vmem:[#allocation2 + $0x60] sm:$0xff]  }
 0x11a   : > { %11667 = vst [vmem:[#allocation14_spill] sm:$0xff] %v9770_v51  ;;  %v3120_v60 = vpop.f32.mrf.mxu2 }
 0x11c   : > { %v3082_v22 = vpop.f32.mrf.mxu0  ;;  %3346 = vmatmul.bf16.gmra.mxu3 %v9742_v63  ;;  %v1500_v63 = vsel %vm1482_vm4, %v1498_v2, %v1499_v30  ;;  %v1764_v30 = vshrl.u32 %v9773_v3, 16  ;;  %v1768_v2 = vrot.slane %v1766_v31, 1 }
 0x11d   : > { %v3171_v19 = vpop.f32.mrf.mxu1 }
 0x11e   : > { %v9776_v28 = vadd.f32 %v3171_v19, %v3082_v22  ;;  %v8983_v22 = vld [vmem:[#allocation2 + $0x54] sm:$0xe]  ;;  %v8678_v19 = vld [vmem:[#allocation2 + $0x48] sm:$0xe] }
 0x11f   : > { %v3209_v36 = vpop.f32.mrf.mxu3  ;;  %v8679_v5 = vor.u32 %v8678_v19, %v8677_v24  ;;  %v8984_v23 = vor.u32 %v8983_v22, %v8982_v6 }
 0x120   : > { %v9779_v13 = vadd.f32 %v3209_v36, %v3120_v60  ;;  %v1681_v60 = vpack.c.b16 %v1665_v55, %v1665_v55 }
 0x121   : > { %v1501_v35 = vrot.slane %v8679_v5, 1 }
 0x122   : > { %11668 = vst [vmem:[#allocation15_spill] sm:$0xff] %v9779_v13  ;;  %v3122_v49 = vpop.f32.mrf.mxu2  ;;  %v1771_v38 = vshll.u32 %v1681_v60, 16  ;;  %v1966_v55 = vrot.slane %v1681_v60, 1  ;;  %v1778_v60 = vshll.u32 %v9800_v40, 16 }
 0x123   : > { %v1503_v24 = vsel %vm1482_vm4, %v1501_v35, %v1502_v43 }
 0x124   : > { %v3085_v41 = vpop.f32.mrf.mxu0 }
 0x125   : > { %v3174_v16 = vpop.f32.mrf.mxu1 }
 0x126   : > { %v9785_v62 = vadd.f32 %v3174_v16, %v3085_v41  ;;  %v1769_v41 = vor.u32 %v1768_v2, %v1764_v30  ;;  %v991_v16 = vld [vmem:[#allocation2 + $0x68] sm:$0x1] }
 0x127   : > { %3262 = vmatmul.bf16.gmra.mxu2 %v1500_v63  ;;  %3440 = vmatmul.bf16.gmra.mxu0 %v1762_v54  ;;  %v3211_v17 = vpop.f32.mrf.mxu3  ;;  %v1773_v63 = vrot.slane %v1771_v38, 1  ;;  %v1965_v54 = vrot.slane %v8984_v23, 1  ;;  %v1666_v22 = vunpack.c.l.b16 %v991_v16  ;;  %v8702_v23 = vld [vmem:[#allocation2 + $0x60] sm:$0xe]  ;;  %v9809_v16 = vld [vmem:[#allocation2 + $0x6c] sm:$0xff]  }
 0x128   : > { %3529 = vmatmul.bf16.gmra.mxu1 %v1964_v61  ;;  %v9788_v1 = vadd.f32 %v3211_v17, %v3122_v49 }
 0x129   : > { %v1774_v6 = vsel %vm1225_vm3, %v1769_v41, %v1773_v63  ;;  %v1776_v41 = vshrl.u32 %v9800_v40, 16  ;;  %v1780_v63 = vrot.slane %v1778_v60, 1 }
 0x12a   : > { %11669 = vst [vmem:[#allocation16_spill] sm:$0xff] %v9788_v1  ;;  %v3125_v59 = vpop.f32.mrf.mxu2 }
 0x12c   : > { %v3087_v32 = vpop.f32.mrf.mxu0  ;;  %3351 = vmatmul.bf16.gmra.mxu3 %v9661_v34  ;;  %v8986_v34 = vld [vmem:[#allocation2 + $0x54] sm:$0xe] }
 0x12d   : > { %v3176_v36 = vpop.f32.mrf.mxu1  ;;  %v8987_v35 = vor.u32 %v8986_v34, %v9673_v45  ;;  %v1781_v45 = vor.u32 %v1780_v63, %v1776_v41  ;;  %v8376_v63 = vld [vmem:[#allocation7 + $0x218] sm:$0xff] }
 0x12e   : > { %v9792_v52 = vadd.f32 %v3176_v36, %v3087_v32  ;;  %v1967_v32 = vsel %vm1482_vm4, %v1965_v54, %v1966_v55  ;;  %v8701_v36 = vld [vmem:[#allocation2 + $0x60] sm:$0xf0]  ;;  %3767 = vmatpush.bf16.msra.mxu0 %v8376_v63 }
 0x12f   : > { %v3214_v49 = vpop.f32.mrf.mxu3  ;;  %v8703_v55 = vor.u32 %v8702_v23, %v8701_v36  ;;  %v992_v36 = vld [vmem:[#allocation2 + $0x74] sm:$0x1] }
 0x130   : > { %v9795_v61 = vadd.f32 %v3214_v49, %v3125_v59  ;;  %v1682_v59 = vpack.c.b16 %v1666_v22, %v1666_v22  ;;  %v1504_v22 = vrot.slane %v8987_v35, 1 }
 0x131   : > { %v1968_v60 = vrot.slane %v8703_v55, 1 }
 0x132   : > { %11670 = vst [vmem:[#allocation17_spill] sm:$0xff] %v9795_v61  ;;  %v3127_v17 = vpop.f32.mrf.mxu2  ;;  %v1783_v49 = vshll.u32 %v1682_v59, 16 }
 0x134   : > { %v3090_v31 = vpop.f32.mrf.mxu0  ;;  %v1785_v34 = vrot.slane %v1783_v49, 1  ;;  %v8989_v49 = vld [vmem:[#allocation2 + $0x6c] sm:$0xe] }
 0x135   : > { %v3179_v19 = vpop.f32.mrf.mxu1 }
 0x136   : > { %v9802_v5 = vadd.f32 %v3179_v19, %v3090_v31  ;;  %v8988_v31 = vld [vmem:[#allocation2 + $0x6c] sm:$0xf0]  ;;  %v1505_v19 = vrot.slane %v9685_v15, 1 }
 0x137   : > { %3267 = vmatmul.bf16.gmra.mxu2 %v1503_v24  ;;  %3445 = vmatmul.bf16.gmra.mxu0 %v1774_v6  ;;  %v3216_v30 = vpop.f32.mrf.mxu3  ;;  %v8368_v6 = vld [vmem:[#allocation7 + $0x1d8] sm:$0xff] }
 0x138   : > { %3534 = vmatmul.bf16.gmra.mxu1 %v1967_v32  ;;  %v9805_v2 = vadd.f32 %v3216_v30, %v3127_v17  ;;  %v8360_v17 = vld [vmem:[#allocation7 + $0x198] sm:$0xff]  ;;  %3678 = vmatpush.bf16.msra.mxu3 %v8368_v6  ;;  %v1969_v30 = vrot.slane %v1682_v59, 1  ;;  %v1790_v59 = vshll.u32 %v9809_v16, 16  ;;  %v8681_v6 = vld [vmem:[#allocation2 + $0x60] sm:$0xe] }
 0x139   : > { %3589 = vmatpush.bf16.msra.mxu2 %v8360_v17  ;;  %v8680_v17 = vld [vmem:[#allocation2 + $0x60] sm:$0xf0] }
 0x13a   : > { %11671 = vst [vmem:[#allocation18_spill] sm:$0xff] %v9805_v2  ;;  %v3130_v38 = vpop.f32.mrf.mxu2  ;;  %v1970_v15 = vsel %vm1482_vm4, %v1968_v60, %v1969_v30 }
 0x13c   : > { %v3092_v43 = vpop.f32.mrf.mxu0  ;;  %3356 = vmatmul.bf16.gmra.mxu3 %v9773_v3  ;;  %v1506_v3 = vsel %vm1482_vm4, %v1504_v22, %v1505_v19 }
 0x13d   : > { %v3181_v54 = vpop.f32.mrf.mxu1 }
 0x13e   : > { %v9812_v24 = vadd.f32 %v3181_v54, %v3092_v43  ;;  %v1786_v43 = vsel %vm1225_vm3, %v1781_v45, %v1785_v34  ;;  %v1667_v54 = vunpack.c.l.b16 %v992_v36  ;;  %v8682_v34 = vor.u32 %v8681_v6, %v8680_v17 }
 0x13f   : > { %v3219_v32 = vpop.f32.mrf.mxu3  ;;  %v8990_v36 = vor.u32 %v8989_v49, %v8988_v31 }
 0x140   : > { %v9815_v23 = vadd.f32 %v3219_v32, %v3130_v38  ;;  %v1683_v38 = vpack.c.b16 %v1667_v54, %v1667_v54  ;;  %v1792_v32 = vrot.slane %v1790_v59, 1  ;;  %v1508_v54 = vrot.slane %v9491_v14, 1  ;;  %v9835_v14 = vld [vmem:[#allocation2 + $0x78] sm:$0xff]  }
 0x141   : > { %v1971_v63 = vrot.slane %v8990_v36, 1  ;;  %v8705_v36 = vld [vmem:[#allocation2 + $0x78] sm:$0xe] }
 0x142   : > { %11672 = vst [vmem:[#allocation19_spill] sm:$0xff] %v9815_v23  ;;  %v3132_v2 = vpop.f32.mrf.mxu2  ;;  %v1795_v60 = vshll.u32 %v1683_v38, 16 }
 0x144   : > { %v3095_v61 = vpop.f32.mrf.mxu0 }
 0x145   : > { %v3184_v35 = vpop.f32.mrf.mxu1 }
 0x146   : > { %v9820_v41 = vadd.f32 %v3184_v35, %v3095_v61  ;;  %v1788_v61 = vshrl.u32 %v9809_v16, 16 }
 0x147   : > { %3272 = vmatmul.bf16.gmra.mxu2 %v1506_v3  ;;  %3450 = vmatmul.bf16.gmra.mxu0 %v1786_v43  ;;  %v3221_v55 = vpop.f32.mrf.mxu3  ;;  %v1507_v43 = vrot.slane %v8682_v34, 1 }
 0x148   : > { %3539 = vmatmul.bf16.gmra.mxu1 %v1970_v15  ;;  %v9823_v22 = vadd.f32 %v3221_v55, %v3132_v2  ;;  %v1793_v35 = vor.u32 %v1792_v32, %v1788_v61  ;;  %v1797_v15 = vrot.slane %v1795_v60, 1  ;;  %v1972_v55 = vrot.slane %v1683_v38, 1 }
 0x149   : > { %v1509_v23 = vsel %vm1482_vm4, %v1507_v43, %v1508_v54  ;;  %v1802_v38 = vshll.u32 %v9835_v14, 16 }
 0x14a   : > { %11673 = vst [vmem:[#allocation20_spill] sm:$0xff] %v9823_v22  ;;  %v3135_v19 = vpop.f32.mrf.mxu2  ;;  %v993_v22 = vld [vmem:[#allocation2 + $0x80] sm:$0x1]  ;;  %v1798_v31 = vsel %vm1225_vm3, %v1793_v35, %v1797_v15  ;;  %v1973_v34 = vsel %vm1482_vm4, %v1971_v63, %v1972_v55  ;;  %v1800_v35 = vshrl.u32 %v9835_v14, 16  ;;  %v9843_v55 = vld [vmem:[#allocation2 + $0x84] sm:$0xff]  }
 0x14b   : > { %v1668_v49 = vunpack.c.l.b16 %v993_v22  ;;  %v1804_v15 = vrot.slane %v1802_v38, 1 }
 0x14c   : > { %v3097_v45 = vpop.f32.mrf.mxu0  ;;  %3361 = vmatmul.bf16.gmra.mxu3 %v9800_v40  ;;  %v8992_v40 = vld [vmem:[#allocation2 + $0x6c] sm:$0xe] }
 0x14d   : > { %v3186_v30 = vpop.f32.mrf.mxu1  ;;  %v8993_v22 = vor.u32 %v8992_v40, %v9505_v33 }
 0x14e   : > { %v9827_v3 = vadd.f32 %v3186_v30, %v3097_v45  ;;  %v8704_v30 = vld [vmem:[#allocation2 + $0x78] sm:$0xf0] }
 0x14f   : > { %v3224_v2 = vpop.f32.mrf.mxu3  ;;  %v8706_v63 = vor.u32 %v8705_v36, %v8704_v30  ;;  %v8388_v36 = vld [vmem:[#allocation9 + $0x38] sm:$0xff] }
 0x150   : > { %v9830_v17 = vadd.f32 %v3224_v2, %v3135_v19  ;;  %v1684_v19 = vpack.c.b16 %v1668_v49, %v1668_v49  ;;  %v8367_v49 = vld [vmem:[#allocation7 + $0x1d0] sm:$0xff]  ;;  %6637 = vmatpush.bf16.msra.mxu1 %v8388_v36 }
 0x151   : > { %3679 = vmatpush.bf16.msra.mxu3 %v8367_v49  ;;  %v1974_v40 = vrot.slane %v8706_v63, 1  ;;  %v8995_v63 = vld [vmem:[#allocation2 + $0x84] sm:$0xe] }
 0x152   : > { %11674 = vst [vmem:[#allocation21_spill] sm:$0xff] %v9830_v17  ;;  %v3137_v6 = vpop.f32.mrf.mxu2  ;;  %v1975_v38 = vrot.slane %v1684_v19, 1 }
 0x154   : > { %v3416_v59 = vpop.f32.mrf.mxu0 }
 0x155   : > { %v3505_v45 = vpop.f32.mrf.mxu1 }
 0x157   : > { %3277 = vmatmul.bf16.gmra.mxu2 %v1509_v23  ;;  %3455 = vmatmul.bf16.gmra.mxu0 %v1798_v31  ;;  %v3226_v61 = vpop.f32.mrf.mxu3  ;;  %v1807_v23 = vshll.u32 %v1684_v19, 16  ;;  %v8994_v31 = vld [vmem:[#allocation2 + $0x84] sm:$0xf0]  ;;  %v8375_v19 = vld [vmem:[#allocation7 + $0x210] sm:$0xff] }
 0x158   : > { %3544 = vmatmul.bf16.gmra.mxu1 %v1973_v34  ;;  %v9838_v32 = vadd.f32 %v3226_v61, %v3137_v6  ;;  %v8359_v6 = vld [vmem:[#allocation7 + $0x190] sm:$0xff]  ;;  %v1510_v34 = vrot.slane %v8993_v22, 1  ;;  %v1511_v61 = vrot.slane %v9511_v46, 1  ;;  %3768 = vmatpush.bf16.msra.mxu0 %v8375_v19 }
 0x159   : > { %3590 = vmatpush.bf16.msra.mxu2 %v8359_v6  ;;  %v1814_v6 = vshll.u32 %v9843_v55, 16 }
 0x15a   : > { %11675 = vst [vmem:[#allocation22_spill] sm:$0xff] %v9838_v32  ;;  %v3238_v60 = vpop.f32.mrf.mxu2  ;;  %v994_v32 = vld [vmem:[#allocation2 + $0x8c] sm:$0x1] }
 0x15b   : > { %v3239_v43 = vadd.f32 %v3238_v60, %v9705_v29  ;;  %v1805_v29 = vor.u32 %v1804_v15, %v1800_v35  ;;  %v1809_v60 = vrot.slane %v1807_v23, 1  ;;  %v1669_v46 = vunpack.c.l.b16 %v994_v32 }
 0x15c   : > { %v3418_v54 = vpop.f32.mrf.mxu0  ;;  %3366 = vmatmul.bf16.gmra.mxu3 %v9809_v16  ;;  %v1512_v16 = vsel %vm1482_vm4, %v1510_v34, %v1511_v61  ;;  %v1976_v15 = vsel %vm1482_vm4, %v1974_v40, %v1975_v38  ;;  %v8996_v38 = vor.u32 %v8995_v63, %v8994_v31 }
 0x15d   : > { %v3507_v2 = vpop.f32.mrf.mxu1  ;;  %v1810_v22 = vsel %vm1225_vm3, %v1805_v29, %v1809_v60  ;;  %v1816_v60 = vrot.slane %v1814_v6, 1 }
 0x15f   : > { %v3327_v33 = vpop.f32.mrf.mxu3 }
 0x160   : > { %v3328_v17 = vadd.f32 %v3327_v33, %v3239_v43  ;;  %v8683_v43 = vld [vmem:[#allocation2 + $0x78] sm:$0xf0] }
 0x162   : > { %v3240_v30 = vpop.f32.mrf.mxu2  ;;  %v3417_v13 = vadd.f32 %v3416_v59, %v3328_v17  ;;  %v1685_v17 = vpack.c.b16 %v1669_v46, %v1669_v46 }
 0x163   : > { %v3241_v1 = vadd.f32 %v3240_v30, %v9711_v10  ;;  %v8684_v10 = vld [vmem:[#allocation2 + $0x78] sm:$0xe] }
 0x164   : > { %v3421_v51 = vpop.f32.mrf.mxu0  ;;  %v9851_v23 = vadd.f32 %v3505_v45, %v3417_v13  ;;  %v8685_v61 = vor.u32 %v8684_v10, %v8683_v43  ;;  %v1812_v45 = vshrl.u32 %v9843_v55, 16  ;;  %v1819_v33 = vshll.u32 %v1685_v17, 16 }
 0x165   : > { %v3510_v35 = vpop.f32.mrf.mxu1 }
 0x166   : > { %v1513_v36 = vrot.slane %v8685_v61, 1 }
 0x167   : > { %3282 = vmatmul.bf16.gmra.mxu2 %v1512_v16  ;;  %3460 = vmatmul.bf16.gmra.mxu0 %v1810_v22  ;;  %v3329_v59 = vpop.f32.mrf.mxu3  ;;  %v1514_v16 = vrot.slane %v9539_v26, 1  ;;  %v1821_v22 = vrot.slane %v1819_v33, 1 }
 0x168   : > { %3549 = vmatmul.bf16.gmra.mxu1 %v1976_v15  ;;  %v3330_v49 = vadd.f32 %v3329_v59, %v3241_v1  ;;  %v1817_v1 = vor.u32 %v1816_v60, %v1812_v45  ;;  %v1978_v15 = vrot.slane %v1685_v17, 1  ;;  %v8707_v45 = vld [vmem:[#allocation2 + $0x90] sm:$0xf0]  ;;  %v8708_v60 = vld [vmem:[#allocation2 + $0x90] sm:$0xe] }
 0x169   : > { %v1515_v31 = vsel %vm1482_vm4, %v1513_v36, %v1514_v16 }
 0x16a   : > { %v3243_v32 = vpop.f32.mrf.mxu2  ;;  %v3419_v29 = vadd.f32 %v3418_v54, %v3330_v49  ;;  %v995_v54 = vld [vmem:[#allocation2 + $0x98] sm:$0x1] }
 0x16b   : > { %v3244_v34 = vadd.f32 %v3243_v32, %v9719_v7  ;;  %v1977_v7 = vrot.slane %v8996_v38, 1  ;;  %v1670_v63 = vunpack.c.l.b16 %v995_v54  ;;  %v9864_v32 = vld [vmem:[#allocation2 + $0x90] sm:$0xff]   ;;  %v9874_v54 = vld [vmem:[#allocation2 + $0x9c] sm:$0xf0] }
 0x16c   : > { %v3423_v13 = vpop.f32.mrf.mxu0  ;;  %3371 = vmatmul.bf16.gmra.mxu3 %v9835_v14  ;;  %v9857_v30 = vadd.f32 %v3507_v2, %v3419_v29  ;;  %v1822_v14 = vsel %vm1225_vm3, %v1817_v1, %v1821_v22  ;;  %v8998_v2 = vld [vmem:[#allocation2 + $0x84] sm:$0xe] }
 0x16d   : > { %v3512_v40 = vpop.f32.mrf.mxu1  ;;  %v1979_v26 = vsel %vm1482_vm4, %v1977_v7, %v1978_v15  ;;  %v8999_v38 = vor.u32 %v8998_v2, %v9565_v25  ;;  %v8709_v7 = vor.u32 %v8708_v60, %v8707_v45  ;;  %v9872_v15 = vld [vmem:[#allocation2 + $0x9c] sm:$0xff]   ;;  %v1517_v25 = vrot.slane %v9581_v57, 1 }
 0x16f   : > { %v3332_v46 = vpop.f32.mrf.mxu3 }
 0x170   : > { %v3333_v19 = vadd.f32 %v3332_v46, %v3244_v34 }
 0x172   : > { %v3245_v43 = vpop.f32.mrf.mxu2  ;;  %v3422_v6 = vadd.f32 %v3421_v51, %v3333_v19  ;;  %v1686_v51 = vpack.c.b16 %v1670_v63, %v1670_v63  ;;  %v996_v63 = vld [vmem:[#allocation2 + $0xa4] sm:$0x1] }
 0x173   : > { %v3246_v10 = vadd.f32 %v3245_v43, %v9725_v12  ;;  %v1826_v12 = vshll.u32 %v9864_v32, 16  ;;  %v8358_v43 = vld [vmem:[#allocation7 + $0x188] sm:$0xff]  ;;  %v1671_v57 = vunpack.c.l.b16 %v996_v63  ;;  %v363_v63 = vld [vmem:[%s9421_s13 + $0xf0] sm:$0xff] }
 0x174   : > { %v3426_v59 = vpop.f32.mrf.mxu0  ;;  %v9866_v61 = vadd.f32 %v3510_v35, %v3422_v6  ;;  %v1824_v35 = vshrl.u32 %v9864_v32, 16  ;;  %v1831_v22 = vshll.u32 %v1686_v51, 16  ;;  %3591 = vmatpush.bf16.msra.mxu2 %v8358_v43  ;;  %v1981_v2 = vrot.slane %v1686_v51, 1  ;;  %v8374_v51 = vld [vmem:[#allocation7 + $0x208] sm:$0xff] }
 0x175   : > { %v3515_v49 = vpop.f32.mrf.mxu1  ;;  %v1828_v1 = vrot.slane %v1826_v12, 1  ;;  %3769 = vmatpush.bf16.msra.mxu0 %v8374_v51 }
 0x176   : > { %v1833_v6 = vrot.slane %v1831_v22, 1 }
 0x177   : > { %3287 = vmatmul.bf16.gmra.mxu2 %v1515_v31  ;;  %3465 = vmatmul.bf16.gmra.mxu0 %v1822_v14  ;;  %v3334_v17 = vpop.f32.mrf.mxu3  ;;  %v1980_v14 = vrot.slane %v8709_v7, 1 }
 0x178   : > { %3554 = vmatmul.bf16.gmra.mxu1 %v1979_v26  ;;  %v3335_v34 = vadd.f32 %v3334_v17, %v3246_v10  ;;  %v1516_v10 = vrot.slane %v8999_v38, 1  ;;  %v8387_v17 = vld [vmem:[#allocation9 + $0x30] sm:$0xff] }
 0x179   : > { %6638 = vmatpush.bf16.msra.mxu1 %v8387_v17  ;;  %v1982_v38 = vsel %vm1482_vm4, %v1980_v14, %v1981_v2  ;;  %v395_v17 = vpack.c.bf16 %v363_v63, %v363_v63 }
 0x17a   : > { %v3248_v29 = vpop.f32.mrf.mxu2  ;;  %v3424_v36 = vadd.f32 %v3423_v13, %v3335_v34  ;;  %v1829_v13 = vor.u32 %v1828_v1, %v1824_v35  ;;  %v9001_v35 = vld [vmem:[#allocation2 + $0x9c] sm:$0xe]  ;;  %v1687_v1 = vpack.c.b16 %v1671_v57, %v1671_v57 }
 0x17b   : > { %v3249_v33 = vadd.f32 %v3248_v29, %v9735_v56  ;;  %v8366_v56 = vld [vmem:[#allocation7 + $0x1c8] sm:$0xff]  ;;  %v9002_v2 = vor.u32 %v9001_v35, %v9874_v54 }
 0x17c   : > { %v3428_v16 = vpop.f32.mrf.mxu0  ;;  %3376 = vmatmul.bf16.gmra.mxu3 %v9843_v55  ;;  %v9877_v19 = vadd.f32 %v3512_v40, %v3424_v36  ;;  %v1518_v40 = vsel %vm1482_vm4, %v1516_v10, %v1517_v25  ;;  %v1834_v45 = vsel %vm1225_vm3, %v1829_v13, %v1833_v6  ;;  %v1836_v13 = vshrl.u32 %v9872_v15, 16 }
 0x17d   : > { %v3517_v46 = vpop.f32.mrf.mxu1  ;;  %3680 = vmatpush.bf16.msra.mxu3 %v8366_v56  ;;  %v1983_v51 = vrot.slane %v9002_v2, 1 }
 0x17f   : > { %v3337_v31 = vpop.f32.mrf.mxu3 }
 0x180   : > { %v3338_v26 = vadd.f32 %v3337_v31, %v3249_v33  ;;  %v8686_v33 = vld [vmem:[#allocation2 + $0x90] sm:$0xf0]  ;;  %v1843_v31 = vshll.u32 %v1687_v1, 16 }
 0x182   : > { %v3250_v12 = vpop.f32.mrf.mxu2  ;;  %v3427_v34 = vadd.f32 %v3426_v59, %v3338_v26  ;;  %v1838_v59 = vshll.u32 %v9872_v15, 16  ;;  %v364_v26 = vld [vmem:[%s9421_s13 + $0xf8] sm:$0xff] }
 0x183   : > { %v3251_v55 = vadd.f32 %v3250_v12, %v9745_v0  ;;  %v8687_v0 = vld [vmem:[#allocation2 + $0x90] sm:$0xe] }
 0x184   : > { %v3431_v29 = vpop.f32.mrf.mxu0  ;;  %v9884_v36 = vadd.f32 %v3515_v49, %v3427_v34  ;;  %v8688_v49 = vor.u32 %v8687_v0, %v8686_v33  ;;  %v1840_v6 = vrot.slane %v1838_v59, 1  ;;  %v1845_v34 = vrot.slane %v1843_v31, 1  ;;  %v997_v0 = vld [vmem:[#allocation2 + $0xb0] sm:$0x1] }
 0x185   : > { %v3520_v60 = vpop.f32.mrf.mxu1  ;;  %v1984_v33 = vrot.slane %v1687_v1, 1 }
 0x187   : > { %3292 = vmatmul.bf16.gmra.mxu2 %v1518_v40  ;;  %3470 = vmatmul.bf16.gmra.mxu0 %v1834_v45  ;;  %v3339_v22 = vpop.f32.mrf.mxu3  ;;  %v1841_v40 = vor.u32 %v1840_v6, %v1836_v13  ;;  %v466_v45 = vunpack.c.l.b16 %v395_v17  ;;  %v1985_v1 = vsel %vm1482_vm4, %v1983_v51, %v1984_v33 }
 0x188   : > { %3559 = vmatmul.bf16.gmra.mxu1 %v1982_v38  ;;  %v3340_v7 = vadd.f32 %v3339_v22, %v3251_v55  ;;  %v396_v55 = vpack.c.bf16 %v364_v26, %v364_v26 }
 0x18a   : > { %v3253_v43 = vpop.f32.mrf.mxu2  ;;  %v3429_v10 = vadd.f32 %v3428_v16, %v3340_v7  ;;  %v1520_v16 = vrot.slane %v9613_v20, 1  ;;  %v467_v57 = vunpack.c.l.b16 %v396_v55  ;;  %v1846_v20 = vsel %vm1225_vm3, %v1841_v40, %v1845_v34 }
 0x18b   : > { %v3254_v56 = vadd.f32 %v3253_v43, %v9753_v42  ;;  %v1519_v42 = vrot.slane %v8688_v49, 1  ;;  %v9903_v49 = vld [vmem:[#allocation2 + $0xa8] sm:$0xff]  }
 0x18c   : > { %v3433_v25 = vpop.f32.mrf.mxu0  ;;  %3381 = vmatmul.bf16.gmra.mxu3 %v9864_v32  ;;  %v9895_v12 = vadd.f32 %v3517_v46, %v3429_v10  ;;  %v483_v59 = vpack.c.b16 %v467_v57, %v466_v45  ;;  %v9004_v46 = vld [vmem:[#allocation2 + $0x9c] sm:$0xe]  ;;  %v1672_v10 = vunpack.c.l.b16 %v997_v0 }
 0x18d   : > { %v9889_v14 = vpop.f32.mrf.mxu1  ;;  %v1521_v43 = vsel %vm1482_vm4, %v1519_v42, %v1520_v16  ;;  %v9005_v55 = vor.u32 %v9004_v46, %v9636_v8  ;;  %v8710_v42 = vld [vmem:[#allocation2 + $0xa8] sm:$0xf0]  ;;  %v8711_v16 = vld [vmem:[#allocation2 + $0xa8] sm:$0xe] }
 0x18e   : > { %v593_v31 = vshll.u32 %v483_v59, 16  ;;  %v8712_v8 = vor.u32 %v8711_v16, %v8710_v42  ;;  %v8386_v16 = vld [vmem:[#allocation9 + $0x28] sm:$0xff] }
 0x18f   : > { %v3342_v38 = vpop.f32.mrf.mxu3  ;;  %6639 = vmatpush.bf16.msra.mxu1 %v8386_v16 }
 0x190   : > { %v3343_v54 = vadd.f32 %v3342_v38, %v3254_v56  ;;  %v590_v56 = vshrl.u32 %v483_v59, 16  ;;  %v9920_v59 = vld [vmem:[#allocation2 + $0xb4] sm:$0xff]  }
 0x192   : > { %v3255_v35 = vpop.f32.mrf.mxu2  ;;  %v3432_v22 = vadd.f32 %v3431_v29, %v3343_v54  ;;  %v1688_v29 = vpack.c.b16 %v1672_v10, %v1672_v10  ;;  %v592_v2 = vrot.slane %v590_v56, 7  ;;  %v1522_v10 = vrot.slane %v9005_v55, 1 }
 0x193   : > { %v3256_v32 = vadd.f32 %v3255_v35, %v9760_v44  ;;  %v1850_v44 = vshll.u32 %v9903_v49, 16 }
 0x194   : > { %v9899_v7 = vpop.f32.mrf.mxu0  ;;  %v9908_v6 = vadd.f32 %v3520_v60, %v3432_v22  ;;  %v595_v40 = vor.u32 %v593_v31, %v592_v2  ;;  %v1848_v60 = vshrl.u32 %v9903_v49, 16  ;;  %v662_v57 = vsel %vm9449_vm2, %v592_v2, 0 }
 0x195   : > { %v9905_v13 = vpop.f32.mrf.mxu1  ;;  %v1852_v45 = vrot.slane %v1850_v44, 1  ;;  %v1855_v33 = vshll.u32 %v1688_v29, 16  ;;  %v742_v54 = vunpack.c.l.b16 %v662_v57 }
 0x196   : > { %v646_v0 = vsel %vm9449_vm2, 0, %v595_v40 }
 0x197   : > { %3297 = vmatmul.bf16.gmra.mxu2 %v1521_v43  ;;  %3475 = vmatmul.bf16.gmra.mxu0 %v1846_v20  ;;  %v3344_v63 = vpop.f32.mrf.mxu3  ;;  %v741_v46 = vunpack.c.h.b16 %v646_v0  ;;  %v8365_v43 = vld [vmem:[#allocation7 + $0x1c0] sm:$0xff]  ;;  %v790_v20 = vpack.c.b16 %v742_v54, %v742_v54  ;;  %v1853_v44 = vor.u32 %v1852_v45, %v1848_v60  ;;  %v1857_v2 = vrot.slane %v1855_v33, 1  ;;  %v8690_v54 = vld [vmem:[#allocation2 + $0xa8] sm:$0xe] }
 0x198   : > { %3564 = vmatmul.bf16.gmra.mxu1 %v1985_v1  ;;  %v3345_v26 = vadd.f32 %v3344_v63, %v3256_v32  ;;  %v9922_v32 = vld [vmem:[#allocation2 + $0xb4] sm:$0xf0]  ;;  %v1523_v1 = vrot.slane %v9647_v53, 1  ;;  %3681 = vmatpush.bf16.msra.mxu3 %v8365_v43 }
 0x199   : > { %v789_v31 = vpack.c.b16 %v741_v46, %v741_v46  ;;  %887 = vst [vmem:[#allocation2 + $0xc8] sm:$0x1] %v790_v20  ;;  %v1858_v45 = vsel %vm1225_vm3, %v1853_v44, %v1857_v2 }
 0x19a   : > { %v3258_v17 = vpop.f32.mrf.mxu2  ;;  %v3434_v38 = vadd.f32 %v3433_v25, %v3345_v26  ;;  %v8357_v25 = vld [vmem:[#allocation7 + $0x180] sm:$0xff]  ;;  %v1986_v26 = vrot.slane %v8712_v8, 1  ;;  %v1524_v53 = vsel %vm1482_vm4, %v1522_v10, %v1523_v1  ;;  %v1860_v1 = vshrl.u32 %v9920_v59, 16 }
 0x19b   : > { %v3259_v34 = vadd.f32 %v3258_v17, %v9768_v11  ;;  %v740_v11 = vunpack.c.l.b16 %v646_v0  ;;  %3592 = vmatpush.bf16.msra.mxu2 %v8357_v25  ;;  %v1987_v17 = vrot.slane %v1688_v29, 1  ;;  %886 = vst [vmem:[#allocation2 + $0xc4] sm:$0xf] %v789_v31  ;;  %v9007_v0 = vld [vmem:[#allocation2 + $0xb4] sm:$0xe] }
 0x19c   : > { %v3438_v51 = vpop.f32.mrf.mxu0  ;;  %3386 = vmatmul.bf16.gmra.mxu3 %v9872_v15  ;;  %v9926_v22 = vadd.f32 %v9889_v14, %v3434_v38  ;;  %v998_v15 = vld [vmem:[#allocation2 + $0xbc] sm:$0x1]  ;;  %v9008_v2 = vor.u32 %v9007_v0, %v9922_v32 }
 0x19d   : > { %v9918_v35 = vpop.f32.mrf.mxu1  ;;  %v788_v56 = vpack.c.b16 %v740_v11, %v740_v11  ;;  %v1673_v57 = vunpack.c.l.b16 %v998_v15  ;;  %v1988_v29 = vsel %vm1482_vm4, %v1986_v26, %v1987_v17  ;;  %v1526_v26 = vrot.slane %v9675_v58, 1 }
 0x19f   : > { %v3347_v63 = vpop.f32.mrf.mxu3  ;;  %885 = vst [vmem:[#allocation2 + $0xc0] sm:$0xf] %v788_v56  ;;  %v1689_v8 = vpack.c.b16 %v1673_v57, %v1673_v57 }
 0x1a0   : > { %v3348_v14 = vadd.f32 %v3347_v63, %v3259_v34  ;;  %v8373_v34 = vld [vmem:[#allocation7 + $0x200] sm:$0xff] }
 0x1a1   : > { %3770 = vmatpush.bf16.msra.mxu0 %v8373_v34  ;;  %v1867_v31 = vshll.u32 %v1689_v8, 16 }
 0x1a2   : > { %v3260_v42 = vpop.f32.mrf.mxu2  ;;  %v3437_v40 = vadd.f32 %v9899_v7, %v3348_v14  ;;  %v1862_v7 = vshll.u32 %v9920_v59, 16  ;;  %v1989_v14 = vrot.slane %v9008_v2, 1 }
 0x1a3   : > { %v3261_v55 = vadd.f32 %v3260_v42, %v9776_v28  ;;  %v8689_v28 = vld [vmem:[#allocation2 + $0xa8] sm:$0xf0]  ;;  %v1869_v15 = vrot.slane %v1867_v31, 1  ;;  %v999_v42 = vld [vmem:[#allocation2 + $0xc8] sm:$0x1] }
 0x1a4   : > { %v3441_v60 = vpop.f32.mrf.mxu0  ;;  %v9935_v33 = vadd.f32 %v9905_v13, %v3437_v40  ;;  %v8691_v20 = vor.u32 %v8690_v54, %v8689_v28  ;;  %v1864_v56 = vrot.slane %v1862_v7, 1 }
 0x1a5   : > { %v3530_v38 = vpop.f32.mrf.mxu1 }
 0x1a6   : > { %v1525_v63 = vrot.slane %v8691_v20, 1  ;;  %v1865_v17 = vor.u32 %v1864_v56, %v1860_v1  ;;  %v8660_v0 = vld [vmem:[#allocation2 + $0xc0] sm:$0xff]  }
 0x1a7   : > { %3302 = vmatmul.bf16.gmra.mxu2 %v1524_v53  ;;  %3480 = vmatmul.bf16.gmra.mxu0 %v1858_v45  ;;  %v3349_v11 = vpop.f32.mrf.mxu3  ;;  %v1874_v54 = vshll.u32 %v8660_v0, 16  ;;  %v1872_v56 = vshrl.u32 %v8660_v0, 16 }
 0x1a8   : > { %3569 = vmatmul.bf16.gmra.mxu1 %v1988_v29  ;;  %v3350_v46 = vadd.f32 %v3349_v11, %v3261_v55  ;;  %v1527_v57 = vsel %vm1482_vm4, %v1525_v63, %v1526_v26  ;;  %v1870_v32 = vsel %vm1225_vm3, %v1865_v17, %v1869_v15  ;;  %v1674_v29 = vunpack.c.l.b16 %v999_v42  ;;  %v8713_v11 = vld [vmem:[#allocation2 + $0xc0] sm:$0xf0]  ;;  %v8385_v42 = vld [vmem:[#allocation9 + $0x20] sm:$0xff] }
 0x1a9   : > { %v1529_v17 = vrot.slane %v9693_v47, 1  ;;  %6640 = vmatpush.bf16.msra.mxu1 %v8385_v42 }
 0x1aa   : > { %v3263_v25 = vpop.f32.mrf.mxu2  ;;  %v9939_v10 = vadd.f32 %v3438_v51, %v3350_v46  ;;  %v1990_v51 = vrot.slane %v1689_v8, 1  ;;  %v1690_v7 = vpack.c.b16 %v1674_v29, %v1674_v29  ;;  %v8714_v46 = vld [vmem:[#allocation2 + $0xc0] sm:$0xe] }
 0x1ab   : > { %v3264_v43 = vadd.f32 %v3263_v25, %v9785_v62  ;;  %v8715_v63 = vor.u32 %v8714_v46, %v8713_v11  ;;  %v8519_v11 = vld [vmem:[#allocation2 + $0x18] sm:$0xff]  }
 0x1ac   : > { %v3443_v13 = vpop.f32.mrf.mxu0  ;;  %3391 = vmatmul.bf16.gmra.mxu3 %v9903_v49  ;;  %v9010_v49 = vld [vmem:[#allocation2 + $0xb4] sm:$0xe]  ;;  %v1991_v58 = vsel %vm1482_vm4, %v1989_v14, %v1990_v51  ;;  %v1879_v31 = vshll.u32 %v1690_v7, 16  ;;  %v1993_v51 = vrot.slane %v1690_v7, 1 }
 0x1ad   : > { %v9942_v44 = vpop.f32.mrf.mxu1 }
 0x1af   : > { %v3352_v62 = vpop.f32.mrf.mxu3 }
 0x1b0   : > { %v3353_v16 = vadd.f32 %v3352_v62, %v3264_v43  ;;  %v9011_v43 = vor.u32 %v9010_v49, %v9680_v4  ;;  %v1881_v62 = vrot.slane %v1879_v31, 1  ;;  %v1049_v49 = vld [vmem:[#allocation2 + $0x20] sm:$0x1] }
 0x1b1   : > { %v2123_v7 = vunpack.c.l.b16 %v1049_v49 }
 0x1b2   : > { %v3265_v55 = vpop.f32.mrf.mxu2  ;;  %v3442_v40 = vadd.f32 %v3441_v60, %v3353_v16  ;;  %v1528_v26 = vrot.slane %v9011_v43, 1  ;;  %v2158_v43 = vshll.u32 %v8519_v11, 16 }
 0x1b3   : > { %v3266_v53 = vadd.f32 %v3265_v55, %v9792_v52 }
 0x1b4   : > { %v3446_v45 = vpop.f32.mrf.mxu0  ;;  %v9951_v28 = vadd.f32 %v3530_v38, %v3442_v40  ;;  %v1876_v38 = vrot.slane %v1874_v54, 1  ;;  %v1530_v40 = vsel %vm1482_vm4, %v1528_v26, %v1529_v17  ;;  %v8717_v54 = vld [vmem:[#allocation2 + $0x18] sm:$0xe] }
 0x1b5   : > { %v3535_v34 = vpop.f32.mrf.mxu1 }
 0x1b6   : > { %v1877_v15 = vor.u32 %v1876_v38, %v1872_v56 }
 0x1b7   : > { %3307 = vmatmul.bf16.gmra.mxu2 %v1527_v57  ;;  %3485 = vmatmul.bf16.gmra.mxu0 %v1870_v32  ;;  %v3354_v52 = vpop.f32.mrf.mxu3 }
 0x1b8   : > { %3574 = vmatmul.bf16.gmra.mxu1 %v1991_v58  ;;  %v3355_v60 = vadd.f32 %v3354_v52, %v3266_v53  ;;  %v1882_v57 = vsel %vm1225_vm3, %v1877_v15, %v1881_v62  ;;  %v8716_v58 = vld [vmem:[#allocation2 + $0x18] sm:$0xf0]  ;;  %v2156_v15 = vshrl.u32 %v8519_v11, 16  ;;  %v2160_v62 = vrot.slane %v2158_v43, 1 }
 0x1b9   : > { %v8718_v46 = vor.u32 %v8717_v54, %v8716_v58 }
 0x1ba   : > { %v3268_v8 = vpop.f32.mrf.mxu2  ;;  %v9955_v20 = vadd.f32 %v3443_v13, %v3355_v60 }
 0x1bb   : > { %v3269_v25 = vadd.f32 %v3268_v8, %v9802_v5  ;;  %v1992_v5 = vrot.slane %v8715_v63, 1  ;;  %v2411_v56 = vrot.slane %v8718_v46, 1 }
 0x1bc   : > { %v3448_v1 = vpop.f32.mrf.mxu0  ;;  %3396 = vmatmul.bf16.gmra.mxu3 %v9920_v59 }
 0x1bd   : > { %v9957_v2 = vpop.f32.mrf.mxu1  ;;  %v1994_v47 = vsel %vm1482_vm4, %v1992_v5, %v1993_v51  ;;  %v1019_v51 = vld [vmem:[#allocation2 + $0x24] sm:$0xff]  }
 0x1bf   : > { %v3357_v14 = vpop.f32.mrf.mxu3 }
 0x1c0   : > { %v3358_v4 = vadd.f32 %v3357_v14, %v3269_v25 }
 0x1c2   : > { %v3270_v13 = vpop.f32.mrf.mxu2  ;;  %v3447_v55 = vadd.f32 %v3446_v45, %v3358_v4  ;;  %v9012_v4 = vld [vmem:[#allocation2 + $0x24] sm:$0xf0] }
 0x1c3   : > { %v3271_v16 = vadd.f32 %v3270_v13, %v9812_v24 }
 0x1c4   : > { %v3451_v53 = vpop.f32.mrf.mxu0  ;;  %v9965_v32 = vadd.f32 %v3535_v34, %v3447_v55  ;;  %v2139_v34 = vpack.c.b16 %v2123_v7, %v2123_v7  ;;  %v2170_v7 = vshll.u32 %v1019_v51, 16 }
 0x1c5   : > { %v3540_v59 = vpop.f32.mrf.mxu1 }
 0x1c6   : > { %v2412_v38 = vrot.slane %v2139_v34, 1 }
 0x1c7   : > { %3312 = vmatmul.bf16.gmra.mxu2 %v1530_v40  ;;  %3490 = vmatmul.bf16.gmra.mxu0 %v1882_v57  ;;  %v3359_v29 = vpop.f32.mrf.mxu3  ;;  %v1050_v40 = vld [vmem:[#allocation2 + $0x2c] sm:$0x1] }
 0x1c8   : > { %3579 = vmatmul.bf16.gmra.mxu1 %v1994_v47  ;;  %v3360_v24 = vadd.f32 %v3359_v29, %v3271_v16  ;;  %v2413_v5 = vsel %vm1482_vm4, %v2411_v56, %v2412_v38  ;;  %v2161_v16 = vor.u32 %v2160_v62, %v2156_v15  ;;  %v2124_v49 = vunpack.c.l.b16 %v1050_v40  ;;  %v8384_v56 = vld [vmem:[#allocation9 + $0x18] sm:$0xff] }
 0x1c9   : > { %6641 = vmatpush.bf16.msra.mxu1 %v8384_v56 }
 0x1ca   : > { %v3273_v45 = vpop.f32.mrf.mxu2  ;;  %v9968_v60 = vadd.f32 %v3448_v1, %v3360_v24 }
 0x1cb   : > { %v3274_v52 = vadd.f32 %v3273_v45, %v9820_v41  ;;  %v2163_v41 = vshll.u32 %v2139_v34, 16 }
 0x1cc   : > { %v3453_v8 = vpop.f32.mrf.mxu0  ;;  %3401 = vmatmul.bf16.gmra.mxu3 %v8660_v0  ;;  %v9013_v0 = vld [vmem:[#allocation2 + $0x24] sm:$0xe] }
 0x1cd   : > { %v9970_v25 = vpop.f32.mrf.mxu1  ;;  %v2165_v55 = vrot.slane %v2163_v41, 1  ;;  %v9014_v24 = vor.u32 %v9013_v0, %v9012_v4  ;;  %v8719_v0 = vld [vmem:[#allocation2 + $0x30] sm:$0xf0] }
 0x1cf   : > { %v3362_v31 = vpop.f32.mrf.mxu3 }
 0x1d0   : > { %v3363_v63 = vadd.f32 %v3362_v31, %v3274_v52  ;;  %v2414_v52 = vrot.slane %v9014_v24, 1  ;;  %v2168_v31 = vshrl.u32 %v1019_v51, 16 }
 0x1d2   : > { %v3275_v26 = vpop.f32.mrf.mxu2  ;;  %v3452_v1 = vadd.f32 %v3451_v53, %v3363_v63  ;;  %v2166_v53 = vsel %vm1225_vm3, %v2161_v16, %v2165_v55  ;;  %v2172_v63 = vrot.slane %v2170_v7, 1  ;;  %v8720_v16 = vld [vmem:[#allocation2 + $0x30] sm:$0xe] }
 0x1d3   : > { %v3276_v17 = vadd.f32 %v3275_v26, %v9827_v3 }
 0x1d4   : > { %v3456_v14 = vpop.f32.mrf.mxu0  ;;  %v9974_v42 = vadd.f32 %v3540_v59, %v3452_v1  ;;  %v2140_v59 = vpack.c.b16 %v2124_v49, %v2124_v49  ;;  %v2173_v41 = vor.u32 %v2172_v63, %v2168_v31  ;;  %v8721_v49 = vor.u32 %v8720_v16, %v8719_v0  ;;  %v1023_v31 = vld [vmem:[#allocation2 + $0x3c] sm:$0xff]  }
 0x1d5   : > { %v3545_v13 = vpop.f32.mrf.mxu1  ;;  %v9015_v63 = vld [vmem:[#allocation2 + $0x3c] sm:$0xf0] }
 0x1d6   : > { %v2417_v24 = vrot.slane %v8721_v49, 1 }
 0x1d7   : > { %3593 = vmatmul.bf16.vlgmr.msra.gmra.mxu2 %v8519_v11  ;;  %3771 = vmatmul.bf16.vlgmr.msra.gmra.mxu0 %v2413_v5  ;;  %v3364_v57 = vpop.f32.mrf.mxu3  ;;  %v2415_v11 = vrot.slane %v2140_v59, 1  ;;  %v1051_v5 = vld [vmem:[#allocation2 + $0x38] sm:$0x1] }
 0x1d8   : > { %v3365_v3 = vadd.f32 %v3364_v57, %v3276_v17  ;;  %v2125_v40 = vunpack.c.l.b16 %v1051_v5  ;;  %v1052_v5 = vld [vmem:[#allocation2 + $0x44] sm:$0x1] }
 0x1d9   : > { %v2416_v17 = vsel %vm1482_vm4, %v2414_v52, %v2415_v11  ;;  %v2126_v16 = vunpack.c.l.b16 %v1052_v5  ;;  %v8723_v5 = vld [vmem:[#allocation2 + $0x48] sm:$0xe] }
 0x1da   : > { %v3278_v47 = vpop.f32.mrf.mxu2  ;;  %v9978_v58 = vadd.f32 %v3453_v8, %v3365_v3 }
 0x1db   : > { %v3279_v29 = vadd.f32 %v3278_v47, %v9714_v27  ;;  %v2175_v27 = vshll.u32 %v2140_v59, 16 }
 0x1dc   : > { %v3458_v54 = vpop.f32.mrf.mxu0  ;;  %3682 = vmatmul.bf16.vlgmr.msra.gmra.mxu3 %v2166_v53  ;;  %v2141_v53 = vpack.c.b16 %v2125_v40, %v2125_v40 }
 0x1dd   : > { %v9980_v45 = vpop.f32.mrf.mxu1  ;;  %v2177_v1 = vrot.slane %v2175_v27, 1 }
 0x1de   : > { %v2418_v59 = vrot.slane %v2141_v53, 1 }
 0x1df   : > { %v3367_v46 = vpop.f32.mrf.mxu3 }
 0x1e0   : > { %v3368_v34 = vadd.f32 %v3367_v46, %v3279_v29 }
 0x1e2   : > { %v3280_v43 = vpop.f32.mrf.mxu2  ;;  %v3457_v8 = vadd.f32 %v3456_v14, %v3368_v34  ;;  %v2178_v14 = vsel %vm1225_vm3, %v2173_v41, %v2177_v1 }
 0x1e3   : > { %v3281_v38 = vadd.f32 %v3280_v43, %v9722_v50 }
 0x1e4   : > { %v3461_v26 = vpop.f32.mrf.mxu0  ;;  %v9984_v62 = vadd.f32 %v3545_v13, %v3457_v8  ;;  %v8661_v13 = vld [vmem:[#allocation2 + $0x30] sm:$0xff]   ;;  %v9016_v8 = vld [vmem:[#allocation2 + $0x3c] sm:$0xe] }
 0x1e5   : > { %v3550_v15 = vpop.f32.mrf.mxu1  ;;  %v2182_v29 = vshll.u32 %v8661_v13, 16  ;;  %v2180_v34 = vshrl.u32 %v8661_v13, 16 }
 0x1e7   : > { %3598 = vmatmul.bf16.gmra.mxu2 %v1019_v51  ;;  %3776 = vmatmul.bf16.gmra.mxu0 %v2416_v17  ;;  %v3369_v4 = vpop.f32.mrf.mxu3  ;;  %v2184_v43 = vrot.slane %v2182_v29, 1 }
 0x1e8   : > { %v3370_v50 = vadd.f32 %v3369_v4, %v3281_v38  ;;  %v2419_v38 = vsel %vm1482_vm4, %v2417_v24, %v2418_v59 }
 0x1e9   : > { %v2185_v41 = vor.u32 %v2184_v43, %v2180_v34 }
 0x1ea   : > { %v3283_v55 = vpop.f32.mrf.mxu2  ;;  %v9988_v3 = vadd.f32 %v3458_v54, %v3370_v50 }
 0x1eb   : > { %v3284_v57 = vadd.f32 %v3283_v55, %v9728_v21  ;;  %v2187_v21 = vshll.u32 %v2141_v53, 16 }
 0x1ec   : > { %v3463_v47 = vpop.f32.mrf.mxu0  ;;  %3687 = vmatmul.bf16.gmra.mxu3 %v2178_v14  ;;  %v9017_v14 = vor.u32 %v9016_v8, %v9015_v63  ;;  %v1053_v8 = vld [vmem:[#allocation2 + $0x50] sm:$0x1] }
 0x1ed   : > { %v9990_v51 = vpop.f32.mrf.mxu1  ;;  %v2189_v1 = vrot.slane %v2187_v21, 1 }
 0x1ee   : > { %v2420_v49 = vrot.slane %v9017_v14, 1 }
 0x1ef   : > { %v3372_v7 = vpop.f32.mrf.mxu3 }
 0x1f0   : > { %v3373_v52 = vadd.f32 %v3372_v7, %v3284_v57  ;;  %v8383_v7 = vld [vmem:[#allocation9 + $0x10] sm:$0xff] }
 0x1f1   : > { %6642 = vmatpush.bf16.msra.mxu1 %v8383_v7 }
 0x1f2   : > { %v3285_v11 = vpop.f32.mrf.mxu2  ;;  %v3462_v54 = vadd.f32 %v3461_v26, %v3373_v52  ;;  %v2190_v26 = vsel %vm1225_vm3, %v2185_v41, %v2189_v1  ;;  %v8722_v1 = vld [vmem:[#allocation2 + $0x48] sm:$0xf0] }
 0x1f3   : > { %v3286_v46 = vadd.f32 %v3285_v11, %v9738_v37  ;;  %v2192_v11 = vshrl.u32 %v1023_v31, 16 }
 0x1f4   : > { %v3466_v56 = vpop.f32.mrf.mxu0  ;;  %v9994_v17 = vadd.f32 %v3550_v15, %v3462_v54  ;;  %v2142_v15 = vpack.c.b16 %v2126_v16, %v2126_v16 }
 0x1f5   : > { %v3555_v27 = vpop.f32.mrf.mxu1 }
 0x1f6   : > { %v2421_v53 = vrot.slane %v2142_v15, 1 }
 0x1f7   : > { %3603 = vmatmul.bf16.gmra.mxu2 %v8661_v13  ;;  %3781 = vmatmul.bf16.gmra.mxu0 %v2419_v38  ;;  %v3374_v4 = vpop.f32.mrf.mxu3  ;;  %v2194_v13 = vshll.u32 %v1023_v31, 16 }
 0x1f8   : > { %v3375_v37 = vadd.f32 %v3374_v4, %v3286_v46  ;;  %v2422_v43 = vsel %vm1482_vm4, %v2420_v49, %v2421_v53 }
 0x1f9   : > { %v2196_v46 = vrot.slane %v2194_v13, 1 }
 0x1fa   : > { %v3288_v0 = vpop.f32.mrf.mxu2  ;;  %v9998_v55 = vadd.f32 %v3463_v47, %v3375_v37  ;;  %v2127_v37 = vunpack.c.l.b16 %v1053_v8 }
 0x1fb   : > { %v3289_v50 = vadd.f32 %v3288_v0, %v9748_v9  ;;  %v2199_v9 = vshll.u32 %v2142_v15, 16  ;;  %v2197_v38 = vor.u32 %v2196_v46, %v2192_v11 }
 0x1fc   : > { %v3468_v40 = vpop.f32.mrf.mxu0  ;;  %3692 = vmatmul.bf16.gmra.mxu3 %v2190_v26  ;;  %v2143_v14 = vpack.c.b16 %v2127_v37, %v2127_v37 }
 0x1fd   : > { %v10000_v57 = vpop.f32.mrf.mxu1  ;;  %v2201_v63 = vrot.slane %v2199_v9, 1 }
 0x1fe   : > { %v2424_v49 = vrot.slane %v2143_v14, 1 }
 0x1ff   : > { %v3377_v29 = vpop.f32.mrf.mxu3 }
 0x200   : > { %v3378_v24 = vadd.f32 %v3377_v29, %v3289_v50  ;;  %v8724_v50 = vor.u32 %v8723_v5, %v8722_v1  ;;  %v1054_v5 = vld [vmem:[#allocation2 + $0x5c] sm:$0x1] }
 0x202   : > { %v3290_v59 = vpop.f32.mrf.mxu2  ;;  %v3467_v47 = vadd.f32 %v3466_v56, %v3378_v24  ;;  %v2202_v56 = vsel %vm1225_vm3, %v2197_v38, %v2201_v63  ;;  %v2423_v13 = vrot.slane %v8724_v50, 1  ;;  %v9019_v38 = vld [vmem:[#allocation2 + $0x54] sm:$0xe] }
 0x203   : > { %v3291_v52 = vadd.f32 %v3290_v59, %v9756_v18  ;;  %v11676_v59 = vld [vmem:[#allocation14_spill] sm:$0xff] }
 0x204   : > { %v3471_v34 = vpop.f32.mrf.mxu0  ;;  %v10004_v54 = vadd.f32 %v3555_v27, %v3467_v47  ;;  %v8662_v27 = vld [vmem:[#allocation2 + $0x48] sm:$0xff]   ;;  %v2425_v9 = vsel %vm1482_vm4, %v2423_v13, %v2424_v49  ;;  %v1027_v47 = vld [vmem:[#allocation2 + $0x54] sm:$0xff]  }
 0x205   : > { %v3560_v21 = vpop.f32.mrf.mxu1  ;;  %v2206_v15 = vshll.u32 %v8662_v27, 16  ;;  %v2218_v49 = vshll.u32 %v1027_v47, 16 }
 0x207   : > { %3608 = vmatmul.bf16.gmra.mxu2 %v1023_v31  ;;  %3786 = vmatmul.bf16.gmra.mxu0 %v2422_v43  ;;  %v3379_v41 = vpop.f32.mrf.mxu3  ;;  %v2208_v11 = vrot.slane %v2206_v15, 1  ;;  %v9018_v43 = vld [vmem:[#allocation2 + $0x54] sm:$0xf0] }
 0x208   : > { %v3380_v18 = vadd.f32 %v3379_v41, %v3291_v52  ;;  %v2204_v52 = vshrl.u32 %v8662_v27, 16  ;;  %v9020_v13 = vor.u32 %v9019_v38, %v9018_v43 }
 0x20a   : > { %v3293_v4 = vpop.f32.mrf.mxu2  ;;  %v10008_v16 = vadd.f32 %v3468_v40, %v3380_v18  ;;  %v2209_v8 = vor.u32 %v2208_v11, %v2204_v52  ;;  %v8382_v52 = vld [vmem:[#allocation9 + $0x8] sm:$0xff]  ;;  %v11679_v11 = vld [vmem:[#allocation16_spill] sm:$0xff] }
 0x20b   : > { %v3294_v0 = vadd.f32 %v3293_v4, %v9763_v39  ;;  %v2211_v39 = vshll.u32 %v2143_v14, 16  ;;  %6643 = vmatpush.bf16.msra.mxu1 %v8382_v52 }
 0x20c   : > { %v3473_v26 = vpop.f32.mrf.mxu0  ;;  %3697 = vmatmul.bf16.gmra.mxu3 %v2202_v56  ;;  %v2128_v56 = vunpack.c.l.b16 %v1054_v5 }
 0x20d   : > { %v10010_v31 = vpop.f32.mrf.mxu1  ;;  %v2213_v41 = vrot.slane %v2211_v39, 1 }
 0x20f   : > { %v3382_v53 = vpop.f32.mrf.mxu3 }
 0x210   : > { %v3383_v29 = vadd.f32 %v3382_v53, %v3294_v0  ;;  %v11677_v0 = vld [vmem:[#allocation15_spill] sm:$0xff] }
 0x212   : > { %v3295_v24 = vpop.f32.mrf.mxu2  ;;  %v3472_v40 = vadd.f32 %v3471_v34, %v3383_v29  ;;  %v2214_v34 = vsel %vm1225_vm3, %v2209_v8, %v2213_v41 }
 0x213   : > { %v3296_v7 = vadd.f32 %v3295_v24, %v11676_v59 }
 0x214   : > { %v3476_v46 = vpop.f32.mrf.mxu0  ;;  %v10014_v63 = vadd.f32 %v3560_v21, %v3472_v40  ;;  %v2144_v21 = vpack.c.b16 %v2128_v56, %v2128_v56  ;;  %v2216_v40 = vshrl.u32 %v1027_v47, 16  ;;  %v8725_v56 = vld [vmem:[#allocation2 + $0x60] sm:$0xf0] }
 0x215   : > { %v3565_v1 = vpop.f32.mrf.mxu1 }
 0x216   : > { %v2427_v53 = vrot.slane %v2144_v21, 1  ;;  %v2223_v8 = vshll.u32 %v2144_v21, 16 }
 0x217   : > { %3613 = vmatmul.bf16.gmra.mxu2 %v8662_v27  ;;  %3791 = vmatmul.bf16.gmra.mxu0 %v2425_v9  ;;  %v3384_v18 = vpop.f32.mrf.mxu3  ;;  %v2426_v27 = vrot.slane %v9020_v13, 1  ;;  %v2220_v9 = vrot.slane %v2218_v49, 1 }
 0x218   : > { %v3385_v4 = vadd.f32 %v3384_v18, %v3296_v7  ;;  %v2225_v18 = vrot.slane %v2223_v8, 1  ;;  %v11682_v8 = vld [vmem:[#allocation18_spill] sm:$0xff] }
 0x219   : > { %v2428_v43 = vsel %vm1482_vm4, %v2426_v27, %v2427_v53  ;;  %v2221_v5 = vor.u32 %v2220_v9, %v2216_v40  ;;  %v8663_v53 = vld [vmem:[#allocation2 + $0x60] sm:$0xff]  }
 0x21a   : > { %v3298_v37 = vpop.f32.mrf.mxu2  ;;  %v10018_v14 = vadd.f32 %v3473_v26, %v3385_v4  ;;  %v1055_v4 = vld [vmem:[#allocation2 + $0x68] sm:$0x1] }
 0x21b   : > { %v3299_v50 = vadd.f32 %v3298_v37, %v11677_v0  ;;  %v2129_v13 = vunpack.c.l.b16 %v1055_v4  ;;  %v2226_v21 = vsel %vm1225_vm3, %v2221_v5, %v2225_v18 }
 0x21c   : > { %v3478_v15 = vpop.f32.mrf.mxu0  ;;  %3702 = vmatmul.bf16.gmra.mxu3 %v2214_v34  ;;  %v8726_v34 = vld [vmem:[#allocation2 + $0x60] sm:$0xe] }
 0x21d   : > { %v10020_v24 = vpop.f32.mrf.mxu1 }
 0x21e   : > { %11678 = vst [vmem:[#allocation14_spill] sm:$0xff] %v10020_v24 }
 0x21f   : > { %v3387_v29 = vpop.f32.mrf.mxu3 }
 0x220   : > { %v3388_v59 = vadd.f32 %v3387_v29, %v3299_v50 }
 0x222   : > { %v3300_v7 = vpop.f32.mrf.mxu2  ;;  %v3477_v26 = vadd.f32 %v3476_v46, %v3388_v59  ;;  %v11680_v46 = vld [vmem:[#allocation17_spill] sm:$0xff]  ;;  %v2145_v59 = vpack.c.b16 %v2129_v13, %v2129_v13 }
 0x223   : > { %v3301_v39 = vadd.f32 %v3300_v7, %v11679_v11  ;;  %v2230_v7 = vshll.u32 %v8663_v53, 16 }
 0x224   : > { %v3481_v41 = vpop.f32.mrf.mxu0  ;;  %v10024_v38 = vadd.f32 %v3565_v1, %v3477_v26  ;;  %v2430_v11 = vrot.slane %v2145_v59, 1  ;;  %v2235_v18 = vshll.u32 %v2145_v59, 16 }
 0x225   : > { %v3570_v29 = vpop.f32.mrf.mxu1  ;;  %v2232_v5 = vrot.slane %v2230_v7, 1 }
 0x227   : > { %3618 = vmatmul.bf16.gmra.mxu2 %v1027_v47  ;;  %3796 = vmatmul.bf16.gmra.mxu0 %v2428_v43  ;;  %v3389_v37 = vpop.f32.mrf.mxu3  ;;  %v8727_v47 = vor.u32 %v8726_v34, %v8725_v56  ;;  %v2228_v43 = vshrl.u32 %v8663_v53, 16  ;;  %v9022_v34 = vld [vmem:[#allocation2 + $0x6c] sm:$0xe] }
 0x228   : > { %v3390_v0 = vadd.f32 %v3389_v37, %v3301_v39 }
 0x229   : > { %v2429_v52 = vrot.slane %v8727_v47, 1 }
 0x22a   : > { %v3303_v50 = vpop.f32.mrf.mxu2  ;;  %v10028_v27 = vadd.f32 %v3478_v15, %v3390_v0  ;;  %v1031_v0 = vld [vmem:[#allocation2 + $0x6c] sm:$0xff]  }
 0x22b   : > { %v3304_v49 = vadd.f32 %v3303_v50, %v11680_v46  ;;  %v2431_v15 = vsel %vm1482_vm4, %v2429_v52, %v2430_v11  ;;  %v9021_v50 = vld [vmem:[#allocation2 + $0x6c] sm:$0xf0]  ;;  %v2237_v46 = vrot.slane %v2235_v18, 1 }
 0x22c   : > { %11681 = vst [vmem:[#allocation15_spill] sm:$0xff] %v10028_v27  ;;  %v3483_v1 = vpop.f32.mrf.mxu0  ;;  %3707 = vmatmul.bf16.gmra.mxu3 %v2226_v21  ;;  %v2233_v21 = vor.u32 %v2232_v5, %v2228_v43  ;;  %v2242_v43 = vshll.u32 %v1031_v0, 16 }
 0x22d   : > { %v10032_v56 = vpop.f32.mrf.mxu1 }
 0x22e   : > { %11683 = vst [vmem:[#allocation16_spill] sm:$0xff] %v10032_v56 }
 0x22f   : > { %v3392_v40 = vpop.f32.mrf.mxu3 }
 0x230   : > { %v3393_v9 = vadd.f32 %v3392_v40, %v3304_v49  ;;  %v1056_v49 = vld [vmem:[#allocation2 + $0x74] sm:$0x1] }
 0x231   : > { %v2130_v59 = vunpack.c.l.b16 %v1056_v49  ;;  %v2240_v49 = vshrl.u32 %v1031_v0, 16 }
 0x232   : > { %v3305_v39 = vpop.f32.mrf.mxu2  ;;  %v3482_v4 = vadd.f32 %v3481_v41, %v3393_v9  ;;  %v2238_v41 = vsel %vm1225_vm3, %v2233_v21, %v2237_v46  ;;  %v11685_v9 = vld [vmem:[#allocation19_spill] sm:$0xff] }
 0x233   : > { %v3306_v26 = vadd.f32 %v3305_v39, %v11682_v8  ;;  %v9023_v8 = vor.u32 %v9022_v34, %v9021_v50 }
 0x234   : > { %v3486_v37 = vpop.f32.mrf.mxu0  ;;  %v10034_v13 = vadd.f32 %v3570_v29, %v3482_v4  ;;  %v2146_v29 = vpack.c.b16 %v2130_v59, %v2130_v59  ;;  %v1057_v59 = vld [vmem:[#allocation2 + $0x80] sm:$0x1] }
 0x235   : > { %v3575_v4 = vpop.f32.mrf.mxu1 }
 0x236   : > { %11684 = vst [vmem:[#allocation17_spill] sm:$0xff] %v10034_v13  ;;  %v2433_v5 = vrot.slane %v2146_v29, 1  ;;  %v2244_v13 = vrot.slane %v2242_v43, 1  ;;  %v2247_v21 = vshll.u32 %v2146_v29, 16  ;;  %v2131_v43 = vunpack.c.l.b16 %v1057_v59  ;;  %v11690_v29 = vld [vmem:[#allocation21_spill] sm:$0xff] }
 0x237   : > { %3623 = vmatmul.bf16.gmra.mxu2 %v8663_v53  ;;  %3801 = vmatmul.bf16.gmra.mxu0 %v2431_v15  ;;  %v3394_v47 = vpop.f32.mrf.mxu3  ;;  %v2432_v53 = vrot.slane %v9023_v8, 1  ;;  %v8729_v8 = vld [vmem:[#allocation2 + $0x78] sm:$0xe] }
 0x238   : > { %v3395_v40 = vadd.f32 %v3394_v47, %v3306_v26  ;;  %v11687_v26 = vld [vmem:[#allocation20_spill] sm:$0xff]  ;;  %v2245_v50 = vor.u32 %v2244_v13, %v2240_v49  ;;  %v2249_v34 = vrot.slane %v2247_v21, 1 }
 0x23a   : > { %v3308_v7 = vpop.f32.mrf.mxu2  ;;  %v10038_v11 = vadd.f32 %v3483_v1, %v3395_v40  ;;  %v2434_v1 = vsel %vm1482_vm4, %v2432_v53, %v2433_v5  ;;  %v2147_v5 = vpack.c.b16 %v2131_v43, %v2131_v43  ;;  %v9024_v43 = vld [vmem:[#allocation2 + $0x84] sm:$0xf0] }
 0x23b   : > { %v3309_v52 = vadd.f32 %v3308_v7, %v11685_v9 }
 0x23c   : > { %11686 = vst [vmem:[#allocation18_spill] sm:$0xff] %v10038_v11  ;;  %v3488_v39 = vpop.f32.mrf.mxu0  ;;  %3712 = vmatmul.bf16.gmra.mxu3 %v2238_v41 }
 0x23d   : > { %v10044_v9 = vpop.f32.mrf.mxu1 }
 0x23e   : > { %11689 = vst [vmem:[#allocation20_spill] sm:$0xff] %v10044_v9  ;;  %v11692_v9 = vld [vmem:[#allocation22_spill] sm:$0xff] }
 0x23f   : > { %v3397_v18 = vpop.f32.mrf.mxu3 }
 0x240   : > { %v3398_v15 = vadd.f32 %v3397_v18, %v3309_v52  ;;  %v8728_v52 = vld [vmem:[#allocation2 + $0x78] sm:$0xf0] }
 0x241   : > { %v8730_v13 = vor.u32 %v8729_v8, %v8728_v52  ;;  %v1035_v8 = vld [vmem:[#allocation2 + $0x84] sm:$0xff]  }
 0x242   : > { %v3310_v56 = vpop.f32.mrf.mxu2  ;;  %v3487_v46 = vadd.f32 %v3486_v37, %v3398_v15  ;;  %v2250_v37 = vsel %vm1225_vm3, %v2245_v50, %v2249_v34 }
 0x243   : > { %v3311_v47 = vadd.f32 %v3310_v56, %v11687_v26  ;;  %v8381_v26 = vld [vmem:[#allocation9] sm:$0xff]  ;;  %v2435_v21 = vrot.slane %v8730_v13, 1 }
 0x244   : > { %v3491_v7 = vpop.f32.mrf.mxu0  ;;  %v10042_v40 = vadd.f32 %v3575_v4, %v3487_v46  ;;  %v2436_v46 = vrot.slane %v2147_v5, 1  ;;  %6644 = vmatpush.bf16.msra.mxu1 %v8381_v26 }
 0x245   : > { %v3580_v59 = vpop.f32.mrf.mxu1 }
 0x246   : > { %11688 = vst [vmem:[#allocation19_spill] sm:$0xff] %v10042_v40  ;;  %v2437_v52 = vsel %vm1482_vm4, %v2435_v21, %v2436_v46 }
 0x247   : > { %3628 = vmatmul.bf16.gmra.mxu2 %v1031_v0  ;;  %3806 = vmatmul.bf16.gmra.mxu0 %v2434_v1  ;;  %v3399_v41 = vpop.f32.mrf.mxu3  ;;  %v8664_v0 = vld [vmem:[#allocation2 + $0x78] sm:$0xff]  }
 0x248   : > { %v3400_v56 = vadd.f32 %v3399_v41, %v3311_v47  ;;  %v2254_v49 = vshll.u32 %v8664_v0, 16  ;;  %v2252_v34 = vshrl.u32 %v8664_v0, 16 }
 0x24a   : > { %v3313_v18 = vpop.f32.mrf.mxu2  ;;  %v10048_v53 = vadd.f32 %v3488_v39, %v3400_v56  ;;  %v2259_v39 = vshll.u32 %v2147_v5, 16 }
 0x24b   : > { %v3314_v15 = vadd.f32 %v3313_v18, %v11690_v29  ;;  %v2256_v18 = vrot.slane %v2254_v49, 1  ;;  %v10054_v49 = vld [vmem:[#allocation3] sm:$0xff]  }
 0x24c   : > { %11691 = vst [vmem:[#allocation21_spill] sm:$0xff] %v10048_v53  ;;  %v3493_v4 = vpop.f32.mrf.mxu0  ;;  %3717 = vmatmul.bf16.gmra.mxu3 %v2250_v37  ;;  %v9025_v37 = vld [vmem:[#allocation2 + $0x84] sm:$0xe]  ;;  %v2261_v26 = vrot.slane %v2259_v39, 1  ;;  %6645 = vmatmul.bf16.vlgmr.msra.gmra.mxu1 %v10054_v49 }
 0x24d   : > { %v2257_v13 = vor.u32 %v2256_v18, %v2252_v34  ;;  %v9026_v46 = vor.u32 %v9025_v37, %v9024_v43 }
 0x24f   : > { %v3402_v1 = vpop.f32.mrf.mxu3  ;;  %v2438_v34 = vrot.slane %v9026_v46, 1  ;;  %v1059_v46 = vld [vmem:[#allocation2 + $0x98] sm:$0x1] }
 0x250   : > { %v3403_v47 = vadd.f32 %v3402_v1, %v3314_v15  ;;  %v1058_v15 = vld [vmem:[#allocation2 + $0x8c] sm:$0x1] }
 0x252   : > { %v3315_v41 = vpop.f32.mrf.mxu2  ;;  %v3492_v56 = vadd.f32 %v3491_v7, %v3403_v47  ;;  %v2262_v7 = vsel %vm1225_vm3, %v2257_v13, %v2261_v26  ;;  %v2264_v13 = vshrl.u32 %v1035_v8, 16 }
 0x253   : > { %v3316_v50 = vadd.f32 %v3315_v41, %v11692_v9  ;;  %v2132_v41 = vunpack.c.l.b16 %v1058_v15  ;;  %v10071_v15 = vld [vmem:[%s11633_s3] ss:$0 sm:$0xff] }
 0x254   : > { %v3772_v29 = vpop.f32.mrf.mxu0  ;;  %v10052_v53 = vadd.f32 %v3580_v59, %v3492_v56  ;;  %v2266_v59 = vshll.u32 %v1035_v8, 16  ;;  %v10064_v56 = vld [vmem:[%s11632_s2] ss:$0 sm:$0xff] }
 0x255   : > { %v2148_v47 = vpack.c.b16 %v2132_v41, %v2132_v41 }
 0x256   : > { %11693 = vst [vmem:[#allocation22_spill] sm:$0xff] %v10052_v53 }
 0x257   : > { %3633 = vmatmul.bf16.gmra.mxu2 %v8664_v0  ;;  %3811 = vmatmul.bf16.gmra.mxu0 %v2437_v52  ;;  %v3404_v1 = vpop.f32.mrf.mxu3  ;;  %v2439_v18 = vrot.slane %v2148_v47, 1 }
 0x258   : > { %v3405_v40 = vadd.f32 %v3404_v1, %v3316_v50 }
 0x259   : > { %v2440_v37 = vsel %vm1482_vm4, %v2438_v34, %v2439_v18 }
 0x25a   : > { %v3594_v9 = vpop.f32.mrf.mxu2  ;;  %v10058_v5 = vadd.f32 %v3493_v4, %v3405_v40  ;;  %v2268_v40 = vrot.slane %v2266_v59, 1  ;;  %v2271_v4 = vshll.u32 %v2148_v47, 16  ;;  %v8732_v47 = vld [vmem:[#allocation2 + $0x90] sm:$0xe] }
 0x25b   : > { %v3595_v0 = vadd.f32 %v3594_v9, %v9851_v23  ;;  %v8396_v9 = vld [vmem:[#allocation9 + $0x78] sm:$0xff] }
 0x25c   : > { %11694 = vst [vmem:[#allocation23_spill] sm:$0xff] %v10058_v5  ;;  %v3774_v21 = vpop.f32.mrf.mxu0  ;;  %3722 = vmatmul.bf16.gmra.mxu3 %v2262_v7  ;;  %v2269_v41 = vor.u32 %v2268_v40, %v2264_v13  ;;  %v2273_v7 = vrot.slane %v2271_v4, 1  ;;  %6726 = vmatpush.bf16.msrb.mxu2 %v8396_v9 }
 0x25f   : > { %v3683_v50 = vpop.f32.mrf.mxu3 }
 0x260   : > { %v3684_v39 = vadd.f32 %v3683_v50, %v3595_v0  ;;  %v8731_v0 = vld [vmem:[#allocation2 + $0x90] sm:$0xf0]  ;;  %v2133_v50 = vunpack.c.l.b16 %v1059_v46 }
 0x262   : > { %v3596_v52 = vpop.f32.mrf.mxu2  ;;  %v3773_v26 = vadd.f32 %v3772_v29, %v3684_v39  ;;  %v2274_v39 = vsel %vm1225_vm3, %v2269_v41, %v2273_v7  ;;  %v2149_v4 = vpack.c.b16 %v2133_v50, %v2133_v50  ;;  %v1060_v50 = vld [vmem:[#allocation2 + $0xa4] sm:$0x1] }
 0x263   : > { %v3597_v1 = vadd.f32 %v3596_v52, %v9857_v30  ;;  %v8665_v30 = vld [vmem:[#allocation2 + $0x90] sm:$0xff]   ;;  %v8733_v52 = vor.u32 %v8732_v47, %v8731_v0 }
 0x264   : > { %v3777_v43 = vpop.f32.mrf.mxu0  ;;  %v3856_v23 = vmul.f32 %v10064_v56, %v3773_v26  ;;  %v2276_v7 = vshrl.u32 %v8665_v30, 16  ;;  %v2283_v0 = vshll.u32 %v2149_v4, 16 }
 0x266   : > { %v3892_v59 = vadd.f32 %v10071_v15, %v3856_v23  ;;  %v2441_v23 = vrot.slane %v8733_v52, 1 }
 0x267   : > { %3638 = vmatmul.bf16.gmra.mxu2 %v1035_v8  ;;  %3816 = vmatmul.bf16.gmra.mxu0 %v2440_v37  ;;  %v3685_v29 = vpop.f32.mrf.mxu3  ;;  %v2278_v37 = vshll.u32 %v8665_v30, 16 }
 0x268   : > { %v3686_v34 = vadd.f32 %v3685_v29, %v3597_v1  ;;  %v3924_v8 = vmax.f32 %v3892_v59, 0.0  ;;  %v2442_v1 = vrot.slane %v2149_v4, 1 }
 0x26a   : > { %v3599_v18 = vpop.f32.mrf.mxu2  ;;  %v3775_v26 = vadd.f32 %v3774_v21, %v3686_v34  ;;  %v3956_v46 = vpack.c.bf16 %v3924_v8, %v3924_v8  ;;  %v2280_v34 = vrot.slane %v2278_v37, 1  ;;  %v8420_v37 = vld [vmem:[#allocation9 + $0x138] sm:$0xff] }
 0x26b   : > { %v3600_v40 = vadd.f32 %v3599_v18, %v9866_v61  ;;  %v10080_v61 = vld [vmem:[#allocation2 + $0x9c] sm:$0xff]   ;;  %6993 = vmatpush.bf16.msrb.mxu1 %v8420_v37 }
 0x26c   : > { %v3779_v5 = vpop.f32.mrf.mxu0  ;;  %v3857_v13 = vmul.f32 %v10064_v56, %v3775_v26  ;;  %3727 = vmatmul.bf16.gmra.mxu3 %v2274_v39  ;;  %v2443_v39 = vsel %vm1482_vm4, %v2441_v23, %v2442_v1  ;;  %v9027_v18 = vld [vmem:[#allocation2 + $0x9c] sm:$0xf0]  ;;  %v4027_v52 = vunpack.c.l.b16 %v3956_v46  ;;  %v2281_v4 = vor.u32 %v2280_v34, %v2276_v7 }
 0x26d   : > { %v2134_v46 = vunpack.c.l.b16 %v1060_v50 }
 0x26e   : > { %v3893_v9 = vadd.f32 %v10071_v15, %v3857_v13  ;;  %v9028_v13 = vld [vmem:[#allocation2 + $0x9c] sm:$0xe] }
 0x26f   : > { %v3688_v29 = vpop.f32.mrf.mxu3 }
 0x270   : > { %v3925_v53 = vmax.f32 %v3893_v9, 0.0  ;;  %v3689_v41 = vadd.f32 %v3688_v29, %v3600_v40  ;;  %v8404_v9 = vld [vmem:[#allocation9 + $0xb8] sm:$0xff] }
 0x271   : > { %v8412_v29 = vld [vmem:[#allocation9 + $0xf8] sm:$0xff]  ;;  %6815 = vmatpush.bf16.msrb.mxu3 %v8404_v9 }
 0x272   : > { %v3601_v21 = vpop.f32.mrf.mxu2  ;;  %v3957_v47 = vpack.c.bf16 %v3925_v53, %v3925_v53  ;;  %v3778_v59 = vadd.f32 %v3777_v43, %v3689_v41  ;;  %v2285_v53 = vrot.slane %v2283_v0, 1  ;;  %6904 = vmatpush.bf16.msrb.mxu0 %v8412_v29  ;;  %v2150_v0 = vpack.c.b16 %v2134_v46, %v2134_v46 }
 0x273   : > { %v3602_v40 = vadd.f32 %v3601_v21, %v9877_v19 }
 0x274   : > { %v3782_v26 = vpop.f32.mrf.mxu0  ;;  %v4028_v11 = vunpack.c.l.b16 %v3957_v47  ;;  %v3858_v8 = vmul.f32 %v10064_v56, %v3778_v59  ;;  %v2286_v19 = vsel %vm1225_vm3, %v2281_v4, %v2285_v53 }
 0x276   : > { %v4059_v43 = vpack.c.b16 %v4028_v11, %v4027_v52  ;;  %v3894_v23 = vadd.f32 %v10071_v15, %v3858_v8 }
 0x277   : > { %3643 = vmatmul.bf16.gmra.mxu2 %v8665_v30  ;;  %3821 = vmatmul.bf16.gmra.mxu0 %v2443_v39  ;;  %v3690_v1 = vpop.f32.mrf.mxu3  ;;  %v9029_v30 = vor.u32 %v9028_v13, %v9027_v18  ;;  %v2445_v13 = vrot.slane %v2150_v0, 1 }
 0x278   : > { %v4076_v41 = vshrl.u32 %v4059_v43, 16  ;;  %v3691_v47 = vadd.f32 %v3690_v1, %v3602_v40  ;;  %v4079_v24 = vshll.u32 %v4059_v43, 16  ;;  %v3926_v34 = vmax.f32 %v3894_v23, 0.0 }
 0x279   : > { %v2290_v40 = vshll.u32 %v10080_v61, 16  ;;  %v2444_v18 = vrot.slane %v9029_v30, 1 }
 0x27a   : > { %v3604_v59 = vpop.f32.mrf.mxu2  ;;  %v4078_v21 = vrot.slane %v4076_v41, 7  ;;  %v3780_v27 = vadd.f32 %v3779_v5, %v3691_v47  ;;  %v3958_v53 = vpack.c.bf16 %v3926_v34, %v3926_v34  ;;  %v2295_v47 = vshll.u32 %v2150_v0, 16 }
 0x27b   : > { %v3605_v50 = vadd.f32 %v3604_v59, %v9884_v36  ;;  %v2288_v36 = vshrl.u32 %v10080_v61, 16  ;;  %v2292_v41 = vrot.slane %v2290_v40, 1  ;;  %v2446_v30 = vsel %vm1482_vm4, %v2444_v18, %v2445_v13  ;;  %v8734_v13 = vld [vmem:[#allocation2 + $0xa8] sm:$0xf0] }
 0x27c   : > { %v3784_v7 = vpop.f32.mrf.mxu0  ;;  %v4081_v11 = vor.u32 %v4079_v24, %v4078_v21  ;;  %v4235_v39 = vsel %vm9449_vm2, %v4078_v21, 0  ;;  %v3859_v52 = vmul.f32 %v10064_v56, %v3780_v27  ;;  %3732 = vmatmul.bf16.gmra.mxu3 %v2286_v19  ;;  %v2297_v40 = vrot.slane %v2295_v47, 1 }
 0x27d   : > { %v4285_v8 = vunpack.c.l.b16 %v4235_v39 }
 0x27e   : > { %v4219_v9 = vsel %vm9449_vm2, 0, %v4081_v11  ;;  %v3895_v5 = vadd.f32 %v10071_v15, %v3859_v52  ;;  %v4029_v11 = vunpack.c.l.b16 %v3958_v53 }
 0x27f   : > { %v4283_v29 = vunpack.c.l.b16 %v4219_v9  ;;  %v4284_v24 = vunpack.c.h.b16 %v4219_v9  ;;  %v4333_v37 = vpack.c.b16 %v4285_v8, %v4285_v8  ;;  %v3693_v4 = vpop.f32.mrf.mxu3  ;;  %v1061_v8 = vld [vmem:[#allocation2 + $0xb0] sm:$0x1]  ;;  %v2293_v9 = vor.u32 %v2292_v41, %v2288_v36 }
 0x280   : > { %v3927_v43 = vmax.f32 %v3895_v5, 0.0  ;;  %v3694_v27 = vadd.f32 %v3693_v4, %v3605_v50  ;;  %v8395_v50 = vld [vmem:[#allocation9 + $0x70] sm:$0xff]  ;;  %v2135_v18 = vunpack.c.l.b16 %v1061_v8 }
 0x281   : > { %v4331_v1 = vpack.c.b16 %v4283_v29, %v4283_v29  ;;  %v4332_v46 = vpack.c.b16 %v4284_v24, %v4284_v24  ;;  %4430 = vst [vmem:[#allocation3 + $0x14] sm:$0x1] %v4333_v37  ;;  %6727 = vmatpush.bf16.msrb.mxu2 %v8395_v50  ;;  %v8735_v29 = vld [vmem:[#allocation2 + $0xa8] sm:$0xe] }
 0x282   : > { %v3606_v23 = vpop.f32.mrf.mxu2  ;;  %v3959_v59 = vpack.c.bf16 %v3927_v43, %v3927_v43  ;;  %v3783_v19 = vadd.f32 %v3782_v26, %v3694_v27  ;;  %v8736_v36 = vor.u32 %v8735_v29, %v8734_v13  ;;  %v2151_v47 = vpack.c.b16 %v2135_v18, %v2135_v18 }
 0x283   : > { %4428 = vst [vmem:[#allocation3 + $0xc] sm:$0xf] %v4331_v1  ;;  %v3607_v52 = vadd.f32 %v3606_v23, %v9895_v12  ;;  %v2298_v12 = vsel %vm1225_vm3, %v2293_v9, %v2297_v40  ;;  %v8666_v23 = vld [vmem:[#allocation2 + $0xa8] sm:$0xff]  }
 0x284   : > { %v3787_v21 = vpop.f32.mrf.mxu0  ;;  %4429 = vst [vmem:[#allocation3 + $0x10] sm:$0xf] %v4332_v46  ;;  %v4030_v39 = vunpack.c.l.b16 %v3959_v59  ;;  %v3860_v34 = vmul.f32 %v10064_v56, %v3783_v19  ;;  %v2447_v50 = vrot.slane %v8736_v36, 1  ;;  %v2448_v8 = vrot.slane %v2151_v47, 1 }
 0x286   : > { %v4060_v0 = vpack.c.b16 %v4030_v39, %v4029_v11  ;;  %v3896_v26 = vadd.f32 %v10071_v15, %v3860_v34  ;;  %v2302_v39 = vshll.u32 %v8666_v23, 16  ;;  %v2449_v36 = vsel %vm1482_vm4, %v2447_v50, %v2448_v8 }
 0x287   : > { %3648 = vmatmul.bf16.gmra.mxu2 %v10080_v61  ;;  %3826 = vmatmul.bf16.gmra.mxu0 %v2446_v30  ;;  %v3695_v5 = vpop.f32.mrf.mxu3 }
 0x288   : > { %v4083_v24 = vshrl.u32 %v4060_v0, 16  ;;  %v3696_v37 = vadd.f32 %v3695_v5, %v3607_v52  ;;  %v4086_v43 = vshll.u32 %v4060_v0, 16  ;;  %v3928_v1 = vmax.f32 %v3896_v26, 0.0 }
 0x28a   : > { %v3609_v4 = vpop.f32.mrf.mxu2  ;;  %v4085_v53 = vrot.slane %v4083_v24, 7  ;;  %v3785_v27 = vadd.f32 %v3784_v7, %v3696_v37  ;;  %v3960_v5 = vpack.c.bf16 %v3928_v1, %v3928_v1  ;;  %v2300_v24 = vshrl.u32 %v8666_v23, 16  ;;  %v9030_v1 = vld [vmem:[#allocation2 + $0xb4] sm:$0xf0] }
 0x28b   : > { %v10103_v46 = vld [vmem:[#allocation3 + $0xc] sm:$0xff]   ;;  %v3610_v11 = vadd.f32 %v3609_v4, %v9908_v6  ;;  %v2304_v4 = vrot.slane %v2302_v39, 1 }
 0x28c   : > { %v10101_v61 = vpop.f32.mrf.mxu0  ;;  %v10105_v41 = vld [vmem:[#allocation3 + $0xc] sm:$0xf0]  ;;  %v4088_v59 = vor.u32 %v4086_v43, %v4085_v53  ;;  %v4236_v19 = vsel %vm9449_vm2, %v4085_v53, 0  ;;  %v3861_v30 = vmul.f32 %v10064_v56, %v3785_v27  ;;  %3737 = vmatmul.bf16.gmra.mxu3 %v2298_v12  ;;  %6650 = vmatmul.bf16.gmra.mxu1 %v10103_v46  ;;  %v2307_v12 = vshll.u32 %v2151_v47, 16  ;;  %v8403_v47 = vld [vmem:[#allocation9 + $0xb0] sm:$0xff] }
 0x28d   : > { %v4288_v7 = vunpack.c.l.b16 %v4236_v19  ;;  %v1062_v19 = vld [vmem:[#allocation2 + $0xbc] sm:$0x1]  ;;  %6816 = vmatpush.bf16.msrb.mxu3 %v8403_v47 }
 0x28e   : > { %v4220_v34 = vsel %vm9449_vm2, 0, %v4088_v59  ;;  %v3897_v52 = vadd.f32 %v10071_v15, %v3861_v30  ;;  %v10118_v59 = vld [vmem:[#allocation2 + $0xb4] sm:$0xff]  }
 0x28f   : > { %v4286_v9 = vunpack.c.l.b16 %v4220_v34  ;;  %v4287_v40 = vunpack.c.h.b16 %v4220_v34  ;;  %v4336_v0 = vpack.c.b16 %v4288_v7, %v4288_v7  ;;  %v3698_v26 = vpop.f32.mrf.mxu3  ;;  %v9031_v30 = vld [vmem:[#allocation2 + $0xb4] sm:$0xe] }
 0x290   : > { %v3929_v18 = vmax.f32 %v3897_v52, 0.0  ;;  %v3699_v13 = vadd.f32 %v3698_v26, %v3610_v11  ;;  %v4031_v11 = vunpack.c.l.b16 %v3960_v5  ;;  %v8411_v52 = vld [vmem:[#allocation9 + $0xf0] sm:$0xff]  ;;  %v2136_v26 = vunpack.c.l.b16 %v1062_v19 }
 0x291   : > { %v4334_v37 = vpack.c.b16 %v4286_v9, %v4286_v9  ;;  %v4335_v6 = vpack.c.b16 %v4287_v40, %v4287_v40  ;;  %4433 = vst [vmem:[#allocation3 + $0x20] sm:$0x1] %v4336_v0  ;;  %v2305_v9 = vor.u32 %v2304_v4, %v2300_v24  ;;  %v2309_v40 = vrot.slane %v2307_v12, 1  ;;  %6905 = vmatpush.bf16.msrb.mxu0 %v8411_v52 }
 0x292   : > { %v3611_v29 = vpop.f32.mrf.mxu2  ;;  %v3961_v53 = vpack.c.bf16 %v3929_v18, %v3929_v18  ;;  %v3788_v43 = vadd.f32 %v3787_v21, %v3699_v13  ;;  %v8419_v21 = vld [vmem:[#allocation9 + $0x130] sm:$0xff]  ;;  %v2152_v12 = vpack.c.b16 %v2136_v26, %v2136_v26 }
 0x293   : > { %4431 = vst [vmem:[#allocation3 + $0x18] sm:$0xf] %v4334_v37  ;;  %v3612_v39 = vadd.f32 %v3611_v29, %v9926_v22  ;;  %6994 = vmatpush.bf16.msrb.mxu1 %v8419_v21  ;;  %v2310_v22 = vsel %vm1225_vm3, %v2305_v9, %v2309_v40 }
 0x294   : > { %v10115_v27 = vpop.f32.mrf.mxu0  ;;  %4432 = vst [vmem:[#allocation3 + $0x1c] sm:$0xf] %v4335_v6  ;;  %v4032_v7 = vunpack.c.l.b16 %v3961_v53  ;;  %v3862_v34 = vmul.f32 %v10064_v56, %v3788_v43  ;;  %v9032_v6 = vor.u32 %v9031_v30, %v9030_v1  ;;  %v2451_v30 = vrot.slane %v2152_v12, 1 }
 0x296   : > { %v4061_v50 = vpack.c.b16 %v4032_v7, %v4031_v11  ;;  %v3898_v8 = vadd.f32 %v10071_v15, %v3862_v34  ;;  %v2314_v7 = vshll.u32 %v10118_v59, 16  ;;  %v2450_v1 = vrot.slane %v9032_v6, 1 }
 0x297   : > { %3653 = vmatmul.bf16.gmra.mxu2 %v8666_v23  ;;  %3831 = vmatmul.bf16.gmra.mxu0 %v2449_v36  ;;  %v3700_v0 = vpop.f32.mrf.mxu3 }
 0x298   : > { %v4090_v5 = vshrl.u32 %v4061_v50, 16  ;;  %v3701_v18 = vadd.f32 %v3700_v0, %v3612_v39  ;;  %v4093_v37 = vshll.u32 %v4061_v50, 16  ;;  %v3930_v4 = vmax.f32 %v3898_v8, 0.0 }
 0x299   : > { %v2312_v0 = vshrl.u32 %v10118_v59, 16  ;;  %v2452_v6 = vsel %vm1482_vm4, %v2450_v1, %v2451_v30 }
 0x29a   : > { %v3614_v13 = vpop.f32.mrf.mxu2  ;;  %v4092_v29 = vrot.slane %v4090_v5, 7  ;;  %v3790_v24 = vadd.f32 %v10101_v61, %v3701_v18  ;;  %v3962_v9 = vpack.c.bf16 %v3930_v4, %v3930_v4  ;;  %v2316_v18 = vrot.slane %v2314_v7, 1  ;;  %v8394_v4 = vld [vmem:[#allocation9 + $0x68] sm:$0xff]  ;;  %v1063_v7 = vld [vmem:[#allocation2 + $0xc8] sm:$0x1] }
 0x29b   : > { %v3615_v19 = vadd.f32 %v3614_v13, %v9935_v33  ;;  %v10135_v8 = vld [vmem:[#allocation3 + $0x18] sm:$0xff]   ;;  %v2319_v13 = vshll.u32 %v2152_v12, 16  ;;  %6728 = vmatpush.bf16.msrb.mxu2 %v8394_v4 }
 0x29c   : > { %v10125_v23 = vpop.f32.mrf.mxu0  ;;  %v4095_v53 = vor.u32 %v4093_v37, %v4092_v29  ;;  %v4237_v43 = vsel %vm9449_vm2, %v4092_v29, 0  ;;  %v3863_v36 = vmul.f32 %v10064_v56, %v3790_v24  ;;  %3742 = vmatmul.bf16.gmra.mxu3 %v2310_v22  ;;  %6655 = vmatmul.bf16.gmra.mxu1 %v10135_v8  ;;  %v3528_v22 = vadd.f32 %v9918_v35, %v9939_v10 }
 0x29d   : > { %v4291_v11 = vunpack.c.l.b16 %v4237_v43  ;;  %v8410_v43 = vld [vmem:[#allocation9 + $0xe8] sm:$0xff]  ;;  %v2317_v35 = vor.u32 %v2316_v18, %v2312_v0  ;;  %v2321_v10 = vrot.slane %v2319_v13, 1  ;;  %v10152_v18 = vld [vmem:[#allocation2 + $0xc0] sm:$0xff]  }
 0x29e   : > { %v4221_v61 = vsel %vm9449_vm2, 0, %v4095_v53  ;;  %v3899_v34 = vadd.f32 %v10071_v15, %v3863_v36  ;;  %v8402_v53 = vld [vmem:[#allocation9 + $0xa8] sm:$0xff]  ;;  %v4033_v36 = vunpack.c.l.b16 %v3962_v9  ;;  %6906 = vmatpush.bf16.msrb.mxu0 %v8410_v43  ;;  %v8400_v43 = vld [vmem:[#allocation9 + $0x98] sm:$0xff] }
 0x29f   : > { %v4289_v39 = vunpack.c.l.b16 %v4221_v61  ;;  %v4290_v47 = vunpack.c.h.b16 %v4221_v61  ;;  %v4339_v52 = vpack.c.b16 %v4291_v11, %v4291_v11  ;;  %v3703_v21 = vpop.f32.mrf.mxu3  ;;  %6817 = vmatpush.bf16.msrb.mxu3 %v8402_v53  ;;  %v8737_v61 = vld [vmem:[#allocation2 + $0xc0] sm:$0xf0]  ;;  %v8392_v53 = vld [vmem:[#allocation9 + $0x58] sm:$0xff] }
 0x2a0   : > { %v3931_v40 = vmax.f32 %v3899_v34, 0.0  ;;  %v3704_v50 = vadd.f32 %v3703_v21, %v3615_v19  ;;  %v8738_v34 = vld [vmem:[#allocation2 + $0xc0] sm:$0xe]  ;;  %v8409_v21 = vld [vmem:[#allocation9 + $0xe0] sm:$0xff] }
 0x2a1   : > { %v4337_v26 = vpack.c.b16 %v4289_v39, %v4289_v39  ;;  %v4338_v5 = vpack.c.b16 %v4290_v47, %v4290_v47  ;;  %4436 = vst [vmem:[#allocation3 + $0x2c] sm:$0x1] %v4339_v52  ;;  %v2137_v39 = vunpack.c.l.b16 %v1063_v7  ;;  %v8393_v47 = vld [vmem:[#allocation9 + $0x60] sm:$0xff]  ;;  %v8739_v13 = vor.u32 %v8738_v34, %v8737_v61 }
 0x2a2   : > { %v3616_v33 = vpop.f32.mrf.mxu2  ;;  %v3963_v29 = vpack.c.bf16 %v3931_v40, %v3931_v40  ;;  %v3793_v37 = vadd.f32 %v10115_v27, %v3704_v50  ;;  %v8401_v52 = vld [vmem:[#allocation9 + $0xa0] sm:$0xff]  ;;  %6729 = vmatpush.bf16.msrb.mxu2 %v8393_v47  ;;  %6907 = vmatpush.bf16.msrb.mxu0 %v8409_v21  ;;  %v8407_v47 = vld [vmem:[#allocation9 + $0xd0] sm:$0xff] }
 0x2a3   : > { %4434 = vst [vmem:[#allocation3 + $0x24] sm:$0xf] %v4337_v26  ;;  %v3617_v12 = vadd.f32 %v3616_v33, %v3528_v22  ;;  %6818 = vmatpush.bf16.msrb.mxu3 %v8401_v52  ;;  %v3533_v22 = vadd.f32 %v9942_v44, %v9955_v20  ;;  %v2153_v4 = vpack.c.b16 %v2137_v39, %v2137_v39  ;;  %v2326_v20 = vshll.u32 %v10152_v18, 16  ;;  %v8391_v39 = vld [vmem:[#allocation9 + $0x50] sm:$0xff] }
 0x2a4   : > { %v10142_v24 = vpop.f32.mrf.mxu0  ;;  %4435 = vst [vmem:[#allocation3 + $0x28] sm:$0xf] %v4338_v5  ;;  %v4034_v19 = vunpack.c.l.b16 %v3963_v29  ;;  %v3864_v11 = vmul.f32 %v10064_v56, %v3793_v37 }
 0x2a6   : > { %v4062_v27 = vpack.c.b16 %v4034_v19, %v4033_v36  ;;  %v3900_v1 = vadd.f32 %v10071_v15, %v3864_v11  ;;  %6730 = vmatpush.bf16.msrb.mxu2 %v8392_v53 }
 0x2a7   : > { %3658 = vmatmul.bf16.gmra.mxu2 %v10118_v59  ;;  %3836 = vmatmul.bf16.gmra.mxu0 %v2452_v6  ;;  %v3705_v30 = vpop.f32.mrf.mxu3  ;;  %v2322_v59 = vsel %vm1225_vm3, %v2317_v35, %v2321_v10  ;;  %v2453_v10 = vrot.slane %v8739_v13, 1 }
 0x2a8   : > { %v4097_v9 = vshrl.u32 %v4062_v27, 16  ;;  %v3706_v40 = vadd.f32 %v3705_v30, %v3617_v12  ;;  %v4100_v0 = vshll.u32 %v4062_v27, 16  ;;  %v3932_v29 = vmax.f32 %v3900_v1, 0.0  ;;  %v8408_v12 = vld [vmem:[#allocation9 + $0xd8] sm:$0xff]  ;;  %6819 = vmatpush.bf16.msrb.mxu3 %v8400_v43 }
 0x2a9   : > { %v2454_v27 = vrot.slane %v2153_v4, 1  ;;  %6908 = vmatpush.bf16.msrb.mxu0 %v8408_v12  ;;  %v8398_v12 = vld [vmem:[#allocation9 + $0x88] sm:$0xff] }
 0x2aa   : > { %v3619_v50 = vpop.f32.mrf.mxu2  ;;  %v4099_v33 = vrot.slane %v4097_v9, 7  ;;  %v3795_v26 = vadd.f32 %v10125_v23, %v3706_v40  ;;  %v3964_v52 = vpack.c.bf16 %v3932_v29, %v3932_v29  ;;  %v10174_v29 = vld [vmem:[#allocation2 + $0xcc] sm:$0xff]   ;;  %6731 = vmatpush.bf16.msrb.mxu2 %v8391_v39 }
 0x2ab   : > { %v10156_v37 = vld [vmem:[#allocation3 + $0x24] sm:$0xff]   ;;  %v3620_v11 = vadd.f32 %v3619_v50, %v9951_v28  ;;  %v2324_v50 = vshrl.u32 %v10152_v18, 16 }
 0x2ac   : > { %v10150_v5 = vpop.f32.mrf.mxu0  ;;  %v10158_v6 = vld [vmem:[#allocation3 + $0x24] sm:$0xf0]  ;;  %v4102_v23 = vor.u32 %v4100_v0, %v4099_v33  ;;  %v4238_v36 = vsel %vm9449_vm2, %v4099_v33, 0  ;;  %v3865_v19 = vmul.f32 %v10064_v56, %v3795_v26  ;;  %3747 = vmatmul.bf16.gmra.mxu3 %v2322_v59  ;;  %6660 = vmatmul.bf16.gmra.mxu1 %v10156_v37  ;;  %v2328_v0 = vrot.slane %v2326_v20, 1 }
 0x2ad   : > { %v4294_v44 = vunpack.c.l.b16 %v4238_v36  ;;  %v8399_v28 = vld [vmem:[#allocation9 + $0x90] sm:$0xff]  ;;  %v2331_v26 = vshll.u32 %v2153_v4, 16  ;;  %v9033_v36 = vld [vmem:[#allocation2 + $0xcc] sm:$0xf0]  ;;  %6909 = vmatpush.bf16.msrb.mxu0 %v8407_v47  ;;  %v4035_v4 = vunpack.c.l.b16 %v3964_v52 }
 0x2ae   : > { %v4222_v7 = vsel %vm9449_vm2, 0, %v4102_v23  ;;  %v3901_v35 = vadd.f32 %v10071_v15, %v3865_v19  ;;  %v2455_v23 = vsel %vm1482_vm4, %v2453_v10, %v2454_v27  ;;  %v9034_v19 = vld [vmem:[#allocation2 + $0xcc] sm:$0xe]  ;;  %6820 = vmatpush.bf16.msrb.mxu3 %v8399_v28  ;;  %v2329_v10 = vor.u32 %v2328_v0, %v2324_v50  ;;  %v8389_v28 = vld [vmem:[#allocation9 + $0x40] sm:$0xff] }
 0x2af   : > { %v4292_v61 = vunpack.c.l.b16 %v4222_v7  ;;  %v4293_v34 = vunpack.c.h.b16 %v4222_v7  ;;  %v4342_v1 = vpack.c.b16 %v4294_v44, %v4294_v44  ;;  %v3708_v30 = vpop.f32.mrf.mxu3  ;;  %v8406_v44 = vld [vmem:[#allocation9 + $0xc8] sm:$0xff]  ;;  %v2333_v27 = vrot.slane %v2331_v26, 1  ;;  %v8397_v47 = vld [vmem:[#allocation9 + $0x80] sm:$0xff] }
 0x2b0   : > { %v3933_v21 = vmax.f32 %v3901_v35, 0.0  ;;  %v3709_v9 = vadd.f32 %v3708_v30, %v3620_v11  ;;  %v8390_v11 = vld [vmem:[#allocation9 + $0x48] sm:$0xff]  ;;  %v8405_v52 = vld [vmem:[#allocation9 + $0xc0] sm:$0xff]  ;;  %v9035_v26 = vor.u32 %v9034_v19, %v9033_v36  ;;  %v2338_v19 = vshll.u32 %v10174_v29, 16 }
 0x2b1   : > { %v4340_v59 = vpack.c.b16 %v4292_v61, %v4292_v61  ;;  %v4341_v33 = vpack.c.b16 %v4293_v34, %v4293_v34  ;;  %4439 = vst [vmem:[#allocation3 + $0x38] sm:$0x1] %v4342_v1  ;;  %v8418_v35 = vld [vmem:[#allocation9 + $0x128] sm:$0xff]  ;;  %v1064_v61 = vld [vmem:[#allocation2 + $0xd4] sm:$0x1]  ;;  %6732 = vmatpush.bf16.msrb.mxu2 %v8390_v11  ;;  %6910 = vmatpush.bf16.msrb.mxu0 %v8406_v44 }
 0x2b2   : > { %v3621_v40 = vpop.f32.mrf.mxu2  ;;  %v3965_v13 = vpack.c.bf16 %v3933_v21, %v3933_v21  ;;  %v3798_v53 = vadd.f32 %v10142_v24, %v3709_v9  ;;  %6995 = vmatpush.bf16.msrb.mxu1 %v8418_v35  ;;  %v2138_v39 = vunpack.c.l.b16 %v1064_v61  ;;  %6821 = vmatpush.bf16.msrb.mxu3 %v8398_v12  ;;  %v2456_v61 = vrot.slane %v9035_v26, 1 }
 0x2b3   : > { %4437 = vst [vmem:[#allocation3 + $0x30] sm:$0xf] %v4340_v59  ;;  %v3622_v7 = vadd.f32 %v3621_v40, %v3533_v22  ;;  %v4572_v40 = vld [vmem:[#allocation3 + $0x14] sm:$0x1] }
 0x2b4   : > { %v10171_v43 = vpop.f32.mrf.mxu0  ;;  %4438 = vst [vmem:[#allocation3 + $0x34] sm:$0xf] %v4341_v33  ;;  %v4036_v20 = vunpack.c.l.b16 %v3965_v13  ;;  %v3866_v24 = vmul.f32 %v10064_v56, %v3798_v53  ;;  %v10183_v13 = vld [vmem:[#allocation3 + $0xc] sm:$0xff]   ;;  %v2154_v12 = vpack.c.b16 %v2138_v39, %v2138_v39  ;;  %v5245_v44 = vunpack.c.l.b16 %v4572_v40 }
 0x2b5   : > { %6733 = vmatpush.bf16.msrb.mxu2 %v8389_v28  ;;  %v9236_v53 = vld [vmem:[#allocation3 + $0xc] sm:$0xf0]  ;;  %6911 = vmatpush.bf16.msrb.mxu0 %v8405_v52  ;;  %v2336_v28 = vshrl.u32 %v10174_v29, 16 }
 0x2b6   : > { %v4063_v34 = vpack.c.b16 %v4036_v20, %v4035_v4  ;;  %v3902_v1 = vadd.f32 %v10071_v15, %v3866_v24  ;;  %6822 = vmatpush.bf16.msrb.mxu3 %v8397_v47 }
 0x2b7   : > { %3663 = vmatmul.bf16.gmra.mxu2 %v10152_v18  ;;  %3841 = vmatmul.bf16.gmra.mxu0 %v2455_v23  ;;  %v3710_v30 = vpop.f32.mrf.mxu3  ;;  %v2334_v18 = vsel %vm1225_vm3, %v2329_v10, %v2333_v27  ;;  %v9237_v23 = vld [vmem:[#allocation3 + $0xc] sm:$0xe]  ;;  %v2457_v10 = vrot.slane %v2154_v12, 1  ;;  %v4508_v27 = vld [vmem:[#allocation3 + $0x8] sm:$0x1] }
 0x2b8   : > { %v4104_v22 = vshrl.u32 %v4063_v34, 16  ;;  %v3711_v21 = vadd.f32 %v3710_v30, %v3622_v7  ;;  %v4107_v59 = vshll.u32 %v4063_v34, 16  ;;  %v3934_v11 = vmax.f32 %v3902_v1, 0.0 }
 0x2ba   : > { %v3624_v9 = vpop.f32.mrf.mxu2  ;;  %v4106_v50 = vrot.slane %v4104_v22, 7  ;;  %v3800_v33 = vadd.f32 %v10150_v5, %v3711_v21  ;;  %v3966_v47 = vpack.c.bf16 %v3934_v11, %v3934_v11 }
 0x2bb   : > { %v3625_v5 = vadd.f32 %v3624_v9, %v9965_v32  ;;  %v10194_v22 = vld [vmem:[#allocation3 + $0x30] sm:$0xff]   ;;  %v2343_v9 = vshll.u32 %v2154_v12, 16  ;;  %v10204_v12 = vpack.c.b16 %v5245_v44, %v5245_v44 }
 0x2bc   : > { %v10181_v0 = vpop.f32.mrf.mxu0  ;;  %v4109_v4 = vor.u32 %v4107_v59, %v4106_v50  ;;  %v4239_v20 = vsel %vm9449_vm2, %v4106_v50, 0  ;;  %v3867_v24 = vmul.f32 %v10064_v56, %v3800_v33  ;;  %3752 = vmatmul.bf16.gmra.mxu3 %v2334_v18  ;;  %6665 = vmatmul.bf16.gmra.mxu1 %v10194_v22  ;;  %v2340_v50 = vrot.slane %v2338_v19, 1 }
 0x2bd   : > { %v4297_v36 = vunpack.c.l.b16 %v4239_v20  ;;  %v4781_v59 = vunpack.c.l.b16 %v4508_v27  ;;  %v3538_v33 = vadd.f32 %v9957_v2, %v9968_v60  ;;  %v2458_v20 = vsel %vm1482_vm4, %v2456_v61, %v2457_v10 }
 0x2be   : > { %v4223_v7 = vsel %vm9449_vm2, 0, %v4109_v4  ;;  %v3903_v35 = vadd.f32 %v10071_v15, %v3867_v24  ;;  %v4816_v24 = vshll.u32 %v10054_v49, 16  ;;  %v2341_v2 = vor.u32 %v2340_v50, %v2336_v28 }
 0x2bf   : > { %v4295_v34 = vunpack.c.l.b16 %v4223_v7  ;;  %v4296_v1 = vunpack.c.h.b16 %v4223_v7  ;;  %v4345_v30 = vpack.c.b16 %v4297_v36, %v4297_v36  ;;  %v3713_v39 = vpop.f32.mrf.mxu3  ;;  %v2345_v60 = vrot.slane %v2343_v9, 1 }
 0x2c0   : > { %v3935_v52 = vmax.f32 %v3903_v35, 0.0  ;;  %v3714_v32 = vadd.f32 %v3713_v39, %v3625_v5  ;;  %v4037_v5 = vunpack.c.l.b16 %v3966_v47  ;;  %v9238_v35 = vor.u32 %v9237_v23, %v9236_v53 }
 0x2c1   : > { %v4343_v40 = vpack.c.b16 %v4295_v34, %v4295_v34  ;;  %v4344_v18 = vpack.c.b16 %v4296_v1, %v4296_v1  ;;  %4442 = vst [vmem:[#allocation3 + $0x44] sm:$0x1] %v4345_v30  ;;  %v5534_v39 = vrot.slane %v10204_v12, 1  ;;  %v4814_v47 = vshrl.u32 %v10054_v49, 16 }
 0x2c2   : > { %v3626_v21 = vpop.f32.mrf.mxu2  ;;  %v3967_v26 = vpack.c.bf16 %v3935_v52, %v3935_v52  ;;  %v3803_v4 = vadd.f32 %v10171_v43, %v3714_v32  ;;  %v10208_v43 = vpack.c.b16 %v4781_v59, %v4781_v59  ;;  %v5533_v44 = vrot.slane %v9238_v35, 1 }
 0x2c3   : > { %4440 = vst [vmem:[#allocation3 + $0x3c] sm:$0xf] %v4343_v40  ;;  %v3627_v7 = vadd.f32 %v3626_v21, %v3538_v33  ;;  %v4818_v52 = vrot.slane %v4816_v24, 1 }
 0x2c4   : > { %v10200_v11 = vpop.f32.mrf.mxu0  ;;  %4441 = vst [vmem:[#allocation3 + $0x40] sm:$0xf] %v4344_v18  ;;  %v4038_v36 = vunpack.c.l.b16 %v3967_v26  ;;  %v3868_v19 = vmul.f32 %v10064_v56, %v3803_v4  ;;  %v4821_v28 = vshll.u32 %v10208_v43, 16  ;;  %v10217_v9 = vsel %vm1482_vm4, %v5533_v44, %v5534_v39 }
 0x2c5   : > { %v4819_v4 = vor.u32 %v4818_v52, %v4814_v47 }
 0x2c6   : > { %v4064_v61 = vpack.c.b16 %v4038_v36, %v4037_v5  ;;  %v3904_v10 = vadd.f32 %v10071_v15, %v3868_v19  ;;  %v4823_v5 = vrot.slane %v4821_v28, 1  ;;  %v8762_v36 = vld [vmem:[#allocation3] sm:$0xf0]  ;;  %v8763_v19 = vld [vmem:[#allocation3] sm:$0xe] }
 0x2c7   : > { %3668 = vmatmul.bf16.gmra.mxu2 %v10174_v29  ;;  %3846 = vmatmul.bf16.gmra.mxu0 %v2458_v20  ;;  %v3715_v27 = vpop.f32.mrf.mxu3  ;;  %v2346_v29 = vsel %vm1225_vm3, %v2341_v2, %v2345_v60  ;;  %v4509_v28 = vld [vmem:[#allocation3 + $0x14] sm:$0x1] }
 0x2c8   : > { %v4111_v34 = vshrl.u32 %v4064_v61, 16  ;;  %v3716_v1 = vadd.f32 %v3715_v27, %v3627_v7  ;;  %v4114_v21 = vshll.u32 %v4064_v61, 16  ;;  %v3936_v40 = vmax.f32 %v3904_v10, 0.0 }
 0x2ca   : > { %v3629_v30 = vpop.f32.mrf.mxu2  ;;  %v4113_v32 = vrot.slane %v4111_v34, 7  ;;  %v3805_v53 = vadd.f32 %v10181_v0, %v3716_v1  ;;  %v3968_v61 = vpack.c.bf16 %v3936_v40, %v3936_v40  ;;  %v8764_v1 = vor.u32 %v8763_v19, %v8762_v36 }
 0x2cb   : > { %v10219_v18 = vld [vmem:[#allocation3 + $0x3c] sm:$0xff]   ;;  %v3630_v26 = vadd.f32 %v3629_v30, %v9974_v42  ;;  %v3543_v30 = vadd.f32 %v9970_v25, %v9978_v58  ;;  %v5070_v25 = vrot.slane %v10208_v43, 1  ;;  %v4782_v58 = vunpack.c.l.b16 %v4509_v28 }
 0x2cc   : > { %v3809_v23 = vpop.f32.mrf.mxu0  ;;  %v10221_v50 = vld [vmem:[#allocation3 + $0x3c] sm:$0xf0]  ;;  %v4116_v59 = vor.u32 %v4114_v21, %v4113_v32  ;;  %v4240_v49 = vsel %vm9449_vm2, %v4113_v32, 0  ;;  %v3869_v33 = vmul.f32 %v10064_v56, %v3805_v53  ;;  %3757 = vmatmul.bf16.gmra.mxu3 %v2346_v29  ;;  %6670 = vmatmul.bf16.gmra.mxu1 %v10219_v18  ;;  %v4824_v29 = vsel %vm1225_vm3, %v4819_v4, %v4823_v5 }
 0x2cd   : > { %v4300_v0 = vunpack.c.l.b16 %v4240_v49  ;;  %v4039_v32 = vunpack.c.l.b16 %v3968_v61  ;;  %v5069_v49 = vrot.slane %v8764_v1, 1  ;;  %v10243_v5 = vpack.c.b16 %v4782_v58, %v4782_v58 }
 0x2ce   : > { %v4224_v20 = vsel %vm9449_vm2, 0, %v4116_v59  ;;  %v3905_v24 = vadd.f32 %v10071_v15, %v3869_v33  ;;  %v8417_v59 = vld [vmem:[#allocation9 + $0x120] sm:$0xff]  ;;  %v4828_v33 = vshll.u32 %v10103_v46, 16 }
 0x2cf   : > { %v4298_v7 = vunpack.c.l.b16 %v4224_v20  ;;  %v4299_v2 = vunpack.c.h.b16 %v4224_v20  ;;  %v4348_v60 = vpack.c.b16 %v4300_v0, %v4300_v0  ;;  %v3718_v35 = vpop.f32.mrf.mxu3  ;;  %6996 = vmatpush.bf16.msrb.mxu1 %v8417_v59 }
 0x2d0   : > { %v3937_v10 = vmax.f32 %v3905_v24, 0.0  ;;  %v3719_v27 = vadd.f32 %v3718_v35, %v3630_v26  ;;  %v9037_v35 = vld [vmem:[#allocation3 + $0xc] sm:$0xe] }
 0x2d1   : > { %v4346_v34 = vpack.c.b16 %v4298_v7, %v4298_v7  ;;  %v4347_v42 = vpack.c.b16 %v4299_v2, %v4299_v2  ;;  %4445 = vst [vmem:[#allocation3 + $0x50] sm:$0x1] %v4348_v60  ;;  %v4830_v60 = vrot.slane %v4828_v33, 1 }
 0x2d2   : > { %v3631_v44 = vpop.f32.mrf.mxu2  ;;  %v3969_v39 = vpack.c.bf16 %v3937_v10, %v3937_v10  ;;  %v3808_v47 = vadd.f32 %v10200_v11, %v3719_v27 }
 0x2d3   : > { %4443 = vst [vmem:[#allocation3 + $0x48] sm:$0xf] %v4346_v34  ;;  %v3632_v40 = vadd.f32 %v3631_v44, %v3543_v30  ;;  %v10261_v30 = vld [vmem:[%s11633_s3] ss:$0 sm:$0xff] }
 0x2d4   : > { %v10234_v52 = vpop.f32.mrf.mxu0  ;;  %4444 = vst [vmem:[#allocation3 + $0x4c] sm:$0xf] %v4347_v42  ;;  %v4040_v21 = vunpack.c.l.b16 %v3969_v39  ;;  %v3870_v53 = vmul.f32 %v10064_v56, %v3808_v47  ;;  %v5071_v56 = vsel %vm1482_vm4, %v5069_v49, %v5070_v25  ;;  %v4833_v42 = vshll.u32 %v10243_v5, 16  ;;  %v4510_v47 = vld [vmem:[#allocation3 + $0x20] sm:$0x1] }
 0x2d5   : > { %v4783_v33 = vunpack.c.l.b16 %v4510_v47 }
 0x2d6   : > { %v4065_v11 = vpack.c.b16 %v4040_v21, %v4039_v32  ;;  %v3906_v26 = vadd.f32 %v10071_v15, %v3870_v53  ;;  %v10250_v15 = vld [vmem:[%s11632_s2] ss:$0 sm:$0xff] }
 0x2d7   : > { %6734 = vmatmul.bf16.vlgmr.msrb.gmra.mxu2 %v4824_v29  ;;  %6912 = vmatmul.bf16.vlgmr.msrb.gmra.mxu0 %v10183_v13  ;;  %v3720_v4 = vpop.f32.mrf.mxu3 }
 0x2d8   : > { %v4118_v0 = vshrl.u32 %v4065_v11, 16  ;;  %v3721_v20 = vadd.f32 %v3720_v4, %v3632_v40  ;;  %v4121_v19 = vshll.u32 %v4065_v11, 16  ;;  %v3938_v2 = vmax.f32 %v3906_v26, 0.0 }
 0x2d9   : > { %v4835_v11 = vrot.slane %v4833_v42, 1  ;;  %v3548_v26 = vadd.f32 %v9980_v45, %v9988_v3  ;;  %v10275_v45 = vpack.c.b16 %v4783_v33, %v4783_v33 }
 0x2da   : > { %v3634_v24 = vpop.f32.mrf.mxu2  ;;  %v4120_v36 = vrot.slane %v4118_v0, 7  ;;  %v3810_v43 = vadd.f32 %v3809_v23, %v3721_v20  ;;  %v4826_v23 = vshrl.u32 %v10103_v46, 16  ;;  %v3970_v53 = vpack.c.bf16 %v3938_v2, %v3938_v2 }
 0x2db   : > { %v3635_v44 = vadd.f32 %v3634_v24, %v9984_v62  ;;  %v10264_v59 = vld [vmem:[#allocation3 + $0x48] sm:$0xff]   ;;  %v4840_v24 = vshll.u32 %v10135_v8, 16  ;;  %v4845_v42 = vshll.u32 %v10275_v45, 16 }
 0x2dc   : > { %v3814_v7 = vpop.f32.mrf.mxu0  ;;  %v4123_v61 = vor.u32 %v4121_v19, %v4120_v36  ;;  %v4241_v10 = vsel %vm9449_vm2, %v4120_v36, 0  ;;  %v3871_v27 = vmul.f32 %v10250_v15, %v3810_v43  ;;  %6823 = vmatmul.bf16.vlgmr.msrb.gmra.mxu3 %v5071_v56  ;;  %v4831_v21 = vor.u32 %v4830_v60, %v4826_v23  ;;  %6675 = vmatmul.bf16.gmra.mxu1 %v10264_v59 }
 0x2dd   : > { %v4303_v34 = vunpack.c.l.b16 %v4241_v10  ;;  %v9038_v36 = vor.u32 %v9037_v35, %v10105_v41  ;;  %v4041_v19 = vunpack.c.l.b16 %v3970_v53  ;;  %v4838_v35 = vshrl.u32 %v10135_v8, 16 }
 0x2de   : > { %v4225_v1 = vsel %vm9449_vm2, 0, %v4123_v61  ;;  %v3907_v39 = vadd.f32 %v10261_v30, %v3871_v27  ;;  %v4836_v56 = vsel %vm1225_vm3, %v4831_v21, %v4835_v11  ;;  %v5073_v23 = vrot.slane %v10243_v5, 1 }
 0x2df   : > { %v4301_v29 = vunpack.c.l.b16 %v4225_v1  ;;  %v4302_v28 = vunpack.c.h.b16 %v4225_v1  ;;  %v4351_v32 = vpack.c.b16 %v4303_v34, %v4303_v34  ;;  %v3723_v62 = vpop.f32.mrf.mxu3  ;;  %v5072_v27 = vrot.slane %v9038_v36, 1 }
 0x2e0   : > { %v3939_v46 = vmax.f32 %v3907_v39, 0.0  ;;  %v3724_v40 = vadd.f32 %v3723_v62, %v3635_v44 }
 0x2e1   : > { %v4349_v25 = vpack.c.b16 %v4301_v29, %v4301_v29  ;;  %v4350_v58 = vpack.c.b16 %v4302_v28, %v4302_v28  ;;  %4448 = vst [vmem:[#allocation3 + $0x5c] sm:$0x1] %v4351_v32  ;;  %v5074_v62 = vsel %vm1482_vm4, %v5072_v27, %v5073_v23 }
 0x2e2   : > { %v3636_v49 = vpop.f32.mrf.mxu2  ;;  %v3971_v4 = vpack.c.bf16 %v3939_v46, %v3939_v46  ;;  %v3813_v0 = vadd.f32 %v10234_v52, %v3724_v40  ;;  %v4842_v52 = vrot.slane %v4840_v24, 1  ;;  %v10288_v46 = vld [vmem:[#allocation3 + $0x24] sm:$0xff]  }
 0x2e3   : > { %4446 = vst [vmem:[#allocation3 + $0x54] sm:$0xf] %v4349_v25  ;;  %v3637_v60 = vadd.f32 %v3636_v49, %v3548_v26 }
 0x2e4   : > { %v3817_v20 = vpop.f32.mrf.mxu0  ;;  %4447 = vst [vmem:[#allocation3 + $0x58] sm:$0xf] %v4350_v58  ;;  %v4042_v43 = vunpack.c.l.b16 %v3971_v4  ;;  %v3872_v2 = vmul.f32 %v10250_v15, %v3813_v0  ;;  %v10281_v28 = vor.u32 %v4842_v52, %v4838_v35  ;;  %v4847_v58 = vrot.slane %v4845_v42, 1  ;;  %v10306_v35 = vpop.f32.mrf.mxu1 }
 0x2e6   : > { %v4066_v3 = vpack.c.b16 %v4042_v43, %v4041_v19  ;;  %v3908_v61 = vadd.f32 %v10261_v30, %v3872_v2  ;;  %v8765_v2 = vld [vmem:[#allocation3 + $0x18] sm:$0xf0] }
 0x2e7   : > { %6739 = vmatmul.bf16.gmra.mxu2 %v4836_v56  ;;  %6917 = vmatmul.bf16.gmra.mxu0 %v10135_v8  ;;  %v3725_v10 = vpop.f32.mrf.mxu3  ;;  %v10290_v8 = vld [vmem:[#allocation3 + $0x24] sm:$0xf0] }
 0x2e8   : > { %v4125_v44 = vshrl.u32 %v4066_v3, 16  ;;  %v3726_v34 = vadd.f32 %v3725_v10, %v3637_v60  ;;  %v4128_v39 = vshll.u32 %v4066_v3, 16  ;;  %v3940_v32 = vmax.f32 %v3908_v61, 0.0  ;;  %v8766_v60 = vld [vmem:[#allocation3 + $0x18] sm:$0xe] }
 0x2ea   : > { %v3639_v41 = vpop.f32.mrf.mxu2  ;;  %v4127_v1 = vrot.slane %v4125_v44, 7  ;;  %v3815_v47 = vadd.f32 %v3814_v7, %v3726_v34  ;;  %v3972_v56 = vpack.c.bf16 %v3940_v32, %v3940_v32  ;;  %v4511_v44 = vld [vmem:[#allocation3 + $0x2c] sm:$0x1]  ;;  %v4848_v34 = vsel %vm1225_vm3, %v10281_v28, %v4847_v58 }
 0x2eb   : > { %v10284_v21 = vld [vmem:[#allocation3 + $0x54] sm:$0xff]   ;;  %v3640_v49 = vadd.f32 %v3639_v41, %v9994_v17  ;;  %v3553_v17 = vadd.f32 %v9990_v51, %v9998_v55  ;;  %v8767_v41 = vor.u32 %v8766_v60, %v8765_v2  ;;  %v4784_v51 = vunpack.c.l.b16 %v4511_v44 }
 0x2ec   : > { %v3819_v29 = vpop.f32.mrf.mxu0  ;;  %v10286_v53 = vld [vmem:[#allocation3 + $0x54] sm:$0xf0]  ;;  %v4130_v5 = vor.u32 %v4128_v39, %v4127_v1  ;;  %v4242_v40 = vsel %vm9449_vm2, %v4127_v1, 0  ;;  %v3873_v7 = vmul.f32 %v10250_v15, %v3815_v47  ;;  %6828 = vmatmul.bf16.gmra.mxu3 %v5074_v62  ;;  %6680 = vmatmul.bf16.gmra.mxu1 %v10284_v21  ;;  %v4043_v23 = vunpack.c.l.b16 %v3972_v56  ;;  %v8416_v47 = vld [vmem:[#allocation9 + $0x118] sm:$0xff]  ;;  %v10320_v2 = vpop.f32.mrf.mxu1 }
 0x2ed   : > { %v4306_v25 = vunpack.c.l.b16 %v4242_v40  ;;  %6997 = vmatpush.bf16.msrb.mxu1 %v8416_v47  ;;  %v5076_v40 = vrot.slane %v10275_v45, 1  ;;  %v10313_v58 = vpack.c.b16 %v4784_v51, %v4784_v51 }
 0x2ee   : > { %v4226_v11 = vsel %vm9449_vm2, 0, %v4130_v5  ;;  %v3909_v33 = vadd.f32 %v10261_v30, %v3873_v7  ;;  %v5075_v5 = vrot.slane %v8767_v41, 1 }
 0x2ef   : > { %v4304_v26 = vunpack.c.l.b16 %v4226_v11  ;;  %v4305_v4 = vunpack.c.h.b16 %v4226_v11  ;;  %v4354_v0 = vpack.c.b16 %v4306_v25, %v4306_v25  ;;  %v3728_v24 = vpop.f32.mrf.mxu3 }
 0x2f0   : > { %v3941_v36 = vmax.f32 %v3909_v33, 0.0  ;;  %v3729_v19 = vadd.f32 %v3728_v24, %v3640_v49  ;;  %v5077_v24 = vsel %vm1482_vm4, %v5075_v5, %v5076_v40 }
 0x2f1   : > { %v4352_v3 = vpack.c.b16 %v4304_v26, %v4304_v26  ;;  %v4353_v52 = vpack.c.b16 %v4305_v4, %v4305_v4  ;;  %4451 = vst [vmem:[#allocation3 + $0x68] sm:$0x1] %v4354_v0 }
 0x2f2   : > { %v3641_v43 = vpop.f32.mrf.mxu2  ;;  %v3973_v61 = vpack.c.bf16 %v3941_v36, %v3941_v36  ;;  %v3818_v10 = vadd.f32 %v3817_v20, %v3729_v19  ;;  %v4852_v20 = vshll.u32 %v10156_v37, 16  ;;  %v9040_v36 = vld [vmem:[#allocation3 + $0x24] sm:$0xe]  ;;  %v4512_v19 = vld [vmem:[#allocation3 + $0x38] sm:$0x1] }
 0x2f3   : > { %4449 = vst [vmem:[#allocation3 + $0x60] sm:$0xf] %v4352_v3  ;;  %v3642_v39 = vadd.f32 %v3641_v43, %v3553_v17  ;;  %v4857_v17 = vshll.u32 %v10313_v58, 16  ;;  %v4785_v44 = vunpack.c.l.b16 %v4512_v19 }
 0x2f4   : > { %v10302_v27 = vpop.f32.mrf.mxu0  ;;  %4450 = vst [vmem:[#allocation3 + $0x64] sm:$0xf] %v4353_v52  ;;  %v4044_v42 = vunpack.c.l.b16 %v3973_v61  ;;  %v3874_v1 = vmul.f32 %v10250_v15, %v3818_v10  ;;  %v4854_v56 = vrot.slane %v4852_v20, 1  ;;  %v4850_v52 = vshrl.u32 %v10156_v37, 16 }
 0x2f6   : > { %v4067_v55 = vpack.c.b16 %v4044_v42, %v4043_v23  ;;  %v3910_v32 = vadd.f32 %v10261_v30, %v3874_v1  ;;  %v4855_v1 = vor.u32 %v4854_v56, %v4850_v52  ;;  %v9239_v52 = vld [vmem:[#allocation3 + $0x3c] sm:$0xf0] }
 0x2f7   : > { %6744 = vmatmul.bf16.gmra.mxu2 %v4848_v34  ;;  %6922 = vmatmul.bf16.gmra.mxu0 %v10288_v46  ;;  %v3730_v62 = vpop.f32.mrf.mxu3 }
 0x2f8   : > { %v4132_v7 = vshrl.u32 %v4067_v55, 16  ;;  %v3731_v49 = vadd.f32 %v3730_v62, %v3642_v39  ;;  %v4135_v33 = vshll.u32 %v4067_v55, 16  ;;  %v3942_v0 = vmax.f32 %v3910_v32, 0.0 }
 0x2f9   : > { %v4859_v32 = vrot.slane %v4857_v17, 1  ;;  %v3558_v62 = vadd.f32 %v10000_v57, %v10008_v16  ;;  %v4862_v17 = vshrl.u32 %v10194_v22, 16 }
 0x2fa   : > { %v3644_v25 = vpop.f32.mrf.mxu2  ;;  %v4134_v11 = vrot.slane %v4132_v7, 7  ;;  %v3820_v26 = vadd.f32 %v3819_v29, %v3731_v49  ;;  %v3974_v39 = vpack.c.bf16 %v3942_v0, %v3942_v0  ;;  %v10337_v49 = vpack.c.b16 %v4785_v44, %v4785_v44 }
 0x2fb   : > { %v3645_v3 = vadd.f32 %v3644_v25, %v10004_v54  ;;  %v10329_v54 = vld [vmem:[#allocation3 + $0x60] sm:$0xff]   ;;  %v4864_v25 = vshll.u32 %v10194_v22, 16 }
 0x2fc   : > { %v10315_v4 = vpop.f32.mrf.mxu0  ;;  %v4137_v43 = vor.u32 %v4135_v33, %v4134_v11  ;;  %v4243_v45 = vsel %vm9449_vm2, %v4134_v11, 0  ;;  %v3875_v60 = vmul.f32 %v10250_v15, %v3820_v26  ;;  %6833 = vmatmul.bf16.gmra.mxu3 %v5077_v24  ;;  %6685 = vmatmul.bf16.gmra.mxu1 %v10329_v54  ;;  %v4860_v11 = vsel %vm1225_vm3, %v4855_v1, %v4859_v32 }
 0x2fd   : > { %v4309_v29 = vunpack.c.l.b16 %v4243_v45  ;;  %v9041_v33 = vor.u32 %v9040_v36, %v10158_v6  ;;  %v4045_v26 = vunpack.c.l.b16 %v3974_v39  ;;  %v4869_v56 = vshll.u32 %v10337_v49, 16 }
 0x2fe   : > { %v4227_v61 = vsel %vm9449_vm2, 0, %v4137_v43  ;;  %v3911_v10 = vadd.f32 %v10261_v30, %v3875_v60  ;;  %v4866_v19 = vrot.slane %v4864_v25, 1 }
 0x2ff   : > { %v4307_v34 = vunpack.c.l.b16 %v4227_v61  ;;  %v4308_v41 = vunpack.c.h.b16 %v4227_v61  ;;  %v4357_v23 = vpack.c.b16 %v4309_v29, %v4309_v29  ;;  %v3733_v42 = vpop.f32.mrf.mxu3  ;;  %v5078_v60 = vrot.slane %v9041_v33, 1  ;;  %v10348_v29 = vld [vmem:[#allocation3 + $0x3c] sm:$0xff]  }
 0x300   : > { %v3943_v47 = vmax.f32 %v3911_v10, 0.0  ;;  %v3734_v51 = vadd.f32 %v3733_v42, %v3645_v3  ;;  %v5079_v61 = vrot.slane %v10313_v58, 1  ;;  %v10355_v42 = vor.u32 %v4866_v19, %v4862_v17  ;;  %v8768_v19 = vld [vmem:[#allocation3 + $0x30] sm:$0xf0]  ;;  %v4513_v17 = vld [vmem:[#allocation3 + $0x44] sm:$0x1] }
 0x301   : > { %v4355_v37 = vpack.c.b16 %v4307_v34, %v4307_v34  ;;  %v4356_v20 = vpack.c.b16 %v4308_v41, %v4308_v41  ;;  %4454 = vst [vmem:[#allocation3 + $0x74] sm:$0x1] %v4357_v23  ;;  %v4871_v23 = vrot.slane %v4869_v56, 1 }
 0x302   : > { %v3646_v55 = vpop.f32.mrf.mxu2  ;;  %v3975_v5 = vpack.c.bf16 %v3943_v47, %v3943_v47  ;;  %v3823_v40 = vadd.f32 %v10302_v27, %v3734_v51  ;;  %v10344_v27 = vpop.f32.mrf.mxu1  ;;  %v5080_v39 = vsel %vm1482_vm4, %v5078_v60, %v5079_v61  ;;  %v3563_v60 = vadd.f32 %v10010_v31, %v10018_v14  ;;  %v8415_v14 = vld [vmem:[#allocation9 + $0x110] sm:$0xff] }
 0x303   : > { %4452 = vst [vmem:[#allocation3 + $0x6c] sm:$0xf] %v4355_v37  ;;  %v3647_v57 = vadd.f32 %v3646_v55, %v3558_v62  ;;  %v4576_v55 = vld [vmem:[#allocation3 + $0x44] sm:$0x1]  ;;  %6998 = vmatpush.bf16.msrb.mxu1 %v8415_v14 }
 0x304   : > { %v10335_v7 = vpop.f32.mrf.mxu0  ;;  %4453 = vst [vmem:[#allocation3 + $0x70] sm:$0xf] %v4356_v20  ;;  %v4046_v0 = vunpack.c.l.b16 %v3975_v5  ;;  %v3876_v24 = vmul.f32 %v10250_v15, %v3823_v40  ;;  %v5249_v25 = vunpack.c.l.b16 %v4576_v55 }
 0x306   : > { %v4068_v16 = vpack.c.b16 %v4046_v0, %v4045_v26  ;;  %v3912_v43 = vadd.f32 %v10261_v30, %v3876_v24 }
 0x307   : > { %6749 = vmatmul.bf16.gmra.mxu2 %v4860_v11  ;;  %6927 = vmatmul.bf16.gmra.mxu0 %v10194_v22  ;;  %v3735_v45 = vpop.f32.mrf.mxu3  ;;  %v9240_v22 = vld [vmem:[#allocation3 + $0x3c] sm:$0xe] }
 0x308   : > { %v4139_v6 = vshrl.u32 %v4068_v16, 16  ;;  %v3736_v36 = vadd.f32 %v3735_v45, %v3647_v57  ;;  %v4142_v44 = vshll.u32 %v4068_v16, 16  ;;  %v3944_v1 = vmax.f32 %v3912_v43, 0.0  ;;  %v8769_v43 = vld [vmem:[#allocation3 + $0x30] sm:$0xe] }
 0x309   : > { %v9241_v61 = vor.u32 %v9240_v22, %v9239_v52  ;;  %v4786_v52 = vunpack.c.l.b16 %v4513_v17 }
 0x30a   : > { %v3649_v3 = vpop.f32.mrf.mxu2  ;;  %v4141_v10 = vrot.slane %v4139_v6, 7  ;;  %v3825_v34 = vadd.f32 %v10315_v4, %v3736_v36  ;;  %v10369_v40 = vpop.f32.mrf.mxu1  ;;  %v3976_v24 = vpack.c.bf16 %v3944_v1, %v3944_v1 }
 0x30b   : > { %v10358_v47 = vld [vmem:[#allocation3 + $0x6c] sm:$0xff]   ;;  %v3650_v20 = vadd.f32 %v3649_v3, %v10014_v63 }
 0x30c   : > { %v10353_v41 = vpop.f32.mrf.mxu0  ;;  %v10360_v51 = vld [vmem:[#allocation3 + $0x6c] sm:$0xf0]  ;;  %v4144_v37 = vor.u32 %v4142_v44, %v4141_v10  ;;  %v4244_v58 = vsel %vm9449_vm2, %v4141_v10, 0  ;;  %v3877_v4 = vmul.f32 %v10250_v15, %v3825_v34  ;;  %6838 = vmatmul.bf16.gmra.mxu3 %v5080_v39  ;;  %6690 = vmatmul.bf16.gmra.mxu1 %v10358_v47  ;;  %v4872_v10 = vsel %vm1225_vm3, %v10355_v42, %v4871_v23 }
 0x30d   : > { %v4312_v32 = vunpack.c.l.b16 %v4244_v58  ;;  %v8770_v44 = vor.u32 %v8769_v43, %v8768_v19  ;;  %v10379_v34 = vpack.c.b16 %v5249_v25, %v5249_v25  ;;  %v4047_v1 = vunpack.c.l.b16 %v3976_v24 }
 0x30e   : > { %v4228_v62 = vsel %vm9449_vm2, 0, %v4144_v37  ;;  %v3913_v5 = vadd.f32 %v10261_v30, %v3877_v4  ;;  %v5545_v23 = vrot.slane %v9241_v61, 1  ;;  %v4874_v43 = vshrl.u32 %v10219_v18, 16 }
 0x30f   : > { %v4310_v11 = vunpack.c.l.b16 %v4228_v62  ;;  %v4311_v33 = vunpack.c.h.b16 %v4228_v62  ;;  %v4360_v26 = vpack.c.b16 %v4312_v32, %v4312_v32  ;;  %v3738_v0 = vpop.f32.mrf.mxu3  ;;  %v5082_v32 = vrot.slane %v10337_v49, 1 }
 0x310   : > { %v3945_v57 = vmax.f32 %v3913_v5, 0.0  ;;  %v3739_v16 = vadd.f32 %v3738_v0, %v3650_v20  ;;  %v5081_v20 = vrot.slane %v8770_v44, 1 }
 0x311   : > { %v4358_v63 = vpack.c.b16 %v4310_v11, %v4310_v11  ;;  %v4359_v45 = vpack.c.b16 %v4311_v33, %v4311_v33  ;;  %4457 = vst [vmem:[#allocation3 + $0x80] sm:$0x1] %v4360_v26  ;;  %v5546_v11 = vrot.slane %v10379_v34, 1  ;;  %v10389_v33 = vpack.c.b16 %v4786_v52, %v4786_v52 }
 0x312   : > { %v3651_v56 = vpop.f32.mrf.mxu2  ;;  %v3977_v6 = vpack.c.bf16 %v3945_v57, %v3945_v57  ;;  %v3828_v36 = vadd.f32 %v10335_v7, %v3739_v16  ;;  %v4876_v7 = vshll.u32 %v10219_v18, 16  ;;  %v10384_v37 = vpop.f32.mrf.mxu1  ;;  %v5083_v49 = vsel %vm1482_vm4, %v5081_v20, %v5082_v32 }
 0x313   : > { %4455 = vst [vmem:[#allocation3 + $0x78] sm:$0xf] %v4358_v63  ;;  %v3652_v31 = vadd.f32 %v3651_v56, %v3563_v60  ;;  %v10395_v56 = vsel %vm1482_vm4, %v5545_v23, %v5546_v11  ;;  %v9043_v63 = vld [vmem:[#allocation3 + $0x3c] sm:$0xe]  ;;  %v4881_v61 = vshll.u32 %v10389_v33, 16 }
 0x314   : > { %v10375_v3 = vpop.f32.mrf.mxu0  ;;  %4456 = vst [vmem:[#allocation3 + $0x7c] sm:$0xf] %v4359_v45  ;;  %v4048_v39 = vunpack.c.l.b16 %v3977_v6  ;;  %v3878_v55 = vmul.f32 %v10250_v15, %v3828_v36  ;;  %v4878_v26 = vrot.slane %v4876_v7, 1  ;;  %v4514_v36 = vld [vmem:[#allocation3 + $0x50] sm:$0x1] }
 0x315   : > { %11695 = vst [vmem:[#allocation24_spill] sm:$0xff] %v10395_v56  ;;  %v4787_v7 = vunpack.c.l.b16 %v4514_v36  ;;  %v4883_v32 = vrot.slane %v4881_v61, 1  ;;  %v10426_v36 = vld [vmem:[#allocation3 + $0x54] sm:$0xff]   ;;  %v4578_v61 = vld [vmem:[#allocation3 + $0x5c] sm:$0x1] }
 0x316   : > { %v4069_v22 = vpack.c.b16 %v4048_v39, %v4047_v1  ;;  %v3914_v58 = vadd.f32 %v10261_v30, %v3878_v55  ;;  %v4879_v1 = vor.u32 %v4878_v26, %v4874_v43 }
 0x317   : > { %6754 = vmatmul.bf16.gmra.mxu2 %v4872_v10  ;;  %6932 = vmatmul.bf16.gmra.mxu0 %v10348_v29  ;;  %v3740_v4 = vpop.f32.mrf.mxu3 }
 0x318   : > { %v4146_v62 = vshrl.u32 %v4069_v22, 16  ;;  %v3741_v5 = vadd.f32 %v3740_v4, %v3652_v31  ;;  %v4149_v24 = vshll.u32 %v4069_v22, 16  ;;  %v3946_v19 = vmax.f32 %v3914_v58, 0.0 }
 0x31a   : > { %v3654_v25 = vpop.f32.mrf.mxu2  ;;  %v4148_v0 = vrot.slane %v4146_v62, 7  ;;  %v3830_v57 = vadd.f32 %v10353_v41, %v3741_v5  ;;  %v10407_v18 = vpop.f32.mrf.mxu1  ;;  %v3978_v52 = vpack.c.bf16 %v3946_v19, %v3946_v19  ;;  %v11696_v62 = vld [vmem:[#allocation15_spill] sm:$0xff]  ;;  %v11697_v5 = vld [vmem:[#allocation14_spill] sm:$0xff]  ;;  %v9044_v19 = vor.u32 %v9043_v63, %v10221_v50 }
 0x31b   : > { %v3655_v41 = vadd.f32 %v3654_v25, %v10024_v38  ;;  %v10409_v23 = vld [vmem:[#allocation3 + $0x78] sm:$0xff]   ;;  %v3568_v25 = vadd.f32 %v11697_v5, %v11696_v62 }
 0x31c   : > { %v10392_v16 = vpop.f32.mrf.mxu0  ;;  %v4151_v45 = vor.u32 %v4149_v24, %v4148_v0  ;;  %v4245_v60 = vsel %vm9449_vm2, %v4148_v0, 0  ;;  %v3879_v6 = vmul.f32 %v10250_v15, %v3830_v57  ;;  %6843 = vmatmul.bf16.gmra.mxu3 %v5083_v49  ;;  %6695 = vmatmul.bf16.gmra.mxu1 %v10409_v23  ;;  %v4888_v24 = vshll.u32 %v10264_v59, 16 }
 0x31d   : > { %v4315_v17 = vunpack.c.l.b16 %v4245_v60  ;;  %v4884_v57 = vsel %vm1225_vm3, %v4879_v1, %v4883_v32  ;;  %v10420_v49 = vpack.c.b16 %v4787_v7, %v4787_v7  ;;  %v4049_v43 = vunpack.c.l.b16 %v3978_v52 }
 0x31e   : > { %v4229_v10 = vsel %vm9449_vm2, 0, %v4151_v45  ;;  %v3915_v44 = vadd.f32 %v10261_v30, %v3879_v6  ;;  %v4886_v7 = vshrl.u32 %v10264_v59, 16  ;;  %v5085_v52 = vrot.slane %v10389_v33, 1 }
 0x31f   : > { %v4313_v39 = vunpack.c.l.b16 %v4229_v10  ;;  %v4314_v55 = vunpack.c.h.b16 %v4229_v10  ;;  %v4363_v31 = vpack.c.b16 %v4315_v17, %v4315_v17  ;;  %v3743_v14 = vpop.f32.mrf.mxu3  ;;  %v9242_v17 = vld [vmem:[#allocation3 + $0x54] sm:$0xf0]  ;;  %v4890_v10 = vrot.slane %v4888_v24, 1 }
 0x320   : > { %v3947_v22 = vmax.f32 %v3915_v44, 0.0  ;;  %v3744_v38 = vadd.f32 %v3743_v14, %v3655_v41  ;;  %v5084_v44 = vrot.slane %v9044_v19, 1  ;;  %v4893_v1 = vshll.u32 %v10420_v49, 16 }
 0x321   : > { %v4361_v4 = vpack.c.b16 %v4313_v39, %v4313_v39  ;;  %v4362_v20 = vpack.c.b16 %v4314_v55, %v4314_v55  ;;  %4460 = vst [vmem:[#allocation3 + $0x8c] sm:$0x1] %v4363_v31  ;;  %v9243_v39 = vld [vmem:[#allocation3 + $0x54] sm:$0xe]  ;;  %v10435_v32 = vor.u32 %v4890_v10, %v4886_v7 }
 0x322   : > { %v3656_v58 = vpop.f32.mrf.mxu2  ;;  %v3979_v11 = vpack.c.bf16 %v3947_v22, %v3947_v22  ;;  %v3833_v26 = vadd.f32 %v10375_v3, %v3744_v38  ;;  %v10424_v41 = vpop.f32.mrf.mxu1  ;;  %v5251_v22 = vunpack.c.l.b16 %v4578_v61  ;;  %v5086_v5 = vsel %vm1482_vm4, %v5084_v44, %v5085_v52  ;;  %v8771_v44 = vld [vmem:[#allocation3 + $0x48] sm:$0xf0] }
 0x323   : > { %4458 = vst [vmem:[#allocation3 + $0x84] sm:$0xf] %v4361_v4  ;;  %v3657_v6 = vadd.f32 %v3656_v58, %v3568_v25 }
 0x324   : > { %v10415_v0 = vpop.f32.mrf.mxu0  ;;  %4459 = vst [vmem:[#allocation3 + $0x88] sm:$0xf] %v4362_v20  ;;  %v4050_v45 = vunpack.c.l.b16 %v3979_v11  ;;  %v3880_v60 = vmul.f32 %v10250_v15, %v3833_v26  ;;  %v4895_v26 = vrot.slane %v4893_v1, 1  ;;  %v8772_v1 = vld [vmem:[#allocation3 + $0x48] sm:$0xe] }
 0x326   : > { %v4070_v3 = vpack.c.b16 %v4050_v45, %v4049_v43  ;;  %v3916_v50 = vadd.f32 %v10261_v30, %v3880_v60 }
 0x327   : > { %6759 = vmatmul.bf16.gmra.mxu2 %v4884_v57  ;;  %6937 = vmatmul.bf16.gmra.mxu0 %v10264_v59  ;;  %v3745_v63 = vpop.f32.mrf.mxu3 }
 0x328   : > { %v4153_v55 = vshrl.u32 %v4070_v3, 16  ;;  %v3746_v31 = vadd.f32 %v3745_v63, %v3657_v6  ;;  %v4156_v58 = vshll.u32 %v4070_v3, 16  ;;  %v3948_v62 = vmax.f32 %v3916_v50, 0.0 }
 0x329   : > { %v10451_v6 = vpack.c.b16 %v5251_v22, %v5251_v22  ;;  %v9244_v3 = vor.u32 %v9243_v39, %v9242_v17 }
 0x32a   : > { %v3659_v14 = vpop.f32.mrf.mxu2  ;;  %v4155_v38 = vrot.slane %v4153_v55, 7  ;;  %v3835_v4 = vadd.f32 %v10392_v16, %v3746_v31  ;;  %v11698_v16 = vld [vmem:[#allocation17_spill] sm:$0xff]  ;;  %v10449_v60 = vpop.f32.mrf.mxu1  ;;  %v3980_v55 = vpack.c.bf16 %v3948_v62, %v3948_v62  ;;  %v4896_v62 = vsel %vm1225_vm3, %v10435_v32, %v4895_v26 }
 0x32b   : > { %v10438_v25 = vld [vmem:[#allocation3 + $0x84] sm:$0xff]   ;;  %v3660_v57 = vadd.f32 %v3659_v14, %v11698_v16  ;;  %v5552_v16 = vrot.slane %v10451_v6, 1 }
 0x32c   : > { %v10433_v20 = vpop.f32.mrf.mxu0  ;;  %v10440_v11 = vld [vmem:[#allocation3 + $0x84] sm:$0xf0]  ;;  %v4158_v59 = vor.u32 %v4156_v58, %v4155_v38  ;;  %v4246_v33 = vsel %vm9449_vm2, %v4155_v38, 0  ;;  %v3881_v24 = vmul.f32 %v10250_v15, %v3835_v4  ;;  %6848 = vmatmul.bf16.gmra.mxu3 %v5086_v5  ;;  %6700 = vmatmul.bf16.gmra.mxu1 %v10438_v25  ;;  %v11699_v58 = vld [vmem:[#allocation18_spill] sm:$0xff] }
 0x32d   : > { %v4318_v19 = vunpack.c.l.b16 %v4246_v33  ;;  %v11700_v4 = vld [vmem:[#allocation16_spill] sm:$0xff]  ;;  %v4515_v33 = vld [vmem:[#allocation3 + $0x5c] sm:$0x1] }
 0x32e   : > { %v4230_v43 = vsel %vm9449_vm2, 0, %v4158_v59  ;;  %v3917_v45 = vadd.f32 %v10261_v30, %v3881_v24  ;;  %v3573_v22 = vadd.f32 %v11700_v4, %v11699_v58  ;;  %v8773_v59 = vor.u32 %v8772_v1, %v8771_v44 }
 0x32f   : > { %v4316_v61 = vunpack.c.l.b16 %v4230_v43  ;;  %v4317_v10 = vunpack.c.h.b16 %v4230_v43  ;;  %v4366_v50 = vpack.c.b16 %v4318_v19, %v4318_v19  ;;  %v3748_v63 = vpop.f32.mrf.mxu3  ;;  %v5551_v24 = vrot.slane %v9244_v3, 1 }
 0x330   : > { %v3949_v31 = vmax.f32 %v3917_v45, 0.0  ;;  %v3749_v14 = vadd.f32 %v3748_v63, %v3660_v57  ;;  %v4051_v57 = vunpack.c.l.b16 %v3980_v55  ;;  %v5087_v1 = vrot.slane %v8773_v59, 1 }
 0x331   : > { %v4364_v52 = vpack.c.b16 %v4316_v61, %v4316_v61  ;;  %v4365_v38 = vpack.c.b16 %v4317_v10, %v4317_v10  ;;  %4463 = vst [vmem:[#allocation3 + $0x98] sm:$0x1] %v4366_v50  ;;  %v8414_v61 = vld [vmem:[#allocation9 + $0x108] sm:$0xff]  ;;  %v10465_v10 = vsel %vm1482_vm4, %v5551_v24, %v5552_v16  ;;  %v4900_v50 = vshll.u32 %v10284_v21, 16  ;;  %v9046_v24 = vld [vmem:[#allocation3 + $0x54] sm:$0xe] }
 0x332   : > { %v3661_v7 = vpop.f32.mrf.mxu2  ;;  %v3981_v5 = vpack.c.bf16 %v3949_v31, %v3949_v31  ;;  %v3838_v17 = vadd.f32 %v10415_v0, %v3749_v14  ;;  %v4788_v0 = vunpack.c.l.b16 %v4515_v33  ;;  %11701 = vst [vmem:[#allocation15_spill] sm:$0xff] %v10465_v10  ;;  %v10468_v3 = vpop.f32.mrf.mxu1  ;;  %6999 = vmatpush.bf16.msrb.mxu1 %v8414_v61  ;;  %v5088_v55 = vrot.slane %v10420_v49, 1 }
 0x333   : > { %4461 = vst [vmem:[#allocation3 + $0x90] sm:$0xf] %v4364_v52  ;;  %v3662_v45 = vadd.f32 %v3661_v7, %v3573_v22 }
 0x334   : > { %v10457_v39 = vpop.f32.mrf.mxu0  ;;  %4462 = vst [vmem:[#allocation3 + $0x94] sm:$0xf] %v4365_v38  ;;  %v4052_v19 = vunpack.c.l.b16 %v3981_v5  ;;  %v3882_v43 = vmul.f32 %v10250_v15, %v3838_v17  ;;  %v10472_v52 = vpack.c.b16 %v4788_v0, %v4788_v0  ;;  %v4902_v5 = vrot.slane %v4900_v50, 1 }
 0x335   : > { %v5089_v33 = vsel %vm1482_vm4, %v5087_v1, %v5088_v55 }
 0x336   : > { %v4071_v26 = vpack.c.b16 %v4052_v19, %v4051_v57  ;;  %v3918_v63 = vadd.f32 %v10261_v30, %v3882_v43  ;;  %v11702_v57 = vld [vmem:[#allocation19_spill] sm:$0xff]  ;;  %v4516_v43 = vld [vmem:[#allocation3 + $0x68] sm:$0x1] }
 0x337   : > { %6764 = vmatmul.bf16.gmra.mxu2 %v4896_v62  ;;  %6942 = vmatmul.bf16.gmra.mxu0 %v10426_v36  ;;  %v3750_v44 = vpop.f32.mrf.mxu3  ;;  %v4898_v62 = vshrl.u32 %v10284_v21, 16  ;;  %v4789_v55 = vunpack.c.l.b16 %v4516_v43 }
 0x338   : > { %v4160_v31 = vshrl.u32 %v4071_v26, 16  ;;  %v3751_v14 = vadd.f32 %v3750_v44, %v3662_v45  ;;  %v4163_v58 = vshll.u32 %v4071_v26, 16  ;;  %v3950_v17 = vmax.f32 %v3918_v63, 0.0 }
 0x339   : > { %v4903_v50 = vor.u32 %v4902_v5, %v4898_v62  ;;  %v10495_v43 = vpack.c.b16 %v4789_v55, %v4789_v55 }
 0x33a   : > { %v3664_v7 = vpop.f32.mrf.mxu2  ;;  %v4162_v38 = vrot.slane %v4160_v31, 7  ;;  %v3840_v4 = vadd.f32 %v10433_v20, %v3751_v14  ;;  %v4905_v20 = vshll.u32 %v10472_v52, 16  ;;  %v10485_v21 = vpop.f32.mrf.mxu1  ;;  %v3982_v31 = vpack.c.bf16 %v3950_v17, %v3950_v17 }
 0x33b   : > { %v3665_v19 = vadd.f32 %v3664_v7, %v11702_v57 }
 0x33c   : > { %v3844_v22 = vpop.f32.mrf.mxu0  ;;  %v4165_v59 = vor.u32 %v4163_v58, %v4162_v38  ;;  %v4247_v49 = vsel %vm9449_vm2, %v4162_v38, 0  ;;  %v3883_v16 = vmul.f32 %v10250_v15, %v3840_v4  ;;  %6853 = vmatmul.bf16.gmra.mxu3 %v5089_v33  ;;  %v10487_v38 = vld [vmem:[#allocation3 + $0x90] sm:$0xff]  }
 0x33d   : > { %v4321_v45 = vunpack.c.l.b16 %v4247_v49  ;;  %6705 = vmatmul.bf16.gmra.mxu1 %v10487_v38  ;;  %v11703_v49 = vld [vmem:[#allocation21_spill] sm:$0xff] }
 0x33e   : > { %v4231_v61 = vsel %vm9449_vm2, 0, %v4165_v59  ;;  %v3919_v0 = vadd.f32 %v10261_v30, %v3883_v16  ;;  %v4907_v59 = vrot.slane %v4905_v20, 1  ;;  %v11704_v16 = vld [vmem:[#allocation20_spill] sm:$0xff] }
 0x33f   : > { %v4319_v26 = vunpack.c.l.b16 %v4231_v61  ;;  %v4320_v63 = vunpack.c.h.b16 %v4231_v61  ;;  %v4369_v44 = vpack.c.b16 %v4321_v45, %v4321_v45  ;;  %v3753_v1 = vpop.f32.mrf.mxu3  ;;  %v3578_v5 = vadd.f32 %v11704_v16, %v11703_v49 }
 0x340   : > { %v3951_v14 = vmax.f32 %v3919_v0, 0.0  ;;  %v3754_v7 = vadd.f32 %v3753_v1, %v3665_v19  ;;  %v4908_v17 = vsel %vm1225_vm3, %v4903_v50, %v4907_v59  ;;  %v9047_v19 = vor.u32 %v9046_v24, %v10286_v53 }
 0x341   : > { %v4367_v4 = vpack.c.b16 %v4319_v26, %v4319_v26  ;;  %v4368_v33 = vpack.c.b16 %v4320_v63, %v4320_v63  ;;  %4466 = vst [vmem:[#allocation3 + $0xa4] sm:$0x1] %v4369_v44  ;;  %v4053_v61 = vunpack.c.l.b16 %v3982_v31  ;;  %v4912_v63 = vshll.u32 %v10329_v54, 16 }
 0x342   : > { %v3666_v58 = vpop.f32.mrf.mxu2  ;;  %v3983_v62 = vpack.c.bf16 %v3951_v14, %v3951_v14  ;;  %v3843_v57 = vadd.f32 %v10457_v39, %v3754_v7  ;;  %v10500_v44 = vpop.f32.mrf.mxu1  ;;  %v5090_v53 = vrot.slane %v9047_v19, 1  ;;  %v4917_v24 = vshll.u32 %v10495_v43, 16 }
 0x343   : > { %4464 = vst [vmem:[#allocation3 + $0x9c] sm:$0xf] %v4367_v4  ;;  %v3667_v20 = vadd.f32 %v3666_v58, %v3578_v5  ;;  %v4914_v7 = vrot.slane %v4912_v63, 1  ;;  %v5091_v58 = vrot.slane %v10472_v52, 1  ;;  %v4910_v16 = vshrl.u32 %v10329_v54, 16 }
 0x344   : > { %v3847_v45 = vpop.f32.mrf.mxu0  ;;  %4465 = vst [vmem:[#allocation3 + $0xa0] sm:$0xf] %v4368_v33  ;;  %v4054_v0 = vunpack.c.l.b16 %v3983_v62  ;;  %v3884_v26 = vmul.f32 %v10250_v15, %v3843_v57  ;;  %v4919_v19 = vrot.slane %v4917_v24, 1 }
 0x345   : > { %v5092_v62 = vsel %vm1482_vm4, %v5090_v53, %v5091_v58  ;;  %v10521_v63 = vor.u32 %v4914_v7, %v4910_v16 }
 0x346   : > { %v4072_v39 = vpack.c.b16 %v4054_v0, %v4053_v61  ;;  %v3920_v50 = vadd.f32 %v10261_v30, %v3884_v26  ;;  %v10513_v61 = vld [vmem:[#allocation3 + $0x6c] sm:$0xff]  }
 0x347   : > { %6769 = vmatmul.bf16.gmra.mxu2 %v4908_v17  ;;  %6947 = vmatmul.bf16.gmra.mxu0 %v10329_v54  ;;  %v3755_v1 = vpop.f32.mrf.mxu3  ;;  %11705 = vst [vmem:[#allocation14_spill] sm:$0xff] %v10513_v61  ;;  %v10515_v0 = vld [vmem:[#allocation3 + $0x6c] sm:$0xf0]  ;;  %v11707_v54 = vld [vmem:[#allocation22_spill] sm:$0xff] }
 0x348   : > { %v4167_v55 = vshrl.u32 %v4072_v39, 16  ;;  %v3756_v31 = vadd.f32 %v3755_v1, %v3667_v20  ;;  %v4170_v33 = vshll.u32 %v4072_v39, 16  ;;  %v3952_v5 = vmax.f32 %v3920_v50, 0.0  ;;  %11706 = vst [vmem:[#allocation17_spill] sm:$0xff] %v10515_v0 }
 0x349   : > { %11708 = vst [vmem:[#allocation18_spill] sm:$0xff] %v10521_v63 }
 0x34a   : > { %v3669_v14 = vpop.f32.mrf.mxu2  ;;  %v4169_v4 = vrot.slane %v4167_v55, 7  ;;  %v3845_v59 = vadd.f32 %v3844_v22, %v3756_v31  ;;  %v10526_v53 = vpop.f32.mrf.mxu1 }
 0x34b   : > { %v10509_v57 = vld [vmem:[#allocation3 + $0x9c] sm:$0xff]   ;;  %v3670_v20 = vadd.f32 %v3669_v14, %v11707_v54 }
 0x34c   : > { %v10505_v49 = vpop.f32.mrf.mxu0  ;;  %v10511_v17 = vld [vmem:[#allocation3 + $0x9c] sm:$0xf0]  ;;  %v4172_v52 = vor.u32 %v4170_v33, %v4169_v4  ;;  %v4248_v22 = vsel %vm9449_vm2, %v4169_v4, 0  ;;  %v3885_v26 = vmul.f32 %v10250_v15, %v3845_v59  ;;  %6858 = vmatmul.bf16.gmra.mxu3 %v5092_v62  ;;  %v3984_v4 = vpack.c.bf16 %v3952_v5, %v3952_v5  ;;  %v8774_v62 = vld [vmem:[#allocation3 + $0x60] sm:$0xf0] }
 0x34d   : > { %v4324_v39 = vunpack.c.l.b16 %v4248_v22  ;;  %v8775_v14 = vld [vmem:[#allocation3 + $0x60] sm:$0xe]  ;;  %6710 = vmatmul.bf16.gmra.mxu1 %v10509_v57  ;;  %v4920_v5 = vsel %vm1225_vm3, %v10521_v63, %v4919_v19 }
 0x34e   : > { %v4232_v50 = vsel %vm9449_vm2, 0, %v4172_v52  ;;  %v3921_v1 = vadd.f32 %v10261_v30, %v3885_v26  ;;  %v11709_v52 = vld [vmem:[#allocation23_spill] sm:$0xff] }
 0x34f   : > { %v4322_v24 = vunpack.c.l.b16 %v4232_v50  ;;  %v4323_v55 = vunpack.c.h.b16 %v4232_v50  ;;  %v4372_v31 = vpack.c.b16 %v4324_v39, %v4324_v39  ;;  %v3758_v58 = vpop.f32.mrf.mxu3  ;;  %v3583_v30 = vadd.f32 %v10306_v35, %v11709_v52  ;;  %v4517_v39 = vld [vmem:[#allocation3 + $0x74] sm:$0x1]  ;;  %v8413_v35 = vld [vmem:[#allocation9 + $0x100] sm:$0xff] }
 0x350   : > { %v3953_v33 = vmax.f32 %v3921_v1, 0.0  ;;  %v3759_v15 = vadd.f32 %v3758_v58, %v3670_v20  ;;  %v8776_v20 = vor.u32 %v8775_v14, %v8774_v62  ;;  %v4055_v50 = vunpack.c.l.b16 %v3984_v4  ;;  %v8428_v58 = vld [vmem:[#allocation9 + $0x178] sm:$0xff]  ;;  %7000 = vmatpush.bf16.msrb.mxu1 %v8413_v35  ;;  %v9049_v35 = vld [vmem:[#allocation3 + $0x6c] sm:$0xe] }
 0x351   : > { %v4370_v7 = vpack.c.b16 %v4322_v24, %v4322_v24  ;;  %v4371_v16 = vpack.c.b16 %v4323_v55, %v4323_v55  ;;  %4469 = vst [vmem:[#allocation3 + $0xb0] sm:$0x1] %v4372_v31  ;;  %v8930_v24 = vld [vmem:[%s11632_s2] ss:$0 sm:$0xff]  ;;  %v4790_v19 = vunpack.c.l.b16 %v4517_v39  ;;  %7082 = vmatpush.bf16.msra.mxu2 %v8428_v58  ;;  %v4924_v4 = vshll.u32 %v10358_v47, 16 }
 0x352   : > { %v3671_v59 = vpop.f32.mrf.mxu2  ;;  %v3985_v22 = vpack.c.bf16 %v3953_v33, %v3953_v33  ;;  %v3848_v26 = vadd.f32 %v3847_v45, %v3759_v15  ;;  %v10539_v33 = vpop.f32.mrf.mxu1  ;;  %v8931_v15 = vld [vmem:[%s11633_s3] ss:$0 sm:$0xff] }
 0x353   : > { %4467 = vst [vmem:[#allocation3 + $0xa8] sm:$0xf] %v4370_v7  ;;  %v3672_v31 = vadd.f32 %v3671_v59, %v3583_v30  ;;  %v5093_v59 = vrot.slane %v8776_v20, 1  ;;  %v5094_v7 = vrot.slane %v10495_v43, 1  ;;  %v4926_v20 = vrot.slane %v4924_v4, 1 }
 0x354   : > { %v10531_v54 = vpop.f32.mrf.mxu0  ;;  %4468 = vst [vmem:[#allocation3 + $0xac] sm:$0xf] %v4371_v16  ;;  %v4056_v1 = vunpack.c.l.b16 %v3985_v22  ;;  %v3886_v55 = vmul.f32 %v8930_v24, %v3848_v26  ;;  %v8436_v22 = vld [vmem:[#allocation9 + $0x1b8] sm:$0xff] }
 0x355   : > { %7171 = vmatpush.bf16.msra.mxu3 %v8436_v22 }
 0x356   : > { %v4073_v45 = vpack.c.b16 %v4056_v1, %v4055_v50  ;;  %v3922_v62 = vadd.f32 %v8931_v15, %v3886_v55  ;;  %v10549_v1 = vpack.c.b16 %v4790_v19, %v4790_v19  ;;  %v5095_v55 = vsel %vm1482_vm4, %v5093_v59, %v5094_v7 }
 0x357   : > { %6774 = vmatmul.bf16.gmra.mxu2 %v4920_v5  ;;  %6952 = vmatmul.bf16.gmra.mxu0 %v10513_v61  ;;  %v3760_v14 = vpop.f32.mrf.mxu3  ;;  %v8778_v61 = vld [vmem:[#allocation3 + $0x78] sm:$0xe] }
 0x358   : > { %v4174_v16 = vshrl.u32 %v4073_v45, 16  ;;  %v3761_v52 = vadd.f32 %v3760_v14, %v3672_v31  ;;  %v4177_v5 = vshll.u32 %v4073_v45, 16  ;;  %v3954_v58 = vmax.f32 %v3922_v62, 0.0 }
 0x359   : > { %v4922_v62 = vshrl.u32 %v10358_v47, 16  ;;  %v4929_v59 = vshll.u32 %v10549_v1, 16  ;;  %v9050_v47 = vor.u32 %v9049_v35, %v10360_v51 }
 0x35a   : > { %v6735_v30 = vpop.f32.mrf.mxu2  ;;  %v4176_v26 = vrot.slane %v4174_v16, 7  ;;  %v3850_v39 = vadd.f32 %v10505_v49, %v3761_v52  ;;  %v10557_v16 = vpop.f32.mrf.mxu1 }
 0x35b   : > { %v6736_v45 = vadd.f32 %v6735_v30, %v10320_v2  ;;  %v10563_v2 = vld [vmem:[#allocation3 + $0xa8] sm:$0xff]  }
 0x35c   : > { %v10547_v50 = vpop.f32.mrf.mxu0  ;;  %v4179_v0 = vor.u32 %v4177_v5, %v4176_v26  ;;  %v4249_v43 = vsel %vm9449_vm2, %v4176_v26, 0  ;;  %v3887_v31 = vmul.f32 %v8930_v24, %v3850_v39  ;;  %6863 = vmatmul.bf16.gmra.mxu3 %v5095_v55  ;;  %v4518_v26 = vld [vmem:[#allocation3 + $0x80] sm:$0x1]  ;;  %v3986_v24 = vpack.c.bf16 %v3954_v58, %v3954_v58 }
 0x35d   : > { %v4327_v14 = vunpack.c.l.b16 %v4249_v43  ;;  %6715 = vmatmul.bf16.gmra.mxu1 %v10563_v2  ;;  %v4931_v58 = vrot.slane %v4929_v59, 1  ;;  %v4936_v59 = vshll.u32 %v10409_v23, 16 }
 0x35e   : > { %v4233_v49 = vsel %vm9449_vm2, 0, %v4179_v0  ;;  %v3923_v19 = vadd.f32 %v8931_v15, %v3887_v31  ;;  %v4927_v0 = vor.u32 %v4926_v20, %v4922_v62  ;;  %v8444_v15 = vld [vmem:[#allocation9 + $0x1f8] sm:$0xff] }
 0x35f   : > { %v4325_v4 = vunpack.c.l.b16 %v4233_v49  ;;  %v4326_v7 = vunpack.c.h.b16 %v4233_v49  ;;  %v4375_v52 = vpack.c.b16 %v4327_v14, %v4327_v14  ;;  %v6824_v22 = vpop.f32.mrf.mxu3  ;;  %v8452_v31 = vld [vmem:[#allocation9 + $0x238] sm:$0xff]  ;;  %7260 = vmatpush.bf16.msra.mxu0 %v8444_v15 }
 0x360   : > { %v3955_v5 = vmax.f32 %v3923_v19, 0.0  ;;  %v10561_v39 = vadd.f32 %v6824_v22, %v6736_v45  ;;  %v4791_v19 = vunpack.c.l.b16 %v4518_v26  ;;  %7349 = vmatpush.bf16.msra.mxu1 %v8452_v31  ;;  %v4057_v45 = vunpack.c.l.b16 %v3986_v24  ;;  %v4582_v24 = vld [vmem:[#allocation3 + $0x8c] sm:$0x1] }
 0x361   : > { %v4373_v55 = vpack.c.b16 %v4325_v4, %v4325_v4  ;;  %v4374_v43 = vpack.c.b16 %v4326_v7, %v4326_v7  ;;  %4472 = vst [vmem:[#allocation3 + $0xbc] sm:$0x1] %v4375_v52  ;;  %v4932_v4 = vsel %vm1225_vm3, %v4927_v0, %v4931_v58  ;;  %v5096_v7 = vrot.slane %v9050_v47, 1  ;;  %v9245_v0 = vld [vmem:[#allocation3 + $0x84] sm:$0xf0] }
 0x362   : > { %v6737_v30 = vpop.f32.mrf.mxu2  ;;  %v3987_v14 = vpack.c.bf16 %v3955_v5, %v3955_v5  ;;  %v10572_v35 = vpop.f32.mrf.mxu1  ;;  %v10574_v52 = vpack.c.b16 %v4791_v19, %v4791_v19  ;;  %v5097_v26 = vrot.slane %v10549_v1, 1  ;;  %v5255_v19 = vunpack.c.l.b16 %v4582_v24 }
 0x363   : > { %4470 = vst [vmem:[#allocation3 + $0xb4] sm:$0xf] %v4373_v55  ;;  %v6738_v62 = vadd.f32 %v6737_v30, %v10344_v27  ;;  %v10580_v30 = vld [vmem:[#allocation3 + $0x84] sm:$0xff]  }
 0x364   : > { %v10567_v49 = vpop.f32.mrf.mxu0  ;;  %4471 = vst [vmem:[#allocation3 + $0xb8] sm:$0xf] %v4374_v43  ;;  %v4058_v20 = vunpack.c.l.b16 %v3987_v14  ;;  %v9246_v55 = vld [vmem:[#allocation3 + $0x84] sm:$0xe]  ;;  %v5098_v43 = vsel %vm1482_vm4, %v5096_v7, %v5097_v26  ;;  %v4941_v58 = vshll.u32 %v10574_v52, 16 }
 0x365   : > { %11710 = vst [vmem:[#allocation16_spill] sm:$0xff] %v10580_v30 }
 0x366   : > { %v4074_v51 = vpack.c.b16 %v4058_v20, %v4057_v45  ;;  %v4938_v45 = vrot.slane %v4936_v59, 1  ;;  %v10598_v59 = vpack.c.b16 %v5255_v19, %v5255_v19  ;;  %v8427_v19 = vld [vmem:[#allocation9 + $0x170] sm:$0xff] }
 0x367   : > { %6779 = vmatmul.bf16.gmra.mxu2 %v4932_v4  ;;  %6957 = vmatmul.bf16.gmra.mxu0 %v10409_v23  ;;  %v6826_v22 = vpop.f32.mrf.mxu3 }
 0x368   : > { %v4181_v5 = vshrl.u32 %v4074_v51, 16  ;;  %v10578_v15 = vadd.f32 %v6826_v22, %v6738_v62  ;;  %v4184_v31 = vshll.u32 %v4074_v51, 16  ;;  %v4934_v51 = vshrl.u32 %v10409_v23, 16  ;;  %11711 = vst [vmem:[#allocation19_spill] sm:$0xff] %v10598_v59  ;;  %7083 = vmatpush.bf16.msra.mxu2 %v8427_v19 }
 0x369   : > { %v9247_v23 = vor.u32 %v9246_v55, %v9245_v0  ;;  %v5280_v55 = vshll.u32 %v10183_v13, 16  ;;  %v5285_v19 = vshll.u32 %v10204_v12, 16 }
 0x36a   : > { %v6740_v27 = vpop.f32.mrf.mxu2  ;;  %v4183_v47 = vrot.slane %v4181_v5, 7  ;;  %v10596_v5 = vpop.f32.mrf.mxu1  ;;  %v10600_v56 = vor.u32 %v4938_v45, %v4934_v51 }
 0x36b   : > { %v6741_v1 = vadd.f32 %v6740_v27, %v10369_v40  ;;  %v10587_v20 = vld [vmem:[#allocation3 + $0xb4] sm:$0xff]  }
 0x36c   : > { %v10583_v14 = vpop.f32.mrf.mxu0  ;;  %v10589_v62 = vld [vmem:[#allocation3 + $0xb4] sm:$0xf0]  ;;  %v4186_v4 = vor.u32 %v4184_v31, %v4183_v47  ;;  %v4250_v22 = vsel %vm9449_vm2, %v4183_v47, 0  ;;  %6868 = vmatmul.bf16.gmra.mxu3 %v5098_v43  ;;  %11712 = vst [vmem:[#allocation21_spill] sm:$0xff] %v10600_v56  ;;  %v4943_v43 = vrot.slane %v4941_v58, 1 }
 0x36d   : > { %v4330_v7 = vunpack.c.l.b16 %v4250_v22  ;;  %v8777_v22 = vld [vmem:[#allocation3 + $0x78] sm:$0xf0]  ;;  %6720 = vmatmul.bf16.gmra.mxu1 %v10587_v20 }
 0x36e   : > { %v4234_v26 = vsel %vm9449_vm2, 0, %v4186_v4  ;;  %v8779_v45 = vor.u32 %v8778_v61, %v8777_v22  ;;  %v4944_v0 = vsel %vm1225_vm3, %v10600_v56, %v4943_v43  ;;  %v5282_v43 = vrot.slane %v5280_v55, 1  ;;  %v8435_v22 = vld [vmem:[#allocation9 + $0x1b0] sm:$0xff] }
 0x36f   : > { %v4328_v40 = vunpack.c.l.b16 %v4234_v26  ;;  %v4329_v24 = vunpack.c.h.b16 %v4234_v26  ;;  %v4378_v27 = vpack.c.b16 %v4330_v7, %v4330_v7  ;;  %v6829_v10 = vpop.f32.mrf.mxu3  ;;  %v5563_v26 = vrot.slane %v9247_v23, 1  ;;  %7172 = vmatpush.bf16.msra.mxu3 %v8435_v22  ;;  %v8443_v22 = vld [vmem:[#allocation9 + $0x1f0] sm:$0xff] }
 0x370   : > { %v10602_v31 = vadd.f32 %v6829_v10, %v6741_v1  ;;  %v5564_v7 = vrot.slane %v10598_v59, 1  ;;  %v4519_v10 = vld [vmem:[#allocation3 + $0x8c] sm:$0x1]  ;;  %v5287_v55 = vrot.slane %v5285_v19, 1  ;;  %7261 = vmatpush.bf16.msra.mxu0 %v8443_v22 }
 0x371   : > { %v4376_v63 = vpack.c.b16 %v4328_v40, %v4328_v40  ;;  %v4377_v48 = vpack.c.b16 %v4329_v24, %v4329_v24  ;;  %4475 = vst [vmem:[#allocation3 + $0xc8] sm:$0x1] %v4378_v27  ;;  %v5099_v40 = vrot.slane %v8779_v45, 1  ;;  %v5100_v24 = vrot.slane %v10574_v52, 1 }
 0x372   : > { %v6742_v47 = vpop.f32.mrf.mxu2  ;;  %v10613_v1 = vsel %vm1482_vm4, %v5563_v26, %v5564_v7  ;;  %v10616_v51 = vpop.f32.mrf.mxu1 }
 0x373   : > { %4473 = vst [vmem:[#allocation3 + $0xc0] sm:$0xf] %v4376_v63  ;;  %v6743_v58 = vadd.f32 %v6742_v47, %v10384_v37  ;;  %v4792_v63 = vunpack.c.l.b16 %v4519_v10  ;;  %v4948_v37 = vshll.u32 %v10438_v25, 16  ;;  %v5101_v7 = vsel %vm1482_vm4, %v5099_v40, %v5100_v24 }
 0x374   : > { %v10605_v4 = vpop.f32.mrf.mxu0  ;;  %4474 = vst [vmem:[#allocation3 + $0xc4] sm:$0xf] %v4377_v48  ;;  %v5278_v48 = vshrl.u32 %v10183_v13, 16 }
 0x375   : > { %11713 = vst [vmem:[#allocation20_spill] sm:$0xff] %v10613_v1  ;;  %v4808_v26 = vpack.c.b16 %v4792_v63, %v4792_v63  ;;  %v4950_v10 = vrot.slane %v4948_v37, 1  ;;  %v4946_v1 = vshrl.u32 %v10438_v25, 16  ;;  %v8451_v37 = vld [vmem:[#allocation9 + $0x230] sm:$0xff] }
 0x376   : > { %v5283_v45 = vor.u32 %v5282_v43, %v5278_v48  ;;  %7350 = vmatpush.bf16.msra.mxu1 %v8451_v37  ;;  %v10656_v37 = vld [vmem:[#allocation3 + $0x9c] sm:$0xff]  }
 0x377   : > { %6784 = vmatmul.bf16.gmra.mxu2 %v4944_v0  ;;  %6962 = vmatmul.bf16.gmra.mxu0 %v10580_v30  ;;  %v6831_v61 = vpop.f32.mrf.mxu3  ;;  %v4573_v0 = vld [vmem:[#allocation3 + $0x20] sm:$0x1]  ;;  %v4953_v59 = vshll.u32 %v4808_v26, 16  ;;  %v4951_v40 = vor.u32 %v4950_v10, %v4946_v1  ;;  %11714 = vst [vmem:[#allocation22_spill] sm:$0xff] %v10656_v37 }
 0x378   : > { %v10620_v27 = vadd.f32 %v6831_v61, %v6743_v58  ;;  %v9052_v58 = vld [vmem:[#allocation3 + $0x84] sm:$0xe]  ;;  %v5288_v12 = vsel %vm1225_vm3, %v5283_v45, %v5287_v55  ;;  %v5246_v24 = vunpack.c.l.b16 %v4573_v0  ;;  %v5103_v55 = vrot.slane %v4808_v26, 1 }
 0x379   : > { %v4955_v43 = vrot.slane %v4953_v59, 1  ;;  %v9053_v48 = vor.u32 %v9052_v58, %v10440_v11  ;;  %v4960_v59 = vshll.u32 %v10487_v38, 16  ;;  %v4958_v26 = vshrl.u32 %v10487_v38, 16 }
 0x37a   : > { %v6745_v47 = vpop.f32.mrf.mxu2  ;;  %v10628_v61 = vpop.f32.mrf.mxu1 }
 0x37b   : > { %v6746_v52 = vadd.f32 %v6745_v47, %v10407_v18  ;;  %v4520_v18 = vld [vmem:[#allocation3 + $0x98] sm:$0x1]  ;;  %v4956_v19 = vsel %vm1225_vm3, %v4951_v40, %v4955_v43  ;;  %v5102_v10 = vrot.slane %v9053_v48, 1  ;;  %v4962_v40 = vrot.slane %v4960_v59, 1  ;;  %v10658_v43 = vld [vmem:[#allocation3 + $0x9c] sm:$0xf0] }
 0x37c   : > { %v10622_v23 = vpop.f32.mrf.mxu0  ;;  %6873 = vmatmul.bf16.gmra.mxu3 %v5101_v7  ;;  %v10639_v7 = vpack.c.b16 %v5246_v24, %v5246_v24  ;;  %11715 = vst [vmem:[#allocation23_spill] sm:$0xff] %v10658_v43  ;;  %v8781_v59 = vld [vmem:[#allocation3 + $0x90] sm:$0xe] }
 0x37d   : > { %7001 = vmatmul.bf16.vlgmr.msrb.gmra.mxu1 %v5288_v12  ;;  %v10652_v12 = vadd.f32 %v10531_v54, %v10561_v39  ;;  %v10663_v54 = vor.u32 %v4962_v40, %v4958_v26  ;;  %v4521_v40 = vld [vmem:[#allocation3 + $0xa4] sm:$0x1] }
 0x37e   : > { %v5297_v58 = vshll.u32 %v10639_v7, 16 }
 0x37f   : > { %v6834_v13 = vpop.f32.mrf.mxu3  ;;  %11716 = vst [vmem:[#allocation25_spill] sm:$0xff] %v10663_v54 }
 0x380   : > { %v10631_v30 = vadd.f32 %v6834_v13, %v6746_v52  ;;  %v4793_v52 = vunpack.c.l.b16 %v4520_v18  ;;  %v5299_v22 = vrot.slane %v5297_v58, 1 }
 0x382   : > { %v6747_v63 = vpop.f32.mrf.mxu2  ;;  %v10642_v1 = vpop.f32.mrf.mxu1 }
 0x383   : > { %v6748_v25 = vadd.f32 %v6747_v63, %v10424_v41  ;;  %v4809_v41 = vpack.c.b16 %v4793_v52, %v4793_v52  ;;  %v5104_v63 = vsel %vm1482_vm4, %v5102_v10, %v5103_v55  ;;  %v5300_v52 = vsel %vm1225_vm3, %v10281_v28, %v5299_v22  ;;  %v8780_v10 = vld [vmem:[#allocation3 + $0x90] sm:$0xf0] }
 0x384   : > { %v10634_v47 = vpop.f32.mrf.mxu0  ;;  %v10673_v55 = vadd.f32 %v10547_v50, %v10578_v15 }
 0x385   : > { %v4965_v18 = vshll.u32 %v4809_v41, 16 }
 0x387   : > { %6789 = vmatmul.bf16.gmra.mxu2 %v4956_v19  ;;  %6967 = vmatmul.bf16.gmra.mxu0 %v10487_v38  ;;  %v6836_v45 = vpop.f32.mrf.mxu3  ;;  %v4574_v19 = vld [vmem:[#allocation3 + $0x2c] sm:$0x1] }
 0x388   : > { %v10645_v0 = vadd.f32 %v6836_v45, %v6748_v25  ;;  %v4967_v45 = vrot.slane %v4965_v18, 1  ;;  %v5247_v38 = vunpack.c.l.b16 %v4574_v19  ;;  %v5106_v19 = vrot.slane %v4809_v41, 1 }
 0x38a   : > { %v6750_v11 = vpop.f32.mrf.mxu2  ;;  %v10661_v48 = vpop.f32.mrf.mxu1  ;;  %v4968_v22 = vsel %vm1225_vm3, %v10663_v54, %v4967_v45  ;;  %v10682_v26 = vpack.c.b16 %v5247_v38, %v5247_v38  ;;  %v5302_v45 = vshrl.u32 %v10288_v46, 16  ;;  %v10693_v38 = vadd.f32 %v10567_v49, %v10602_v31 }
 0x38b   : > { %v6751_v24 = vadd.f32 %v6750_v11, %v10449_v60  ;;  %v8426_v11 = vld [vmem:[#allocation9 + $0x168] sm:$0xff]  ;;  %v4970_v54 = vshrl.u32 %v10509_v57, 16 }
 0x38c   : > { %v10648_v13 = vpop.f32.mrf.mxu0  ;;  %6878 = vmatmul.bf16.gmra.mxu3 %v5104_v63  ;;  %v8782_v63 = vor.u32 %v8781_v59, %v8780_v10  ;;  %7084 = vmatpush.bf16.msra.mxu2 %v8426_v11 }
 0x38d   : > { %7006 = vmatmul.bf16.gmra.mxu1 %v5300_v52  ;;  %v4972_v52 = vshll.u32 %v10509_v57, 16 }
 0x38e   : > { %v5105_v15 = vrot.slane %v8782_v63, 1 }
 0x38f   : > { %v6839_v25 = vpop.f32.mrf.mxu3 }
 0x390   : > { %v10665_v39 = vadd.f32 %v6839_v25, %v6751_v24  ;;  %v5304_v24 = vshll.u32 %v10288_v46, 16  ;;  %v4794_v25 = vunpack.c.l.b16 %v4521_v40  ;;  %v5107_v41 = vsel %vm1482_vm4, %v5105_v15, %v5106_v19 }
 0x392   : > { %v6752_v60 = vpop.f32.mrf.mxu2  ;;  %v10680_v18 = vpop.f32.mrf.mxu1  ;;  %v4810_v43 = vpack.c.b16 %v4794_v25, %v4794_v25 }
 0x393   : > { %v6753_v28 = vadd.f32 %v6752_v60, %v10468_v3  ;;  %v5306_v3 = vrot.slane %v5304_v24, 1  ;;  %v8434_v60 = vld [vmem:[#allocation9 + $0x1a8] sm:$0xff]  ;;  %v4974_v24 = vrot.slane %v4972_v52, 1 }
 0x394   : > { %v10669_v58 = vpop.f32.mrf.mxu0  ;;  %7173 = vmatpush.bf16.msra.mxu3 %v8434_v60  ;;  %v4977_v25 = vshll.u32 %v4810_v43, 16  ;;  %v8450_v52 = vld [vmem:[#allocation9 + $0x228] sm:$0xff] }
 0x395   : > { %v5307_v40 = vor.u32 %v5306_v3, %v5302_v45  ;;  %v4975_v15 = vor.u32 %v4974_v24, %v4970_v54  ;;  %v10705_v3 = vadd.f32 %v10583_v14, %v10620_v27  ;;  %7351 = vmatpush.bf16.msra.mxu1 %v8450_v52  ;;  %v4984_v27 = vshll.u32 %v10563_v2, 16 }
 0x397   : > { %6794 = vmatmul.bf16.gmra.mxu2 %v4968_v22  ;;  %6972 = vmatmul.bf16.gmra.mxu0 %v10656_v37  ;;  %v6841_v50 = vpop.f32.mrf.mxu3  ;;  %v5309_v22 = vshll.u32 %v10682_v26, 16  ;;  %v4986_v52 = vrot.slane %v4984_v27, 1 }
 0x398   : > { %v10685_v10 = vadd.f32 %v6841_v50, %v6753_v28  ;;  %v9055_v28 = vld [vmem:[#allocation3 + $0x9c] sm:$0xe]  ;;  %v4575_v50 = vld [vmem:[#allocation3 + $0x38] sm:$0x1] }
 0x399   : > { %v5311_v46 = vrot.slane %v5309_v22, 1  ;;  %v5248_v19 = vunpack.c.l.b16 %v4575_v50  ;;  %v9056_v45 = vor.u32 %v9055_v28, %v10511_v17 }
 0x39a   : > { %v6755_v59 = vpop.f32.mrf.mxu2  ;;  %v10697_v37 = vpop.f32.mrf.mxu1 }
 0x39b   : > { %v6756_v63 = vadd.f32 %v6755_v59, %v10485_v21  ;;  %v5312_v49 = vsel %vm1225_vm3, %v5307_v40, %v5311_v46  ;;  %v4522_v21 = vld [vmem:[#allocation3 + $0xb0] sm:$0x1]  ;;  %v4979_v59 = vrot.slane %v4977_v25, 1  ;;  %v5108_v14 = vrot.slane %v9056_v45, 1  ;;  %v8425_v25 = vld [vmem:[#allocation9 + $0x160] sm:$0xff] }
 0x39c   : > { %v10687_v11 = vpop.f32.mrf.mxu0  ;;  %6883 = vmatmul.bf16.gmra.mxu3 %v5107_v41  ;;  %v8442_v41 = vld [vmem:[#allocation9 + $0x1e8] sm:$0xff]  ;;  %v4795_v40 = vunpack.c.l.b16 %v4522_v21  ;;  %7085 = vmatpush.bf16.msra.mxu2 %v8425_v25  ;;  %v10730_v21 = vadd.f32 %v10605_v4, %v10631_v30 }
 0x39d   : > { %7011 = vmatmul.bf16.gmra.mxu1 %v5312_v49  ;;  %7262 = vmatpush.bf16.msra.mxu0 %v8442_v41  ;;  %v4980_v54 = vsel %vm1225_vm3, %v4975_v15, %v4979_v59  ;;  %v8441_v49 = vld [vmem:[#allocation9 + $0x1e0] sm:$0xff] }
 0x39e   : > { %v10726_v41 = vld [vmem:[#allocation3 + $0xb4] sm:$0xf0] }
 0x39f   : > { %v6844_v60 = vpop.f32.mrf.mxu3  ;;  %11718 = vst [vmem:[#allocation27_spill] sm:$0xff] %v10726_v41 }
 0x3a0   : > { %v10700_v56 = vadd.f32 %v6844_v60, %v6756_v63  ;;  %v10712_v63 = vpack.c.b16 %v5248_v19, %v5248_v19  ;;  %v8433_v60 = vld [vmem:[#allocation9 + $0x1a0] sm:$0xff] }
 0x3a1   : > { %7174 = vmatpush.bf16.msra.mxu3 %v8433_v60  ;;  %v10724_v19 = vld [vmem:[#allocation3 + $0xb4] sm:$0xff]   ;;  %7263 = vmatpush.bf16.msra.mxu0 %v8441_v49  ;;  %v8783_v60 = vld [vmem:[#allocation3 + $0xa8] sm:$0xf0]  ;;  %v8784_v49 = vld [vmem:[#allocation3 + $0xa8] sm:$0xe] }
 0x3a2   : > { %v6757_v31 = vpop.f32.mrf.mxu2  ;;  %v10715_v24 = vpop.f32.mrf.mxu1  ;;  %v5321_v28 = vshll.u32 %v10712_v63, 16  ;;  %11717 = vst [vmem:[#allocation26_spill] sm:$0xff] %v10724_v19  ;;  %v8785_v41 = vor.u32 %v8784_v49, %v8783_v60 }
 0x3a3   : > { %v6758_v22 = vadd.f32 %v6757_v31, %v10500_v44  ;;  %v10721_v44 = vpack.c.b16 %v4795_v40, %v4795_v40  ;;  %v5109_v31 = vrot.slane %v4810_v43, 1  ;;  %v8440_v40 = vld [vmem:[#allocation9 + $0x1d8] sm:$0xff] }
 0x3a4   : > { %v10707_v57 = vpop.f32.mrf.mxu0  ;;  %v5323_v45 = vrot.slane %v5321_v28, 1 }
 0x3a5   : > { %v5110_v15 = vsel %vm1482_vm4, %v5108_v14, %v5109_v31  ;;  %v4989_v43 = vshll.u32 %v10721_v44, 16  ;;  %v4982_v14 = vshrl.u32 %v10563_v2, 16  ;;  %7264 = vmatpush.bf16.msra.mxu0 %v8440_v40  ;;  %v8423_v31 = vld [vmem:[#allocation9 + $0x150] sm:$0xff]  ;;  %v8438_v40 = vld [vmem:[#allocation9 + $0x1c8] sm:$0xff] }
 0x3a7   : > { %6799 = vmatmul.bf16.gmra.mxu2 %v4980_v54  ;;  %6977 = vmatmul.bf16.gmra.mxu0 %v10563_v2  ;;  %v6846_v50 = vpop.f32.mrf.mxu3  ;;  %v8432_v54 = vld [vmem:[#allocation9 + $0x198] sm:$0xff]  ;;  %v10739_v4 = vor.u32 %v4986_v52, %v4982_v14  ;;  %v4991_v28 = vrot.slane %v4989_v43, 1  ;;  %v8431_v2 = vld [vmem:[#allocation9 + $0x190] sm:$0xff]  ;;  %v8430_v52 = vld [vmem:[#allocation9 + $0x188] sm:$0xff] }
 0x3a8   : > { %v10718_v46 = vadd.f32 %v6846_v50, %v6758_v22  ;;  %v8424_v22 = vld [vmem:[#allocation9 + $0x158] sm:$0xff]  ;;  %7175 = vmatpush.bf16.msra.mxu3 %v8432_v54  ;;  %v8422_v54 = vld [vmem:[#allocation9 + $0x148] sm:$0xff] }
 0x3a9   : > { %7086 = vmatpush.bf16.msra.mxu2 %v8424_v22  ;;  %v4523_v22 = vld [vmem:[#allocation3 + $0xbc] sm:$0x1]  ;;  %v4992_v43 = vsel %vm1225_vm3, %v10739_v4, %v4991_v28 }
 0x3aa   : > { %v6760_v17 = vpop.f32.mrf.mxu2  ;;  %v10737_v25 = vpop.f32.mrf.mxu1 }
 0x3ab   : > { %v6761_v59 = vadd.f32 %v6760_v17, %v10526_v53  ;;  %v5324_v53 = vsel %vm1225_vm3, %v10355_v42, %v5323_v45  ;;  %v5328_v42 = vshll.u32 %v10348_v29, 16 }
 0x3ac   : > { %6888 = vmatmul.bf16.gmra.mxu3 %v5110_v15  ;;  %v10734_v50 = vpop.f32.mrf.mxu0  ;;  %v8439_v15 = vld [vmem:[#allocation9 + $0x1d0] sm:$0xff] }
 0x3ad   : > { %7016 = vmatmul.bf16.gmra.mxu1 %v5324_v53  ;;  %7087 = vmatpush.bf16.msra.mxu2 %v8423_v31  ;;  %v5330_v49 = vrot.slane %v5328_v42, 1  ;;  %v8421_v31 = vld [vmem:[#allocation9 + $0x140] sm:$0xff]  ;;  %v10768_v42 = vadd.f32 %v10634_v47, %v10665_v39 }
 0x3ae   : > { %7176 = vmatpush.bf16.msra.mxu3 %v8431_v2  ;;  %7265 = vmatpush.bf16.msra.mxu0 %v8439_v15  ;;  %v8429_v2 = vld [vmem:[#allocation9 + $0x180] sm:$0xff] }
 0x3af   : > { %v6849_v30 = vpop.f32.mrf.mxu3  ;;  %v8437_v15 = vld [vmem:[#allocation9 + $0x1c0] sm:$0xff] }
 0x3b0   : > { %v10741_v27 = vadd.f32 %v6849_v30, %v6761_v59  ;;  %v10747_v59 = vadd.f32 %v10622_v23, %v10645_v0  ;;  %v4796_v30 = vunpack.c.l.b16 %v4523_v22  ;;  %v5111_v23 = vrot.slane %v8785_v41, 1  ;;  %v8449_v47 = vld [vmem:[#allocation9 + $0x220] sm:$0xff] }
 0x3b1   : > { %v5112_v0 = vrot.slane %v10721_v44, 1  ;;  %7088 = vmatpush.bf16.msra.mxu2 %v8422_v54  ;;  %v5326_v22 = vshrl.u32 %v10348_v29, 16  ;;  %7352 = vmatpush.bf16.msra.mxu1 %v8449_v47  ;;  %v10804_v47 = vadd.f32 %v10669_v58, %v10700_v56  ;;  %v4638_v58 = vld [vmem:[#allocation3 + $0x2c] sm:$0x1] }
 0x3b2   : > { %v6762_v17 = vpop.f32.mrf.mxu2  ;;  %v10754_v14 = vpop.f32.mrf.mxu1  ;;  %7177 = vmatpush.bf16.msra.mxu3 %v8430_v52  ;;  %7266 = vmatpush.bf16.msra.mxu0 %v8438_v40  ;;  %v4577_v40 = vld [vmem:[#allocation3 + $0x50] sm:$0x1] }
 0x3b3   : > { %v6763_v45 = vadd.f32 %v6762_v17, %v10539_v33  ;;  %v4996_v33 = vshll.u32 %v10587_v20, 16  ;;  %v5113_v41 = vsel %vm1482_vm4, %v5111_v23, %v5112_v0  ;;  %v5331_v54 = vor.u32 %v5330_v49, %v5326_v22 }
 0x3b4   : > { %v10756_v60 = vpop.f32.mrf.mxu0  ;;  %v5250_v49 = vunpack.c.l.b16 %v4577_v40 }
 0x3b5   : > { %7089 = vmatpush.bf16.msra.mxu2 %v8421_v31  ;;  %v4998_v52 = vrot.slane %v4996_v33, 1  ;;  %v4637_v31 = vld [vmem:[#allocation3 + $0x20] sm:$0x1] }
 0x3b6   : > { %7178 = vmatpush.bf16.msra.mxu3 %v8429_v2  ;;  %7267 = vmatpush.bf16.msra.mxu0 %v8437_v15  ;;  %v5709_v22 = vunpack.c.l.b16 %v4637_v31 }
 0x3b7   : > { %6804 = vmatmul.bf16.gmra.mxu2 %v4992_v43  ;;  %6982 = vmatmul.bf16.gmra.mxu0 %v10724_v19  ;;  %v6851_v53 = vpop.f32.mrf.mxu3  ;;  %v5333_v43 = vshll.u32 %v10379_v34, 16  ;;  %v4812_v19 = vpack.c.b16 %v4796_v30, %v4796_v30  ;;  %v4994_v30 = vshrl.u32 %v10587_v20, 16 }
 0x3b8   : > { %v10760_v17 = vadd.f32 %v6851_v53, %v6763_v45  ;;  %v9058_v45 = vld [vmem:[#allocation3 + $0xb4] sm:$0xe] }
 0x3b9   : > { %v5335_v34 = vrot.slane %v5333_v43, 1  ;;  %v5001_v53 = vshll.u32 %v4812_v19, 16  ;;  %v4999_v33 = vor.u32 %v4998_v52, %v4994_v30  ;;  %v9059_v15 = vor.u32 %v9058_v45, %v10589_v62 }
 0x3ba   : > { %v6765_v28 = vpop.f32.mrf.mxu2  ;;  %v10770_v29 = vpop.f32.mrf.mxu1  ;;  %v10787_v52 = vadd.f32 %v10648_v13, %v10685_v10 }
 0x3bb   : > { %v6766_v44 = vadd.f32 %v6765_v28, %v10557_v16  ;;  %v5336_v16 = vsel %vm1225_vm3, %v5331_v54, %v5335_v34  ;;  %v5003_v39 = vrot.slane %v5001_v53, 1  ;;  %v8615_v54 = vld [vmem:[#allocation3 + $0x18] sm:$0xff]   ;;  %v5114_v45 = vrot.slane %v9059_v15, 1  ;;  %v10806_v15 = vld [vmem:[#allocation3 + $0x24] sm:$0xff]  }
 0x3bc   : > { %6893 = vmatmul.bf16.gmra.mxu3 %v5113_v41  ;;  %v10776_v2 = vpop.f32.mrf.mxu0  ;;  %v10781_v41 = vld [vmem:[#allocation3 + $0xc0] sm:$0xff]   ;;  %v5744_v34 = vshll.u32 %v8615_v54, 16 }
 0x3bd   : > { %7021 = vmatmul.bf16.gmra.mxu1 %v5336_v16  ;;  %v5004_v43 = vsel %vm1225_vm3, %v4999_v33, %v5003_v39  ;;  %v5115_v16 = vrot.slane %v4812_v19, 1  ;;  %v5742_v39 = vshrl.u32 %v8615_v54, 16 }
 0x3be   : > { %v5746_v10 = vrot.slane %v5744_v34, 1 }
 0x3bf   : > { %v6854_v23 = vpop.f32.mrf.mxu3  ;;  %v5116_v13 = vsel %vm1482_vm4, %v5114_v45, %v5115_v16  ;;  %v10821_v16 = vadd.f32 %v10687_v11, %v10718_v46  ;;  %v5350_v11 = vshrl.u32 %v10426_v36, 16  ;;  %v5357_v46 = vshll.u32 %v10451_v6, 16 }
 0x3c0   : > { %v10773_v0 = vadd.f32 %v6854_v23, %v6766_v44  ;;  %v10783_v44 = vpack.c.b16 %v5250_v49, %v5250_v49 }
 0x3c2   : > { %v6767_v28 = vpop.f32.mrf.mxu2  ;;  %v10790_v40 = vpop.f32.mrf.mxu1  ;;  %v5345_v23 = vshll.u32 %v10783_v44, 16 }
 0x3c3   : > { %v6768_v20 = vadd.f32 %v6767_v28, %v10572_v35  ;;  %v10792_v35 = vpack.c.b16 %v5709_v22, %v5709_v22  ;;  %v10808_v22 = vld [vmem:[#allocation3 + $0x24] sm:$0xf0] }
 0x3c4   : > { %v10797_v28 = vpop.f32.mrf.mxu0  ;;  %v5347_v31 = vrot.slane %v5345_v23, 1  ;;  %11720 = vst [vmem:[#allocation29_spill] sm:$0xff] %v10808_v22 }
 0x3c5   : > { %11719 = vst [vmem:[#allocation28_spill] sm:$0xff] %v10792_v35  ;;  %v5749_v33 = vshll.u32 %v10792_v35, 16 }
 0x3c7   : > { %6809 = vmatmul.bf16.gmra.mxu2 %v5004_v43  ;;  %6987 = vmatmul.bf16.gmra.mxu0 %v10781_v41  ;;  %v6856_v62 = vpop.f32.mrf.mxu3  ;;  %v5747_v43 = vor.u32 %v5746_v10, %v5742_v39 }
 0x3c8   : > { %v10794_v30 = vadd.f32 %v6856_v62, %v6768_v20  ;;  %v5751_v62 = vrot.slane %v5749_v33, 1 }
 0x3ca   : > { %v6770_v53 = vpop.f32.mrf.mxu2  ;;  %v10810_v19 = vpop.f32.mrf.mxu1  ;;  %v5752_v56 = vsel %vm1225_vm3, %v5747_v43, %v5751_v62  ;;  %v8787_v43 = vld [vmem:[#allocation3 + $0x18] sm:$0xe] }
 0x3cb   : > { %v6771_v49 = vadd.f32 %v6770_v53, %v10596_v5  ;;  %v5348_v5 = vsel %vm1225_vm3, %v10435_v32, %v5347_v31  ;;  %v5352_v53 = vshll.u32 %v10426_v36, 16  ;;  %v5710_v32 = vunpack.c.l.b16 %v4638_v58  ;;  %v4579_v58 = vld [vmem:[#allocation3 + $0x68] sm:$0x1] }
 0x3cc   : > { %6898 = vmatmul.bf16.gmra.mxu3 %v5116_v13  ;;  %v10823_v13 = vpop.f32.mrf.mxu0  ;;  %v10842_v36 = vadd.f32 %v10707_v57, %v10741_v27 }
 0x3cd   : > { %7026 = vmatmul.bf16.gmra.mxu1 %v5348_v5  ;;  %v5354_v39 = vrot.slane %v5352_v53, 1  ;;  %v10833_v62 = vpack.c.b16 %v5710_v32, %v5710_v32  ;;  %v5359_v53 = vrot.slane %v5357_v46, 1  ;;  %v8448_v46 = vld [vmem:[#allocation9 + $0x218] sm:$0xff] }
 0x3ce   : > { %7353 = vmatpush.bf16.msra.mxu1 %v8448_v46 }
 0x3cf   : > { %v6859_v20 = vpop.f32.mrf.mxu3  ;;  %11721 = vst [vmem:[#allocation30_spill] sm:$0xff] %v10833_v62  ;;  %v5761_v22 = vshll.u32 %v10833_v62, 16 }
 0x3d0   : > { %v10812_v45 = vadd.f32 %v6859_v20, %v6771_v49  ;;  %v8786_v20 = vld [vmem:[#allocation3 + $0x18] sm:$0xf0] }
 0x3d1   : > { %v5763_v62 = vrot.slane %v5761_v22, 1 }
 0x3d2   : > { %v6772_v34 = vpop.f32.mrf.mxu2  ;;  %v10826_v10 = vpop.f32.mrf.mxu1 }
 0x3d3   : > { %v6773_v23 = vadd.f32 %v6772_v34, %v10616_v51  ;;  %v5756_v51 = vshll.u32 %v10806_v15, 16  ;;  %v5355_v34 = vor.u32 %v5354_v39, %v5350_v11  ;;  %v4639_v11 = vld [vmem:[#allocation3 + $0x38] sm:$0x1] }
 0x3d4   : > { %v10844_v6 = vpop.f32.mrf.mxu0 }
 0x3d5   : > { %v5360_v39 = vsel %vm1225_vm3, %v5355_v34, %v5359_v53 }
 0x3d7   : > { %7090 = vmatmul.bf16.vlgmr.msra.gmra.mxu2 %v10217_v9  ;;  %7268 = vmatmul.bf16.vlgmr.msra.gmra.mxu0 %v5752_v56  ;;  %v6861_v33 = vpop.f32.mrf.mxu3  ;;  %v8788_v9 = vor.u32 %v8787_v43, %v8786_v20  ;;  %v5758_v56 = vrot.slane %v5756_v51, 1  ;;  %v5252_v51 = vunpack.c.l.b16 %v4579_v58 }
 0x3d8   : > { %v10828_v49 = vadd.f32 %v6861_v33, %v6773_v23  ;;  %v5754_v33 = vshrl.u32 %v10806_v15, 16 }
 0x3d9   : > { %v10853_v35 = vpack.c.b16 %v5252_v51, %v5252_v51  ;;  %v10874_v51 = vld [vmem:[#allocation3 + $0x3c] sm:$0xf0] }
 0x3da   : > { %v6775_v31 = vpop.f32.mrf.mxu2  ;;  %v10836_v23 = vpop.f32.mrf.mxu1  ;;  %v5759_v43 = vor.u32 %v5758_v56, %v5754_v33  ;;  %v10859_v56 = vadd.f32 %v10734_v50, %v10760_v17  ;;  %11724 = vst [vmem:[#allocation33_spill] sm:$0xff] %v10874_v51 }
 0x3db   : > { %v6776_v5 = vadd.f32 %v6775_v31, %v10628_v61  ;;  %v5537_v61 = vrot.slane %v10639_v7, 1  ;;  %v9061_v7 = vld [vmem:[#allocation3 + $0x24] sm:$0xe] }
 0x3dc   : > { %7179 = vmatmul.bf16.vlgmr.msra.gmra.mxu3 %v8615_v54  ;;  %v5536_v54 = vrot.slane %v8788_v9, 1  ;;  %v5764_v9 = vsel %vm1225_vm3, %v5759_v43, %v5763_v62  ;;  %v5369_v62 = vshll.u32 %v10853_v35, 16  ;;  %v10872_v43 = vld [vmem:[#allocation3 + $0x3c] sm:$0xff]  }
 0x3dd   : > { %7031 = vmatmul.bf16.gmra.mxu1 %v5360_v39 }
 0x3de   : > { %v5538_v57 = vsel %vm1482_vm4, %v5536_v54, %v5537_v61  ;;  %v10866_v54 = vpop.f32.mrf.mxu0  ;;  %v9062_v61 = vor.u32 %v9061_v7, %v10290_v8  ;;  %v5371_v50 = vrot.slane %v5369_v62, 1  ;;  %v11725_v7 = vld [vmem:[#allocation18_spill] sm:$0xff] }
 0x3df   : > { %v6864_v32 = vpop.f32.mrf.mxu3  ;;  %11723 = vst [vmem:[#allocation32_spill] sm:$0xff] %v10866_v54  ;;  %v11726_v54 = vld [vmem:[#allocation14_spill] sm:$0xff] }
 0x3e0   : > { %v10847_v31 = vadd.f32 %v6864_v32, %v6776_v5  ;;  %v8755_v5 = vld [vmem:[#allocation3 + $0x30] sm:$0xff]   ;;  %v5711_v32 = vunpack.c.l.b16 %v4639_v11 }
 0x3e1   : > { %v5768_v58 = vshll.u32 %v8755_v5, 16  ;;  %v5766_v11 = vshrl.u32 %v8755_v5, 16 }
 0x3e2   : > { %v6777_v20 = vpop.f32.mrf.mxu2  ;;  %v10855_v34 = vpop.f32.mrf.mxu1  ;;  %v10864_v33 = vpack.c.b16 %v5711_v32, %v5711_v32  ;;  %v4580_v32 = vld [vmem:[#allocation3 + $0x74] sm:$0x1] }
 0x3e3   : > { %v6778_v27 = vadd.f32 %v6777_v20, %v10642_v1  ;;  %v5770_v39 = vrot.slane %v5768_v58, 1  ;;  %v5540_v58 = vrot.slane %v10682_v26, 1  ;;  %v10895_v26 = vadd.f32 %v10756_v60, %v10773_v0 }
 0x3e4   : > { %11722 = vst [vmem:[#allocation31_spill] sm:$0xff] %v10864_v33  ;;  %v5773_v17 = vshll.u32 %v10864_v33, 16  ;;  %v4640_v33 = vld [vmem:[#allocation3 + $0x44] sm:$0x1] }
 0x3e6   : > { %v10883_v62 = vpop.f32.mrf.mxu0 }
 0x3e7   : > { %7095 = vmatmul.bf16.gmra.mxu2 %v5538_v57  ;;  %7273 = vmatmul.bf16.gmra.mxu0 %v5764_v9  ;;  %v6866_v22 = vpop.f32.mrf.mxu3  ;;  %v5771_v9 = vor.u32 %v5770_v39, %v5766_v11  ;;  %v5712_v11 = vunpack.c.l.b16 %v4640_v33 }
 0x3e8   : > { %v10861_v53 = vadd.f32 %v6866_v22, %v6778_v27  ;;  %v5539_v27 = vrot.slane %v9062_v61, 1  ;;  %v5775_v22 = vrot.slane %v5773_v17, 1  ;;  %v5376_v61 = vshll.u32 %v11726_v54, 16 }
 0x3ea   : > { %v6780_v1 = vpop.f32.mrf.mxu2  ;;  %v10876_v46 = vpop.f32.mrf.mxu1  ;;  %v5541_v51 = vsel %vm1482_vm4, %v5539_v27, %v5540_v58 }
 0x3eb   : > { %v6781_v20 = vadd.f32 %v6780_v1, %v10661_v48  ;;  %v5253_v1 = vunpack.c.l.b16 %v4580_v32 }
 0x3ec   : > { %7184 = vmatmul.bf16.gmra.mxu3 %v10806_v15  ;;  %v5372_v15 = vsel %vm1225_vm3, %v11725_v7, %v5371_v50  ;;  %v5378_v7 = vrot.slane %v5376_v61, 1 }
 0x3ed   : > { %7036 = vmatmul.bf16.gmra.mxu1 %v5372_v15  ;;  %v10891_v17 = vpack.c.b16 %v5253_v1, %v5253_v1  ;;  %v8789_v15 = vld [vmem:[#allocation3 + $0x30] sm:$0xf0] }
 0x3ee   : > { %v10905_v1 = vpop.f32.mrf.mxu0 }
 0x3ef   : > { %v6869_v57 = vpop.f32.mrf.mxu3  ;;  %11729 = vst [vmem:[#allocation34_spill] sm:$0xff] %v10905_v1 }
 0x3f0   : > { %v10878_v8 = vadd.f32 %v6869_v57, %v6781_v20  ;;  %v5776_v20 = vsel %vm1225_vm3, %v5771_v9, %v5775_v22  ;;  %v5780_v9 = vshll.u32 %v10872_v43, 16  ;;  %v10902_v22 = vpack.c.b16 %v5712_v11, %v5712_v11 }
 0x3f2   : > { %v6782_v48 = vpop.f32.mrf.mxu2  ;;  %v10889_v50 = vpop.f32.mrf.mxu1  ;;  %11728 = vst [vmem:[#allocation14_spill] sm:$0xff] %v10902_v22  ;;  %v5782_v58 = vrot.slane %v5780_v9, 1 }
 0x3f3   : > { %v6783_v39 = vadd.f32 %v6782_v48, %v10680_v18  ;;  %v8790_v18 = vld [vmem:[#allocation3 + $0x30] sm:$0xe]  ;;  %v5381_v48 = vshll.u32 %v10891_v17, 16 }
 0x3f4   : > { %v8791_v33 = vor.u32 %v8790_v18, %v8789_v15 }
 0x3f7   : > { %7100 = vmatmul.bf16.gmra.mxu2 %v5541_v51  ;;  %7278 = vmatmul.bf16.gmra.mxu0 %v5776_v20  ;;  %v6871_v57 = vpop.f32.mrf.mxu3  ;;  %v5374_v51 = vshrl.u32 %v11726_v54, 16  ;;  %v5383_v20 = vrot.slane %v5381_v48, 1  ;;  %v10911_v54 = vadd.f32 %v10776_v2, %v10794_v30  ;;  %v4641_v48 = vld [vmem:[#allocation3 + $0x50] sm:$0x1] }
 0x3f8   : > { %v10897_v27 = vadd.f32 %v6871_v57, %v6783_v39  ;;  %v4581_v39 = vld [vmem:[#allocation3 + $0x80] sm:$0x1]  ;;  %v5778_v57 = vshrl.u32 %v10872_v43, 16  ;;  %v5713_v2 = vunpack.c.l.b16 %v4641_v48 }
 0x3f9   : > { %v5379_v0 = vor.u32 %v5378_v7, %v5374_v51  ;;  %v5254_v51 = vunpack.c.l.b16 %v4581_v39  ;;  %v10929_v39 = vadd.f32 %v10797_v28, %v10812_v45 }
 0x3fa   : > { %11727 = vst [vmem:[#allocation18_spill] sm:$0xff] %v10897_v27  ;;  %v6785_v32 = vpop.f32.mrf.mxu2  ;;  %v7002_v61 = vpop.f32.mrf.mxu1  ;;  %v5785_v27 = vshll.u32 %v10902_v22, 16  ;;  %v5783_v9 = vor.u32 %v5782_v58, %v5778_v57  ;;  %v8447_v22 = vld [vmem:[#allocation9 + $0x210] sm:$0xff]  ;;  %v10939_v57 = vld [vmem:[#allocation3 + $0x9c] sm:$0xff]  }
 0x3fb   : > { %v6786_v60 = vadd.f32 %v6785_v32, %v10697_v37  ;;  %v10914_v11 = vadd.f32 %v7002_v61, %v10652_v12  ;;  %v5542_v37 = vrot.slane %v8791_v33, 1  ;;  %v5543_v32 = vrot.slane %v10712_v63, 1  ;;  %7354 = vmatpush.bf16.msra.mxu1 %v8447_v22  ;;  %v10931_v22 = vpop.f32.mrf.mxu0 }
 0x3fc   : > { %7189 = vmatmul.bf16.gmra.mxu3 %v8755_v5  ;;  %v5384_v15 = vsel %vm1225_vm3, %v5379_v0, %v5383_v20  ;;  %v5787_v1 = vrot.slane %v5785_v27, 1  ;;  %v10923_v63 = vpack.c.b16 %v5254_v51, %v5254_v51  ;;  %v4648_v0 = vld [vmem:[#allocation3 + $0xa4] sm:$0x1]  ;;  %v10937_v20 = vpack.c.b16 %v5713_v2, %v5713_v2 }
 0x3fd   : > { %7041 = vmatmul.bf16.gmra.mxu1 %v5384_v15  ;;  %v5544_v30 = vsel %vm1482_vm4, %v5542_v37, %v5543_v32  ;;  %v5720_v27 = vunpack.c.l.b16 %v4648_v0  ;;  %v9249_v37 = vld [vmem:[#allocation3 + $0x9c] sm:$0xe] }
 0x3fe   : > { %v5788_v33 = vsel %vm1225_vm3, %v5783_v9, %v5787_v1  ;;  %11730 = vst [vmem:[#allocation35_spill] sm:$0xff] %v10937_v20  ;;  %v5393_v28 = vshll.u32 %v10923_v63, 16 }
 0x3ff   : > { %v6874_v5 = vpop.f32.mrf.mxu3  ;;  %v10944_v45 = vpack.c.b16 %v5720_v27, %v5720_v27  ;;  %v10957_v27 = vadd.f32 %v10823_v13, %v10828_v49  ;;  %v4642_v13 = vld [vmem:[#allocation3 + $0x5c] sm:$0x1]  ;;  %v11734_v49 = vld [vmem:[#allocation16_spill] sm:$0xff] }
 0x400   : > { %v10917_v7 = vadd.f32 %v6874_v5, %v6786_v60  ;;  %v10925_v60 = vld [vmem:[#allocation3 + $0x48] sm:$0xff]   ;;  %v9248_v5 = vld [vmem:[#allocation3 + $0x9c] sm:$0xf0]  ;;  %v5395_v48 = vrot.slane %v5393_v28, 1 }
 0x401   : > { %v5792_v1 = vshll.u32 %v10925_v60, 16  ;;  %v9250_v9 = vor.u32 %v9249_v37, %v9248_v5  ;;  %v5790_v2 = vshrl.u32 %v10925_v60, 16  ;;  %v6031_v0 = vrot.slane %v10944_v45, 1 }
 0x402   : > { %v6787_v18 = vpop.f32.mrf.mxu2  ;;  %v7004_v58 = vpop.f32.mrf.mxu1 }
 0x403   : > { %v6788_v12 = vadd.f32 %v6787_v18, %v10715_v24  ;;  %v10934_v24 = vadd.f32 %v7004_v58, %v10673_v55  ;;  %v5794_v18 = vrot.slane %v5792_v1, 1  ;;  %v5797_v55 = vshll.u32 %v10937_v20, 16 }
 0x404   : > { %v5400_v20 = vshll.u32 %v11734_v49, 16 }
 0x405   : > { %v5799_v1 = vrot.slane %v5797_v55, 1  ;;  %v11735_v55 = vld [vmem:[#allocation24_spill] sm:$0xff] }
 0x407   : > { %7105 = vmatmul.bf16.gmra.mxu2 %v5544_v30  ;;  %7283 = vmatmul.bf16.gmra.mxu0 %v5788_v33  ;;  %v6876_v61 = vpop.f32.mrf.mxu3  ;;  %v10950_v30 = vld [vmem:[#allocation3 + $0x54] sm:$0xff]   ;;  %v6030_v33 = vrot.slane %v9250_v9, 1 }
 0x408   : > { %v10941_v32 = vadd.f32 %v6876_v61, %v6788_v12  ;;  %v10952_v12 = vld [vmem:[#allocation3 + $0x54] sm:$0xf0] }
 0x409   : > { %11731 = vst [vmem:[#allocation36_spill] sm:$0xff] %v10952_v12  ;;  %v10963_v5 = vsel %vm1482_vm4, %v6030_v33, %v6031_v0  ;;  %v10969_v12 = vpop.f32.mrf.mxu0  ;;  %v10977_v33 = vadd.f32 %v10844_v6, %v10847_v31 }
 0x40a   : > { %v6790_v15 = vpop.f32.mrf.mxu2  ;;  %v7007_v58 = vpop.f32.mrf.mxu1  ;;  %11732 = vst [vmem:[#allocation37_spill] sm:$0xff] %v10963_v5  ;;  %v5802_v5 = vshrl.u32 %v10950_v30, 16 }
 0x40b   : > { %v6791_v51 = vadd.f32 %v6790_v15, %v10737_v25  ;;  %v10960_v61 = vadd.f32 %v7007_v58, %v10693_v38  ;;  %v5795_v25 = vor.u32 %v5794_v18, %v5790_v2  ;;  %v11733_v15 = vld [vmem:[#allocation21_spill] sm:$0xff] }
 0x40c   : > { %7194 = vmatmul.bf16.gmra.mxu3 %v10872_v43  ;;  %v5396_v28 = vsel %vm1225_vm3, %v11733_v15, %v5395_v48  ;;  %v5402_v15 = vrot.slane %v5400_v20, 1  ;;  %v4583_v20 = vld [vmem:[#allocation3 + $0x98] sm:$0x1] }
 0x40d   : > { %7046 = vmatmul.bf16.gmra.mxu1 %v5396_v28  ;;  %v5800_v18 = vsel %vm1225_vm3, %v5795_v25, %v5799_v1  ;;  %v8793_v28 = vld [vmem:[#allocation3 + $0x48] sm:$0xe]  ;;  %v5804_v25 = vshll.u32 %v10950_v30, 16  ;;  %v5398_v1 = vshrl.u32 %v11734_v49, 16 }
 0x40f   : > { %v6879_v43 = vpop.f32.mrf.mxu3 }
 0x410   : > { %v10965_v37 = vadd.f32 %v6879_v43, %v6791_v51  ;;  %v5714_v51 = vunpack.c.l.b16 %v4642_v13 }
 0x411   : > { %v10989_v6 = vpop.f32.mrf.mxu0 }
 0x412   : > { %v6792_v9 = vpop.f32.mrf.mxu2  ;;  %v7009_v2 = vpop.f32.mrf.mxu1  ;;  %11739 = vst [vmem:[#allocation24_spill] sm:$0xff] %v10989_v6 }
 0x413   : > { %v6793_v38 = vadd.f32 %v6792_v9, %v10754_v14  ;;  %v10980_v48 = vadd.f32 %v7009_v2, %v10705_v3  ;;  %v8792_v14 = vld [vmem:[#allocation3 + $0x48] sm:$0xf0]  ;;  %v11737_v9 = vld [vmem:[#allocation19_spill] sm:$0xff] }
 0x414   : > { %v5405_v13 = vshll.u32 %v11737_v9, 16  ;;  %v8794_v31 = vor.u32 %v8793_v28, %v8792_v14  ;;  %v5549_v14 = vrot.slane %v10783_v44, 1  ;;  %v11007_v44 = vld [vmem:[#allocation3 + $0x60] sm:$0xff]  }
 0x417   : > { %7110 = vmatmul.bf16.gmra.mxu2 %v11735_v55  ;;  %7288 = vmatmul.bf16.gmra.mxu0 %v5800_v18  ;;  %v6881_v0 = vpop.f32.mrf.mxu3  ;;  %v10987_v18 = vpack.c.b16 %v5714_v51, %v5714_v51  ;;  %v5806_v55 = vrot.slane %v5804_v25, 1  ;;  %v4643_v25 = vld [vmem:[#allocation3 + $0x68] sm:$0x1] }
 0x418   : > { %v10982_v58 = vadd.f32 %v6881_v0, %v6793_v38  ;;  %v5403_v38 = vor.u32 %v5402_v15, %v5398_v1  ;;  %v5407_v0 = vrot.slane %v5405_v13, 1  ;;  %v5256_v15 = vunpack.c.l.b16 %v4583_v20  ;;  %v8446_v1 = vld [vmem:[#allocation9 + $0x208] sm:$0xff] }
 0x419   : > { %11738 = vst [vmem:[#allocation16_spill] sm:$0xff] %v10987_v18  ;;  %v5809_v49 = vshll.u32 %v10987_v18, 16  ;;  %7355 = vmatpush.bf16.msra.mxu1 %v8446_v1 }
 0x41a   : > { %11736 = vst [vmem:[#allocation21_spill] sm:$0xff] %v10982_v58  ;;  %v6795_v43 = vpop.f32.mrf.mxu2  ;;  %v7012_v2 = vpop.f32.mrf.mxu1  ;;  %v5548_v58 = vrot.slane %v8794_v31, 1 }
 0x41b   : > { %v6796_v3 = vadd.f32 %v6795_v43, %v10770_v29  ;;  %v10996_v9 = vadd.f32 %v7012_v2, %v10730_v21  ;;  %v5408_v29 = vsel %vm1225_vm3, %v5403_v38, %v5407_v0  ;;  %v5807_v43 = vor.u32 %v5806_v55, %v5802_v5  ;;  %v11009_v38 = vpop.f32.mrf.mxu0  ;;  %v4650_v5 = vld [vmem:[#allocation3 + $0xbc] sm:$0x1] }
 0x41c   : > { %7199 = vmatmul.bf16.gmra.mxu3 %v10925_v60  ;;  %v5811_v13 = vrot.slane %v5809_v49, 1  ;;  %v5550_v18 = vsel %vm1482_vm4, %v5548_v58, %v5549_v14  ;;  %v11005_v2 = vpack.c.b16 %v5256_v15, %v5256_v15  ;;  %11741 = vst [vmem:[#allocation38_spill] sm:$0xff] %v11009_v38  ;;  %v5722_v20 = vunpack.c.l.b16 %v4650_v5  ;;  %v11015_v49 = vld [vmem:[#allocation3 + $0xb4] sm:$0xff]   ;;  %v11027_v5 = vld [vmem:[#allocation3 + $0x6c] sm:$0xff]  }
 0x41d   : > { %7051 = vmatmul.bf16.gmra.mxu1 %v5408_v29  ;;  %v9252_v14 = vld [vmem:[#allocation3 + $0xb4] sm:$0xe]  ;;  %v4644_v38 = vld [vmem:[#allocation3 + $0x74] sm:$0x1] }
 0x41e   : > { %v5812_v31 = vsel %vm1225_vm3, %v5807_v43, %v5811_v13  ;;  %v5417_v43 = vshll.u32 %v11005_v2, 16  ;;  %v11022_v15 = vpack.c.b16 %v5722_v20, %v5722_v20 }
 0x41f   : > { %v6884_v51 = vpop.f32.mrf.mxu3 }
 0x420   : > { %v10999_v28 = vadd.f32 %v6884_v51, %v6796_v3  ;;  %v5715_v3 = vunpack.c.l.b16 %v4643_v25  ;;  %v9251_v51 = vld [vmem:[#allocation3 + $0xb4] sm:$0xf0]  ;;  %v5419_v13 = vrot.slane %v5417_v43, 1  ;;  %v11748_v43 = vld [vmem:[#allocation25_spill] sm:$0xff] }
 0x421   : > { %v9253_v1 = vor.u32 %v9252_v14, %v9251_v51  ;;  %v4584_v51 = vld [vmem:[#allocation3 + $0xa4] sm:$0x1] }
 0x422   : > { %11740 = vst [vmem:[#allocation19_spill] sm:$0xff] %v10999_v28  ;;  %v6797_v60 = vpop.f32.mrf.mxu2  ;;  %v7014_v55 = vpop.f32.mrf.mxu1  ;;  %v5257_v28 = vunpack.c.l.b16 %v4584_v51  ;;  %v8795_v51 = vld [vmem:[#allocation3 + $0x60] sm:$0xf0] }
 0x423   : > { %v6798_v21 = vadd.f32 %v6797_v60, %v10790_v40  ;;  %v11012_v0 = vadd.f32 %v7014_v55, %v10747_v59  ;;  %v5816_v40 = vshll.u32 %v11007_v44, 16  ;;  %v5814_v55 = vshrl.u32 %v11007_v44, 16 }
 0x425   : > { %v5818_v25 = vrot.slane %v5816_v40, 1 }
 0x427   : > { %7115 = vmatmul.bf16.gmra.mxu2 %v5550_v18  ;;  %7293 = vmatmul.bf16.gmra.mxu0 %v5812_v31  ;;  %v6886_v58 = vpop.f32.mrf.mxu3  ;;  %v11020_v18 = vpack.c.b16 %v5715_v3, %v5715_v3  ;;  %v6037_v3 = vrot.slane %v11022_v15, 1 }
 0x428   : > { %v11017_v29 = vadd.f32 %v6886_v58, %v6798_v21  ;;  %v11029_v21 = vld [vmem:[#allocation3 + $0x6c] sm:$0xf0]  ;;  %v6036_v58 = vrot.slane %v9253_v1, 1 }
 0x429   : > { %11743 = vst [vmem:[#allocation40_spill] sm:$0xff] %v11020_v18  ;;  %v5821_v31 = vshll.u32 %v11020_v18, 16 }
 0x42a   : > { %11742 = vst [vmem:[#allocation39_spill] sm:$0xff] %v11017_v29  ;;  %v6800_v60 = vpop.f32.mrf.mxu2  ;;  %v7017_v20 = vpop.f32.mrf.mxu1  ;;  %v11039_v14 = vsel %vm1482_vm4, %v6036_v58, %v6037_v3  ;;  %v5716_v3 = vunpack.c.l.b16 %v4644_v38 }
 0x42b   : > { %v6801_v59 = vadd.f32 %v6800_v60, %v10810_v19  ;;  %11744 = vst [vmem:[#allocation41_spill] sm:$0xff] %v11029_v21  ;;  %v11033_v29 = vpop.f32.mrf.mxu0  ;;  %v11036_v40 = vadd.f32 %v7017_v20, %v10768_v42  ;;  %v5819_v19 = vor.u32 %v5818_v25, %v5814_v55  ;;  %v5420_v21 = vsel %vm1225_vm3, %v11748_v43, %v5419_v13  ;;  %v11750_v55 = vld [vmem:[#allocation15_spill] sm:$0xff] }
 0x42c   : > { %7204 = vmatmul.bf16.gmra.mxu3 %v10950_v30  ;;  %11745 = vst [vmem:[#allocation42_spill] sm:$0xff] %v11033_v29  ;;  %v5823_v18 = vrot.slane %v5821_v31, 1  ;;  %v11749_v29 = vld [vmem:[#allocation22_spill] sm:$0xff]  ;;  %v8796_v43 = vld [vmem:[#allocation3 + $0x60] sm:$0xe] }
 0x42d   : > { %11746 = vst [vmem:[#allocation43_spill] sm:$0xff] %v11039_v14  ;;  %7056 = vmatmul.bf16.gmra.mxu1 %v5420_v21  ;;  %v5424_v6 = vshll.u32 %v11749_v29, 16  ;;  %v8797_v38 = vor.u32 %v8796_v43, %v8795_v51  ;;  %v5555_v51 = vrot.slane %v10853_v35, 1 }
 0x42e   : > { %v5824_v25 = vsel %vm1225_vm3, %v5819_v19, %v5823_v18  ;;  %v5422_v19 = vshrl.u32 %v11749_v29, 16 }
 0x42f   : > { %v6889_v30 = vpop.f32.mrf.mxu3 }
 0x430   : > { %v11041_v60 = vadd.f32 %v6889_v30, %v6801_v59  ;;  %v11049_v59 = vpack.c.b16 %v5257_v28, %v5257_v28  ;;  %v5426_v30 = vrot.slane %v5424_v6, 1  ;;  %v4585_v6 = vld [vmem:[#allocation3 + $0xb0] sm:$0x1] }
 0x432   : > { %11747 = vst [vmem:[#allocation44_spill] sm:$0xff] %v11041_v60  ;;  %v6802_v1 = vpop.f32.mrf.mxu2  ;;  %v7019_v58 = vpop.f32.mrf.mxu1  ;;  %v5429_v28 = vshll.u32 %v11049_v59, 16 }
 0x433   : > { %v6803_v42 = vadd.f32 %v6802_v1, %v10826_v10  ;;  %v11052_v13 = vadd.f32 %v7019_v58, %v10787_v52  ;;  %v5828_v10 = vshll.u32 %v11027_v5, 16  ;;  %v11057_v18 = vpop.f32.mrf.mxu0  ;;  %v11061_v1 = vpack.c.b16 %v5716_v3, %v5716_v3 }
 0x434   : > { %v5431_v58 = vrot.slane %v5429_v28, 1  ;;  %v5554_v3 = vrot.slane %v8797_v38, 1 }
 0x435   : > { %11752 = vst [vmem:[#allocation22_spill] sm:$0xff] %v11061_v1  ;;  %v5833_v14 = vshll.u32 %v11061_v1, 16 }
 0x436   : > { %v5556_v38 = vsel %vm1482_vm4, %v5554_v3, %v5555_v51  ;;  %v11755_v51 = vld [vmem:[#allocation17_spill] sm:$0xff] }
 0x437   : > { %7120 = vmatmul.bf16.gmra.mxu2 %v11750_v55  ;;  %7298 = vmatmul.bf16.gmra.mxu0 %v5824_v25  ;;  %v6891_v31 = vpop.f32.mrf.mxu3  ;;  %v5830_v25 = vrot.slane %v5828_v10, 1  ;;  %v4645_v10 = vld [vmem:[#allocation3 + $0x80] sm:$0x1]  ;;  %v5835_v28 = vrot.slane %v5833_v14, 1 }
 0x438   : > { %v11054_v21 = vadd.f32 %v6891_v31, %v6803_v42  ;;  %v5427_v42 = vor.u32 %v5426_v30, %v5422_v19  ;;  %v5826_v31 = vshrl.u32 %v11027_v5, 16  ;;  %v5258_v30 = vunpack.c.l.b16 %v4585_v6  ;;  %v8445_v19 = vld [vmem:[#allocation9 + $0x200] sm:$0xff] }
 0x439   : > { %v5717_v1 = vunpack.c.l.b16 %v4645_v10  ;;  %7356 = vmatpush.bf16.msra.mxu1 %v8445_v19 }
 0x43a   : > { %11751 = vst [vmem:[#allocation25_spill] sm:$0xff] %v11054_v21  ;;  %v6805_v20 = vpop.f32.mrf.mxu2  ;;  %v7022_v55 = vpop.f32.mrf.mxu1 }
 0x43b   : > { %v6806_v52 = vadd.f32 %v6805_v20, %v10836_v23  ;;  %v11068_v29 = vadd.f32 %v7022_v55, %v10804_v47  ;;  %v5432_v23 = vsel %vm1225_vm3, %v5427_v42, %v5431_v58  ;;  %v5831_v20 = vor.u32 %v5830_v25, %v5826_v31  ;;  %v11074_v60 = vpop.f32.mrf.mxu0  ;;  %v8758_v42 = vld [vmem:[#allocation3 + $0x78] sm:$0xff]  }
 0x43c   : > { %7209 = vmatmul.bf16.gmra.mxu3 %v11007_v44  ;;  %v5840_v55 = vshll.u32 %v8758_v42, 16  ;;  %v11084_v58 = vpack.c.b16 %v5717_v1, %v5717_v1  ;;  %v5838_v19 = vshrl.u32 %v8758_v42, 16  ;;  %v11095_v1 = vld [vmem:[#allocation3 + $0x84] sm:$0xff]  }
 0x43d   : > { %11753 = vst [vmem:[#allocation15_spill] sm:$0xff] %v11068_v29  ;;  %7061 = vmatmul.bf16.gmra.mxu1 %v5432_v23  ;;  %v5836_v35 = vsel %vm1225_vm3, %v5831_v20, %v5835_v28  ;;  %v11097_v28 = vld [vmem:[#allocation3 + $0x84] sm:$0xf0]  ;;  %v4646_v29 = vld [vmem:[#allocation3 + $0x8c] sm:$0x1] }
 0x43e   : > { %v5845_v20 = vshll.u32 %v11084_v58, 16 }
 0x43f   : > { %v6894_v21 = vpop.f32.mrf.mxu3 }
 0x440   : > { %v11071_v43 = vadd.f32 %v6894_v21, %v6806_v52  ;;  %v11079_v21 = vpack.c.b16 %v5258_v30, %v5258_v30  ;;  %v9064_v52 = vld [vmem:[#allocation3 + $0x6c] sm:$0xe] }
 0x441   : > { %v9065_v23 = vor.u32 %v9064_v52, %v11755_v51 }
 0x442   : > { %v6807_v44 = vpop.f32.mrf.mxu2  ;;  %v7024_v25 = vpop.f32.mrf.mxu1  ;;  %v5441_v3 = vshll.u32 %v11079_v21, 16 }
 0x443   : > { %v6808_v47 = vadd.f32 %v6807_v44, %v10855_v34  ;;  %v11082_v6 = vadd.f32 %v7024_v25, %v10821_v16  ;;  %v5842_v44 = vrot.slane %v5840_v55, 1  ;;  %v11093_v10 = vpop.f32.mrf.mxu0  ;;  %v5557_v52 = vrot.slane %v9065_v23, 1  ;;  %v4586_v55 = vld [vmem:[#allocation3 + $0xbc] sm:$0x1] }
 0x444   : > { %v5443_v16 = vrot.slane %v5441_v3, 1  ;;  %v5558_v3 = vrot.slane %v10891_v17, 1  ;;  %v5259_v51 = vunpack.c.l.b16 %v4586_v55 }
 0x445   : > { %11754 = vst [vmem:[#allocation45_spill] sm:$0xff] %v11082_v6  ;;  %v5843_v25 = vor.u32 %v5842_v44, %v5838_v19 }
 0x446   : > { %v5559_v6 = vsel %vm1482_vm4, %v5557_v52, %v5558_v3 }
 0x447   : > { %7125 = vmatmul.bf16.gmra.mxu2 %v5556_v38  ;;  %7303 = vmatmul.bf16.gmra.mxu0 %v5836_v35  ;;  %v6896_v14 = vpop.f32.mrf.mxu3 }
 0x448   : > { %v11086_v31 = vadd.f32 %v6896_v14, %v6808_v47  ;;  %v5847_v14 = vrot.slane %v5845_v20, 1 }
 0x44a   : > { %v6810_v34 = vpop.f32.mrf.mxu2  ;;  %v7027_v47 = vpop.f32.mrf.mxu1  ;;  %v5848_v44 = vsel %vm1225_vm3, %v5843_v25, %v5847_v14  ;;  %v5852_v25 = vshll.u32 %v11095_v1, 16 }
 0x44b   : > { %v6811_v30 = vadd.f32 %v6810_v34, %v10876_v46  ;;  %v11100_v38 = vadd.f32 %v7027_v47, %v10842_v36  ;;  %v5444_v46 = vsel %vm1225_vm3, %v10739_v4, %v5443_v16  ;;  %v11757_v36 = vld [vmem:[#allocation26_spill] sm:$0xff]  ;;  %v5718_v4 = vunpack.c.l.b16 %v4646_v29  ;;  %v11113_v16 = vpop.f32.mrf.mxu0 }
 0x44c   : > { %7214 = vmatmul.bf16.gmra.mxu3 %v11027_v5  ;;  %v5448_v47 = vshll.u32 %v11757_v36, 16  ;;  %v5446_v14 = vshrl.u32 %v11757_v36, 16 }
 0x44d   : > { %11756 = vst [vmem:[#allocation17_spill] sm:$0xff] %v11100_v38  ;;  %7066 = vmatmul.bf16.gmra.mxu1 %v5444_v46  ;;  %v8798_v46 = vld [vmem:[#allocation3 + $0x78] sm:$0xf0] }
 0x44e   : > { %v5450_v55 = vrot.slane %v5448_v47, 1  ;;  %v5850_v47 = vshrl.u32 %v11095_v1, 16 }
 0x44f   : > { %v6899_v35 = vpop.f32.mrf.mxu3 }
 0x450   : > { %v11102_v5 = vadd.f32 %v6899_v35, %v6811_v30  ;;  %v11111_v30 = vpack.c.b16 %v5259_v51, %v5259_v51  ;;  %v5854_v51 = vrot.slane %v5852_v25, 1 }
 0x452   : > { %v6812_v34 = vpop.f32.mrf.mxu2  ;;  %v7029_v20 = vpop.f32.mrf.mxu1  ;;  %v5453_v29 = vshll.u32 %v11111_v30, 16 }
 0x453   : > { %v6813_v23 = vadd.f32 %v6812_v34, %v10889_v50  ;;  %v11116_v17 = vadd.f32 %v7029_v20, %v10859_v56  ;;  %v8799_v50 = vld [vmem:[#allocation3 + $0x78] sm:$0xe]  ;;  %v11124_v34 = vpack.c.b16 %v5718_v4, %v5718_v4  ;;  %v5451_v56 = vor.u32 %v5450_v55, %v5446_v14  ;;  %v11135_v25 = vpop.f32.mrf.mxu0 }
 0x454   : > { %v8800_v3 = vor.u32 %v8799_v50, %v8798_v46  ;;  %v5455_v20 = vrot.slane %v5453_v29, 1  ;;  %v5855_v46 = vor.u32 %v5854_v51, %v5850_v47  ;;  %v4647_v29 = vld [vmem:[#allocation3 + $0x98] sm:$0x1] }
 0x455   : > { %11758 = vst [vmem:[#allocation26_spill] sm:$0xff] %v11116_v17 }
 0x456   : > { %v5560_v36 = vrot.slane %v8800_v3, 1  ;;  %v5460_v3 = vshll.u32 %v10781_v41, 16 }
 0x457   : > { %7130 = vmatmul.bf16.gmra.mxu2 %v5559_v6  ;;  %7308 = vmatmul.bf16.gmra.mxu0 %v5848_v44  ;;  %v6901_v19 = vpop.f32.mrf.mxu3 }
 0x458   : > { %v11118_v35 = vadd.f32 %v6901_v19, %v6813_v23  ;;  %v4587_v23 = vld [vmem:[#allocation3 + $0xc8] sm:$0x1]  ;;  %v5857_v19 = vshll.u32 %v11124_v34, 16  ;;  %v5462_v47 = vrot.slane %v5460_v3, 1 }
 0x459   : > { %v5260_v50 = vunpack.c.l.b16 %v4587_v23 }
 0x45a   : > { %v7091_v52 = vpop.f32.mrf.mxu2  ;;  %v7032_v44 = vpop.f32.mrf.mxu1  ;;  %v5859_v38 = vrot.slane %v5857_v19, 1 }
 0x45b   : > { %v7092_v6 = vadd.f32 %v7091_v52, %v10914_v11  ;;  %v11129_v17 = vadd.f32 %v7032_v44, %v10895_v26  ;;  %v5561_v52 = vrot.slane %v10923_v63, 1  ;;  %v8759_v44 = vld [vmem:[#allocation3 + $0x90] sm:$0xff]  }
 0x45c   : > { %7219 = vmatmul.bf16.gmra.mxu3 %v8758_v42  ;;  %v5456_v42 = vsel %vm1225_vm3, %v5451_v56, %v5455_v20  ;;  %v5860_v63 = vsel %vm1225_vm3, %v5855_v46, %v5859_v38  ;;  %v5719_v56 = vunpack.c.l.b16 %v4647_v29 }
 0x45d   : > { %7071 = vmatmul.bf16.gmra.mxu1 %v5456_v42  ;;  %v5562_v26 = vsel %vm1482_vm4, %v5560_v36, %v5561_v52  ;;  %v5458_v42 = vshrl.u32 %v10781_v41, 16 }
 0x45e   : > { %v11149_v52 = vpack.c.b16 %v5719_v56, %v5719_v56 }
 0x45f   : > { %v7180_v11 = vpop.f32.mrf.mxu3 }
 0x460   : > { %v11132_v4 = vadd.f32 %v7180_v11, %v7092_v6  ;;  %v11141_v6 = vpack.c.b16 %v5260_v50, %v5260_v50  ;;  %v5463_v50 = vor.u32 %v5462_v47, %v5458_v42  ;;  %v5869_v29 = vshll.u32 %v11149_v52, 16  ;;  %v8810_v47 = vld [vmem:[#allocation3 + $0x18] sm:$0xf0]  ;;  %v11759_v42 = vld [vmem:[#allocation20_spill] sm:$0xff] }
 0x462   : > { %v7093_v55 = vpop.f32.mrf.mxu2  ;;  %v7034_v51 = vpop.f32.mrf.mxu1  ;;  %v5465_v36 = vshll.u32 %v11141_v6, 16 }
 0x463   : > { %v7094_v14 = vadd.f32 %v7093_v55, %v10934_v24  ;;  %v11144_v23 = vadd.f32 %v7034_v51, %v10911_v54  ;;  %v5864_v24 = vshll.u32 %v8759_v44, 16  ;;  %v11153_v55 = vpop.f32.mrf.mxu0 }
 0x464   : > { %v5467_v54 = vrot.slane %v5465_v36, 1 }
 0x465   : > { %v5866_v46 = vrot.slane %v5864_v24, 1 }
 0x466   : > { %v5468_v41 = vsel %vm1225_vm3, %v5463_v50, %v5467_v54 }
 0x467   : > { %7135 = vmatmul.bf16.gmra.mxu2 %v5562_v26  ;;  %7313 = vmatmul.bf16.gmra.mxu0 %v5860_v63  ;;  %v7182_v20 = vpop.f32.mrf.mxu3 }
 0x468   : > { %v11146_v19 = vadd.f32 %v7182_v20, %v7094_v14  ;;  %v5862_v14 = vshrl.u32 %v8759_v44, 16  ;;  %v5871_v20 = vrot.slane %v5869_v29, 1 }
 0x46a   : > { %v7096_v11 = vpop.f32.mrf.mxu2  ;;  %v7037_v26 = vpop.f32.mrf.mxu1  ;;  %v5867_v56 = vor.u32 %v5866_v46, %v5862_v14 }
 0x46b   : > { %v7097_v38 = vadd.f32 %v7096_v11, %v10960_v61  ;;  %v11158_v3 = vadd.f32 %v7037_v26, %v10929_v39  ;;  %v8811_v11 = vld [vmem:[#allocation3 + $0x18] sm:$0xe]  ;;  %v11165_v36 = vpop.f32.mrf.mxu0  ;;  %v8801_v26 = vld [vmem:[#allocation3 + $0x90] sm:$0xf0] }
 0x46c   : > { %7224 = vmatmul.bf16.gmra.mxu3 %v11095_v1  ;;  %v5872_v1 = vsel %vm1225_vm3, %v5867_v56, %v5871_v20  ;;  %v8812_v50 = vor.u32 %v8811_v11, %v8810_v47  ;;  %v5881_v47 = vshll.u32 %v10944_v45, 16  ;;  %v4649_v45 = vld [vmem:[#allocation3 + $0xb0] sm:$0x1] }
 0x46d   : > { %7076 = vmatmul.bf16.gmra.mxu1 %v5468_v41  ;;  %v11761_v41 = vld [vmem:[#allocation28_spill] sm:$0xff] }
 0x46e   : > { %v5997_v56 = vrot.slane %v8812_v50, 1 }
 0x46f   : > { %v7185_v63 = vpop.f32.mrf.mxu3 }
 0x470   : > { %v11160_v51 = vadd.f32 %v7185_v63, %v7097_v38  ;;  %v8802_v63 = vld [vmem:[#allocation3 + $0x90] sm:$0xe] }
 0x471   : > { %v8803_v20 = vor.u32 %v8802_v63, %v8801_v26  ;;  %v9067_v26 = vld [vmem:[#allocation3 + $0x24] sm:$0xe] }
 0x472   : > { %v7098_v61 = vpop.f32.mrf.mxu2  ;;  %v7039_v39 = vpop.f32.mrf.mxu1 }
 0x473   : > { %v7099_v24 = vadd.f32 %v7098_v61, %v10980_v48  ;;  %v11169_v38 = vadd.f32 %v7039_v39, %v10957_v27  ;;  %v5876_v48 = vshll.u32 %v10939_v57, 16  ;;  %v5998_v61 = vrot.slane %v11761_v41, 1 }
 0x474   : > { %v5874_v27 = vshrl.u32 %v10939_v57, 16  ;;  %v5883_v41 = vrot.slane %v5881_v47, 1 }
 0x475   : > { %11760 = vst [vmem:[#allocation20_spill] sm:$0xff] %v11169_v38 }
 0x477   : > { %7140 = vmatmul.bf16.gmra.mxu2 %v11759_v42  ;;  %7318 = vmatmul.bf16.gmra.mxu0 %v5872_v1  ;;  %v7187_v46 = vpop.f32.mrf.mxu3  ;;  %v5878_v1 = vrot.slane %v5876_v48, 1 }
 0x478   : > { %v11171_v54 = vadd.f32 %v7187_v46, %v7099_v24  ;;  %v11178_v24 = vpop.f32.mrf.mxu0 }
 0x479   : > { %v5879_v48 = vor.u32 %v5878_v1, %v5874_v27  ;;  %v11764_v27 = vld [vmem:[#allocation29_spill] sm:$0xff] }
 0x47a   : > { %v7101_v29 = vpop.f32.mrf.mxu2  ;;  %v7042_v42 = vpop.f32.mrf.mxu1 }
 0x47b   : > { %v7102_v14 = vadd.f32 %v7101_v29, %v10996_v9  ;;  %v11181_v11 = vadd.f32 %v7042_v42, %v10977_v33  ;;  %v5999_v9 = vsel %vm1482_vm4, %v5997_v56, %v5998_v61  ;;  %v5566_v29 = vrot.slane %v8803_v20, 1  ;;  %v9070_v42 = vld [vmem:[#allocation3 + $0x9c] sm:$0xe]  ;;  %v8760_v61 = vld [vmem:[#allocation3 + $0xa8] sm:$0xff]  }
 0x47c   : > { %7229 = vmatmul.bf16.gmra.mxu3 %v8759_v44  ;;  %v5567_v44 = vrot.slane %v11005_v2, 1  ;;  %v5884_v33 = vsel %vm1225_vm3, %v5879_v48, %v5883_v41 }
 0x47d   : > { %11762 = vst [vmem:[#allocation28_spill] sm:$0xff] %v11181_v11  ;;  %7357 = vmatmul.bf16.vlgmr.msra.gmra.mxu1 %v5999_v9  ;;  %v5721_v11 = vunpack.c.l.b16 %v4649_v45  ;;  %v5888_v9 = vshll.u32 %v8760_v61, 16 }
 0x47e   : > { %v5568_v38 = vsel %vm1482_vm4, %v5566_v29, %v5567_v44 }
 0x47f   : > { %v7190_v39 = vpop.f32.mrf.mxu3  ;;  %v5890_v45 = vrot.slane %v5888_v9, 1 }
 0x480   : > { %v11184_v46 = vadd.f32 %v7190_v39, %v7102_v14  ;;  %v11763_v14 = vld [vmem:[#allocation32_spill] sm:$0xff]  ;;  %v11199_v29 = vpop.f32.mrf.mxu0 }
 0x481   : > { %v6956_v56 = vadd.f32 %v11763_v14, %v10861_v53 }
 0x482   : > { %v7103_v50 = vpop.f32.mrf.mxu2  ;;  %v7044_v2 = vpop.f32.mrf.mxu1 }
 0x483   : > { %v7104_v63 = vadd.f32 %v7103_v50, %v11012_v0  ;;  %v11192_v20 = vadd.f32 %v7044_v2, %v6956_v56  ;;  %v9068_v0 = vor.u32 %v9067_v26, %v11764_v27  ;;  %v11197_v50 = vpack.c.b16 %v5721_v11, %v5721_v11 }
 0x484   : > { %v6959_v26 = vadd.f32 %v10883_v62, %v10878_v8  ;;  %v5886_v11 = vshrl.u32 %v8760_v61, 16  ;;  %v5570_v8 = vrot.slane %v11049_v59, 1 }
 0x485   : > { %v6000_v53 = vrot.slane %v9068_v0, 1  ;;  %v5893_v41 = vshll.u32 %v11197_v50, 16 }
 0x487   : > { %7145 = vmatmul.bf16.gmra.mxu2 %v5568_v38  ;;  %7323 = vmatmul.bf16.gmra.mxu0 %v5884_v33  ;;  %v7192_v1 = vpop.f32.mrf.mxu3  ;;  %v11765_v38 = vld [vmem:[#allocation23_spill] sm:$0xff]  ;;  %v5895_v0 = vrot.slane %v5893_v41, 1 }
 0x488   : > { %v11195_v39 = vadd.f32 %v7192_v1, %v7104_v63  ;;  %v9071_v48 = vor.u32 %v9070_v42, %v11765_v38  ;;  %v11766_v63 = vld [vmem:[#allocation30_spill] sm:$0xff]  ;;  %v11215_v62 = vpop.f32.mrf.mxu0 }
 0x489   : > { %v6001_v33 = vrot.slane %v11766_v63, 1  ;;  %v11768_v63 = vld [vmem:[#allocation34_spill] sm:$0xff] }
 0x48a   : > { %v7106_v47 = vpop.f32.mrf.mxu2  ;;  %v7047_v14 = vpop.f32.mrf.mxu1  ;;  %v5569_v1 = vrot.slane %v9071_v48, 1  ;;  %v8814_v48 = vld [vmem:[#allocation3 + $0x30] sm:$0xe] }
 0x48b   : > { %v7107_v44 = vadd.f32 %v7106_v47, %v11036_v40  ;;  %v11208_v56 = vadd.f32 %v7047_v14, %v6959_v26  ;;  %v6002_v40 = vsel %vm1482_vm4, %v6000_v53, %v6001_v33  ;;  %v11767_v26 = vld [vmem:[#allocation18_spill] sm:$0xff]  ;;  %v5900_v14 = vshll.u32 %v11015_v49, 16 }
 0x48c   : > { %7234 = vmatmul.bf16.gmra.mxu3 %v10939_v57  ;;  %v5891_v57 = vor.u32 %v5890_v45, %v5886_v11  ;;  %v5571_v9 = vsel %vm1482_vm4, %v5569_v1, %v5570_v8  ;;  %v6961_v53 = vadd.f32 %v11768_v63, %v11767_v26  ;;  %v8804_v11 = vld [vmem:[#allocation3 + $0xa8] sm:$0xf0]  ;;  %v11769_v1 = vld [vmem:[#allocation31_spill] sm:$0xff]  ;;  %v5905_v26 = vshll.u32 %v11022_v15, 16 }
 0x48d   : > { %7362 = vmatmul.bf16.gmra.mxu1 %v6002_v40  ;;  %v6966_v15 = vadd.f32 %v10969_v12, %v10941_v32  ;;  %v11773_v12 = vld [vmem:[#allocation24_spill] sm:$0xff] }
 0x48e   : > { %v5896_v38 = vsel %vm1225_vm3, %v5891_v57, %v5895_v0  ;;  %v5902_v0 = vrot.slane %v5900_v14, 1 }
 0x48f   : > { %v7195_v2 = vpop.f32.mrf.mxu3 }
 0x490   : > { %v11211_v27 = vadd.f32 %v7195_v2, %v7107_v44  ;;  %v8813_v44 = vld [vmem:[#allocation3 + $0x30] sm:$0xf0]  ;;  %v8805_v2 = vld [vmem:[#allocation3 + $0xa8] sm:$0xe]  ;;  %v11227_v8 = vpop.f32.mrf.mxu0 }
 0x491   : > { %v8815_v59 = vor.u32 %v8814_v48, %v8813_v44  ;;  %v8806_v57 = vor.u32 %v8805_v2, %v8804_v11  ;;  %v5573_v44 = vrot.slane %v11079_v21, 1  ;;  %v8761_v2 = vld [vmem:[#allocation3 + $0xc0] sm:$0xff]  }
 0x492   : > { %v7108_v42 = vpop.f32.mrf.mxu2  ;;  %v7049_v45 = vpop.f32.mrf.mxu1 }
 0x493   : > { %v7109_v47 = vadd.f32 %v7108_v42, %v11052_v13  ;;  %v11221_v41 = vadd.f32 %v7049_v45, %v6961_v53  ;;  %v6003_v40 = vrot.slane %v8815_v59, 1  ;;  %v6004_v42 = vrot.slane %v11769_v1, 1  ;;  %v9073_v45 = vld [vmem:[#allocation3 + $0x3c] sm:$0xe] }
 0x494   : > { %v5907_v59 = vrot.slane %v5905_v26, 1 }
 0x495   : > { %v6005_v53 = vsel %vm1482_vm4, %v6003_v40, %v6004_v42  ;;  %v11771_v42 = vld [vmem:[#allocation33_spill] sm:$0xff] }
 0x497   : > { %7150 = vmatmul.bf16.gmra.mxu2 %v5571_v9  ;;  %7328 = vmatmul.bf16.gmra.mxu0 %v5896_v38  ;;  %v7197_v33 = vpop.f32.mrf.mxu3  ;;  %v6964_v9 = vadd.f32 %v10931_v22, %v10917_v7  ;;  %v9076_v22 = vld [vmem:[#allocation3 + $0xb4] sm:$0xe] }
 0x498   : > { %v11223_v13 = vadd.f32 %v7197_v33, %v7109_v47  ;;  %v5898_v47 = vshrl.u32 %v11015_v49, 16  ;;  %v4651_v33 = vld [vmem:[#allocation3 + $0xc8] sm:$0x1]  ;;  %v11241_v1 = vpop.f32.mrf.mxu0 }
 0x499   : > { %v5723_v11 = vunpack.c.l.b16 %v4651_v33 }
 0x49a   : > { %v7052_v38 = vpop.f32.mrf.mxu1  ;;  %v5903_v48 = vor.u32 %v5902_v0, %v5898_v47  ;;  %v5912_v0 = vshll.u32 %v8761_v2, 16  ;;  %v11772_v47 = vld [vmem:[#allocation27_spill] sm:$0xff] }
 0x49b   : > { %v11233_v63 = vadd.f32 %v7052_v38, %v6964_v9  ;;  %v11246_v9 = vpack.c.b16 %v5723_v11, %v5723_v11  ;;  %v9077_v26 = vor.u32 %v9076_v22, %v11772_v47  ;;  %v4635_v11 = vld [vmem:[#allocation3 + $0xcc] sm:$0xff]   ;;  %v11777_v47 = vld [vmem:[#allocation38_spill] sm:$0xff] }
 0x49c   : > { %7239 = vmatmul.bf16.gmra.mxu3 %v8760_v61  ;;  %v5572_v61 = vrot.slane %v8806_v57, 1  ;;  %v5908_v7 = vsel %vm1225_vm3, %v5903_v48, %v5907_v59  ;;  %v9074_v57 = vor.u32 %v9073_v45, %v11771_v42  ;;  %v5910_v59 = vshrl.u32 %v8761_v2, 16 }
 0x49d   : > { %7367 = vmatmul.bf16.gmra.mxu1 %v6005_v53  ;;  %v5914_v53 = vrot.slane %v5912_v0, 1  ;;  %v5917_v32 = vshll.u32 %v11246_v9, 16  ;;  %v5576_v42 = vrot.slane %v11111_v30, 1  ;;  %v11776_v0 = vld [vmem:[#allocation21_spill] sm:$0xff]  ;;  %v8808_v30 = vld [vmem:[#allocation3 + $0xc0] sm:$0xe] }
 0x49e   : > { %v5574_v14 = vsel %vm1482_vm4, %v5572_v61, %v5573_v44  ;;  %v6006_v38 = vrot.slane %v9074_v57, 1  ;;  %v6969_v61 = vadd.f32 %v11773_v12, %v10965_v37  ;;  %v11774_v44 = vld [vmem:[#allocation14_spill] sm:$0xff]  ;;  %v6971_v12 = vadd.f32 %v11777_v47, %v11776_v0 }
 0x49f   : > { %v6007_v48 = vrot.slane %v11774_v44, 1  ;;  %v5915_v22 = vor.u32 %v5914_v53, %v5910_v59  ;;  %v5924_v44 = vshll.u32 %v4635_v11, 16  ;;  %v8807_v59 = vld [vmem:[#allocation3 + $0xc0] sm:$0xf0] }
 0x4a0   : > { %v8809_v0 = vor.u32 %v8808_v30, %v8807_v59 }
 0x4a1   : > { %v6008_v45 = vsel %vm1482_vm4, %v6006_v38, %v6007_v48  ;;  %v8816_v38 = vld [vmem:[#allocation3 + $0x48] sm:$0xf0] }
 0x4a2   : > { %v7054_v40 = vpop.f32.mrf.mxu1 }
 0x4a3   : > { %v11243_v21 = vadd.f32 %v7054_v40, %v6966_v15  ;;  %v11257_v15 = vld [vmem:[#allocation3 + $0xcc] sm:$0xf0]  ;;  %v11259_v40 = vpop.f32.mrf.mxu0 }
 0x4a5   : > { %11770 = vst [vmem:[#allocation32_spill] sm:$0xff] %v11243_v21  ;;  %v5579_v21 = vrot.slane %v11141_v6, 1 }
 0x4a7   : > { %7155 = vmatmul.bf16.gmra.mxu2 %v5574_v14  ;;  %7333 = vmatmul.bf16.gmra.mxu0 %v5908_v7  ;;  %v5575_v7 = vrot.slane %v9077_v26, 1  ;;  %v8817_v26 = vld [vmem:[#allocation3 + $0x48] sm:$0xe] }
 0x4a8   : > { %v8818_v48 = vor.u32 %v8817_v26, %v8816_v38 }
 0x4a9   : > { %v5577_v37 = vsel %vm1482_vm4, %v5575_v7, %v5576_v42  ;;  %v5922_v7 = vshrl.u32 %v4635_v11, 16 }
 0x4aa   : > { %v7057_v33 = vpop.f32.mrf.mxu1  ;;  %v6009_v42 = vrot.slane %v8818_v48, 1 }
 0x4ab   : > { %v11254_v14 = vadd.f32 %v7057_v33, %v6969_v61 }
 0x4ac   : > { %7244 = vmatmul.bf16.gmra.mxu3 %v11015_v49  ;;  %v5919_v49 = vrot.slane %v5917_v32, 1  ;;  %v4652_v32 = vld [vmem:[#allocation3 + $0xd4] sm:$0x1] }
 0x4ad   : > { %11775 = vst [vmem:[#allocation29_spill] sm:$0xff] %v11254_v14  ;;  %7372 = vmatmul.bf16.gmra.mxu1 %v6008_v45  ;;  %v5724_v33 = vunpack.c.l.b16 %v4652_v32 }
 0x4ae   : > { %v5920_v57 = vsel %vm1225_vm3, %v5915_v22, %v5919_v49  ;;  %v5926_v22 = vrot.slane %v5924_v44, 1  ;;  %v11270_v49 = vpop.f32.mrf.mxu0  ;;  %v5578_v44 = vrot.slane %v8809_v0, 1 }
 0x4af   : > { %v11268_v45 = vpack.c.b16 %v5724_v33, %v5724_v33 }
 0x4b0   : > { %v5927_v26 = vor.u32 %v5926_v22, %v5922_v7  ;;  %v5580_v59 = vsel %vm1482_vm4, %v5578_v44, %v5579_v21  ;;  %v11783_v22 = vld [vmem:[#allocation36_spill] sm:$0xff]  ;;  %v8820_v44 = vld [vmem:[#allocation3 + $0x60] sm:$0xe] }
 0x4b1   : > { %v5929_v47 = vshll.u32 %v11268_v45, 16 }
 0x4b2   : > { %v7059_v61 = vpop.f32.mrf.mxu1 }
 0x4b3   : > { %v11266_v53 = vadd.f32 %v7059_v61, %v6971_v12  ;;  %v11780_v12 = vld [vmem:[#allocation19_spill] sm:$0xff]  ;;  %v11781_v61 = vld [vmem:[#allocation42_spill] sm:$0xff]  ;;  %v5931_v32 = vrot.slane %v5929_v47, 1 }
 0x4b5   : > { %11778 = vst [vmem:[#allocation23_spill] sm:$0xff] %v11266_v53  ;;  %v6974_v53 = vadd.f32 %v11781_v61, %v11780_v12  ;;  %v5932_v48 = vsel %vm1225_vm3, %v5927_v26, %v5931_v32  ;;  %v11785_v61 = vld [vmem:[#allocation16_spill] sm:$0xff] }
 0x4b6   : > { %v11282_v30 = vpop.f32.mrf.mxu0  ;;  %v6013_v21 = vrot.slane %v11785_v61, 1 }
 0x4b7   : > { %7160 = vmatmul.bf16.gmra.mxu2 %v5577_v37  ;;  %7338 = vmatmul.bf16.gmra.mxu0 %v5920_v57  ;;  %v11779_v37 = vld [vmem:[#allocation35_spill] sm:$0xff] }
 0x4b8   : > { %v6010_v57 = vrot.slane %v11779_v37, 1  ;;  %v11782_v37 = vld [vmem:[#allocation39_spill] sm:$0xff] }
 0x4b9   : > { %v6976_v12 = vadd.f32 %v11057_v18, %v11782_v37  ;;  %v11786_v18 = vld [vmem:[#allocation25_spill] sm:$0xff]  ;;  %v11787_v37 = vld [vmem:[#allocation40_spill] sm:$0xff] }
 0x4ba   : > { %v7062_v38 = vpop.f32.mrf.mxu1  ;;  %v6011_v33 = vsel %vm1482_vm4, %v6009_v42, %v6010_v57  ;;  %v11784_v57 = vld [vmem:[#allocation44_spill] sm:$0xff]  ;;  %v6981_v32 = vadd.f32 %v11093_v10, %v11786_v18  ;;  %v6986_v10 = vadd.f32 %v11135_v25, %v11086_v31  ;;  %v6991_v31 = vadd.f32 %v11165_v36, %v11118_v35  ;;  %v8822_v25 = vld [vmem:[#allocation3 + $0x78] sm:$0xf0] }
 0x4bb   : > { %v11276_v14 = vadd.f32 %v7062_v38, %v6974_v53  ;;  %v6979_v0 = vadd.f32 %v11074_v60, %v11784_v57  ;;  %v6016_v60 = vrot.slane %v11787_v37, 1  ;;  %v11331_v36 = vld [vmem:[%s11636_s6] ss:$0 sm:$0xff] }
 0x4bc   : > { %7249 = vmatmul.bf16.gmra.mxu3 %v8761_v2  ;;  %v9079_v2 = vld [vmem:[#allocation3 + $0x54] sm:$0xe] }
 0x4bd   : > { %7377 = vmatmul.bf16.gmra.mxu1 %v6011_v33  ;;  %v9080_v42 = vor.u32 %v9079_v2, %v11783_v22  ;;  %v8819_v33 = vld [vmem:[#allocation3 + $0x60] sm:$0xf0] }
 0x4bf   : > { %v6012_v6 = vrot.slane %v9080_v42, 1 }
 0x4c1   : > { %v6014_v26 = vsel %vm1482_vm4, %v6012_v6, %v6013_v21  ;;  %v9082_v6 = vld [vmem:[#allocation3 + $0x6c] sm:$0xe] }
 0x4c2   : > { %v7064_v53 = vpop.f32.mrf.mxu1 }
 0x4c3   : > { %v11286_v7 = vadd.f32 %v7064_v53, %v6976_v12  ;;  %v6984_v12 = vadd.f32 %v11113_v16, %v11071_v43  ;;  %v11789_v16 = vld [vmem:[#allocation22_spill] sm:$0xff] }
 0x4c4   : > { %v6019_v18 = vrot.slane %v11789_v16, 1  ;;  %v11348_v16 = vpop.f32.mrf.mxu3 }
 0x4c7   : > { %7165 = vmatmul.bf16.gmra.mxu2 %v5580_v59  ;;  %7343 = vmatmul.bf16.gmra.mxu0 %v5932_v48 }
 0x4ca   : > { %v7067_v47 = vpop.f32.mrf.mxu1 }
 0x4cb   : > { %v11292_v38 = vadd.f32 %v7067_v47, %v6979_v0  ;;  %v11788_v47 = vld [vmem:[#allocation41_spill] sm:$0xff] }
 0x4cc   : > { %7254 = vmatmul.bf16.gmra.mxu3 %v4635_v11  ;;  %v8821_v11 = vor.u32 %v8820_v44, %v8819_v33  ;;  %v9083_v61 = vor.u32 %v9082_v6, %v11788_v47  ;;  %v8823_v44 = vld [vmem:[#allocation3 + $0x78] sm:$0xe] }
 0x4cd   : > { %7382 = vmatmul.bf16.gmra.mxu1 %v6014_v26  ;;  %v6989_v26 = vadd.f32 %v11153_v55, %v11102_v5  ;;  %v6022_v5 = vrot.slane %v11084_v58, 1  ;;  %v7270_v55 = vadd.f32 %v11178_v24, %v11132_v4  ;;  %v11336_v24 = vpop.f32.mrf.mxu2  ;;  %v8932_v6 = vld [vmem:[%s9421_s13] sm:$0xff] }
 0x4ce   : > { %v6015_v59 = vrot.slane %v8821_v11, 1  ;;  %v6018_v21 = vrot.slane %v9083_v61, 1 }
 0x4d0   : > { %v6017_v42 = vsel %vm1482_vm4, %v6015_v59, %v6016_v60  ;;  %v6020_v33 = vsel %vm1482_vm4, %v6018_v21, %v6019_v18  ;;  %v8824_v59 = vor.u32 %v8823_v44, %v8822_v25  ;;  %v11326_v60 = vld [vmem:[%s11635_s5] ss:$0 sm:$0xff] }
 0x4d2   : > { %v7069_v48 = vpop.f32.mrf.mxu1  ;;  %v6021_v37 = vrot.slane %v8824_v59, 1 }
 0x4d3   : > { %v11297_v2 = vadd.f32 %v7069_v48, %v6981_v32 }
 0x4d5   : > { %v11356_v25 = vpop.f32.mrf.mxu2 }
 0x4da   : > { %v7072_v53 = vpop.f32.mrf.mxu1 }
 0x4db   : > { %v11302_v22 = vadd.f32 %v7072_v53, %v6984_v12  ;;  %v6023_v53 = vsel %vm1482_vm4, %v6021_v37, %v6022_v5 }
 0x4dd   : > { %7387 = vmatmul.bf16.gmra.mxu1 %v6017_v42  ;;  %v9085_v42 = vld [vmem:[#allocation3 + $0x84] sm:$0xe] }
 0x4e2   : > { %v7074_v57 = vpop.f32.mrf.mxu1 }
 0x4e3   : > { %v11307_v0 = vadd.f32 %v7074_v57, %v6986_v10  ;;  %v7272_v57 = vadd.f32 %v11199_v29, %v11146_v19  ;;  %v11351_v19 = vpop.f32.mrf.mxu0  ;;  %v8933_v29 = vld [vmem:[%s9421_s13 + $0x8] sm:$0xff] }
 0x4ea   : > { %v7077_v43 = vpop.f32.mrf.mxu1 }
 0x4eb   : > { %v11313_v32 = vadd.f32 %v7077_v43, %v6989_v26  ;;  %v9086_v26 = vor.u32 %v9085_v42, %v11097_v28  ;;  %v7275_v28 = vadd.f32 %v11215_v62, %v11160_v51  ;;  %v7277_v62 = vadd.f32 %v11227_v8, %v11171_v54  ;;  %v8935_v8 = vld [vmem:[%s9421_s13 + $0x18] sm:$0xff] }
 0x4ec   : > { %v6028_v54 = vrot.slane %v11149_v52, 1 }
 0x4ed   : > { %7392 = vmatmul.bf16.gmra.mxu1 %v6020_v33  ;;  %v6024_v33 = vrot.slane %v9086_v26, 1 }
 0x4f2   : > { %v7079_v48 = vpop.f32.mrf.mxu1 }
 0x4f3   : > { %v11318_v11 = vadd.f32 %v7079_v48, %v6991_v31  ;;  %v6025_v48 = vrot.slane %v11124_v34, 1  ;;  %v8825_v34 = vld [vmem:[#allocation3 + $0x90] sm:$0xf0] }
 0x4f5   : > { %v6026_v5 = vsel %vm1482_vm4, %v6024_v33, %v6025_v48 }
 0x4fa   : > { %v7358_v12 = vpop.f32.mrf.mxu1 }
 0x4fb   : > { %v7359_v35 = vadd.f32 %v7358_v12, %v7270_v55 }
 0x4fd   : > { %v7442_v58 = vmul.f32 %v11326_v60, %v7359_v35  ;;  %7397 = vmatmul.bf16.gmra.mxu1 %v6023_v53  ;;  %v11363_v35 = vpop.f32.mrf.mxu3  ;;  %v8934_v53 = vld [vmem:[%s9421_s13 + $0x10] sm:$0xff] }
 0x4ff   : > { %v7478_v4 = vadd.f32 %v11331_v36, %v7442_v58  ;;  %v8826_v58 = vld [vmem:[#allocation3 + $0x90] sm:$0xe] }
 0x501   : > { %v7510_v10 = vadd.f32 %v8932_v6, %v7478_v4  ;;  %v11368_v4 = vpop.f32.mrf.mxu0 }
 0x502   : > { %v7360_v47 = vpop.f32.mrf.mxu1 }
 0x503   : > { %v7542_v61 = vmax.f32 %v7510_v10, 0.0  ;;  %v7361_v21 = vadd.f32 %v7360_v47, %v7272_v57  ;;  %v11370_v57 = vpop.f32.mrf.mxu2  ;;  %v8827_v47 = vor.u32 %v8826_v58, %v8825_v34 }
 0x505   : > { %7574 = vst [vmem:[%s11344_s21] sm:$0xff] %v7542_v61  ;;  %v7443_v43 = vmul.f32 %v11326_v60, %v7361_v21  ;;  %v6027_v26 = vrot.slane %v8827_v47, 1  ;;  %v11379_v33 = vpop.f32.mrf.mxu3 }
 0x507   : > { %v7479_v18 = vadd.f32 %v11331_v36, %v7443_v43 }
 0x509   : > { %v7511_v31 = vadd.f32 %v8933_v29, %v7479_v18  ;;  %v7280_v18 = vadd.f32 %v11241_v1, %v11184_v46  ;;  %v11382_v48 = vpop.f32.mrf.mxu0  ;;  %v8936_v46 = vld [vmem:[%s9421_s13 + $0x20] sm:$0xff] }
 0x50a   : > { %v7363_v44 = vpop.f32.mrf.mxu1 }
 0x50b   : > { %v7543_v59 = vmax.f32 %v7511_v31, 0.0  ;;  %v7364_v37 = vadd.f32 %v7363_v44, %v7275_v28  ;;  %v6029_v44 = vsel %vm1482_vm4, %v6027_v26, %v6028_v54  ;;  %v11386_v52 = vpop.f32.mrf.mxu2  ;;  %v11790_v26 = vld [vmem:[#allocation37_spill] sm:$0xff] }
 0x50d   : > { %7575 = vst [vmem:[%s11344_s21 + $0x8] sm:$0xff] %v7543_v59  ;;  %v7444_v55 = vmul.f32 %v11326_v60, %v7364_v37  ;;  %7402 = vmatmul.bf16.gmra.mxu1 %v6026_v5  ;;  %v7282_v5 = vadd.f32 %v11259_v40, %v11195_v39  ;;  %v7285_v39 = vadd.f32 %v11270_v49, %v11211_v27 }
 0x50e   : > { %v7287_v49 = vadd.f32 %v11282_v30, %v11223_v13  ;;  %v6034_v30 = vrot.slane %v11197_v50, 1 }
 0x50f   : > { %v7480_v12 = vadd.f32 %v11331_v36, %v7444_v55 }
 0x511   : > { %v7512_v51 = vadd.f32 %v8934_v53, %v7480_v12  ;;  %v11396_v34 = vpop.f32.mrf.mxu0 }
 0x512   : > { %v7365_v42 = vpop.f32.mrf.mxu1 }
 0x513   : > { %v7544_v6 = vmax.f32 %v7512_v51, 0.0  ;;  %v7366_v10 = vadd.f32 %v7365_v42, %v7277_v62  ;;  %v11392_v51 = vpop.f32.mrf.mxu3  ;;  %v11399_v42 = vpop.f32.mrf.mxu2 }
 0x515   : > { %7576 = vst [vmem:[%s11344_s21 + $0x10] sm:$0xff] %v7544_v6  ;;  %v7445_v61 = vmul.f32 %v11326_v60, %v7366_v10  ;;  %v8937_v6 = vld [vmem:[%s9421_s13 + $0x28] sm:$0xff] }
 0x517   : > { %v7481_v21 = vadd.f32 %v11331_v36, %v7445_v61 }
 0x519   : > { %v7513_v43 = vadd.f32 %v8935_v8, %v7481_v21 }
 0x51a   : > { %v7368_v29 = vpop.f32.mrf.mxu1 }
 0x51b   : > { %v7545_v31 = vmax.f32 %v7513_v43, 0.0  ;;  %v7369_v28 = vadd.f32 %v7368_v29, %v7280_v18  ;;  %v11407_v54 = vpop.f32.mrf.mxu3  ;;  %v11791_v43 = vld [vmem:[#allocation15_spill] sm:$0xff]  ;;  %v11412_v29 = vpop.f32.mrf.mxu0 }
 0x51c   : > { %v7112_v18 = vadd.f32 %v11336_v24, %v11791_v43  ;;  %v11793_v43 = vld [vmem:[#allocation17_spill] sm:$0xff] }
 0x51d   : > { %7577 = vst [vmem:[%s11344_s21 + $0x18] sm:$0xff] %v7545_v31  ;;  %v7446_v59 = vmul.f32 %v11326_v60, %v7369_v28  ;;  %7407 = vmatmul.bf16.gmra.mxu1 %v6029_v44  ;;  %v8938_v31 = vld [vmem:[%s9421_s13 + $0x30] sm:$0xff] }
 0x51e   : > { %v8828_v28 = vld [vmem:[#allocation3 + $0xa8] sm:$0xf0]  ;;  %v8829_v44 = vld [vmem:[#allocation3 + $0xa8] sm:$0xe] }
 0x51f   : > { %v7482_v37 = vadd.f32 %v11331_v36, %v7446_v59  ;;  %v11417_v59 = vpop.f32.mrf.mxu2 }
 0x521   : > { %v7514_v1 = vadd.f32 %v8936_v46, %v7482_v37 }
 0x522   : > { %v7370_v55 = vpop.f32.mrf.mxu1 }
 0x523   : > { %v7546_v12 = vmax.f32 %v7514_v1, 0.0  ;;  %v7371_v53 = vadd.f32 %v7370_v55, %v7282_v5  ;;  %v8830_v5 = vor.u32 %v8829_v44, %v8828_v28  ;;  %v7201_v55 = vadd.f32 %v11348_v16, %v7112_v18  ;;  %v8940_v18 = vld [vmem:[%s9421_s13 + $0x40] sm:$0xff] }
 0x525   : > { %7578 = vst [vmem:[%s11344_s21 + $0x20] sm:$0xff] %v7546_v12  ;;  %v7447_v62 = vmul.f32 %v11326_v60, %v7371_v53  ;;  %v11423_v53 = vpop.f32.mrf.mxu3  ;;  %v6033_v13 = vrot.slane %v8830_v5, 1 }
 0x527   : > { %v7483_v58 = vadd.f32 %v11331_v36, %v7447_v62  ;;  %v11792_v62 = vld [vmem:[#allocation45_spill] sm:$0xff] }
 0x529   : > { %v7515_v10 = vadd.f32 %v8937_v6, %v7483_v58  ;;  %v7114_v58 = vadd.f32 %v11356_v25, %v11792_v62  ;;  %v8939_v6 = vld [vmem:[%s9421_s13 + $0x38] sm:$0xff] }
 0x52a   : > { %v7373_v40 = vpop.f32.mrf.mxu1 }
 0x52b   : > { %v7547_v47 = vmax.f32 %v7515_v10, 0.0  ;;  %v7374_v61 = vadd.f32 %v7373_v40, %v7285_v39  ;;  %v7290_v39 = vadd.f32 %v11351_v19, %v7201_v55  ;;  %v11430_v40 = vpop.f32.mrf.mxu0  ;;  %v7203_v50 = vadd.f32 %v11363_v35, %v7114_v58  ;;  %v11794_v55 = vld [vmem:[#allocation26_spill] sm:$0xff] }
 0x52c   : > { %v7117_v19 = vadd.f32 %v11370_v57, %v11793_v43 }
 0x52d   : > { %7579 = vst [vmem:[%s11344_s21 + $0x28] sm:$0xff] %v7547_v47  ;;  %v7448_v21 = vmul.f32 %v11326_v60, %v7374_v61  ;;  %7412 = vmatmul.bf16.gmra.mxu1 %v11790_v26  ;;  %v6035_v26 = vsel %vm1482_vm4, %v6033_v13, %v6034_v30 }
 0x52e   : > { %v7206_v35 = vadd.f32 %v11379_v33, %v7117_v19 }
 0x52f   : > { %v7484_v8 = vadd.f32 %v11331_v36, %v7448_v21  ;;  %v11432_v21 = vpop.f32.mrf.mxu2 }
 0x530   : > { %v7295_v13 = vadd.f32 %v11382_v48, %v7206_v35  ;;  %v7122_v48 = vadd.f32 %v11399_v42, %v11129_v17  ;;  %v8943_v35 = vld [vmem:[%s9421_s13 + $0x58] sm:$0xff] }
 0x531   : > { %v7516_v27 = vadd.f32 %v8938_v31, %v7484_v8 }
 0x532   : > { %v7375_v37 = vpop.f32.mrf.mxu1 }
 0x533   : > { %v7548_v46 = vmax.f32 %v7516_v27, 0.0  ;;  %v7376_v1 = vadd.f32 %v7375_v37, %v7287_v49  ;;  %v7292_v27 = vadd.f32 %v11368_v4, %v7203_v50  ;;  %v11443_v49 = vpop.f32.mrf.mxu3  ;;  %v7119_v4 = vadd.f32 %v11386_v52, %v11794_v55 }
 0x535   : > { %7580 = vst [vmem:[%s11344_s21 + $0x30] sm:$0xff] %v7548_v46  ;;  %v7449_v24 = vmul.f32 %v11326_v60, %v7376_v1  ;;  %v11446_v46 = vpop.f32.mrf.mxu0 }
 0x537   : > { %v7485_v12 = vadd.f32 %v11331_v36, %v7449_v24  ;;  %v11450_v5 = vpop.f32.mrf.mxu2  ;;  %v8941_v24 = vld [vmem:[%s9421_s13 + $0x48] sm:$0xff] }
 0x539   : > { %v7517_v10 = vadd.f32 %v8939_v6, %v7485_v12  ;;  %v7208_v6 = vadd.f32 %v11392_v51, %v7119_v4  ;;  %v8831_v51 = vld [vmem:[#allocation3 + $0xc0] sm:$0xf0] }
 0x53a   : > { %v7378_v16 = vpop.f32.mrf.mxu1 }
 0x53b   : > { %v7549_v47 = vmax.f32 %v7517_v10, 0.0  ;;  %v7379_v61 = vadd.f32 %v7378_v16, %v7290_v39  ;;  %v11457_v58 = vpop.f32.mrf.mxu3  ;;  %v11795_v39 = vld [vmem:[#allocation43_spill] sm:$0xff]  ;;  %v7297_v50 = vadd.f32 %v11396_v34, %v7208_v6  ;;  %v7124_v34 = vadd.f32 %v11417_v59, %v11144_v23 }
 0x53d   : > { %7581 = vst [vmem:[%s11344_s21 + $0x38] sm:$0xff] %v7549_v47  ;;  %v7450_v25 = vmul.f32 %v11326_v60, %v7379_v61  ;;  %7417 = vmatmul.bf16.gmra.mxu1 %v6035_v26  ;;  %v11463_v16 = vpop.f32.mrf.mxu0  ;;  %v8942_v61 = vld [vmem:[%s9421_s13 + $0x50] sm:$0xff] }
 0x53f   : > { %v7486_v8 = vadd.f32 %v11331_v36, %v7450_v25  ;;  %v11466_v47 = vpop.f32.mrf.mxu2  ;;  %v8832_v25 = vld [vmem:[#allocation3 + $0xc0] sm:$0xe] }
 0x541   : > { %v7518_v31 = vadd.f32 %v8940_v18, %v7486_v8  ;;  %v8833_v18 = vor.u32 %v8832_v25, %v8831_v51  ;;  %v11796_v25 = vld [vmem:[#allocation20_spill] sm:$0xff] }
 0x542   : > { %v7380_v28 = vpop.f32.mrf.mxu1 }
 0x543   : > { %v7550_v44 = vmax.f32 %v7518_v31, 0.0  ;;  %v7381_v37 = vadd.f32 %v7380_v28, %v7292_v27  ;;  %v7211_v31 = vadd.f32 %v11407_v54, %v7122_v48  ;;  %v7220_v28 = vpop.f32.mrf.mxu3  ;;  %v6039_v42 = vrot.slane %v8833_v18, 1 }
 0x545   : > { %7582 = vst [vmem:[%s11344_s21 + $0x40] sm:$0xff] %v7550_v44  ;;  %v7451_v1 = vmul.f32 %v11326_v60, %v7381_v37  ;;  %v6040_v44 = vrot.slane %v11246_v9, 1  ;;  %v11479_v37 = vpop.f32.mrf.mxu0  ;;  %v7300_v54 = vadd.f32 %v11412_v29, %v7211_v31  ;;  %v7127_v29 = vadd.f32 %v11432_v21, %v11158_v3 }
 0x546   : > { %v6043_v3 = vrot.slane %v11268_v45, 1 }
 0x547   : > { %v7487_v57 = vadd.f32 %v11331_v36, %v7451_v1 }
 0x549   : > { %v7519_v12 = vadd.f32 %v8941_v24, %v7487_v57  ;;  %v7133_v57 = vpop.f32.mrf.mxu2 }
 0x54a   : > { %v7383_v30 = vpop.f32.mrf.mxu1 }
 0x54b   : > { %v7551_v62 = vmax.f32 %v7519_v12, 0.0  ;;  %v7384_v33 = vadd.f32 %v7383_v30, %v7295_v13  ;;  %v9088_v12 = vld [vmem:[#allocation3 + $0xcc] sm:$0xe]  ;;  %v6041_v13 = vsel %vm1482_vm4, %v6039_v42, %v6040_v44  ;;  %v7213_v30 = vadd.f32 %v11423_v53, %v7124_v34  ;;  %v7222_v59 = vpop.f32.mrf.mxu3 }
 0x54c   : > { %v11797_v34 = vld [vmem:[#allocation28_spill] sm:$0xff] }
 0x54d   : > { %7583 = vst [vmem:[%s11344_s21 + $0x48] sm:$0xff] %v7551_v62  ;;  %v7452_v10 = vmul.f32 %v11326_v60, %v7384_v33  ;;  %7422 = vmatmul.bf16.gmra.mxu1 %v11795_v39  ;;  %v8944_v62 = vld [vmem:[%s9421_s13 + $0x60] sm:$0xff]  ;;  %v7302_v6 = vadd.f32 %v11430_v40, %v7213_v30  ;;  %v9089_v39 = vor.u32 %v9088_v12, %v11257_v15  ;;  %v7311_v53 = vpop.f32.mrf.mxu0 }
 0x54e   : > { %v7129_v40 = vadd.f32 %v11450_v5, %v11796_v25 }
 0x54f   : > { %v7488_v52 = vadd.f32 %v11331_v36, %v7452_v10  ;;  %v6042_v51 = vrot.slane %v9089_v39, 1 }
 0x551   : > { %v7520_v26 = vadd.f32 %v8942_v61, %v7488_v52  ;;  %v7136_v61 = vpop.f32.mrf.mxu2 }
 0x552   : > { %v7385_v8 = vpop.f32.mrf.mxu1 }
 0x553   : > { %v7552_v43 = vmax.f32 %v7520_v26, 0.0  ;;  %v7386_v19 = vadd.f32 %v7385_v8, %v7297_v50  ;;  %v7216_v26 = vadd.f32 %v11443_v49, %v7127_v29  ;;  %v8945_v8 = vld [vmem:[%s9421_s13 + $0x68] sm:$0xff]  ;;  %v6044_v49 = vsel %vm1482_vm4, %v6042_v51, %v6043_v3  ;;  %v8947_v29 = vld [vmem:[%s9421_s13 + $0x78] sm:$0xff] }
 0x555   : > { %7584 = vst [vmem:[%s11344_s21 + $0x50] sm:$0xff] %v7552_v43  ;;  %v7453_v27 = vmul.f32 %v11326_v60, %v7386_v19  ;;  %v7305_v43 = vadd.f32 %v11446_v46, %v7216_v26  ;;  %v7225_v19 = vpop.f32.mrf.mxu3  ;;  %v7314_v45 = vpop.f32.mrf.mxu0  ;;  %v7132_v46 = vadd.f32 %v11466_v47, %v11797_v34  ;;  %v7134_v47 = vadd.f32 %v7133_v57, %v11192_v20  ;;  %v8948_v20 = vld [vmem:[%s9421_s13 + $0x80] sm:$0xff] }
 0x556   : > { %v7137_v26 = vadd.f32 %v7136_v61, %v11208_v56  ;;  %v8949_v56 = vld [vmem:[%s9421_s13 + $0x88] sm:$0xff] }
 0x557   : > { %v7489_v17 = vadd.f32 %v11331_v36, %v7453_v27  ;;  %v7221_v12 = vadd.f32 %v7220_v28, %v7132_v46  ;;  %v7223_v39 = vadd.f32 %v7222_v59, %v7134_v47  ;;  %v8950_v46 = vld [vmem:[%s9421_s13 + $0x90] sm:$0xff] }
 0x559   : > { %v7521_v1 = vadd.f32 %v8943_v35, %v7489_v17  ;;  %v7218_v17 = vadd.f32 %v11457_v58, %v7129_v40  ;;  %v7138_v5 = vpop.f32.mrf.mxu2  ;;  %v8946_v35 = vld [vmem:[%s9421_s13 + $0x70] sm:$0xff]  ;;  %v7312_v51 = vadd.f32 %v7311_v53, %v7223_v39  ;;  %v7226_v40 = vadd.f32 %v7225_v19, %v7137_v26  ;;  %v8952_v26 = vld [vmem:[%s9421_s13 + $0xa0] sm:$0xff] }
 0x55a   : > { %v7388_v55 = vpop.f32.mrf.mxu1 }
 0x55b   : > { %v7553_v4 = vmax.f32 %v7521_v1, 0.0  ;;  %v7389_v24 = vadd.f32 %v7388_v55, %v7300_v54  ;;  %v7307_v54 = vadd.f32 %v11463_v16, %v7218_v17  ;;  %v7310_v16 = vadd.f32 %v11479_v37, %v7221_v12 }
 0x55d   : > { %7585 = vst [vmem:[%s11344_s21 + $0x58] sm:$0xff] %v7553_v4  ;;  %v7454_v23 = vmul.f32 %v11326_v60, %v7389_v24  ;;  %7427 = vmatmul.bf16.gmra.mxu1 %v6041_v13  ;;  %v7227_v24 = vpop.f32.mrf.mxu3  ;;  %v7316_v30 = vpop.f32.mrf.mxu0 }
 0x55f   : > { %v7490_v9 = vadd.f32 %v11331_v36, %v7454_v23 }
 0x561   : > { %v7522_v33 = vadd.f32 %v8944_v62, %v7490_v9  ;;  %v7141_v9 = vpop.f32.mrf.mxu2 }
 0x562   : > { %v7390_v10 = vpop.f32.mrf.mxu1  ;;  %v7142_v34 = vadd.f32 %v7141_v9, %v11233_v63  ;;  %v8951_v63 = vld [vmem:[%s9421_s13 + $0x98] sm:$0xff] }
 0x563   : > { %v7554_v52 = vmax.f32 %v7522_v33, 0.0  ;;  %v7391_v48 = vadd.f32 %v7390_v10, %v7302_v6 }
 0x565   : > { %7586 = vst [vmem:[%s11344_s21 + $0x60] sm:$0xff] %v7554_v52  ;;  %v7455_v50 = vmul.f32 %v11326_v60, %v7391_v48  ;;  %v7230_v52 = vpop.f32.mrf.mxu3 }
 0x567   : > { %v7491_v21 = vadd.f32 %v11331_v36, %v7455_v50  ;;  %v7319_v50 = vpop.f32.mrf.mxu0 }
 0x569   : > { %v7523_v15 = vadd.f32 %v8945_v8, %v7491_v21  ;;  %v7143_v3 = vpop.f32.mrf.mxu2 }
 0x56a   : > { %v7393_v18 = vpop.f32.mrf.mxu1 }
 0x56b   : > { %v7555_v31 = vmax.f32 %v7523_v15, 0.0  ;;  %v7394_v27 = vadd.f32 %v7393_v18, %v7305_v43  ;;  %v7139_v43 = vadd.f32 %v7138_v5, %v11221_v41  ;;  %v7315_v18 = vadd.f32 %v7314_v45, %v7226_v40 }
 0x56d   : > { %7587 = vst [vmem:[%s11344_s21 + $0x68] sm:$0xff] %v7555_v31  ;;  %v7456_v42 = vmul.f32 %v11326_v60, %v7394_v27  ;;  %7432 = vmatmul.bf16.gmra.mxu1 %v6044_v49  ;;  %v7232_v15 = vpop.f32.mrf.mxu3 }
 0x56f   : > { %v7492_v44 = vadd.f32 %v11331_v36, %v7456_v42  ;;  %v7321_v53 = vpop.f32.mrf.mxu0  ;;  %v7228_v42 = vadd.f32 %v7227_v24, %v7139_v43  ;;  %v8953_v43 = vld [vmem:[%s9421_s13 + $0xa8] sm:$0xff] }
 0x571   : > { %v7524_v1 = vadd.f32 %v8946_v35, %v7492_v44  ;;  %v7146_v17 = vpop.f32.mrf.mxu2  ;;  %v7317_v5 = vadd.f32 %v7316_v30, %v7228_v42 }
 0x572   : > { %v7395_v55 = vpop.f32.mrf.mxu1 }
 0x573   : > { %v7556_v4 = vmax.f32 %v7524_v1, 0.0  ;;  %v7396_v58 = vadd.f32 %v7395_v55, %v7307_v54  ;;  %v7231_v55 = vadd.f32 %v7230_v52, %v7142_v34  ;;  %v11799_v52 = vld [vmem:[#allocation29_spill] sm:$0xff]  ;;  %v8954_v34 = vld [vmem:[%s9421_s13 + $0xb0] sm:$0xff] }
 0x575   : > { %7588 = vst [vmem:[%s11344_s21 + $0x70] sm:$0xff] %v7556_v4  ;;  %v7457_v13 = vmul.f32 %v11326_v60, %v7396_v58  ;;  %v7235_v35 = vpop.f32.mrf.mxu3  ;;  %v7320_v47 = vadd.f32 %v7319_v50, %v7231_v55 }
 0x577   : > { %v7493_v23 = vadd.f32 %v11331_v36, %v7457_v13  ;;  %v7324_v4 = vpop.f32.mrf.mxu0  ;;  %v11798_v13 = vld [vmem:[#allocation32_spill] sm:$0xff] }
 0x579   : > { %v7525_v62 = vadd.f32 %v8947_v29, %v7493_v23  ;;  %v7148_v24 = vpop.f32.mrf.mxu2  ;;  %v7144_v23 = vadd.f32 %v7143_v3, %v11798_v13 }
 0x57a   : > { %v7398_v33 = vpop.f32.mrf.mxu1 }
 0x57b   : > { %v7557_v6 = vmax.f32 %v7525_v62, 0.0  ;;  %v7399_v10 = vadd.f32 %v7398_v33, %v7310_v16  ;;  %v7233_v33 = vadd.f32 %v7232_v15, %v7144_v23 }
 0x57d   : > { %7589 = vst [vmem:[%s11344_s21 + $0x78] sm:$0xff] %v7557_v6  ;;  %v7458_v28 = vmul.f32 %v11326_v60, %v7399_v10  ;;  %v7237_v16 = vpop.f32.mrf.mxu3 }
 0x57f   : > { %v7494_v48 = vadd.f32 %v11331_v36, %v7458_v28  ;;  %v7326_v10 = vpop.f32.mrf.mxu0 }
 0x581   : > { %v7526_v57 = vadd.f32 %v8948_v20, %v7494_v48  ;;  %v7151_v28 = vpop.f32.mrf.mxu2  ;;  %v7147_v48 = vadd.f32 %v7146_v17, %v11799_v52 }
 0x582   : > { %v7400_v37 = vpop.f32.mrf.mxu1 }
 0x583   : > { %v7558_v21 = vmax.f32 %v7526_v57, 0.0  ;;  %v7401_v25 = vadd.f32 %v7400_v37, %v7312_v51  ;;  %v7322_v57 = vadd.f32 %v7321_v53, %v7233_v33  ;;  %v7236_v37 = vadd.f32 %v7235_v35, %v7147_v48 }
 0x585   : > { %7590 = vst [vmem:[%s11344_s21 + $0x80] sm:$0xff] %v7558_v21  ;;  %v7459_v59 = vmul.f32 %v11326_v60, %v7401_v25  ;;  %v7240_v25 = vpop.f32.mrf.mxu3 }
 0x587   : > { %v7495_v8 = vadd.f32 %v11331_v36, %v7459_v59  ;;  %v11800_v59 = vld [vmem:[#allocation23_spill] sm:$0xff]  ;;  %v7329_v15 = vpop.f32.mrf.mxu0 }
 0x589   : > { %v7527_v61 = vadd.f32 %v8949_v56, %v7495_v8  ;;  %v7149_v8 = vadd.f32 %v7148_v24, %v11800_v59 }
 0x58a   : > { %v7403_v49 = vpop.f32.mrf.mxu1 }
 0x58b   : > { %v7559_v31 = vmax.f32 %v7527_v61, 0.0  ;;  %v7404_v27 = vadd.f32 %v7403_v49, %v7315_v18  ;;  %v7325_v61 = vadd.f32 %v7324_v4, %v7236_v37  ;;  %v7153_v18 = vpop.f32.mrf.mxu2 }
 0x58c   : > { %v7154_v24 = vadd.f32 %v7153_v18, %v11286_v7  ;;  %v8956_v7 = vld [vmem:[%s9421_s13 + $0xc0] sm:$0xff] }
 0x58d   : > { %7591 = vst [vmem:[%s11344_s21 + $0x88] sm:$0xff] %v7559_v31  ;;  %v7460_v19 = vmul.f32 %v11326_v60, %v7404_v27  ;;  %v7238_v27 = vadd.f32 %v7237_v16, %v7149_v8 }
 0x58f   : > { %v7496_v44 = vadd.f32 %v11331_v36, %v7460_v19  ;;  %v7242_v19 = vpop.f32.mrf.mxu3  ;;  %v7331_v35 = vpop.f32.mrf.mxu0 }
 0x591   : > { %v7528_v41 = vadd.f32 %v8950_v46, %v7496_v44  ;;  %v7152_v44 = vadd.f32 %v7151_v28, %v11276_v14 }
 0x592   : > { %v7405_v45 = vpop.f32.mrf.mxu1 }
 0x593   : > { %v7560_v1 = vmax.f32 %v7528_v41, 0.0  ;;  %v7406_v54 = vadd.f32 %v7405_v45, %v7317_v5  ;;  %v7327_v41 = vadd.f32 %v7326_v10, %v7238_v27  ;;  %v7241_v55 = vadd.f32 %v7240_v25, %v7152_v44 }
 0x595   : > { %7592 = vst [vmem:[%s11344_s21 + $0x90] sm:$0xff] %v7560_v1  ;;  %v7461_v58 = vmul.f32 %v11326_v60, %v7406_v54  ;;  %v7156_v54 = vpop.f32.mrf.mxu2  ;;  %v7330_v13 = vadd.f32 %v7329_v15, %v7241_v55 }
 0x597   : > { %v7497_v12 = vadd.f32 %v11331_v36, %v7461_v58  ;;  %v7245_v23 = vpop.f32.mrf.mxu3 }
 0x599   : > { %v7529_v9 = vadd.f32 %v8951_v63, %v7497_v12  ;;  %v8955_v12 = vld [vmem:[%s9421_s13 + $0xb8] sm:$0xff] }
 0x59a   : > { %v7408_v30 = vpop.f32.mrf.mxu1 }
 0x59b   : > { %v7561_v29 = vmax.f32 %v7529_v9, 0.0  ;;  %v7409_v62 = vadd.f32 %v7408_v30, %v7320_v47  ;;  %v7243_v30 = vadd.f32 %v7242_v19, %v7154_v24 }
 0x59d   : > { %7593 = vst [vmem:[%s11344_s21 + $0x98] sm:$0xff] %v7561_v29  ;;  %v7462_v6 = vmul.f32 %v11326_v60, %v7409_v62  ;;  %v7334_v29 = vpop.f32.mrf.mxu0  ;;  %v7158_v16 = vpop.f32.mrf.mxu2 }
 0x59e   : > { %v7159_v37 = vadd.f32 %v7158_v16, %v11297_v2 }
 0x59f   : > { %v7498_v39 = vadd.f32 %v11331_v36, %v7462_v6  ;;  %v7157_v6 = vadd.f32 %v7156_v54, %v11292_v38  ;;  %v8957_v38 = vld [vmem:[%s9421_s13 + $0xc8] sm:$0xff] }
 0x5a1   : > { %v7530_v20 = vadd.f32 %v8952_v26, %v7498_v39  ;;  %v7332_v39 = vadd.f32 %v7331_v35, %v7243_v30  ;;  %v7247_v26 = vpop.f32.mrf.mxu3  ;;  %v8959_v35 = vld [vmem:[%s9421_s13 + $0xd8] sm:$0xff] }
 0x5a2   : > { %v7410_v50 = vpop.f32.mrf.mxu1  ;;  %v7248_v15 = vadd.f32 %v7247_v26, %v7159_v37 }
 0x5a3   : > { %v7562_v51 = vmax.f32 %v7530_v20, 0.0  ;;  %v7411_v3 = vadd.f32 %v7410_v50, %v7322_v57  ;;  %v7246_v20 = vadd.f32 %v7245_v23, %v7157_v6 }
 0x5a5   : > { %7594 = vst [vmem:[%s11344_s21 + $0xa0] sm:$0xff] %v7562_v51  ;;  %v7463_v21 = vmul.f32 %v11326_v60, %v7411_v3  ;;  %v7336_v50 = vpop.f32.mrf.mxu0  ;;  %v7161_v3 = vpop.f32.mrf.mxu2  ;;  %v7335_v25 = vadd.f32 %v7334_v29, %v7246_v20 }
 0x5a7   : > { %v7499_v40 = vadd.f32 %v11331_v36, %v7463_v21 }
 0x5a9   : > { %v7531_v56 = vadd.f32 %v8953_v43, %v7499_v40 }
 0x5aa   : > { %v7413_v49 = vpop.f32.mrf.mxu1 }
 0x5ab   : > { %v7563_v53 = vmax.f32 %v7531_v56, 0.0  ;;  %v7414_v31 = vadd.f32 %v7413_v49, %v7325_v61  ;;  %v7250_v56 = vpop.f32.mrf.mxu3  ;;  %v7162_v49 = vadd.f32 %v7161_v3, %v11302_v22 }
 0x5ad   : > { %7595 = vst [vmem:[%s11344_s21 + $0xa8] sm:$0xff] %v7563_v53  ;;  %v7464_v17 = vmul.f32 %v11326_v60, %v7414_v31  ;;  %v7339_v18 = vpop.f32.mrf.mxu0  ;;  %v8958_v53 = vld [vmem:[%s9421_s13 + $0xd0] sm:$0xff]  ;;  %v7337_v31 = vadd.f32 %v7336_v50, %v7248_v15  ;;  %v7163_v27 = vpop.f32.mrf.mxu2  ;;  %v7251_v44 = vadd.f32 %v7250_v56, %v7162_v49  ;;  %v8963_v15 = vld [vmem:[%s9421_s13 + $0xf8] sm:$0xff] }
 0x5af   : > { %v7500_v42 = vadd.f32 %v11331_v36, %v7464_v17 }
 0x5b1   : > { %v7532_v46 = vadd.f32 %v8954_v34, %v7500_v42 }
 0x5b2   : > { %v7415_v5 = vpop.f32.mrf.mxu1 }
 0x5b3   : > { %v7564_v45 = vmax.f32 %v7532_v46, 0.0  ;;  %v7416_v1 = vadd.f32 %v7415_v5, %v7327_v41  ;;  %v7252_v41 = vpop.f32.mrf.mxu3  ;;  %v7164_v5 = vadd.f32 %v7163_v27, %v11307_v0  ;;  %v8960_v0 = vld [vmem:[%s9421_s13 + $0xe0] sm:$0xff] }
 0x5b5   : > { %7596 = vst [vmem:[%s11344_s21 + $0xb0] sm:$0xff] %v7564_v45  ;;  %v7465_v4 = vmul.f32 %v11326_v60, %v7416_v1  ;;  %v7340_v45 = vadd.f32 %v7339_v18, %v7251_v44  ;;  %v7253_v24 = vadd.f32 %v7252_v41, %v7164_v5 }
 0x5b7   : > { %v7501_v58 = vadd.f32 %v11331_v36, %v7465_v4  ;;  %v7341_v4 = vpop.f32.mrf.mxu0 }
 0x5b9   : > { %v7533_v14 = vadd.f32 %v8955_v12, %v7501_v58  ;;  %v7166_v58 = vpop.f32.mrf.mxu2 }
 0x5ba   : > { %v7418_v63 = vpop.f32.mrf.mxu1  ;;  %v7167_v23 = vadd.f32 %v7166_v58, %v11313_v32 }
 0x5bb   : > { %v7565_v9 = vmax.f32 %v7533_v14, 0.0  ;;  %v7419_v47 = vadd.f32 %v7418_v63, %v7330_v13  ;;  %v7255_v13 = vpop.f32.mrf.mxu3 }
 0x5bc   : > { %v7256_v16 = vadd.f32 %v7255_v13, %v7167_v23 }
 0x5bd   : > { %7597 = vst [vmem:[%s11344_s21 + $0xb8] sm:$0xff] %v7565_v9  ;;  %v7466_v62 = vmul.f32 %v11326_v60, %v7419_v47  ;;  %v7342_v9 = vadd.f32 %v7341_v4, %v7253_v24 }
 0x5bf   : > { %v7502_v33 = vadd.f32 %v11331_v36, %v7466_v62  ;;  %v7344_v62 = vpop.f32.mrf.mxu0 }
 0x5c1   : > { %v7534_v10 = vadd.f32 %v8956_v7, %v7502_v33  ;;  %v7168_v6 = vpop.f32.mrf.mxu2 }
 0x5c2   : > { %v7420_v28 = vpop.f32.mrf.mxu1  ;;  %v7169_v32 = vadd.f32 %v7168_v6, %v11318_v11 }
 0x5c3   : > { %v7566_v52 = vmax.f32 %v7534_v10, 0.0  ;;  %v7421_v48 = vadd.f32 %v7420_v28, %v7332_v39  ;;  %v7345_v10 = vadd.f32 %v7344_v62, %v7256_v16  ;;  %v8961_v39 = vld [vmem:[%s9421_s13 + $0xe8] sm:$0xff] }
 0x5c5   : > { %7598 = vst [vmem:[%s11344_s21 + $0xc0] sm:$0xff] %v7566_v52  ;;  %v7467_v57 = vmul.f32 %v11326_v60, %v7421_v48  ;;  %v7257_v52 = vpop.f32.mrf.mxu3 }
 0x5c7   : > { %v7503_v51 = vadd.f32 %v11331_v36, %v7467_v57  ;;  %v7258_v57 = vadd.f32 %v7257_v52, %v7169_v32 }
 0x5c9   : > { %v7535_v21 = vadd.f32 %v8957_v38, %v7503_v51  ;;  %v7346_v51 = vpop.f32.mrf.mxu0  ;;  %v8962_v38 = vld [vmem:[%s9421_s13 + $0xf0] sm:$0xff] }
 0x5ca   : > { %v7423_v40 = vpop.f32.mrf.mxu1  ;;  %v7347_v37 = vadd.f32 %v7346_v51, %v7258_v57 }
 0x5cb   : > { %v7567_v59 = vmax.f32 %v7535_v21, 0.0  ;;  %v7424_v8 = vadd.f32 %v7423_v40, %v7335_v25 }
 0x5cd   : > { %7599 = vst [vmem:[%s11344_s21 + $0xc8] sm:$0xff] %v7567_v59  ;;  %v7468_v43 = vmul.f32 %v11326_v60, %v7424_v8 }
 0x5cf   : > { %v7504_v61 = vadd.f32 %v11331_v36, %v7468_v43 }
 0x5d1   : > { %v7536_v2 = vadd.f32 %v8958_v53, %v7504_v61 }
 0x5d2   : > { %v7425_v17 = vpop.f32.mrf.mxu1 }
 0x5d3   : > { %v7568_v42 = vmax.f32 %v7536_v2, 0.0  ;;  %v7426_v19 = vadd.f32 %v7425_v17, %v7337_v31 }
 0x5d5   : > { %7600 = vst [vmem:[%s11344_s21 + $0xd0] sm:$0xff] %v7568_v42  ;;  %v7469_v34 = vmul.f32 %v11326_v60, %v7426_v19 }
 0x5d7   : > { %v7505_v46 = vadd.f32 %v11331_v36, %v7469_v34 }
 0x5d9   : > { %v7537_v22 = vadd.f32 %v8959_v35, %v7505_v46 }
 0x5da   : > { %v7428_v1 = vpop.f32.mrf.mxu1 }
 0x5db   : > { %v7569_v54 = vmax.f32 %v7537_v22, 0.0  ;;  %v7429_v55 = vadd.f32 %v7428_v1, %v7340_v45 }
 0x5dd   : > { %7601 = vst [vmem:[%s11344_s21 + $0xd8] sm:$0xff] %v7569_v54  ;;  %v7470_v12 = vmul.f32 %v11326_v60, %v7429_v55 }
 0x5df   : > { %v7506_v14 = vadd.f32 %v11331_v36, %v7470_v12 }
 0x5e1   : > { %v7538_v63 = vadd.f32 %v8960_v0, %v7506_v14 }
 0x5e2   : > { %v7430_v47 = vpop.f32.mrf.mxu1 }
 0x5e3   : > { %v7570_v30 = vmax.f32 %v7538_v63, 0.0  ;;  %v7431_v29 = vadd.f32 %v7430_v47, %v7342_v9 }
 0x5e5   : > { %7602 = vst [vmem:[%s11344_s21 + $0xe0] sm:$0xff] %v7570_v30  ;;  %v7471_v33 = vmul.f32 %v11326_v60, %v7431_v29 }
 0x5e7   : > { %v7507_v7 = vadd.f32 %v11331_v36, %v7471_v33 }
 0x5e9   : > { %v7539_v28 = vadd.f32 %v8961_v39, %v7507_v7 }
 0x5ea   : > { %v7433_v48 = vpop.f32.mrf.mxu1 }
 0x5eb   : > { %v7571_v26 = vmax.f32 %v7539_v28, 0.0  ;;  %v7434_v20 = vadd.f32 %v7433_v48, %v7345_v10 }
 0x5ed   : > { %7603 = vst [vmem:[%s11344_s21 + $0xe8] sm:$0xff] %v7571_v26  ;;  %v7472_v50 = vmul.f32 %v11326_v60, %v7434_v20 }
 0x5ef   : > { %v7508_v3 = vadd.f32 %v11331_v36, %v7472_v50 }
 0x5f1   : > { %v7540_v21 = vadd.f32 %v8962_v38, %v7508_v3 }
 0x5f2   : > { %v7435_v11 = vpop.f32.mrf.mxu1 }
 0x5f3   : > { %v7572_v25 = vmax.f32 %v7540_v21, 0.0  ;;  %v7436_v40 = vadd.f32 %v7435_v11, %v7347_v37 }
 0x5f5   : > { %7604 = vst [vmem:[%s11344_s21 + $0xf0] sm:$0xff] %v7572_v25  ;;  %v7473_v59 = vmul.f32 %v11326_v60, %v7436_v40 }
 0x5f7   : > { %v7509_v8 = vadd.f32 %v11331_v36, %v7473_v59 }
 0x5f9   : > { %v7541_v43 = vadd.f32 %v8963_v15, %v7509_v8 }
 0x5fb   : > { %v7573_v56 = vmax.f32 %v7541_v43, 0.0 }
 0x5fd   : > { %7605 = vst [vmem:[%s11344_s21 + $0xf8] sm:$0xff] %v7573_v56 }
 0x5fe   : > { %9207 = shalt.err (!%p9204_p10)
}
 0x5ff   : > { %s9277_s14 = smov 128   ;;  %s9278_s13 = smov 8  }
 0x600   : > { %8860 = dma.vmem_to_hbm [thread:$0]  (%p9385_p3), %s7620_s17, 4096, %s7622_s11, %s7607_s28, %s9277_s14, %s9277_s14, %s9278_s13  }
 0x601 PF: > { %s7636_s21 = sand.u32 1, %s9256_s24   ;;  %p11801_p12 = scmp.ge.s32.totalorder %s9268_s27, 2 }
 0x602   : > { %s7637_s23 = scalar_lea.sflag [#allocation6], %s7636_s21 }
 0x603   : > { %p8874_p13 = pnand %p11801_p12, %p9354_p6 }
 0x605   : > { %p8875_p0 = pneg %p8874_p13 }
 0x607   : > { %9233 = dma.done.wait (%p8875_p0), %s7637_s23, 4096  }
 0x608   : > { %9235 = vsyncadd (%p8875_p0), %s7637_s23, 4294963200  ;;  %p21_p5 = scmp.ge.s32.totalorder %s9375_s22, 4   ;;  %s11802_s24 = smov %s9260_s25 }
 0x609   : > { %s11803_s25 = smov %s9264_s26  ;;  %s11804_s26 = smov %s9391_s10 }
 0x60a   : > { %s11805_s27 = smov %s9375_s22  ;;  %23 = sbr.rel (!%p21_p5) target bundleno = 8 (0x8), region = 107 }
 0x60f   :  { %7643 = vsyncpa [#allocation5], 1 }
 0x610   :  { %7645 = vsyncpa [#allocation5 + $0x1], 1 }
 0x611   :  { %7646 = vsyncpa [#allocation8], 1 }
 0x612   :  { %7647 = vsyncpa [#allocation6], 1 }
 0x613   :  { %7649 = vsyncpa [#allocation6 + $0x1], 1 }

</bundles_post_ra>
